<compile_context>
chip_gen: v7x
topology: tpu7x:2x2x1
jax: 0.10.0
libtpu: 0.0.40
codegen_flags: <defaults>
</compile_context>

<pallas_src>
import jax
import jax.numpy as jnp
from jax.experimental import pallas as pl
from jax.experimental.pallas import tpu as pltpu

INPUT_DIM = 1
MODEL_DIM = 64
NUM_HEADS = 4
HEAD_DIM = MODEL_DIM // NUM_HEADS
FFN_DIM = 2048            # nn.TransformerEncoderLayer default dim_feedforward
NUM_ENC_LAYERS = 3
NUM_DEC_LAYERS = 3
LN_EPS = 1e-5
MAX_POS = 5000

# bf16 matmul operands / f32 accumulation (flagged numerics tradeoff vs f32 reference).
MATMUL_DTYPE = jnp.bfloat16

# Row layout of the packed per-layer "vec" arrays (each row is a length-64 f32 vector).
# encoder rows: qb kb vb ob ln1g ln1b b2 ln2g ln2b
E_QB, E_KB, E_VB, E_OB, E_LN1G, E_LN1B, E_B2, E_LN2G, E_LN2B = range(9)
N_ENC_VEC = 9
# decoder rows: sa_{qb,kb,vb,ob} ln1g ln1b ca_{qb,kb,vb,ob} ln2g ln2b b2 ln3g ln3b
(D_SQB, D_SKB, D_SVB, D_SOB, D_LN1G, D_LN1B,
 D_CQB, D_CKB, D_CVB, D_COB, D_LN2G, D_LN2B,
 D_B2, D_LN3G, D_LN3B) = range(15)
N_DEC_VEC = 15


# ----------------------------------------------------------------------------
# In-kernel helper blocks (traced inline into the fused stack kernels)
# ----------------------------------------------------------------------------

def _layer_norm(x, g, b):
    mean = jnp.mean(x, axis=-1, keepdims=True)
    cent = x - mean
    var = jnp.mean(cent * cent, axis=-1, keepdims=True)
    return cent * jax.lax.rsqrt(var + LN_EPS) * g + b


def _ffn(x, w1, b1, w2t, b2):
    h = jnp.dot(x.astype(MATMUL_DTYPE), w1, preferred_element_type=jnp.float32) + b1
    h = jnp.maximum(h, 0.0)
    # w2 stored transposed (D, FFN): contract on the lane-dense 2048 axis.
    y = jax.lax.dot_general(h.astype(MATMUL_DTYPE), w2t, (((1,), (1,)), ((), ())),
                            preferred_element_type=jnp.float32)
    return y + b2


def _attention(x_q, x_kv, qw, kw, vw, ow, qb, kb, vb, ob, s_q, s_kv, batch):
    """nn.MultiheadAttention (eval mode, no attn_mask) over batch-flattened rows.

    x_q: (batch*s_q, D) f32 and x_kv: (batch*s_kv, D) f32, batch-major row blocks.
    Cross-batch pairs are suppressed with a block-diagonal additive mask so one
    lane-dense (Nq, Nk) score matmul covers all batches; heads are separated with
    lane masks (no 16-lane slices) and the output projection is a single
    (Nq,64)@(64,64) matmul.  Weights are (in, out) in MATMUL_DTYPE; biases (1, D) f32.
    """
    nq, nk = x_q.shape[0], x_kv.shape[0]
    d = MODEL_DIM

    q = jnp.dot(x_q.astype(MATMUL_DTYPE), qw, preferred_element_type=jnp.float32) + qb
    k = jnp.dot(x_kv.astype(MATMUL_DTYPE), kw, preferred_element_type=jnp.float32) + kb
    v = jnp.dot(x_kv.astype(MATMUL_DTYPE), vw, preferred_element_type=jnp.float32) + vb
    q = q * (1.0 / float(HEAD_DIM) ** 0.5)          # softmax scale folded into q once

    # Block-diagonal batch mask (built from compares; avoids vector integer division).
    ri = jax.lax.broadcasted_iota(jnp.int32, (nq, nk), 0)
    ci = jax.lax.broadcasted_iota(jnp.int32, (nq, nk), 1)
    same = None
    for bidx in range(batch):
        rb = (ri >= bidx * s_q) & (ri < (bidx + 1) * s_q)
        cb = (ci >= bidx * s_kv) & (ci < (bidx + 1) * s_kv)
        blk = rb & cb
        same = blk if same is None else (same | blk)
    bmask = jnp.where(same, 0.0, -1e30)

    lane = jax.lax.broadcasted_iota(jnp.int32, (1, d), 1)
    k16 = k.astype(MATMUL_DTYPE)
    ctx = jnp.zeros((nq, d), jnp.float32)
    for h in range(NUM_HEADS):
        hm = ((lane >= h * HEAD_DIM) & (lane < (h + 1) * HEAD_DIM)).astype(jnp.float32)
        qh = (q * hm).astype(MATMUL_DTYPE)          # zero non-head lanes; 64-wide contraction
        vh = (v * hm).astype(MATMUL_DTYPE)
        s = jax.lax.dot_general(qh, k16, (((1,), (1,)), ((), ())),
                                preferred_element_type=jnp.float32)
        s = s + bmask
        s = s - jnp.max(s, axis=-1, keepdims=True)
        p = jnp.exp(s)
        p = p / jnp.sum(p, axis=-1, keepdims=True)  # exact division (reference parity)
        ctx = ctx + jnp.dot(p.astype(MATMUL_DTYPE), vh,
                            preferred_element_type=jnp.float32)
    return jnp.dot(ctx.astype(MATMUL_DTYPE), ow,
                   preferred_element_type=jnp.float32) + ob


# ----------------------------------------------------------------------------
# Fused encoder stack: embedding + NUM_ENC_LAYERS post-norm encoder layers
# ----------------------------------------------------------------------------

def encoder_stack(src2d, pos2d, emb_w, emb_b, enc, batch, seq):
    ns = src2d.shape[0]
    d, f = MODEL_DIM, FFN_DIM

    def kernel(src_ref, pos_ref, embw_ref, embb_ref,
               qw_ref, kw_ref, vw_ref, ow_ref,
               w1_ref, b1_ref, w2t_ref, vec_ref,
               mem_ref, act_ref):
        @pl.when(pl.program_id(0) == 0)
        def _():
            # input embedding (Linear(1, D) == broadcast multiply) + positional encoding
            act_ref[...] = src_ref[...] * embw_ref[...] + embb_ref[...] + pos_ref[...]

        x = act_ref[...]
        vec = vec_ref[0]
        sa = _attention(x, x,
                        qw_ref[0], kw_ref[0], vw_ref[0], ow_ref[0],
                        vec[E_QB:E_QB + 1], vec[E_KB:E_KB + 1],
                        vec[E_VB:E_VB + 1], vec[E_OB:E_OB + 1],
                        seq, seq, batch)
        x1 = _layer_norm(x + sa, vec[E_LN1G:E_LN1G + 1], vec[E_LN1B:E_LN1B + 1])
        ff = _ffn(x1, w1_ref[0], b1_ref[0], w2t_ref[0], vec[E_B2:E_B2 + 1])
        x2 = _layer_norm(x1 + ff, vec[E_LN2G:E_LN2G + 1], vec[E_LN2B:E_LN2B + 1])
        act_ref[...] = x2
        mem_ref[...] = x2   # constant out index: only the final value reaches HBM

    const = lambda l: (0, 0)
    per_layer = lambda l: (l, 0, 0)
    return pl.pallas_call(
        kernel,
        grid=(NUM_ENC_LAYERS,),
        in_specs=[
            pl.BlockSpec((ns, 1), const),               # src (flattened)
            pl.BlockSpec((ns, d), const),               # positional encoding
            pl.BlockSpec((1, d), const),                # emb_w
            pl.BlockSpec((1, d), const),                # emb_b
            pl.BlockSpec((1, d, d), per_layer),         # q weight
            pl.BlockSpec((1, d, d), per_layer),         # k weight
            pl.BlockSpec((1, d, d), per_layer),         # v weight
            pl.BlockSpec((1, d, d), per_layer),         # out-proj weight
            pl.BlockSpec((1, d, f), per_layer),         # FFN w1
            pl.BlockSpec((1, 1, f), per_layer),         # FFN b1
            pl.BlockSpec((1, d, f), per_layer),         # FFN w2 (transposed, lane-dense)
            pl.BlockSpec((1, N_ENC_VEC, d), per_layer), # packed biases / LN params
        ],
        out_specs=pl.BlockSpec((ns, d), const),
        out_shape=jax.ShapeDtypeStruct((ns, d), jnp.float32),
        scratch_shapes=[pltpu.VMEM((ns, d), jnp.float32)],
        compiler_params=pltpu.CompilerParams(dimension_semantics=("arbitrary",)),
    )(src2d, pos2d, emb_w, emb_b,
      enc["qw"], enc["kw"], enc["vw"], enc["ow"],
      enc["w1"], enc["b1"], enc["w2t"], enc["vec"])


# ----------------------------------------------------------------------------
# Fused decoder stack: embedding + NUM_DEC_LAYERS decoder layers + output head
# ----------------------------------------------------------------------------

def decoder_stack(tgt2d, pos2d, memory, emb_w, emb_b, dec, head_w, head_b,
                  batch, s_tgt, s_src):
    nt = tgt2d.shape[0]
    ns = memory.shape[0]
    d, f = MODEL_DIM, FFN_DIM

    def kernel(tgt_ref, pos_ref, embw_ref, embb_ref, mem_ref,
               sqw_ref, skw_ref, svw_ref, sow_ref,
               cqw_ref, ckw_ref, cvw_ref, cow_ref,
               w1_ref, b1_ref, w2t_ref, vec_ref,
               hw_ref, hb_ref,
               y_ref, act_ref):
        @pl.when(pl.program_id(0) == 0)
        def _():
            act_ref[...] = tgt_ref[...] * embw_ref[...] + embb_ref[...] + pos_ref[...]

        x = act_ref[...]
        mem = mem_ref[...]
        vec = vec_ref[0]
        # self-attention (no causal mask: the reference passes no tgt_mask)
        sa = _attention(x, x,
                        sqw_ref[0], skw_ref[0], svw_ref[0], sow_ref[0],
                        vec[D_SQB:D_SQB + 1], vec[D_SKB:D_SKB + 1],
                        vec[D_SVB:D_SVB + 1], vec[D_SOB:D_SOB + 1],
                        s_tgt, s_tgt, batch)
        x1 = _layer_norm(x + sa, vec[D_LN1G:D_LN1G + 1], vec[D_LN1B:D_LN1B + 1])
        # cross-attention over encoder memory
        ca = _attention(x1, mem,
                        cqw_ref[0], ckw_ref[0], cvw_ref[0], cow_ref[0],
                        vec[D_CQB:D_CQB + 1], vec[D_CKB:D_CKB + 1],
                        vec[D_CVB:D_CVB + 1], vec[D_COB:D_COB + 1],
                        s_tgt, s_src, batch)
        x2 = _layer_norm(x1 + ca, vec[D_LN2G:D_LN2G + 1], vec[D_LN2B:D_LN2B + 1])
        ff = _ffn(x2, w1_ref[0], b1_ref[0], w2t_ref[0], vec[D_B2:D_B2 + 1])
        x3 = _layer_norm(x2 + ff, vec[D_LN3G:D_LN3G + 1], vec[D_LN3B:D_LN3B + 1])
        act_ref[...] = x3
        # fused Linear(64 -> 1) head; only the last grid step's value survives writeback
        y_ref[...] = jnp.sum(x3 * hw_ref[...], axis=-1, keepdims=True) + hb_ref[...]

    const = lambda l: (0, 0)
    per_layer = lambda l: (l, 0, 0)
    return pl.pallas_call(
        kernel,
        grid=(NUM_DEC_LAYERS,),
        in_specs=[
            pl.BlockSpec((nt, 1), const),               # tgt (flattened)
            pl.BlockSpec((nt, d), const),               # positional encoding
            pl.BlockSpec((1, d), const),                # emb_w
            pl.BlockSpec((1, d), const),                # emb_b
            pl.BlockSpec((ns, d), const),               # encoder memory (resident)
            pl.BlockSpec((1, d, d), per_layer),         # self-attn q/k/v/o weights
            pl.BlockSpec((1, d, d), per_layer),
            pl.BlockSpec((1, d, d), per_layer),
            pl.BlockSpec((1, d, d), per_layer),
            pl.BlockSpec((1, d, d), per_layer),         # cross-attn q/k/v/o weights
            pl.BlockSpec((1, d, d), per_layer),
            pl.BlockSpec((1, d, d), per_layer),
            pl.BlockSpec((1, d, d), per_layer),
            pl.BlockSpec((1, d, f), per_layer),         # FFN w1
            pl.BlockSpec((1, 1, f), per_layer),         # FFN b1
            pl.BlockSpec((1, d, f), per_layer),         # FFN w2 (transposed)
            pl.BlockSpec((1, N_DEC_VEC, d), per_layer), # packed biases / LN params
            pl.BlockSpec((1, d), const),                # head weight
            pl.BlockSpec((1, 1), const),                # head bias
        ],
        out_specs=pl.BlockSpec((nt, 1), const),
        out_shape=jax.ShapeDtypeStruct((nt, 1), jnp.float32),
        scratch_shapes=[pltpu.VMEM((nt, d), jnp.float32)],
        compiler_params=pltpu.CompilerParams(dimension_semantics=("arbitrary",)),
    )(tgt2d, pos2d, emb_w, emb_b, memory,
      dec["sa_qw"], dec["sa_kw"], dec["sa_vw"], dec["sa_ow"],
      dec["ca_qw"], dec["ca_kw"], dec["ca_vw"], dec["ca_ow"],
      dec["w1"], dec["b1"], dec["w2t"], dec["vec"],
      head_w, head_b)


# ----------------------------------------------------------------------------
# Full forward (2 pallas_calls)
# ----------------------------------------------------------------------------

def transformer_forward(params, src, tgt):
    b, s_src, _ = src.shape
    _, s_tgt, _ = tgt.shape
    pos_src = jnp.tile(params["pos"][0, :s_src, :], (b, 1))   # (b*s_src, D)
    pos_tgt = jnp.tile(params["pos"][0, :s_tgt, :], (b, 1))   # (b*s_tgt, D)
    memory = encoder_stack(src.reshape(b * s_src, 1), pos_src,
                           params["emb_w"], params["emb_b"], params["enc"],
                           b, s_src)
    y = decoder_stack(tgt.reshape(b * s_tgt, 1), pos_tgt, memory,
                      params["emb_w"], params["emb_b"], params["dec"],
                      params["head_w"], params["head_b"],
                      b, s_tgt, s_src)
    return y.reshape(b, s_tgt, 1)


# ----------------------------------------------------------------------------
# Deterministic synthetic parameters (shapes follow the PyTorch __init__).
# Matmul weights are stacked per layer on a leading axis and cast once to bf16.
# ----------------------------------------------------------------------------

def init_params(key):
    d, f = MODEL_DIM, FFN_DIM
    keys = iter(jax.random.split(key, 64))

    def nrm(shape, std=0.02):
        return jax.random.normal(next(keys), shape, jnp.float32) * std

    def mm(shape):
        return nrm(shape).astype(MATMUL_DTYPE)

    def enc_params(n_layers):
        ones = jnp.ones((n_layers, 1, d), jnp.float32)
        zeros = jnp.zeros((n_layers, 1, d), jnp.float32)
        vec = jnp.concatenate(
            [nrm((n_layers, 1, d)) for _ in range(4)]    # qb kb vb ob
            + [ones, zeros]                              # ln1 gamma/beta
            + [nrm((n_layers, 1, d))]                    # b2
            + [ones, zeros],                             # ln2 gamma/beta
            axis=1)
        return {
            "qw": mm((n_layers, d, d)), "kw": mm((n_layers, d, d)),
            "vw": mm((n_layers, d, d)), "ow": mm((n_layers, d, d)),
            "w1": mm((n_layers, d, f)), "b1": nrm((n_layers, 1, f)),
            "w2t": mm((n_layers, d, f)),   # Linear(FFN->D) weight stored transposed
            "vec": vec,
        }

    def dec_params(n_layers):
        ones = jnp.ones((n_layers, 1, d), jnp.float32)
        zeros = jnp.zeros((n_layers, 1, d), jnp.float32)
        vec = jnp.concatenate(
            [nrm((n_layers, 1, d)) for _ in range(4)]    # sa: qb kb vb ob
            + [ones, zeros]                              # ln1
            + [nrm((n_layers, 1, d)) for _ in range(4)]  # ca: qb kb vb ob
            + [ones, zeros]                              # ln2
            + [nrm((n_layers, 1, d))]                    # b2
            + [ones, zeros],                             # ln3
            axis=1)
        return {
            "sa_qw": mm((n_layers, d, d)), "sa_kw": mm((n_layers, d, d)),
            "sa_vw": mm((n_layers, d, d)), "sa_ow": mm((n_layers, d, d)),
            "ca_qw": mm((n_layers, d, d)), "ca_kw": mm((n_layers, d, d)),
            "ca_vw": mm((n_layers, d, d)), "ca_ow": mm((n_layers, d, d)),
            "w1": mm((n_layers, d, f)), "b1": nrm((n_layers, 1, f)),
            "w2t": mm((n_layers, d, f)),
            "vec": vec,
        }

    return {
        "emb_w": nrm((1, d)),           # nn.Linear(1, 64) weight, stored (in, out)
        "emb_b": nrm((1, d)),
        "pos": nrm((1, MAX_POS, d)),    # nn.Parameter, nn.init.normal_(std=0.02)
        "head_w": nrm((1, d)),          # nn.Linear(64, 1) weight
        "head_b": nrm((1, 1)),
        "enc": enc_params(NUM_ENC_LAYERS),
        "dec": dec_params(NUM_DEC_LAYERS),
    }


# ----------------------------------------------------------------------------

if __name__ == "__main__":
    key = jax.random.PRNGKey(0)
    kp, ks, kt = jax.random.split(key, 3)

    params = init_params(kp)

    B, S_SRC, S_TGT = 2, 16, 8
    src = jax.random.normal(ks, (B, S_SRC, INPUT_DIM), jnp.float32)
    tgt = jax.random.normal(kt, (B, S_TGT, INPUT_DIM), jnp.float32)

    fwd = jax.jit(transformer_forward)
    out = jax.block_until_ready(fwd(params, src, tgt))

    assert out.shape == (B, S_TGT, 1), out.shape
    assert bool(jnp.all(jnp.isfinite(out)))
    print("KERNEL_OK")
</pallas_src>

<mosaic_0001>
module attributes {stable_mosaic.version = 11 : i64} {
  func.func @kernel(%arg0: i32, %arg1: memref<32x1xf32, #tpu.memory_space<vmem>>, %arg2: memref<32x64xf32, #tpu.memory_space<vmem>>, %arg3: memref<1x64xf32, #tpu.memory_space<vmem>>, %arg4: memref<1x64xf32, #tpu.memory_space<vmem>>, %arg5: memref<1x64x64xbf16, #tpu.memory_space<vmem>>, %arg6: memref<1x64x64xbf16, #tpu.memory_space<vmem>>, %arg7: memref<1x64x64xbf16, #tpu.memory_space<vmem>>, %arg8: memref<1x64x64xbf16, #tpu.memory_space<vmem>>, %arg9: memref<1x64x2048xbf16, #tpu.memory_space<vmem>>, %arg10: memref<1x1x2048xf32, #tpu.memory_space<vmem>>, %arg11: memref<1x64x2048xbf16, #tpu.memory_space<vmem>>, %arg12: memref<1x9x64xf32, #tpu.memory_space<vmem>>, %arg13: memref<32x64xf32, #tpu.memory_space<vmem>>, %arg14: memref<32x64xf32, #tpu.memory_space<vmem>>) attributes {dimension_semantics = [#tpu.dimension_semantics<arbitrary>], iteration_bounds = array<i64: 3>, scalar_prefetch = 0 : i64, scratch_operands = 1 : i64, tpu.core_type = #tpu.core_type<tc>, window_params = [{pipeline_mode = #tpu.pipeline_mode<synchronous>, transform_indices = @transform_0, window_bounds = array<i64: 32, 1>}, {pipeline_mode = #tpu.pipeline_mode<synchronous>, transform_indices = @transform_1, window_bounds = array<i64: 32, 64>}, {pipeline_mode = #tpu.pipeline_mode<synchronous>, transform_indices = @transform_2, window_bounds = array<i64: 1, 64>}, {pipeline_mode = #tpu.pipeline_mode<synchronous>, transform_indices = @transform_3, window_bounds = array<i64: 1, 64>}, {transform_indices = @transform_4, window_bounds = array<i64: 1, 64, 64>}, {transform_indices = @transform_5, window_bounds = array<i64: 1, 64, 64>}, {transform_indices = @transform_6, window_bounds = array<i64: 1, 64, 64>}, {transform_indices = @transform_7, window_bounds = array<i64: 1, 64, 64>}, {transform_indices = @transform_8, window_bounds = array<i64: 1, 64, 2048>}, {transform_indices = @transform_9, window_bounds = array<i64: 1, 1, 2048>}, {transform_indices = @transform_10, window_bounds = array<i64: 1, 64, 2048>}, {transform_indices = @transform_11, window_bounds = array<i64: 1, 9, 64>}, {pipeline_mode = #tpu.pipeline_mode<synchronous>, transform_indices = @transform_12, window_bounds = array<i64: 32, 64>}]} {
    %c0_i32 = arith.constant 0 : i32
    %0 = arith.cmpi eq, %arg0, %c0_i32 : i32
    %1 = arith.extui %0 : i1 to i32
    %c0_i32_0 = arith.constant 0 : i32
    %2 = arith.cmpi ne, %1, %c0_i32_0 : i32
    scf.if %2 {
      %c0_78 = arith.constant 0 : index
      %c0_79 = arith.constant 0 : index
      %240 = vector.load %arg1[%c0_78, %c0_79] : memref<32x1xf32, #tpu.memory_space<vmem>>, vector<32x1xf32>
      %c0_80 = arith.constant 0 : index
      %c0_81 = arith.constant 0 : index
      %241 = vector.load %arg3[%c0_80, %c0_81] : memref<1x64xf32, #tpu.memory_space<vmem>>, vector<1x64xf32>
      %242 = vector.broadcast %240 : vector<32x1xf32> to vector<32x64xf32>
      %243 = vector.broadcast %241 : vector<1x64xf32> to vector<32x64xf32>
      %244 = arith.mulf %242, %243 : vector<32x64xf32>
      %c0_82 = arith.constant 0 : index
      %c0_83 = arith.constant 0 : index
      %245 = vector.load %arg4[%c0_82, %c0_83] : memref<1x64xf32, #tpu.memory_space<vmem>>, vector<1x64xf32>
      %246 = vector.broadcast %245 : vector<1x64xf32> to vector<32x64xf32>
      %247 = arith.addf %244, %246 : vector<32x64xf32>
      %c0_84 = arith.constant 0 : index
      %c0_85 = arith.constant 0 : index
      %248 = vector.load %arg2[%c0_84, %c0_85] : memref<32x64xf32, #tpu.memory_space<vmem>>, vector<32x64xf32>
      %249 = arith.addf %247, %248 : vector<32x64xf32>
      %c0_86 = arith.constant 0 : index
      %c0_87 = arith.constant 0 : index
      %250 = vector.load %arg14[%c0_86, %c0_87] : memref<32x64xf32, #tpu.memory_space<vmem>>, vector<32x64xf32>
      tpu.vector_store %arg14[%c0_86, %c0_87], %249 {strides = array<i32>} : memref<32x64xf32, #tpu.memory_space<vmem>>, vector<32x64xf32>,
    } else {
    }
    %c0 = arith.constant 0 : index
    %c0_1 = arith.constant 0 : index
    %3 = vector.load %arg14[%c0, %c0_1] : memref<32x64xf32, #tpu.memory_space<vmem>>, vector<32x64xf32>
    %c0_2 = arith.constant 0 : index
    %c0_3 = arith.constant 0 : index
    %c0_4 = arith.constant 0 : index
    %4 = vector.load %arg12[%c0_2, %c0_3, %c0_4] : memref<1x9x64xf32, #tpu.memory_space<vmem>>, vector<1x9x64xf32>
    %5 = vector.shape_cast %4 : vector<1x9x64xf32> to vector<9x64xf32>
    %c0_5 = arith.constant 0 : index
    %c0_6 = arith.constant 0 : index
    %c0_7 = arith.constant 0 : index
    %6 = vector.load %arg5[%c0_5, %c0_6, %c0_7] : memref<1x64x64xbf16, #tpu.memory_space<vmem>>, vector<1x64x64xbf16>
    %7 = vector.shape_cast %6 : vector<1x64x64xbf16> to vector<64x64xbf16>
    %c0_8 = arith.constant 0 : index
    %c0_9 = arith.constant 0 : index
    %c0_10 = arith.constant 0 : index
    %8 = vector.load %arg6[%c0_8, %c0_9, %c0_10] : memref<1x64x64xbf16, #tpu.memory_space<vmem>>, vector<1x64x64xbf16>
    %9 = vector.shape_cast %8 : vector<1x64x64xbf16> to vector<64x64xbf16>
    %c0_11 = arith.constant 0 : index
    %c0_12 = arith.constant 0 : index
    %c0_13 = arith.constant 0 : index
    %10 = vector.load %arg7[%c0_11, %c0_12, %c0_13] : memref<1x64x64xbf16, #tpu.memory_space<vmem>>, vector<1x64x64xbf16>
    %11 = vector.shape_cast %10 : vector<1x64x64xbf16> to vector<64x64xbf16>
    %c0_14 = arith.constant 0 : index
    %c0_15 = arith.constant 0 : index
    %c0_16 = arith.constant 0 : index
    %12 = vector.load %arg8[%c0_14, %c0_15, %c0_16] : memref<1x64x64xbf16, #tpu.memory_space<vmem>>, vector<1x64x64xbf16>
    %13 = vector.shape_cast %12 : vector<1x64x64xbf16> to vector<64x64xbf16>
    %14 = vector.extract_strided_slice %5 {offsets = [0, 0], sizes = [1, 64], strides = [1, 1]} : vector<9x64xf32> to vector<1x64xf32>
    %15 = vector.extract_strided_slice %5 {offsets = [1, 0], sizes = [1, 64], strides = [1, 1]} : vector<9x64xf32> to vector<1x64xf32>
    %16 = vector.extract_strided_slice %5 {offsets = [2, 0], sizes = [1, 64], strides = [1, 1]} : vector<9x64xf32> to vector<1x64xf32>
    %17 = vector.extract_strided_slice %5 {offsets = [3, 0], sizes = [1, 64], strides = [1, 1]} : vector<9x64xf32> to vector<1x64xf32>
    %18 = arith.truncf %3 : vector<32x64xf32> to vector<32x64xbf16>
    %cst = arith.constant dense<0.000000e+00> : vector<32x64xf32>
    %19 = tpu.matmul %18, %7, %cst {dimension_numbers = #tpu.dot_dimension_numbers<[1], [0], [0], [1], [0, 0, 1, 1], [], []>} : vector<32x64xbf16>, vector<64x64xbf16>, vector<32x64xf32> -> vector<32x64xf32>
    %20 = vector.broadcast %14 : vector<1x64xf32> to vector<32x64xf32>
    %21 = arith.addf %19, %20 : vector<32x64xf32>
    %22 = arith.truncf %3 : vector<32x64xf32> to vector<32x64xbf16>
    %cst_17 = arith.constant dense<0.000000e+00> : vector<32x64xf32>
    %23 = tpu.matmul %22, %9, %cst_17 {dimension_numbers = #tpu.dot_dimension_numbers<[1], [0], [0], [1], [0, 0, 1, 1], [], []>} : vector<32x64xbf16>, vector<64x64xbf16>, vector<32x64xf32> -> vector<32x64xf32>
    %24 = vector.broadcast %15 : vector<1x64xf32> to vector<32x64xf32>
    %25 = arith.addf %23, %24 : vector<32x64xf32>
    %26 = arith.truncf %3 : vector<32x64xf32> to vector<32x64xbf16>
    %cst_18 = arith.constant dense<0.000000e+00> : vector<32x64xf32>
    %27 = tpu.matmul %26, %11, %cst_18 {dimension_numbers = #tpu.dot_dimension_numbers<[1], [0], [0], [1], [0, 0, 1, 1], [], []>} : vector<32x64xbf16>, vector<64x64xbf16>, vector<32x64xf32> -> vector<32x64xf32>
    %28 = vector.broadcast %16 : vector<1x64xf32> to vector<32x64xf32>
    %29 = arith.addf %27, %28 : vector<32x64xf32>
    %cst_19 = arith.constant 2.500000e-01 : f32
    %30 = vector.broadcast %cst_19 : f32 to vector<32x64xf32>
    %31 = arith.mulf %21, %30 : vector<32x64xf32>
    %32 = tpu.iota {dimensions = array<i32: 0>} : vector<32x32xi32>
    %33 = tpu.iota {dimensions = array<i32: 1>} : vector<32x32xi32>
    %c0_i32_20 = arith.constant 0 : i32
    %34 = vector.broadcast %c0_i32_20 : i32 to vector<32x32xi32>
    %35 = arith.cmpi sge, %32, %34 : vector<32x32xi32>
    %c16_i32 = arith.constant 16 : i32
    %36 = vector.broadcast %c16_i32 : i32 to vector<32x32xi32>
    %37 = arith.cmpi slt, %32, %36 : vector<32x32xi32>
    %38 = arith.andi %35, %37 : vector<32x32xi1>
    %c0_i32_21 = arith.constant 0 : i32
    %39 = vector.broadcast %c0_i32_21 : i32 to vector<32x32xi32>
    %40 = arith.cmpi sge, %33, %39 : vector<32x32xi32>
    %c16_i32_22 = arith.constant 16 : i32
    %41 = vector.broadcast %c16_i32_22 : i32 to vector<32x32xi32>
    %42 = arith.cmpi slt, %33, %41 : vector<32x32xi32>
    %43 = arith.andi %40, %42 : vector<32x32xi1>
    %44 = arith.andi %38, %43 : vector<32x32xi1>
    %c16_i32_23 = arith.constant 16 : i32
    %45 = vector.broadcast %c16_i32_23 : i32 to vector<32x32xi32>
    %46 = arith.cmpi sge, %32, %45 : vector<32x32xi32>
    %c32_i32 = arith.constant 32 : i32
    %47 = vector.broadcast %c32_i32 : i32 to vector<32x32xi32>
    %48 = arith.cmpi slt, %32, %47 : vector<32x32xi32>
    %49 = arith.andi %46, %48 : vector<32x32xi1>
    %c16_i32_24 = arith.constant 16 : i32
    %50 = vector.broadcast %c16_i32_24 : i32 to vector<32x32xi32>
    %51 = arith.cmpi sge, %33, %50 : vector<32x32xi32>
    %c32_i32_25 = arith.constant 32 : i32
    %52 = vector.broadcast %c32_i32_25 : i32 to vector<32x32xi32>
    %53 = arith.cmpi slt, %33, %52 : vector<32x32xi32>
    %54 = arith.andi %51, %53 : vector<32x32xi1>
    %55 = arith.andi %49, %54 : vector<32x32xi1>
    %56 = arith.ori %44, %55 : vector<32x32xi1>
    %cst_26 = arith.constant 0.000000e+00 : f32
    %cst_27 = arith.constant -1.000000e+30 : f32
    %57 = vector.broadcast %cst_26 : f32 to vector<32x32xf32>
    %58 = vector.broadcast %cst_27 : f32 to vector<32x32xf32>
    %59 = arith.select %56, %57, %58 : vector<32x32xi1>, vector<32x32xf32>
    %60 = tpu.iota {dimensions = array<i32: 1>} : vector<1x64xi32>
    %61 = arith.truncf %25 : vector<32x64xf32> to vector<32x64xbf16>
    %cst_28 = arith.constant 0.000000e+00 : f32
    %62 = vector.broadcast %cst_28 : f32 to vector<32x64xf32>
    %c0_i32_29 = arith.constant 0 : i32
    %63 = vector.broadcast %c0_i32_29 : i32 to vector<1x64xi32>
    %64 = arith.cmpi sge, %60, %63 : vector<1x64xi32>
    %c16_i32_30 = arith.constant 16 : i32
    %65 = vector.broadcast %c16_i32_30 : i32 to vector<1x64xi32>
    %66 = arith.cmpi slt, %60, %65 : vector<1x64xi32>
    %67 = arith.andi %64, %66 : vector<1x64xi1>
    %68 = arith.extui %67 : vector<1x64xi1> to vector<1x64xi32>
    %69 = arith.sitofp %68 : vector<1x64xi32> to vector<1x64xf32>
    %70 = vector.broadcast %69 : vector<1x64xf32> to vector<32x64xf32>
    %71 = arith.mulf %31, %70 : vector<32x64xf32>
    %72 = arith.truncf %71 : vector<32x64xf32> to vector<32x64xbf16>
    %73 = vector.broadcast %69 : vector<1x64xf32> to vector<32x64xf32>
    %74 = arith.mulf %29, %73 : vector<32x64xf32>
    %75 = arith.truncf %74 : vector<32x64xf32> to vector<32x64xbf16>
    %cst_31 = arith.constant dense<0.000000e+00> : vector<32x32xf32>
    %76 = tpu.matmul %72, %61, %cst_31 {dimension_numbers = #tpu.dot_dimension_numbers<[1], [1], [0], [0], [0, 0, 1, 0], [], []>} : vector<32x64xbf16>, vector<32x64xbf16>, vector<32x32xf32> -> vector<32x32xf32>
    %77 = arith.addf %76, %59 : vector<32x32xf32>
    %cst_32 = arith.constant dense<0xFF800000> : vector<32xf32>
    %78 = vector.multi_reduction <maximumf>, %77, %cst_32 [1] : vector<32x32xf32> to vector<32xf32>
    %79 = vector.shape_cast %78 : vector<32xf32> to vector<32x1xf32>
    %80 = vector.broadcast %79 : vector<32x1xf32> to vector<32x32xf32>
    %81 = arith.subf %77, %80 : vector<32x32xf32>
    %82 = math.exp %81 : vector<32x32xf32>
    %cst_33 = arith.constant dense<0.000000e+00> : vector<32xf32>
    %83 = vector.multi_reduction <add>, %82, %cst_33 [1] : vector<32x32xf32> to vector<32xf32>
    %84 = vector.shape_cast %83 : vector<32xf32> to vector<32x1xf32>
    %85 = vector.broadcast %84 : vector<32x1xf32> to vector<32x32xf32>
    %86 = arith.divf %82, %85 : vector<32x32xf32>
    %87 = arith.truncf %86 : vector<32x32xf32> to vector<32x32xbf16>
    %cst_34 = arith.constant dense<0.000000e+00> : vector<32x64xf32>
    %88 = tpu.matmul %87, %75, %cst_34 {dimension_numbers = #tpu.dot_dimension_numbers<[1], [0], [0], [1], [0, 0, 1, 1], [], []>} : vector<32x32xbf16>, vector<32x64xbf16>, vector<32x64xf32> -> vector<32x64xf32>
    %89 = arith.addf %62, %88 : vector<32x64xf32>
    %c16_i32_35 = arith.constant 16 : i32
    %90 = vector.broadcast %c16_i32_35 : i32 to vector<1x64xi32>
    %91 = arith.cmpi sge, %60, %90 : vector<1x64xi32>
    %c32_i32_36 = arith.constant 32 : i32
    %92 = vector.broadcast %c32_i32_36 : i32 to vector<1x64xi32>
    %93 = arith.cmpi slt, %60, %92 : vector<1x64xi32>
    %94 = arith.andi %91, %93 : vector<1x64xi1>
    %95 = arith.extui %94 : vector<1x64xi1> to vector<1x64xi32>
    %96 = arith.sitofp %95 : vector<1x64xi32> to vector<1x64xf32>
    %97 = vector.broadcast %96 : vector<1x64xf32> to vector<32x64xf32>
    %98 = arith.mulf %31, %97 : vector<32x64xf32>
    %99 = arith.truncf %98 : vector<32x64xf32> to vector<32x64xbf16>
    %100 = vector.broadcast %96 : vector<1x64xf32> to vector<32x64xf32>
    %101 = arith.mulf %29, %100 : vector<32x64xf32>
    %102 = arith.truncf %101 : vector<32x64xf32> to vector<32x64xbf16>
    %cst_37 = arith.constant dense<0.000000e+00> : vector<32x32xf32>
    %103 = tpu.matmul %99, %61, %cst_37 {dimension_numbers = #tpu.dot_dimension_numbers<[1], [1], [0], [0], [0, 0, 1, 0], [], []>} : vector<32x64xbf16>, vector<32x64xbf16>, vector<32x32xf32> -> vector<32x32xf32>
    %104 = arith.addf %103, %59 : vector<32x32xf32>
    %cst_38 = arith.constant dense<0xFF800000> : vector<32xf32>
    %105 = vector.multi_reduction <maximumf>, %104, %cst_38 [1] : vector<32x32xf32> to vector<32xf32>
    %106 = vector.shape_cast %105 : vector<32xf32> to vector<32x1xf32>
    %107 = vector.broadcast %106 : vector<32x1xf32> to vector<32x32xf32>
    %108 = arith.subf %104, %107 : vector<32x32xf32>
    %109 = math.exp %108 : vector<32x32xf32>
    %cst_39 = arith.constant dense<0.000000e+00> : vector<32xf32>
    %110 = vector.multi_reduction <add>, %109, %cst_39 [1] : vector<32x32xf32> to vector<32xf32>
    %111 = vector.shape_cast %110 : vector<32xf32> to vector<32x1xf32>
    %112 = vector.broadcast %111 : vector<32x1xf32> to vector<32x32xf32>
    %113 = arith.divf %109, %112 : vector<32x32xf32>
    %114 = arith.truncf %113 : vector<32x32xf32> to vector<32x32xbf16>
    %cst_40 = arith.constant dense<0.000000e+00> : vector<32x64xf32>
    %115 = tpu.matmul %114, %102, %cst_40 {dimension_numbers = #tpu.dot_dimension_numbers<[1], [0], [0], [1], [0, 0, 1, 1], [], []>} : vector<32x32xbf16>, vector<32x64xbf16>, vector<32x64xf32> -> vector<32x64xf32>
    %116 = arith.addf %89, %115 : vector<32x64xf32>
    %c32_i32_41 = arith.constant 32 : i32
    %117 = vector.broadcast %c32_i32_41 : i32 to vector<1x64xi32>
    %118 = arith.cmpi sge, %60, %117 : vector<1x64xi32>
    %c48_i32 = arith.constant 48 : i32
    %119 = vector.broadcast %c48_i32 : i32 to vector<1x64xi32>
    %120 = arith.cmpi slt, %60, %119 : vector<1x64xi32>
    %121 = arith.andi %118, %120 : vector<1x64xi1>
    %122 = arith.extui %121 : vector<1x64xi1> to vector<1x64xi32>
    %123 = arith.sitofp %122 : vector<1x64xi32> to vector<1x64xf32>
    %124 = vector.broadcast %123 : vector<1x64xf32> to vector<32x64xf32>
    %125 = arith.mulf %31, %124 : vector<32x64xf32>
    %126 = arith.truncf %125 : vector<32x64xf32> to vector<32x64xbf16>
    %127 = vector.broadcast %123 : vector<1x64xf32> to vector<32x64xf32>
    %128 = arith.mulf %29, %127 : vector<32x64xf32>
    %129 = arith.truncf %128 : vector<32x64xf32> to vector<32x64xbf16>
    %cst_42 = arith.constant dense<0.000000e+00> : vector<32x32xf32>
    %130 = tpu.matmul %126, %61, %cst_42 {dimension_numbers = #tpu.dot_dimension_numbers<[1], [1], [0], [0], [0, 0, 1, 0], [], []>} : vector<32x64xbf16>, vector<32x64xbf16>, vector<32x32xf32> -> vector<32x32xf32>
    %131 = arith.addf %130, %59 : vector<32x32xf32>
    %cst_43 = arith.constant dense<0xFF800000> : vector<32xf32>
    %132 = vector.multi_reduction <maximumf>, %131, %cst_43 [1] : vector<32x32xf32> to vector<32xf32>
    %133 = vector.shape_cast %132 : vector<32xf32> to vector<32x1xf32>
    %134 = vector.broadcast %133 : vector<32x1xf32> to vector<32x32xf32>
    %135 = arith.subf %131, %134 : vector<32x32xf32>
    %136 = math.exp %135 : vector<32x32xf32>
    %cst_44 = arith.constant dense<0.000000e+00> : vector<32xf32>
    %137 = vector.multi_reduction <add>, %136, %cst_44 [1] : vector<32x32xf32> to vector<32xf32>
    %138 = vector.shape_cast %137 : vector<32xf32> to vector<32x1xf32>
    %139 = vector.broadcast %138 : vector<32x1xf32> to vector<32x32xf32>
    %140 = arith.divf %136, %139 : vector<32x32xf32>
    %141 = arith.truncf %140 : vector<32x32xf32> to vector<32x32xbf16>
    %cst_45 = arith.constant dense<0.000000e+00> : vector<32x64xf32>
    %142 = tpu.matmul %141, %129, %cst_45 {dimension_numbers = #tpu.dot_dimension_numbers<[1], [0], [0], [1], [0, 0, 1, 1], [], []>} : vector<32x32xbf16>, vector<32x64xbf16>, vector<32x64xf32> -> vector<32x64xf32>
    %143 = arith.addf %116, %142 : vector<32x64xf32>
    %c48_i32_46 = arith.constant 48 : i32
    %144 = vector.broadcast %c48_i32_46 : i32 to vector<1x64xi32>
    %145 = arith.cmpi sge, %60, %144 : vector<1x64xi32>
    %c64_i32 = arith.constant 64 : i32
    %146 = vector.broadcast %c64_i32 : i32 to vector<1x64xi32>
    %147 = arith.cmpi slt, %60, %146 : vector<1x64xi32>
    %148 = arith.andi %145, %147 : vector<1x64xi1>
    %149 = arith.extui %148 : vector<1x64xi1> to vector<1x64xi32>
    %150 = arith.sitofp %149 : vector<1x64xi32> to vector<1x64xf32>
    %151 = vector.broadcast %150 : vector<1x64xf32> to vector<32x64xf32>
    %152 = arith.mulf %31, %151 : vector<32x64xf32>
    %153 = arith.truncf %152 : vector<32x64xf32> to vector<32x64xbf16>
    %154 = vector.broadcast %150 : vector<1x64xf32> to vector<32x64xf32>
    %155 = arith.mulf %29, %154 : vector<32x64xf32>
    %156 = arith.truncf %155 : vector<32x64xf32> to vector<32x64xbf16>
    %cst_47 = arith.constant dense<0.000000e+00> : vector<32x32xf32>
    %157 = tpu.matmul %153, %61, %cst_47 {dimension_numbers = #tpu.dot_dimension_numbers<[1], [1], [0], [0], [0, 0, 1, 0], [], []>} : vector<32x64xbf16>, vector<32x64xbf16>, vector<32x32xf32> -> vector<32x32xf32>
    %158 = arith.addf %157, %59 : vector<32x32xf32>
    %cst_48 = arith.constant dense<0xFF800000> : vector<32xf32>
    %159 = vector.multi_reduction <maximumf>, %158, %cst_48 [1] : vector<32x32xf32> to vector<32xf32>
    %160 = vector.shape_cast %159 : vector<32xf32> to vector<32x1xf32>
    %161 = vector.broadcast %160 : vector<32x1xf32> to vector<32x32xf32>
    %162 = arith.subf %158, %161 : vector<32x32xf32>
    %163 = math.exp %162 : vector<32x32xf32>
    %cst_49 = arith.constant dense<0.000000e+00> : vector<32xf32>
    %164 = vector.multi_reduction <add>, %163, %cst_49 [1] : vector<32x32xf32> to vector<32xf32>
    %165 = vector.shape_cast %164 : vector<32xf32> to vector<32x1xf32>
    %166 = vector.broadcast %165 : vector<32x1xf32> to vector<32x32xf32>
    %167 = arith.divf %163, %166 : vector<32x32xf32>
    %168 = arith.truncf %167 : vector<32x32xf32> to vector<32x32xbf16>
    %cst_50 = arith.constant dense<0.000000e+00> : vector<32x64xf32>
    %169 = tpu.matmul %168, %156, %cst_50 {dimension_numbers = #tpu.dot_dimension_numbers<[1], [0], [0], [1], [0, 0, 1, 1], [], []>} : vector<32x32xbf16>, vector<32x64xbf16>, vector<32x64xf32> -> vector<32x64xf32>
    %170 = arith.addf %143, %169 : vector<32x64xf32>
    %171 = arith.truncf %170 : vector<32x64xf32> to vector<32x64xbf16>
    %cst_51 = arith.constant dense<0.000000e+00> : vector<32x64xf32>
    %172 = tpu.matmul %171, %13, %cst_51 {dimension_numbers = #tpu.dot_dimension_numbers<[1], [0], [0], [1], [0, 0, 1, 1], [], []>} : vector<32x64xbf16>, vector<64x64xbf16>, vector<32x64xf32> -> vector<32x64xf32>
    %173 = vector.broadcast %17 : vector<1x64xf32> to vector<32x64xf32>
    %174 = arith.addf %172, %173 : vector<32x64xf32>
    %175 = arith.addf %3, %174 : vector<32x64xf32>
    %176 = vector.extract_strided_slice %5 {offsets = [4, 0], sizes = [1, 64], strides = [1, 1]} : vector<9x64xf32> to vector<1x64xf32>
    %177 = vector.extract_strided_slice %5 {offsets = [5, 0], sizes = [1, 64], strides = [1, 1]} : vector<9x64xf32> to vector<1x64xf32>
    %cst_52 = arith.constant dense<0.000000e+00> : vector<32xf32>
    %178 = vector.multi_reduction <add>, %175, %cst_52 [1] : vector<32x64xf32> to vector<32xf32>
    %179 = vector.shape_cast %178 : vector<32xf32> to vector<32x1xf32>
    %cst_53 = arith.constant 6.400000e+01 : f32
    %180 = vector.broadcast %cst_53 : f32 to vector<32x1xf32>
    %181 = arith.divf %179, %180 : vector<32x1xf32>
    %182 = vector.broadcast %181 : vector<32x1xf32> to vector<32x64xf32>
    %183 = arith.subf %175, %182 : vector<32x64xf32>
    %184 = arith.mulf %183, %183 : vector<32x64xf32>
    %cst_54 = arith.constant dense<0.000000e+00> : vector<32xf32>
    %185 = vector.multi_reduction <add>, %184, %cst_54 [1] : vector<32x64xf32> to vector<32xf32>
    %186 = vector.shape_cast %185 : vector<32xf32> to vector<32x1xf32>
    %cst_55 = arith.constant 6.400000e+01 : f32
    %187 = vector.broadcast %cst_55 : f32 to vector<32x1xf32>
    %188 = arith.divf %186, %187 : vector<32x1xf32>
    %cst_56 = arith.constant 9.99999974E-6 : f32
    %189 = vector.broadcast %cst_56 : f32 to vector<32x1xf32>
    %190 = arith.addf %188, %189 : vector<32x1xf32>
    %191 = math.rsqrt %190 : vector<32x1xf32>
    %192 = vector.broadcast %191 : vector<32x1xf32> to vector<32x64xf32>
    %193 = arith.mulf %183, %192 : vector<32x64xf32>
    %194 = vector.broadcast %176 : vector<1x64xf32> to vector<32x64xf32>
    %195 = arith.mulf %193, %194 : vector<32x64xf32>
    %196 = vector.broadcast %177 : vector<1x64xf32> to vector<32x64xf32>
    %197 = arith.addf %195, %196 : vector<32x64xf32>
    %c0_57 = arith.constant 0 : index
    %c0_58 = arith.constant 0 : index
    %c0_59 = arith.constant 0 : index
    %198 = vector.load %arg9[%c0_57, %c0_58, %c0_59] : memref<1x64x2048xbf16, #tpu.memory_space<vmem>>, vector<1x64x2048xbf16>
    %199 = vector.shape_cast %198 : vector<1x64x2048xbf16> to vector<64x2048xbf16>
    %c0_60 = arith.constant 0 : index
    %c0_61 = arith.constant 0 : index
    %c0_62 = arith.constant 0 : index
    %200 = vector.load %arg10[%c0_60, %c0_61, %c0_62] : memref<1x1x2048xf32, #tpu.memory_space<vmem>>, vector<1x1x2048xf32>
    %201 = vector.shape_cast %200 : vector<1x1x2048xf32> to vector<1x2048xf32>
    %c0_63 = arith.constant 0 : index
    %c0_64 = arith.constant 0 : index
    %c0_65 = arith.constant 0 : index
    %202 = vector.load %arg11[%c0_63, %c0_64, %c0_65] : memref<1x64x2048xbf16, #tpu.memory_space<vmem>>, vector<1x64x2048xbf16>
    %203 = vector.shape_cast %202 : vector<1x64x2048xbf16> to vector<64x2048xbf16>
    %204 = vector.extract_strided_slice %5 {offsets = [6, 0], sizes = [1, 64], strides = [1, 1]} : vector<9x64xf32> to vector<1x64xf32>
    %205 = arith.truncf %197 : vector<32x64xf32> to vector<32x64xbf16>
    %cst_66 = arith.constant dense<0.000000e+00> : vector<32x2048xf32>
    %206 = tpu.matmul %205, %199, %cst_66 {dimension_numbers = #tpu.dot_dimension_numbers<[1], [0], [0], [1], [0, 0, 1, 1], [], []>} : vector<32x64xbf16>, vector<64x2048xbf16>, vector<32x2048xf32> -> vector<32x2048xf32>
    %207 = vector.broadcast %201 : vector<1x2048xf32> to vector<32x2048xf32>
    %208 = arith.addf %206, %207 : vector<32x2048xf32>
    %cst_67 = arith.constant 0.000000e+00 : f32
    %209 = vector.broadcast %cst_67 : f32 to vector<32x2048xf32>
    %210 = arith.maximumf %208, %209 : vector<32x2048xf32>
    %211 = arith.truncf %210 : vector<32x2048xf32> to vector<32x2048xbf16>
    %cst_68 = arith.constant dense<0.000000e+00> : vector<32x64xf32>
    %212 = tpu.matmul %211, %203, %cst_68 {dimension_numbers = #tpu.dot_dimension_numbers<[1], [1], [0], [0], [0, 0, 1, 0], [], []>} : vector<32x2048xbf16>, vector<64x2048xbf16>, vector<32x64xf32> -> vector<32x64xf32>
    %213 = vector.broadcast %204 : vector<1x64xf32> to vector<32x64xf32>
    %214 = arith.addf %212, %213 : vector<32x64xf32>
    %215 = arith.addf %197, %214 : vector<32x64xf32>
    %216 = vector.extract_strided_slice %5 {offsets = [7, 0], sizes = [1, 64], strides = [1, 1]} : vector<9x64xf32> to vector<1x64xf32>
    %217 = vector.extract_strided_slice %5 {offsets = [8, 0], sizes = [1, 64], strides = [1, 1]} : vector<9x64xf32> to vector<1x64xf32>
    %cst_69 = arith.constant dense<0.000000e+00> : vector<32xf32>
    %218 = vector.multi_reduction <add>, %215, %cst_69 [1] : vector<32x64xf32> to vector<32xf32>
    %219 = vector.shape_cast %218 : vector<32xf32> to vector<32x1xf32>
    %cst_70 = arith.constant 6.400000e+01 : f32
    %220 = vector.broadcast %cst_70 : f32 to vector<32x1xf32>
    %221 = arith.divf %219, %220 : vector<32x1xf32>
    %222 = vector.broadcast %221 : vector<32x1xf32> to vector<32x64xf32>
    %223 = arith.subf %215, %222 : vector<32x64xf32>
    %224 = arith.mulf %223, %223 : vector<32x64xf32>
    %cst_71 = arith.constant dense<0.000000e+00> : vector<32xf32>
    %225 = vector.multi_reduction <add>, %224, %cst_71 [1] : vector<32x64xf32> to vector<32xf32>
    %226 = vector.shape_cast %225 : vector<32xf32> to vector<32x1xf32>
    %cst_72 = arith.constant 6.400000e+01 : f32
    %227 = vector.broadcast %cst_72 : f32 to vector<32x1xf32>
    %228 = arith.divf %226, %227 : vector<32x1xf32>
    %cst_73 = arith.constant 9.99999974E-6 : f32
    %229 = vector.broadcast %cst_73 : f32 to vector<32x1xf32>
    %230 = arith.addf %228, %229 : vector<32x1xf32>
    %231 = math.rsqrt %230 : vector<32x1xf32>
    %232 = vector.broadcast %231 : vector<32x1xf32> to vector<32x64xf32>
    %233 = arith.mulf %223, %232 : vector<32x64xf32>
    %234 = vector.broadcast %216 : vector<1x64xf32> to vector<32x64xf32>
    %235 = arith.mulf %233, %234 : vector<32x64xf32>
    %236 = vector.broadcast %217 : vector<1x64xf32> to vector<32x64xf32>
    %237 = arith.addf %235, %236 : vector<32x64xf32>
    %c0_74 = arith.constant 0 : index
    %c0_75 = arith.constant 0 : index
    %238 = vector.load %arg14[%c0_74, %c0_75] : memref<32x64xf32, #tpu.memory_space<vmem>>, vector<32x64xf32>
    tpu.vector_store %arg14[%c0_74, %c0_75], %237 {strides = array<i32>} : memref<32x64xf32, #tpu.memory_space<vmem>>, vector<32x64xf32>,
    %c0_76 = arith.constant 0 : index
    %c0_77 = arith.constant 0 : index
    %239 = vector.load %arg13[%c0_76, %c0_77] : memref<32x64xf32, #tpu.memory_space<vmem>>, vector<32x64xf32>
    tpu.vector_store %arg13[%c0_76, %c0_77], %237 {strides = array<i32>} : memref<32x64xf32, #tpu.memory_space<vmem>>, vector<32x64xf32>,
    return
  }
  func.func @transform_0(%arg0: i32) -> (i32, i32) {
    %c0_i32 = arith.constant 0 : i32
    %c0_i32_0 = arith.constant 0 : i32
    %c0_i32_1 = arith.constant 0 : i32
    return %c0_i32, %c0_i32_0 : i32, i32
  }
  func.func @transform_1(%arg0: i32) -> (i32, i32) {
    %c0_i32 = arith.constant 0 : i32
    %c0_i32_0 = arith.constant 0 : i32
    %c0_i32_1 = arith.constant 0 : i32
    return %c0_i32, %c0_i32_0 : i32, i32
  }
  func.func @transform_2(%arg0: i32) -> (i32, i32) {
    %c0_i32 = arith.constant 0 : i32
    %c0_i32_0 = arith.constant 0 : i32
    %c0_i32_1 = arith.constant 0 : i32
    return %c0_i32, %c0_i32_0 : i32, i32
  }
  func.func @transform_3(%arg0: i32) -> (i32, i32) {
    %c0_i32 = arith.constant 0 : i32
    %c0_i32_0 = arith.constant 0 : i32
    %c0_i32_1 = arith.constant 0 : i32
    return %c0_i32, %c0_i32_0 : i32, i32
  }
  func.func @transform_4(%arg0: i32) -> (i32, i32, i32) {
    %c0_i32 = arith.constant 0 : i32
    %c0_i32_0 = arith.constant 0 : i32
    %c0_i32_1 = arith.constant 0 : i32
    return %arg0, %c0_i32, %c0_i32_0 : i32, i32, i32
  }
  func.func @transform_5(%arg0: i32) -> (i32, i32, i32) {
    %c0_i32 = arith.constant 0 : i32
    %c0_i32_0 = arith.constant 0 : i32
    %c0_i32_1 = arith.constant 0 : i32
    return %arg0, %c0_i32, %c0_i32_0 : i32, i32, i32
  }
  func.func @transform_6(%arg0: i32) -> (i32, i32, i32) {
    %c0_i32 = arith.constant 0 : i32
    %c0_i32_0 = arith.constant 0 : i32
    %c0_i32_1 = arith.constant 0 : i32
    return %arg0, %c0_i32, %c0_i32_0 : i32, i32, i32
  }
  func.func @transform_7(%arg0: i32) -> (i32, i32, i32) {
    %c0_i32 = arith.constant 0 : i32
    %c0_i32_0 = arith.constant 0 : i32
    %c0_i32_1 = arith.constant 0 : i32
    return %arg0, %c0_i32, %c0_i32_0 : i32, i32, i32
  }
  func.func @transform_8(%arg0: i32) -> (i32, i32, i32) {
    %c0_i32 = arith.constant 0 : i32
    %c0_i32_0 = arith.constant 0 : i32
    %c0_i32_1 = arith.constant 0 : i32
    return %arg0, %c0_i32, %c0_i32_0 : i32, i32, i32
  }
  func.func @transform_9(%arg0: i32) -> (i32, i32, i32) {
    %c0_i32 = arith.constant 0 : i32
    %c0_i32_0 = arith.constant 0 : i32
    %c0_i32_1 = arith.constant 0 : i32
    return %arg0, %c0_i32, %c0_i32_0 : i32, i32, i32
  }
  func.func @transform_10(%arg0: i32) -> (i32, i32, i32) {
    %c0_i32 = arith.constant 0 : i32
    %c0_i32_0 = arith.constant 0 : i32
    %c0_i32_1 = arith.constant 0 : i32
    return %arg0, %c0_i32, %c0_i32_0 : i32, i32, i32
  }
  func.func @transform_11(%arg0: i32) -> (i32, i32, i32) {
    %c0_i32 = arith.constant 0 : i32
    %c0_i32_0 = arith.constant 0 : i32
    %c0_i32_1 = arith.constant 0 : i32
    return %arg0, %c0_i32, %c0_i32_0 : i32, i32, i32
  }
  func.func @transform_12(%arg0: i32) -> (i32, i32) {
    %c0_i32 = arith.constant 0 : i32
    %c0_i32_0 = arith.constant 0 : i32
    %c0_i32_1 = arith.constant 0 : i32
    return %c0_i32, %c0_i32_0 : i32, i32
  }
}

module attributes {stable_mosaic.version = 11 : i64} {
  func.func @kernel(%arg0: i32, %arg1: memref<16x1xf32, #tpu.memory_space<vmem>>, %arg2: memref<16x64xf32, #tpu.memory_space<vmem>>, %arg3: memref<1x64xf32, #tpu.memory_space<vmem>>, %arg4: memref<1x64xf32, #tpu.memory_space<vmem>>, %arg5: memref<32x64xf32, #tpu.memory_space<vmem>>, %arg6: memref<1x64x64xbf16, #tpu.memory_space<vmem>>, %arg7: memref<1x64x64xbf16, #tpu.memory_space<vmem>>, %arg8: memref<1x64x64xbf16, #tpu.memory_space<vmem>>, %arg9: memref<1x64x64xbf16, #tpu.memory_space<vmem>>, %arg10: memref<1x64x64xbf16, #tpu.memory_space<vmem>>, %arg11: memref<1x64x64xbf16, #tpu.memory_space<vmem>>, %arg12: memref<1x64x64xbf16, #tpu.memory_space<vmem>>, %arg13: memref<1x64x64xbf16, #tpu.memory_space<vmem>>, %arg14: memref<1x64x2048xbf16, #tpu.memory_space<vmem>>, %arg15: memref<1x1x2048xf32, #tpu.memory_space<vmem>>, %arg16: memref<1x64x2048xbf16, #tpu.memory_space<vmem>>, %arg17: memref<1x15x64xf32, #tpu.memory_space<vmem>>, %arg18: memref<1x64xf32, #tpu.memory_space<vmem>>, %arg19: memref<1x1xf32, #tpu.memory_space<vmem>>, %arg20: memref<16x1xf32, #tpu.memory_space<vmem>>, %arg21: memref<16x64xf32, #tpu.memory_space<vmem>>) attributes {dimension_semantics = [#tpu.dimension_semantics<arbitrary>], iteration_bounds = array<i64: 3>, scalar_prefetch = 0 : i64, scratch_operands = 1 : i64, tpu.core_type = #tpu.core_type<tc>, window_params = [{pipeline_mode = #tpu.pipeline_mode<synchronous>, transform_indices = @transform_0, window_bounds = array<i64: 16, 1>}, {pipeline_mode = #tpu.pipeline_mode<synchronous>, transform_indices = @transform_1, window_bounds = array<i64: 16, 64>}, {pipeline_mode = #tpu.pipeline_mode<synchronous>, transform_indices = @transform_2, window_bounds = array<i64: 1, 64>}, {pipeline_mode = #tpu.pipeline_mode<synchronous>, transform_indices = @transform_3, window_bounds = array<i64: 1, 64>}, {pipeline_mode = #tpu.pipeline_mode<synchronous>, transform_indices = @transform_4, window_bounds = array<i64: 32, 64>}, {transform_indices = @transform_5, window_bounds = array<i64: 1, 64, 64>}, {transform_indices = @transform_6, window_bounds = array<i64: 1, 64, 64>}, {transform_indices = @transform_7, window_bounds = array<i64: 1, 64, 64>}, {transform_indices = @transform_8, window_bounds = array<i64: 1, 64, 64>}, {transform_indices = @transform_9, window_bounds = array<i64: 1, 64, 64>}, {transform_indices = @transform_10, window_bounds = array<i64: 1, 64, 64>}, {transform_indices = @transform_11, window_bounds = array<i64: 1, 64, 64>}, {transform_indices = @transform_12, window_bounds = array<i64: 1, 64, 64>}, {transform_indices = @transform_13, window_bounds = array<i64: 1, 64, 2048>}, {transform_indices = @transform_14, window_bounds = array<i64: 1, 1, 2048>}, {transform_indices = @transform_15, window_bounds = array<i64: 1, 64, 2048>}, {transform_indices = @transform_16, window_bounds = array<i64: 1, 15, 64>}, {pipeline_mode = #tpu.pipeline_mode<synchronous>, transform_indices = @transform_17, window_bounds = array<i64: 1, 64>}, {pipeline_mode = #tpu.pipeline_mode<synchronous>, transform_indices = @transform_18, window_bounds = array<i64: 1, 1>}, {pipeline_mode = #tpu.pipeline_mode<synchronous>, transform_indices = @transform_19, window_bounds = array<i64: 16, 1>}]} {
    %c0_i32 = arith.constant 0 : i32
    %0 = arith.cmpi eq, %arg0, %c0_i32 : i32
    %1 = arith.extui %0 : i1 to i32
    %c0_i32_0 = arith.constant 0 : i32
    %2 = arith.cmpi ne, %1, %c0_i32_0 : i32
    scf.if %2 {
      %c0_141 = arith.constant 0 : index
      %c0_142 = arith.constant 0 : index
      %441 = vector.load %arg1[%c0_141, %c0_142] : memref<16x1xf32, #tpu.memory_space<vmem>>, vector<16x1xf32>
      %c0_143 = arith.constant 0 : index
      %c0_144 = arith.constant 0 : index
      %442 = vector.load %arg3[%c0_143, %c0_144] : memref<1x64xf32, #tpu.memory_space<vmem>>, vector<1x64xf32>
      %443 = vector.broadcast %441 : vector<16x1xf32> to vector<16x64xf32>
      %444 = vector.broadcast %442 : vector<1x64xf32> to vector<16x64xf32>
      %445 = arith.mulf %443, %444 : vector<16x64xf32>
      %c0_145 = arith.constant 0 : index
      %c0_146 = arith.constant 0 : index
      %446 = vector.load %arg4[%c0_145, %c0_146] : memref<1x64xf32, #tpu.memory_space<vmem>>, vector<1x64xf32>
      %447 = vector.broadcast %446 : vector<1x64xf32> to vector<16x64xf32>
      %448 = arith.addf %445, %447 : vector<16x64xf32>
      %c0_147 = arith.constant 0 : index
      %c0_148 = arith.constant 0 : index
      %449 = vector.load %arg2[%c0_147, %c0_148] : memref<16x64xf32, #tpu.memory_space<vmem>>, vector<16x64xf32>
      %450 = arith.addf %448, %449 : vector<16x64xf32>
      %c0_149 = arith.constant 0 : index
      %c0_150 = arith.constant 0 : index
      %451 = vector.load %arg21[%c0_149, %c0_150] : memref<16x64xf32, #tpu.memory_space<vmem>>, vector<16x64xf32>
      tpu.vector_store %arg21[%c0_149, %c0_150], %450 {strides = array<i32>} : memref<16x64xf32, #tpu.memory_space<vmem>>, vector<16x64xf32>,
    } else {
    }
    %c0 = arith.constant 0 : index
    %c0_1 = arith.constant 0 : index
    %3 = vector.load %arg21[%c0, %c0_1] : memref<16x64xf32, #tpu.memory_space<vmem>>, vector<16x64xf32>
    %c0_2 = arith.constant 0 : index
    %c0_3 = arith.constant 0 : index
    %4 = vector.load %arg5[%c0_2, %c0_3] : memref<32x64xf32, #tpu.memory_space<vmem>>, vector<32x64xf32>
    %c0_4 = arith.constant 0 : index
    %c0_5 = arith.constant 0 : index
    %c0_6 = arith.constant 0 : index
    %5 = vector.load %arg17[%c0_4, %c0_5, %c0_6] : memref<1x15x64xf32, #tpu.memory_space<vmem>>, vector<1x15x64xf32>
    %6 = vector.shape_cast %5 : vector<1x15x64xf32> to vector<15x64xf32>
    %c0_7 = arith.constant 0 : index
    %c0_8 = arith.constant 0 : index
    %c0_9 = arith.constant 0 : index
    %7 = vector.load %arg6[%c0_7, %c0_8, %c0_9] : memref<1x64x64xbf16, #tpu.memory_space<vmem>>, vector<1x64x64xbf16>
    %8 = vector.shape_cast %7 : vector<1x64x64xbf16> to vector<64x64xbf16>
    %c0_10 = arith.constant 0 : index
    %c0_11 = arith.constant 0 : index
    %c0_12 = arith.constant 0 : index
    %9 = vector.load %arg7[%c0_10, %c0_11, %c0_12] : memref<1x64x64xbf16, #tpu.memory_space<vmem>>, vector<1x64x64xbf16>
    %10 = vector.shape_cast %9 : vector<1x64x64xbf16> to vector<64x64xbf16>
    %c0_13 = arith.constant 0 : index
    %c0_14 = arith.constant 0 : index
    %c0_15 = arith.constant 0 : index
    %11 = vector.load %arg8[%c0_13, %c0_14, %c0_15] : memref<1x64x64xbf16, #tpu.memory_space<vmem>>, vector<1x64x64xbf16>
    %12 = vector.shape_cast %11 : vector<1x64x64xbf16> to vector<64x64xbf16>
    %c0_16 = arith.constant 0 : index
    %c0_17 = arith.constant 0 : index
    %c0_18 = arith.constant 0 : index
    %13 = vector.load %arg9[%c0_16, %c0_17, %c0_18] : memref<1x64x64xbf16, #tpu.memory_space<vmem>>, vector<1x64x64xbf16>
    %14 = vector.shape_cast %13 : vector<1x64x64xbf16> to vector<64x64xbf16>
    %15 = vector.extract_strided_slice %6 {offsets = [0, 0], sizes = [1, 64], strides = [1, 1]} : vector<15x64xf32> to vector<1x64xf32>
    %16 = vector.extract_strided_slice %6 {offsets = [1, 0], sizes = [1, 64], strides = [1, 1]} : vector<15x64xf32> to vector<1x64xf32>
    %17 = vector.extract_strided_slice %6 {offsets = [2, 0], sizes = [1, 64], strides = [1, 1]} : vector<15x64xf32> to vector<1x64xf32>
    %18 = vector.extract_strided_slice %6 {offsets = [3, 0], sizes = [1, 64], strides = [1, 1]} : vector<15x64xf32> to vector<1x64xf32>
    %19 = arith.truncf %3 : vector<16x64xf32> to vector<16x64xbf16>
    %cst = arith.constant dense<0.000000e+00> : vector<16x64xf32>
    %20 = tpu.matmul %19, %8, %cst {dimension_numbers = #tpu.dot_dimension_numbers<[1], [0], [0], [1], [0, 0, 1, 1], [], []>} : vector<16x64xbf16>, vector<64x64xbf16>, vector<16x64xf32> -> vector<16x64xf32>
    %21 = vector.broadcast %15 : vector<1x64xf32> to vector<16x64xf32>
    %22 = arith.addf %20, %21 : vector<16x64xf32>
    %23 = arith.truncf %3 : vector<16x64xf32> to vector<16x64xbf16>
    %cst_19 = arith.constant dense<0.000000e+00> : vector<16x64xf32>
    %24 = tpu.matmul %23, %10, %cst_19 {dimension_numbers = #tpu.dot_dimension_numbers<[1], [0], [0], [1], [0, 0, 1, 1], [], []>} : vector<16x64xbf16>, vector<64x64xbf16>, vector<16x64xf32> -> vector<16x64xf32>
    %25 = vector.broadcast %16 : vector<1x64xf32> to vector<16x64xf32>
    %26 = arith.addf %24, %25 : vector<16x64xf32>
    %27 = arith.truncf %3 : vector<16x64xf32> to vector<16x64xbf16>
    %cst_20 = arith.constant dense<0.000000e+00> : vector<16x64xf32>
    %28 = tpu.matmul %27, %12, %cst_20 {dimension_numbers = #tpu.dot_dimension_numbers<[1], [0], [0], [1], [0, 0, 1, 1], [], []>} : vector<16x64xbf16>, vector<64x64xbf16>, vector<16x64xf32> -> vector<16x64xf32>
    %29 = vector.broadcast %17 : vector<1x64xf32> to vector<16x64xf32>
    %30 = arith.addf %28, %29 : vector<16x64xf32>
    %cst_21 = arith.constant 2.500000e-01 : f32
    %31 = vector.broadcast %cst_21 : f32 to vector<16x64xf32>
    %32 = arith.mulf %22, %31 : vector<16x64xf32>
    %33 = tpu.iota {dimensions = array<i32: 0>} : vector<16x16xi32>
    %34 = tpu.iota {dimensions = array<i32: 1>} : vector<16x16xi32>
    %c0_i32_22 = arith.constant 0 : i32
    %35 = vector.broadcast %c0_i32_22 : i32 to vector<16x16xi32>
    %36 = arith.cmpi sge, %33, %35 : vector<16x16xi32>
    %c8_i32 = arith.constant 8 : i32
    %37 = vector.broadcast %c8_i32 : i32 to vector<16x16xi32>
    %38 = arith.cmpi slt, %33, %37 : vector<16x16xi32>
    %39 = arith.andi %36, %38 : vector<16x16xi1>
    %c0_i32_23 = arith.constant 0 : i32
    %40 = vector.broadcast %c0_i32_23 : i32 to vector<16x16xi32>
    %41 = arith.cmpi sge, %34, %40 : vector<16x16xi32>
    %c8_i32_24 = arith.constant 8 : i32
    %42 = vector.broadcast %c8_i32_24 : i32 to vector<16x16xi32>
    %43 = arith.cmpi slt, %34, %42 : vector<16x16xi32>
    %44 = arith.andi %41, %43 : vector<16x16xi1>
    %45 = arith.andi %39, %44 : vector<16x16xi1>
    %c8_i32_25 = arith.constant 8 : i32
    %46 = vector.broadcast %c8_i32_25 : i32 to vector<16x16xi32>
    %47 = arith.cmpi sge, %33, %46 : vector<16x16xi32>
    %c16_i32 = arith.constant 16 : i32
    %48 = vector.broadcast %c16_i32 : i32 to vector<16x16xi32>
    %49 = arith.cmpi slt, %33, %48 : vector<16x16xi32>
    %50 = arith.andi %47, %49 : vector<16x16xi1>
    %c8_i32_26 = arith.constant 8 : i32
    %51 = vector.broadcast %c8_i32_26 : i32 to vector<16x16xi32>
    %52 = arith.cmpi sge, %34, %51 : vector<16x16xi32>
    %c16_i32_27 = arith.constant 16 : i32
    %53 = vector.broadcast %c16_i32_27 : i32 to vector<16x16xi32>
    %54 = arith.cmpi slt, %34, %53 : vector<16x16xi32>
    %55 = arith.andi %52, %54 : vector<16x16xi1>
    %56 = arith.andi %50, %55 : vector<16x16xi1>
    %57 = arith.ori %45, %56 : vector<16x16xi1>
    %cst_28 = arith.constant 0.000000e+00 : f32
    %cst_29 = arith.constant -1.000000e+30 : f32
    %58 = vector.broadcast %cst_28 : f32 to vector<16x16xf32>
    %59 = vector.broadcast %cst_29 : f32 to vector<16x16xf32>
    %60 = arith.select %57, %58, %59 : vector<16x16xi1>, vector<16x16xf32>
    %61 = tpu.iota {dimensions = array<i32: 1>} : vector<1x64xi32>
    %62 = arith.truncf %26 : vector<16x64xf32> to vector<16x64xbf16>
    %cst_30 = arith.constant 0.000000e+00 : f32
    %63 = vector.broadcast %cst_30 : f32 to vector<16x64xf32>
    %c0_i32_31 = arith.constant 0 : i32
    %64 = vector.broadcast %c0_i32_31 : i32 to vector<1x64xi32>
    %65 = arith.cmpi sge, %61, %64 : vector<1x64xi32>
    %c16_i32_32 = arith.constant 16 : i32
    %66 = vector.broadcast %c16_i32_32 : i32 to vector<1x64xi32>
    %67 = arith.cmpi slt, %61, %66 : vector<1x64xi32>
    %68 = arith.andi %65, %67 : vector<1x64xi1>
    %69 = arith.extui %68 : vector<1x64xi1> to vector<1x64xi32>
    %70 = arith.sitofp %69 : vector<1x64xi32> to vector<1x64xf32>
    %71 = vector.broadcast %70 : vector<1x64xf32> to vector<16x64xf32>
    %72 = arith.mulf %32, %71 : vector<16x64xf32>
    %73 = arith.truncf %72 : vector<16x64xf32> to vector<16x64xbf16>
    %74 = vector.broadcast %70 : vector<1x64xf32> to vector<16x64xf32>
    %75 = arith.mulf %30, %74 : vector<16x64xf32>
    %76 = arith.truncf %75 : vector<16x64xf32> to vector<16x64xbf16>
    %cst_33 = arith.constant dense<0.000000e+00> : vector<16x16xf32>
    %77 = tpu.matmul %73, %62, %cst_33 {dimension_numbers = #tpu.dot_dimension_numbers<[1], [1], [0], [0], [0, 0, 1, 0], [], []>} : vector<16x64xbf16>, vector<16x64xbf16>, vector<16x16xf32> -> vector<16x16xf32>
    %78 = arith.addf %77, %60 : vector<16x16xf32>
    %cst_34 = arith.constant dense<0xFF800000> : vector<16xf32>
    %79 = vector.multi_reduction <maximumf>, %78, %cst_34 [1] : vector<16x16xf32> to vector<16xf32>
    %80 = vector.shape_cast %79 : vector<16xf32> to vector<16x1xf32>
    %81 = vector.broadcast %80 : vector<16x1xf32> to vector<16x16xf32>
    %82 = arith.subf %78, %81 : vector<16x16xf32>
    %83 = math.exp %82 : vector<16x16xf32>
    %cst_35 = arith.constant dense<0.000000e+00> : vector<16xf32>
    %84 = vector.multi_reduction <add>, %83, %cst_35 [1] : vector<16x16xf32> to vector<16xf32>
    %85 = vector.shape_cast %84 : vector<16xf32> to vector<16x1xf32>
    %86 = vector.broadcast %85 : vector<16x1xf32> to vector<16x16xf32>
    %87 = arith.divf %83, %86 : vector<16x16xf32>
    %88 = arith.truncf %87 : vector<16x16xf32> to vector<16x16xbf16>
    %cst_36 = arith.constant dense<0.000000e+00> : vector<16x64xf32>
    %89 = tpu.matmul %88, %76, %cst_36 {dimension_numbers = #tpu.dot_dimension_numbers<[1], [0], [0], [1], [0, 0, 1, 1], [], []>} : vector<16x16xbf16>, vector<16x64xbf16>, vector<16x64xf32> -> vector<16x64xf32>
    %90 = arith.addf %63, %89 : vector<16x64xf32>
    %c16_i32_37 = arith.constant 16 : i32
    %91 = vector.broadcast %c16_i32_37 : i32 to vector<1x64xi32>
    %92 = arith.cmpi sge, %61, %91 : vector<1x64xi32>
    %c32_i32 = arith.constant 32 : i32
    %93 = vector.broadcast %c32_i32 : i32 to vector<1x64xi32>
    %94 = arith.cmpi slt, %61, %93 : vector<1x64xi32>
    %95 = arith.andi %92, %94 : vector<1x64xi1>
    %96 = arith.extui %95 : vector<1x64xi1> to vector<1x64xi32>
    %97 = arith.sitofp %96 : vector<1x64xi32> to vector<1x64xf32>
    %98 = vector.broadcast %97 : vector<1x64xf32> to vector<16x64xf32>
    %99 = arith.mulf %32, %98 : vector<16x64xf32>
    %100 = arith.truncf %99 : vector<16x64xf32> to vector<16x64xbf16>
    %101 = vector.broadcast %97 : vector<1x64xf32> to vector<16x64xf32>
    %102 = arith.mulf %30, %101 : vector<16x64xf32>
    %103 = arith.truncf %102 : vector<16x64xf32> to vector<16x64xbf16>
    %cst_38 = arith.constant dense<0.000000e+00> : vector<16x16xf32>
    %104 = tpu.matmul %100, %62, %cst_38 {dimension_numbers = #tpu.dot_dimension_numbers<[1], [1], [0], [0], [0, 0, 1, 0], [], []>} : vector<16x64xbf16>, vector<16x64xbf16>, vector<16x16xf32> -> vector<16x16xf32>
    %105 = arith.addf %104, %60 : vector<16x16xf32>
    %cst_39 = arith.constant dense<0xFF800000> : vector<16xf32>
    %106 = vector.multi_reduction <maximumf>, %105, %cst_39 [1] : vector<16x16xf32> to vector<16xf32>
    %107 = vector.shape_cast %106 : vector<16xf32> to vector<16x1xf32>
    %108 = vector.broadcast %107 : vector<16x1xf32> to vector<16x16xf32>
    %109 = arith.subf %105, %108 : vector<16x16xf32>
    %110 = math.exp %109 : vector<16x16xf32>
    %cst_40 = arith.constant dense<0.000000e+00> : vector<16xf32>
    %111 = vector.multi_reduction <add>, %110, %cst_40 [1] : vector<16x16xf32> to vector<16xf32>
    %112 = vector.shape_cast %111 : vector<16xf32> to vector<16x1xf32>
    %113 = vector.broadcast %112 : vector<16x1xf32> to vector<16x16xf32>
    %114 = arith.divf %110, %113 : vector<16x16xf32>
    %115 = arith.truncf %114 : vector<16x16xf32> to vector<16x16xbf16>
    %cst_41 = arith.constant dense<0.000000e+00> : vector<16x64xf32>
    %116 = tpu.matmul %115, %103, %cst_41 {dimension_numbers = #tpu.dot_dimension_numbers<[1], [0], [0], [1], [0, 0, 1, 1], [], []>} : vector<16x16xbf16>, vector<16x64xbf16>, vector<16x64xf32> -> vector<16x64xf32>
    %117 = arith.addf %90, %116 : vector<16x64xf32>
    %c32_i32_42 = arith.constant 32 : i32
    %118 = vector.broadcast %c32_i32_42 : i32 to vector<1x64xi32>
    %119 = arith.cmpi sge, %61, %118 : vector<1x64xi32>
    %c48_i32 = arith.constant 48 : i32
    %120 = vector.broadcast %c48_i32 : i32 to vector<1x64xi32>
    %121 = arith.cmpi slt, %61, %120 : vector<1x64xi32>
    %122 = arith.andi %119, %121 : vector<1x64xi1>
    %123 = arith.extui %122 : vector<1x64xi1> to vector<1x64xi32>
    %124 = arith.sitofp %123 : vector<1x64xi32> to vector<1x64xf32>
    %125 = vector.broadcast %124 : vector<1x64xf32> to vector<16x64xf32>
    %126 = arith.mulf %32, %125 : vector<16x64xf32>
    %127 = arith.truncf %126 : vector<16x64xf32> to vector<16x64xbf16>
    %128 = vector.broadcast %124 : vector<1x64xf32> to vector<16x64xf32>
    %129 = arith.mulf %30, %128 : vector<16x64xf32>
    %130 = arith.truncf %129 : vector<16x64xf32> to vector<16x64xbf16>
    %cst_43 = arith.constant dense<0.000000e+00> : vector<16x16xf32>
    %131 = tpu.matmul %127, %62, %cst_43 {dimension_numbers = #tpu.dot_dimension_numbers<[1], [1], [0], [0], [0, 0, 1, 0], [], []>} : vector<16x64xbf16>, vector<16x64xbf16>, vector<16x16xf32> -> vector<16x16xf32>
    %132 = arith.addf %131, %60 : vector<16x16xf32>
    %cst_44 = arith.constant dense<0xFF800000> : vector<16xf32>
    %133 = vector.multi_reduction <maximumf>, %132, %cst_44 [1] : vector<16x16xf32> to vector<16xf32>
    %134 = vector.shape_cast %133 : vector<16xf32> to vector<16x1xf32>
    %135 = vector.broadcast %134 : vector<16x1xf32> to vector<16x16xf32>
    %136 = arith.subf %132, %135 : vector<16x16xf32>
    %137 = math.exp %136 : vector<16x16xf32>
    %cst_45 = arith.constant dense<0.000000e+00> : vector<16xf32>
    %138 = vector.multi_reduction <add>, %137, %cst_45 [1] : vector<16x16xf32> to vector<16xf32>
    %139 = vector.shape_cast %138 : vector<16xf32> to vector<16x1xf32>
    %140 = vector.broadcast %139 : vector<16x1xf32> to vector<16x16xf32>
    %141 = arith.divf %137, %140 : vector<16x16xf32>
    %142 = arith.truncf %141 : vector<16x16xf32> to vector<16x16xbf16>
    %cst_46 = arith.constant dense<0.000000e+00> : vector<16x64xf32>
    %143 = tpu.matmul %142, %130, %cst_46 {dimension_numbers = #tpu.dot_dimension_numbers<[1], [0], [0], [1], [0, 0, 1, 1], [], []>} : vector<16x16xbf16>, vector<16x64xbf16>, vector<16x64xf32> -> vector<16x64xf32>
    %144 = arith.addf %117, %143 : vector<16x64xf32>
    %c48_i32_47 = arith.constant 48 : i32
    %145 = vector.broadcast %c48_i32_47 : i32 to vector<1x64xi32>
    %146 = arith.cmpi sge, %61, %145 : vector<1x64xi32>
    %c64_i32 = arith.constant 64 : i32
    %147 = vector.broadcast %c64_i32 : i32 to vector<1x64xi32>
    %148 = arith.cmpi slt, %61, %147 : vector<1x64xi32>
    %149 = arith.andi %146, %148 : vector<1x64xi1>
    %150 = arith.extui %149 : vector<1x64xi1> to vector<1x64xi32>
    %151 = arith.sitofp %150 : vector<1x64xi32> to vector<1x64xf32>
    %152 = vector.broadcast %151 : vector<1x64xf32> to vector<16x64xf32>
    %153 = arith.mulf %32, %152 : vector<16x64xf32>
    %154 = arith.truncf %153 : vector<16x64xf32> to vector<16x64xbf16>
    %155 = vector.broadcast %151 : vector<1x64xf32> to vector<16x64xf32>
    %156 = arith.mulf %30, %155 : vector<16x64xf32>
    %157 = arith.truncf %156 : vector<16x64xf32> to vector<16x64xbf16>
    %cst_48 = arith.constant dense<0.000000e+00> : vector<16x16xf32>
    %158 = tpu.matmul %154, %62, %cst_48 {dimension_numbers = #tpu.dot_dimension_numbers<[1], [1], [0], [0], [0, 0, 1, 0], [], []>} : vector<16x64xbf16>, vector<16x64xbf16>, vector<16x16xf32> -> vector<16x16xf32>
    %159 = arith.addf %158, %60 : vector<16x16xf32>
    %cst_49 = arith.constant dense<0xFF800000> : vector<16xf32>
    %160 = vector.multi_reduction <maximumf>, %159, %cst_49 [1] : vector<16x16xf32> to vector<16xf32>
    %161 = vector.shape_cast %160 : vector<16xf32> to vector<16x1xf32>
    %162 = vector.broadcast %161 : vector<16x1xf32> to vector<16x16xf32>
    %163 = arith.subf %159, %162 : vector<16x16xf32>
    %164 = math.exp %163 : vector<16x16xf32>
    %cst_50 = arith.constant dense<0.000000e+00> : vector<16xf32>
    %165 = vector.multi_reduction <add>, %164, %cst_50 [1] : vector<16x16xf32> to vector<16xf32>
    %166 = vector.shape_cast %165 : vector<16xf32> to vector<16x1xf32>
    %167 = vector.broadcast %166 : vector<16x1xf32> to vector<16x16xf32>
    %168 = arith.divf %164, %167 : vector<16x16xf32>
    %169 = arith.truncf %168 : vector<16x16xf32> to vector<16x16xbf16>
    %cst_51 = arith.constant dense<0.000000e+00> : vector<16x64xf32>
    %170 = tpu.matmul %169, %157, %cst_51 {dimension_numbers = #tpu.dot_dimension_numbers<[1], [0], [0], [1], [0, 0, 1, 1], [], []>} : vector<16x16xbf16>, vector<16x64xbf16>, vector<16x64xf32> -> vector<16x64xf32>
    %171 = arith.addf %144, %170 : vector<16x64xf32>
    %172 = arith.truncf %171 : vector<16x64xf32> to vector<16x64xbf16>
    %cst_52 = arith.constant dense<0.000000e+00> : vector<16x64xf32>
    %173 = tpu.matmul %172, %14, %cst_52 {dimension_numbers = #tpu.dot_dimension_numbers<[1], [0], [0], [1], [0, 0, 1, 1], [], []>} : vector<16x64xbf16>, vector<64x64xbf16>, vector<16x64xf32> -> vector<16x64xf32>
    %174 = vector.broadcast %18 : vector<1x64xf32> to vector<16x64xf32>
    %175 = arith.addf %173, %174 : vector<16x64xf32>
    %176 = arith.addf %3, %175 : vector<16x64xf32>
    %177 = vector.extract_strided_slice %6 {offsets = [4, 0], sizes = [1, 64], strides = [1, 1]} : vector<15x64xf32> to vector<1x64xf32>
    %178 = vector.extract_strided_slice %6 {offsets = [5, 0], sizes = [1, 64], strides = [1, 1]} : vector<15x64xf32> to vector<1x64xf32>
    %cst_53 = arith.constant dense<0.000000e+00> : vector<16xf32>
    %179 = vector.multi_reduction <add>, %176, %cst_53 [1] : vector<16x64xf32> to vector<16xf32>
    %180 = vector.shape_cast %179 : vector<16xf32> to vector<16x1xf32>
    %cst_54 = arith.constant 6.400000e+01 : f32
    %181 = vector.broadcast %cst_54 : f32 to vector<16x1xf32>
    %182 = arith.divf %180, %181 : vector<16x1xf32>
    %183 = vector.broadcast %182 : vector<16x1xf32> to vector<16x64xf32>
    %184 = arith.subf %176, %183 : vector<16x64xf32>
    %185 = arith.mulf %184, %184 : vector<16x64xf32>
    %cst_55 = arith.constant dense<0.000000e+00> : vector<16xf32>
    %186 = vector.multi_reduction <add>, %185, %cst_55 [1] : vector<16x64xf32> to vector<16xf32>
    %187 = vector.shape_cast %186 : vector<16xf32> to vector<16x1xf32>
    %cst_56 = arith.constant 6.400000e+01 : f32
    %188 = vector.broadcast %cst_56 : f32 to vector<16x1xf32>
    %189 = arith.divf %187, %188 : vector<16x1xf32>
    %cst_57 = arith.constant 9.99999974E-6 : f32
    %190 = vector.broadcast %cst_57 : f32 to vector<16x1xf32>
    %191 = arith.addf %189, %190 : vector<16x1xf32>
    %192 = math.rsqrt %191 : vector<16x1xf32>
    %193 = vector.broadcast %192 : vector<16x1xf32> to vector<16x64xf32>
    %194 = arith.mulf %184, %193 : vector<16x64xf32>
    %195 = vector.broadcast %177 : vector<1x64xf32> to vector<16x64xf32>
    %196 = arith.mulf %194, %195 : vector<16x64xf32>
    %197 = vector.broadcast %178 : vector<1x64xf32> to vector<16x64xf32>
    %198 = arith.addf %196, %197 : vector<16x64xf32>
    %c0_58 = arith.constant 0 : index
    %c0_59 = arith.constant 0 : index
    %c0_60 = arith.constant 0 : index
    %199 = vector.load %arg10[%c0_58, %c0_59, %c0_60] : memref<1x64x64xbf16, #tpu.memory_space<vmem>>, vector<1x64x64xbf16>
    %200 = vector.shape_cast %199 : vector<1x64x64xbf16> to vector<64x64xbf16>
    %c0_61 = arith.constant 0 : index
    %c0_62 = arith.constant 0 : index
    %c0_63 = arith.constant 0 : index
    %201 = vector.load %arg11[%c0_61, %c0_62, %c0_63] : memref<1x64x64xbf16, #tpu.memory_space<vmem>>, vector<1x64x64xbf16>
    %202 = vector.shape_cast %201 : vector<1x64x64xbf16> to vector<64x64xbf16>
    %c0_64 = arith.constant 0 : index
    %c0_65 = arith.constant 0 : index
    %c0_66 = arith.constant 0 : index
    %203 = vector.load %arg12[%c0_64, %c0_65, %c0_66] : memref<1x64x64xbf16, #tpu.memory_space<vmem>>, vector<1x64x64xbf16>
    %204 = vector.shape_cast %203 : vector<1x64x64xbf16> to vector<64x64xbf16>
    %c0_67 = arith.constant 0 : index
    %c0_68 = arith.constant 0 : index
    %c0_69 = arith.constant 0 : index
    %205 = vector.load %arg13[%c0_67, %c0_68, %c0_69] : memref<1x64x64xbf16, #tpu.memory_space<vmem>>, vector<1x64x64xbf16>
    %206 = vector.shape_cast %205 : vector<1x64x64xbf16> to vector<64x64xbf16>
    %207 = vector.extract_strided_slice %6 {offsets = [6, 0], sizes = [1, 64], strides = [1, 1]} : vector<15x64xf32> to vector<1x64xf32>
    %208 = vector.extract_strided_slice %6 {offsets = [7, 0], sizes = [1, 64], strides = [1, 1]} : vector<15x64xf32> to vector<1x64xf32>
    %209 = vector.extract_strided_slice %6 {offsets = [8, 0], sizes = [1, 64], strides = [1, 1]} : vector<15x64xf32> to vector<1x64xf32>
    %210 = vector.extract_strided_slice %6 {offsets = [9, 0], sizes = [1, 64], strides = [1, 1]} : vector<15x64xf32> to vector<1x64xf32>
    %211 = arith.truncf %198 : vector<16x64xf32> to vector<16x64xbf16>
    %cst_70 = arith.constant dense<0.000000e+00> : vector<16x64xf32>
    %212 = tpu.matmul %211, %200, %cst_70 {dimension_numbers = #tpu.dot_dimension_numbers<[1], [0], [0], [1], [0, 0, 1, 1], [], []>} : vector<16x64xbf16>, vector<64x64xbf16>, vector<16x64xf32> -> vector<16x64xf32>
    %213 = vector.broadcast %207 : vector<1x64xf32> to vector<16x64xf32>
    %214 = arith.addf %212, %213 : vector<16x64xf32>
    %215 = arith.truncf %4 : vector<32x64xf32> to vector<32x64xbf16>
    %cst_71 = arith.constant dense<0.000000e+00> : vector<32x64xf32>
    %216 = tpu.matmul %215, %202, %cst_71 {dimension_numbers = #tpu.dot_dimension_numbers<[1], [0], [0], [1], [0, 0, 1, 1], [], []>} : vector<32x64xbf16>, vector<64x64xbf16>, vector<32x64xf32> -> vector<32x64xf32>
    %217 = vector.broadcast %208 : vector<1x64xf32> to vector<32x64xf32>
    %218 = arith.addf %216, %217 : vector<32x64xf32>
    %219 = arith.truncf %4 : vector<32x64xf32> to vector<32x64xbf16>
    %cst_72 = arith.constant dense<0.000000e+00> : vector<32x64xf32>
    %220 = tpu.matmul %219, %204, %cst_72 {dimension_numbers = #tpu.dot_dimension_numbers<[1], [0], [0], [1], [0, 0, 1, 1], [], []>} : vector<32x64xbf16>, vector<64x64xbf16>, vector<32x64xf32> -> vector<32x64xf32>
    %221 = vector.broadcast %209 : vector<1x64xf32> to vector<32x64xf32>
    %222 = arith.addf %220, %221 : vector<32x64xf32>
    %cst_73 = arith.constant 2.500000e-01 : f32
    %223 = vector.broadcast %cst_73 : f32 to vector<16x64xf32>
    %224 = arith.mulf %214, %223 : vector<16x64xf32>
    %225 = tpu.iota {dimensions = array<i32: 0>} : vector<16x32xi32>
    %226 = tpu.iota {dimensions = array<i32: 1>} : vector<16x32xi32>
    %c0_i32_74 = arith.constant 0 : i32
    %227 = vector.broadcast %c0_i32_74 : i32 to vector<16x32xi32>
    %228 = arith.cmpi sge, %225, %227 : vector<16x32xi32>
    %c8_i32_75 = arith.constant 8 : i32
    %229 = vector.broadcast %c8_i32_75 : i32 to vector<16x32xi32>
    %230 = arith.cmpi slt, %225, %229 : vector<16x32xi32>
    %231 = arith.andi %228, %230 : vector<16x32xi1>
    %c0_i32_76 = arith.constant 0 : i32
    %232 = vector.broadcast %c0_i32_76 : i32 to vector<16x32xi32>
    %233 = arith.cmpi sge, %226, %232 : vector<16x32xi32>
    %c16_i32_77 = arith.constant 16 : i32
    %234 = vector.broadcast %c16_i32_77 : i32 to vector<16x32xi32>
    %235 = arith.cmpi slt, %226, %234 : vector<16x32xi32>
    %236 = arith.andi %233, %235 : vector<16x32xi1>
    %237 = arith.andi %231, %236 : vector<16x32xi1>
    %c8_i32_78 = arith.constant 8 : i32
    %238 = vector.broadcast %c8_i32_78 : i32 to vector<16x32xi32>
    %239 = arith.cmpi sge, %225, %238 : vector<16x32xi32>
    %c16_i32_79 = arith.constant 16 : i32
    %240 = vector.broadcast %c16_i32_79 : i32 to vector<16x32xi32>
    %241 = arith.cmpi slt, %225, %240 : vector<16x32xi32>
    %242 = arith.andi %239, %241 : vector<16x32xi1>
    %c16_i32_80 = arith.constant 16 : i32
    %243 = vector.broadcast %c16_i32_80 : i32 to vector<16x32xi32>
    %244 = arith.cmpi sge, %226, %243 : vector<16x32xi32>
    %c32_i32_81 = arith.constant 32 : i32
    %245 = vector.broadcast %c32_i32_81 : i32 to vector<16x32xi32>
    %246 = arith.cmpi slt, %226, %245 : vector<16x32xi32>
    %247 = arith.andi %244, %246 : vector<16x32xi1>
    %248 = arith.andi %242, %247 : vector<16x32xi1>
    %249 = arith.ori %237, %248 : vector<16x32xi1>
    %cst_82 = arith.constant 0.000000e+00 : f32
    %cst_83 = arith.constant -1.000000e+30 : f32
    %250 = vector.broadcast %cst_82 : f32 to vector<16x32xf32>
    %251 = vector.broadcast %cst_83 : f32 to vector<16x32xf32>
    %252 = arith.select %249, %250, %251 : vector<16x32xi1>, vector<16x32xf32>
    %253 = tpu.iota {dimensions = array<i32: 1>} : vector<1x64xi32>
    %254 = arith.truncf %218 : vector<32x64xf32> to vector<32x64xbf16>
    %cst_84 = arith.constant 0.000000e+00 : f32
    %255 = vector.broadcast %cst_84 : f32 to vector<16x64xf32>
    %c0_i32_85 = arith.constant 0 : i32
    %256 = vector.broadcast %c0_i32_85 : i32 to vector<1x64xi32>
    %257 = arith.cmpi sge, %253, %256 : vector<1x64xi32>
    %c16_i32_86 = arith.constant 16 : i32
    %258 = vector.broadcast %c16_i32_86 : i32 to vector<1x64xi32>
    %259 = arith.cmpi slt, %253, %258 : vector<1x64xi32>
    %260 = arith.andi %257, %259 : vector<1x64xi1>
    %261 = arith.extui %260 : vector<1x64xi1> to vector<1x64xi32>
    %262 = arith.sitofp %261 : vector<1x64xi32> to vector<1x64xf32>
    %263 = vector.broadcast %262 : vector<1x64xf32> to vector<16x64xf32>
    %264 = arith.mulf %224, %263 : vector<16x64xf32>
    %265 = arith.truncf %264 : vector<16x64xf32> to vector<16x64xbf16>
    %266 = vector.broadcast %262 : vector<1x64xf32> to vector<32x64xf32>
    %267 = arith.mulf %222, %266 : vector<32x64xf32>
    %268 = arith.truncf %267 : vector<32x64xf32> to vector<32x64xbf16>
    %cst_87 = arith.constant dense<0.000000e+00> : vector<16x32xf32>
    %269 = tpu.matmul %265, %254, %cst_87 {dimension_numbers = #tpu.dot_dimension_numbers<[1], [1], [0], [0], [0, 0, 1, 0], [], []>} : vector<16x64xbf16>, vector<32x64xbf16>, vector<16x32xf32> -> vector<16x32xf32>
    %270 = arith.addf %269, %252 : vector<16x32xf32>
    %cst_88 = arith.constant dense<0xFF800000> : vector<16xf32>
    %271 = vector.multi_reduction <maximumf>, %270, %cst_88 [1] : vector<16x32xf32> to vector<16xf32>
    %272 = vector.shape_cast %271 : vector<16xf32> to vector<16x1xf32>
    %273 = vector.broadcast %272 : vector<16x1xf32> to vector<16x32xf32>
    %274 = arith.subf %270, %273 : vector<16x32xf32>
    %275 = math.exp %274 : vector<16x32xf32>
    %cst_89 = arith.constant dense<0.000000e+00> : vector<16xf32>
    %276 = vector.multi_reduction <add>, %275, %cst_89 [1] : vector<16x32xf32> to vector<16xf32>
    %277 = vector.shape_cast %276 : vector<16xf32> to vector<16x1xf32>
    %278 = vector.broadcast %277 : vector<16x1xf32> to vector<16x32xf32>
    %279 = arith.divf %275, %278 : vector<16x32xf32>
    %280 = arith.truncf %279 : vector<16x32xf32> to vector<16x32xbf16>
    %cst_90 = arith.constant dense<0.000000e+00> : vector<16x64xf32>
    %281 = tpu.matmul %280, %268, %cst_90 {dimension_numbers = #tpu.dot_dimension_numbers<[1], [0], [0], [1], [0, 0, 1, 1], [], []>} : vector<16x32xbf16>, vector<32x64xbf16>, vector<16x64xf32> -> vector<16x64xf32>
    %282 = arith.addf %255, %281 : vector<16x64xf32>
    %c16_i32_91 = arith.constant 16 : i32
    %283 = vector.broadcast %c16_i32_91 : i32 to vector<1x64xi32>
    %284 = arith.cmpi sge, %253, %283 : vector<1x64xi32>
    %c32_i32_92 = arith.constant 32 : i32
    %285 = vector.broadcast %c32_i32_92 : i32 to vector<1x64xi32>
    %286 = arith.cmpi slt, %253, %285 : vector<1x64xi32>
    %287 = arith.andi %284, %286 : vector<1x64xi1>
    %288 = arith.extui %287 : vector<1x64xi1> to vector<1x64xi32>
    %289 = arith.sitofp %288 : vector<1x64xi32> to vector<1x64xf32>
    %290 = vector.broadcast %289 : vector<1x64xf32> to vector<16x64xf32>
    %291 = arith.mulf %224, %290 : vector<16x64xf32>
    %292 = arith.truncf %291 : vector<16x64xf32> to vector<16x64xbf16>
    %293 = vector.broadcast %289 : vector<1x64xf32> to vector<32x64xf32>
    %294 = arith.mulf %222, %293 : vector<32x64xf32>
    %295 = arith.truncf %294 : vector<32x64xf32> to vector<32x64xbf16>
    %cst_93 = arith.constant dense<0.000000e+00> : vector<16x32xf32>
    %296 = tpu.matmul %292, %254, %cst_93 {dimension_numbers = #tpu.dot_dimension_numbers<[1], [1], [0], [0], [0, 0, 1, 0], [], []>} : vector<16x64xbf16>, vector<32x64xbf16>, vector<16x32xf32> -> vector<16x32xf32>
    %297 = arith.addf %296, %252 : vector<16x32xf32>
    %cst_94 = arith.constant dense<0xFF800000> : vector<16xf32>
    %298 = vector.multi_reduction <maximumf>, %297, %cst_94 [1] : vector<16x32xf32> to vector<16xf32>
    %299 = vector.shape_cast %298 : vector<16xf32> to vector<16x1xf32>
    %300 = vector.broadcast %299 : vector<16x1xf32> to vector<16x32xf32>
    %301 = arith.subf %297, %300 : vector<16x32xf32>
    %302 = math.exp %301 : vector<16x32xf32>
    %cst_95 = arith.constant dense<0.000000e+00> : vector<16xf32>
    %303 = vector.multi_reduction <add>, %302, %cst_95 [1] : vector<16x32xf32> to vector<16xf32>
    %304 = vector.shape_cast %303 : vector<16xf32> to vector<16x1xf32>
    %305 = vector.broadcast %304 : vector<16x1xf32> to vector<16x32xf32>
    %306 = arith.divf %302, %305 : vector<16x32xf32>
    %307 = arith.truncf %306 : vector<16x32xf32> to vector<16x32xbf16>
    %cst_96 = arith.constant dense<0.000000e+00> : vector<16x64xf32>
    %308 = tpu.matmul %307, %295, %cst_96 {dimension_numbers = #tpu.dot_dimension_numbers<[1], [0], [0], [1], [0, 0, 1, 1], [], []>} : vector<16x32xbf16>, vector<32x64xbf16>, vector<16x64xf32> -> vector<16x64xf32>
    %309 = arith.addf %282, %308 : vector<16x64xf32>
    %c32_i32_97 = arith.constant 32 : i32
    %310 = vector.broadcast %c32_i32_97 : i32 to vector<1x64xi32>
    %311 = arith.cmpi sge, %253, %310 : vector<1x64xi32>
    %c48_i32_98 = arith.constant 48 : i32
    %312 = vector.broadcast %c48_i32_98 : i32 to vector<1x64xi32>
    %313 = arith.cmpi slt, %253, %312 : vector<1x64xi32>
    %314 = arith.andi %311, %313 : vector<1x64xi1>
    %315 = arith.extui %314 : vector<1x64xi1> to vector<1x64xi32>
    %316 = arith.sitofp %315 : vector<1x64xi32> to vector<1x64xf32>
    %317 = vector.broadcast %316 : vector<1x64xf32> to vector<16x64xf32>
    %318 = arith.mulf %224, %317 : vector<16x64xf32>
    %319 = arith.truncf %318 : vector<16x64xf32> to vector<16x64xbf16>
    %320 = vector.broadcast %316 : vector<1x64xf32> to vector<32x64xf32>
    %321 = arith.mulf %222, %320 : vector<32x64xf32>
    %322 = arith.truncf %321 : vector<32x64xf32> to vector<32x64xbf16>
    %cst_99 = arith.constant dense<0.000000e+00> : vector<16x32xf32>
    %323 = tpu.matmul %319, %254, %cst_99 {dimension_numbers = #tpu.dot_dimension_numbers<[1], [1], [0], [0], [0, 0, 1, 0], [], []>} : vector<16x64xbf16>, vector<32x64xbf16>, vector<16x32xf32> -> vector<16x32xf32>
    %324 = arith.addf %323, %252 : vector<16x32xf32>
    %cst_100 = arith.constant dense<0xFF800000> : vector<16xf32>
    %325 = vector.multi_reduction <maximumf>, %324, %cst_100 [1] : vector<16x32xf32> to vector<16xf32>
    %326 = vector.shape_cast %325 : vector<16xf32> to vector<16x1xf32>
    %327 = vector.broadcast %326 : vector<16x1xf32> to vector<16x32xf32>
    %328 = arith.subf %324, %327 : vector<16x32xf32>
    %329 = math.exp %328 : vector<16x32xf32>
    %cst_101 = arith.constant dense<0.000000e+00> : vector<16xf32>
    %330 = vector.multi_reduction <add>, %329, %cst_101 [1] : vector<16x32xf32> to vector<16xf32>
    %331 = vector.shape_cast %330 : vector<16xf32> to vector<16x1xf32>
    %332 = vector.broadcast %331 : vector<16x1xf32> to vector<16x32xf32>
    %333 = arith.divf %329, %332 : vector<16x32xf32>
    %334 = arith.truncf %333 : vector<16x32xf32> to vector<16x32xbf16>
    %cst_102 = arith.constant dense<0.000000e+00> : vector<16x64xf32>
    %335 = tpu.matmul %334, %322, %cst_102 {dimension_numbers = #tpu.dot_dimension_numbers<[1], [0], [0], [1], [0, 0, 1, 1], [], []>} : vector<16x32xbf16>, vector<32x64xbf16>, vector<16x64xf32> -> vector<16x64xf32>
    %336 = arith.addf %309, %335 : vector<16x64xf32>
    %c48_i32_103 = arith.constant 48 : i32
    %337 = vector.broadcast %c48_i32_103 : i32 to vector<1x64xi32>
    %338 = arith.cmpi sge, %253, %337 : vector<1x64xi32>
    %c64_i32_104 = arith.constant 64 : i32
    %339 = vector.broadcast %c64_i32_104 : i32 to vector<1x64xi32>
    %340 = arith.cmpi slt, %253, %339 : vector<1x64xi32>
    %341 = arith.andi %338, %340 : vector<1x64xi1>
    %342 = arith.extui %341 : vector<1x64xi1> to vector<1x64xi32>
    %343 = arith.sitofp %342 : vector<1x64xi32> to vector<1x64xf32>
    %344 = vector.broadcast %343 : vector<1x64xf32> to vector<16x64xf32>
    %345 = arith.mulf %224, %344 : vector<16x64xf32>
    %346 = arith.truncf %345 : vector<16x64xf32> to vector<16x64xbf16>
    %347 = vector.broadcast %343 : vector<1x64xf32> to vector<32x64xf32>
    %348 = arith.mulf %222, %347 : vector<32x64xf32>
    %349 = arith.truncf %348 : vector<32x64xf32> to vector<32x64xbf16>
    %cst_105 = arith.constant dense<0.000000e+00> : vector<16x32xf32>
    %350 = tpu.matmul %346, %254, %cst_105 {dimension_numbers = #tpu.dot_dimension_numbers<[1], [1], [0], [0], [0, 0, 1, 0], [], []>} : vector<16x64xbf16>, vector<32x64xbf16>, vector<16x32xf32> -> vector<16x32xf32>
    %351 = arith.addf %350, %252 : vector<16x32xf32>
    %cst_106 = arith.constant dense<0xFF800000> : vector<16xf32>
    %352 = vector.multi_reduction <maximumf>, %351, %cst_106 [1] : vector<16x32xf32> to vector<16xf32>
    %353 = vector.shape_cast %352 : vector<16xf32> to vector<16x1xf32>
    %354 = vector.broadcast %353 : vector<16x1xf32> to vector<16x32xf32>
    %355 = arith.subf %351, %354 : vector<16x32xf32>
    %356 = math.exp %355 : vector<16x32xf32>
    %cst_107 = arith.constant dense<0.000000e+00> : vector<16xf32>
    %357 = vector.multi_reduction <add>, %356, %cst_107 [1] : vector<16x32xf32> to vector<16xf32>
    %358 = vector.shape_cast %357 : vector<16xf32> to vector<16x1xf32>
    %359 = vector.broadcast %358 : vector<16x1xf32> to vector<16x32xf32>
    %360 = arith.divf %356, %359 : vector<16x32xf32>
    %361 = arith.truncf %360 : vector<16x32xf32> to vector<16x32xbf16>
    %cst_108 = arith.constant dense<0.000000e+00> : vector<16x64xf32>
    %362 = tpu.matmul %361, %349, %cst_108 {dimension_numbers = #tpu.dot_dimension_numbers<[1], [0], [0], [1], [0, 0, 1, 1], [], []>} : vector<16x32xbf16>, vector<32x64xbf16>, vector<16x64xf32> -> vector<16x64xf32>
    %363 = arith.addf %336, %362 : vector<16x64xf32>
    %364 = arith.truncf %363 : vector<16x64xf32> to vector<16x64xbf16>
    %cst_109 = arith.constant dense<0.000000e+00> : vector<16x64xf32>
    %365 = tpu.matmul %364, %206, %cst_109 {dimension_numbers = #tpu.dot_dimension_numbers<[1], [0], [0], [1], [0, 0, 1, 1], [], []>} : vector<16x64xbf16>, vector<64x64xbf16>, vector<16x64xf32> -> vector<16x64xf32>
    %366 = vector.broadcast %210 : vector<1x64xf32> to vector<16x64xf32>
    %367 = arith.addf %365, %366 : vector<16x64xf32>
    %368 = arith.addf %198, %367 : vector<16x64xf32>
    %369 = vector.extract_strided_slice %6 {offsets = [10, 0], sizes = [1, 64], strides = [1, 1]} : vector<15x64xf32> to vector<1x64xf32>
    %370 = vector.extract_strided_slice %6 {offsets = [11, 0], sizes = [1, 64], strides = [1, 1]} : vector<15x64xf32> to vector<1x64xf32>
    %cst_110 = arith.constant dense<0.000000e+00> : vector<16xf32>
    %371 = vector.multi_reduction <add>, %368, %cst_110 [1] : vector<16x64xf32> to vector<16xf32>
    %372 = vector.shape_cast %371 : vector<16xf32> to vector<16x1xf32>
    %cst_111 = arith.constant 6.400000e+01 : f32
    %373 = vector.broadcast %cst_111 : f32 to vector<16x1xf32>
    %374 = arith.divf %372, %373 : vector<16x1xf32>
    %375 = vector.broadcast %374 : vector<16x1xf32> to vector<16x64xf32>
    %376 = arith.subf %368, %375 : vector<16x64xf32>
    %377 = arith.mulf %376, %376 : vector<16x64xf32>
    %cst_112 = arith.constant dense<0.000000e+00> : vector<16xf32>
    %378 = vector.multi_reduction <add>, %377, %cst_112 [1] : vector<16x64xf32> to vector<16xf32>
    %379 = vector.shape_cast %378 : vector<16xf32> to vector<16x1xf32>
    %cst_113 = arith.constant 6.400000e+01 : f32
    %380 = vector.broadcast %cst_113 : f32 to vector<16x1xf32>
    %381 = arith.divf %379, %380 : vector<16x1xf32>
    %cst_114 = arith.constant 9.99999974E-6 : f32
    %382 = vector.broadcast %cst_114 : f32 to vector<16x1xf32>
    %383 = arith.addf %381, %382 : vector<16x1xf32>
    %384 = math.rsqrt %383 : vector<16x1xf32>
    %385 = vector.broadcast %384 : vector<16x1xf32> to vector<16x64xf32>
    %386 = arith.mulf %376, %385 : vector<16x64xf32>
    %387 = vector.broadcast %369 : vector<1x64xf32> to vector<16x64xf32>
    %388 = arith.mulf %386, %387 : vector<16x64xf32>
    %389 = vector.broadcast %370 : vector<1x64xf32> to vector<16x64xf32>
    %390 = arith.addf %388, %389 : vector<16x64xf32>
    %c0_115 = arith.constant 0 : index
    %c0_116 = arith.constant 0 : index
    %c0_117 = arith.constant 0 : index
    %391 = vector.load %arg14[%c0_115, %c0_116, %c0_117] : memref<1x64x2048xbf16, #tpu.memory_space<vmem>>, vector<1x64x2048xbf16>
    %392 = vector.shape_cast %391 : vector<1x64x2048xbf16> to vector<64x2048xbf16>
    %c0_118 = arith.constant 0 : index
    %c0_119 = arith.constant 0 : index
    %c0_120 = arith.constant 0 : index
    %393 = vector.load %arg15[%c0_118, %c0_119, %c0_120] : memref<1x1x2048xf32, #tpu.memory_space<vmem>>, vector<1x1x2048xf32>
    %394 = vector.shape_cast %393 : vector<1x1x2048xf32> to vector<1x2048xf32>
    %c0_121 = arith.constant 0 : index
    %c0_122 = arith.constant 0 : index
    %c0_123 = arith.constant 0 : index
    %395 = vector.load %arg16[%c0_121, %c0_122, %c0_123] : memref<1x64x2048xbf16, #tpu.memory_space<vmem>>, vector<1x64x2048xbf16>
    %396 = vector.shape_cast %395 : vector<1x64x2048xbf16> to vector<64x2048xbf16>
    %397 = vector.extract_strided_slice %6 {offsets = [12, 0], sizes = [1, 64], strides = [1, 1]} : vector<15x64xf32> to vector<1x64xf32>
    %398 = arith.truncf %390 : vector<16x64xf32> to vector<16x64xbf16>
    %cst_124 = arith.constant dense<0.000000e+00> : vector<16x2048xf32>
    %399 = tpu.matmul %398, %392, %cst_124 {dimension_numbers = #tpu.dot_dimension_numbers<[1], [0], [0], [1], [0, 0, 1, 1], [], []>} : vector<16x64xbf16>, vector<64x2048xbf16>, vector<16x2048xf32> -> vector<16x2048xf32>
    %400 = vector.broadcast %394 : vector<1x2048xf32> to vector<16x2048xf32>
    %401 = arith.addf %399, %400 : vector<16x2048xf32>
    %cst_125 = arith.constant 0.000000e+00 : f32
    %402 = vector.broadcast %cst_125 : f32 to vector<16x2048xf32>
    %403 = arith.maximumf %401, %402 : vector<16x2048xf32>
    %404 = arith.truncf %403 : vector<16x2048xf32> to vector<16x2048xbf16>
    %cst_126 = arith.constant dense<0.000000e+00> : vector<16x64xf32>
    %405 = tpu.matmul %404, %396, %cst_126 {dimension_numbers = #tpu.dot_dimension_numbers<[1], [1], [0], [0], [0, 0, 1, 0], [], []>} : vector<16x2048xbf16>, vector<64x2048xbf16>, vector<16x64xf32> -> vector<16x64xf32>
    %406 = vector.broadcast %397 : vector<1x64xf32> to vector<16x64xf32>
    %407 = arith.addf %405, %406 : vector<16x64xf32>
    %408 = arith.addf %390, %407 : vector<16x64xf32>
    %409 = vector.extract_strided_slice %6 {offsets = [13, 0], sizes = [1, 64], strides = [1, 1]} : vector<15x64xf32> to vector<1x64xf32>
    %410 = vector.extract_strided_slice %6 {offsets = [14, 0], sizes = [1, 64], strides = [1, 1]} : vector<15x64xf32> to vector<1x64xf32>
    %cst_127 = arith.constant dense<0.000000e+00> : vector<16xf32>
    %411 = vector.multi_reduction <add>, %408, %cst_127 [1] : vector<16x64xf32> to vector<16xf32>
    %412 = vector.shape_cast %411 : vector<16xf32> to vector<16x1xf32>
    %cst_128 = arith.constant 6.400000e+01 : f32
    %413 = vector.broadcast %cst_128 : f32 to vector<16x1xf32>
    %414 = arith.divf %412, %413 : vector<16x1xf32>
    %415 = vector.broadcast %414 : vector<16x1xf32> to vector<16x64xf32>
    %416 = arith.subf %408, %415 : vector<16x64xf32>
    %417 = arith.mulf %416, %416 : vector<16x64xf32>
    %cst_129 = arith.constant dense<0.000000e+00> : vector<16xf32>
    %418 = vector.multi_reduction <add>, %417, %cst_129 [1] : vector<16x64xf32> to vector<16xf32>
    %419 = vector.shape_cast %418 : vector<16xf32> to vector<16x1xf32>
    %cst_130 = arith.constant 6.400000e+01 : f32
    %420 = vector.broadcast %cst_130 : f32 to vector<16x1xf32>
    %421 = arith.divf %419, %420 : vector<16x1xf32>
    %cst_131 = arith.constant 9.99999974E-6 : f32
    %422 = vector.broadcast %cst_131 : f32 to vector<16x1xf32>
    %423 = arith.addf %421, %422 : vector<16x1xf32>
    %424 = math.rsqrt %423 : vector<16x1xf32>
    %425 = vector.broadcast %424 : vector<16x1xf32> to vector<16x64xf32>
    %426 = arith.mulf %416, %425 : vector<16x64xf32>
    %427 = vector.broadcast %409 : vector<1x64xf32> to vector<16x64xf32>
    %428 = arith.mulf %426, %427 : vector<16x64xf32>
    %429 = vector.broadcast %410 : vector<1x64xf32> to vector<16x64xf32>
    %430 = arith.addf %428, %429 : vector<16x64xf32>
    %c0_132 = arith.constant 0 : index
    %c0_133 = arith.constant 0 : index
    %431 = vector.load %arg21[%c0_132, %c0_133] : memref<16x64xf32, #tpu.memory_space<vmem>>, vector<16x64xf32>
    tpu.vector_store %arg21[%c0_132, %c0_133], %430 {strides = array<i32>} : memref<16x64xf32, #tpu.memory_space<vmem>>, vector<16x64xf32>,
    %c0_134 = arith.constant 0 : index
    %c0_135 = arith.constant 0 : index
    %432 = vector.load %arg18[%c0_134, %c0_135] : memref<1x64xf32, #tpu.memory_space<vmem>>, vector<1x64xf32>
    %433 = vector.broadcast %432 : vector<1x64xf32> to vector<16x64xf32>
    %434 = arith.mulf %430, %433 : vector<16x64xf32>
    %cst_136 = arith.constant dense<0.000000e+00> : vector<16xf32>
    %435 = vector.multi_reduction <add>, %434, %cst_136 [1] : vector<16x64xf32> to vector<16xf32>
    %436 = vector.shape_cast %435 : vector<16xf32> to vector<16x1xf32>
    %c0_137 = arith.constant 0 : index
    %c0_138 = arith.constant 0 : index
    %437 = vector.load %arg19[%c0_137, %c0_138] : memref<1x1xf32, #tpu.memory_space<vmem>>, vector<1x1xf32>
    %438 = vector.broadcast %437 : vector<1x1xf32> to vector<16x1xf32>
    %439 = arith.addf %436, %438 : vector<16x1xf32>
    %c0_139 = arith.constant 0 : index
    %c0_140 = arith.constant 0 : index
    %440 = vector.load %arg20[%c0_139, %c0_140] : memref<16x1xf32, #tpu.memory_space<vmem>>, vector<16x1xf32>
    tpu.vector_store %arg20[%c0_139, %c0_140], %439 {strides = array<i32>} : memref<16x1xf32, #tpu.memory_space<vmem>>, vector<16x1xf32>,
    return
  }
  func.func @transform_0(%arg0: i32) -> (i32, i32) {
    %c0_i32 = arith.constant 0 : i32
    %c0_i32_0 = arith.constant 0 : i32
    %c0_i32_1 = arith.constant 0 : i32
    return %c0_i32, %c0_i32_0 : i32, i32
  }
  func.func @transform_1(%arg0: i32) -> (i32, i32) {
    %c0_i32 = arith.constant 0 : i32
    %c0_i32_0 = arith.constant 0 : i32
    %c0_i32_1 = arith.constant 0 : i32
    return %c0_i32, %c0_i32_0 : i32, i32
  }
  func.func @transform_2(%arg0: i32) -> (i32, i32) {
    %c0_i32 = arith.constant 0 : i32
    %c0_i32_0 = arith.constant 0 : i32
    %c0_i32_1 = arith.constant 0 : i32
    return %c0_i32, %c0_i32_0 : i32, i32
  }
  func.func @transform_3(%arg0: i32) -> (i32, i32) {
    %c0_i32 = arith.constant 0 : i32
    %c0_i32_0 = arith.constant 0 : i32
    %c0_i32_1 = arith.constant 0 : i32
    return %c0_i32, %c0_i32_0 : i32, i32
  }
  func.func @transform_4(%arg0: i32) -> (i32, i32) {
    %c0_i32 = arith.constant 0 : i32
    %c0_i32_0 = arith.constant 0 : i32
    %c0_i32_1 = arith.constant 0 : i32
    return %c0_i32, %c0_i32_0 : i32, i32
  }
  func.func @transform_5(%arg0: i32) -> (i32, i32, i32) {
    %c0_i32 = arith.constant 0 : i32
    %c0_i32_0 = arith.constant 0 : i32
    %c0_i32_1 = arith.constant 0 : i32
    return %arg0, %c0_i32, %c0_i32_0 : i32, i32, i32
  }
  func.func @transform_6(%arg0: i32) -> (i32, i32, i32) {
    %c0_i32 = arith.constant 0 : i32
    %c0_i32_0 = arith.constant 0 : i32
    %c0_i32_1 = arith.constant 0 : i32
    return %arg0, %c0_i32, %c0_i32_0 : i32, i32, i32
  }
  func.func @transform_7(%arg0: i32) -> (i32, i32, i32) {
    %c0_i32 = arith.constant 0 : i32
    %c0_i32_0 = arith.constant 0 : i32
    %c0_i32_1 = arith.constant 0 : i32
    return %arg0, %c0_i32, %c0_i32_0 : i32, i32, i32
  }
  func.func @transform_8(%arg0: i32) -> (i32, i32, i32) {
    %c0_i32 = arith.constant 0 : i32
    %c0_i32_0 = arith.constant 0 : i32
    %c0_i32_1 = arith.constant 0 : i32
    return %arg0, %c0_i32, %c0_i32_0 : i32, i32, i32
  }
  func.func @transform_9(%arg0: i32) -> (i32, i32, i32) {
    %c0_i32 = arith.constant 0 : i32
    %c0_i32_0 = arith.constant 0 : i32
    %c0_i32_1 = arith.constant 0 : i32
    return %arg0, %c0_i32, %c0_i32_0 : i32, i32, i32
  }
  func.func @transform_10(%arg0: i32) -> (i32, i32, i32) {
    %c0_i32 = arith.constant 0 : i32
    %c0_i32_0 = arith.constant 0 : i32
    %c0_i32_1 = arith.constant 0 : i32
    return %arg0, %c0_i32, %c0_i32_0 : i32, i32, i32
  }
  func.func @transform_11(%arg0: i32) -> (i32, i32, i32) {
    %c0_i32 = arith.constant 0 : i32
    %c0_i32_0 = arith.constant 0 : i32
    %c0_i32_1 = arith.constant 0 : i32
    return %arg0, %c0_i32, %c0_i32_0 : i32, i32, i32
  }
  func.func @transform_12(%arg0: i32) -> (i32, i32, i32) {
    %c0_i32 = arith.constant 0 : i32
    %c0_i32_0 = arith.constant 0 : i32
    %c0_i32_1 = arith.constant 0 : i32
    return %arg0, %c0_i32, %c0_i32_0 : i32, i32, i32
  }
  func.func @transform_13(%arg0: i32) -> (i32, i32, i32) {
    %c0_i32 = arith.constant 0 : i32
    %c0_i32_0 = arith.constant 0 : i32
    %c0_i32_1 = arith.constant 0 : i32
    return %arg0, %c0_i32, %c0_i32_0 : i32, i32, i32
  }
  func.func @transform_14(%arg0: i32) -> (i32, i32, i32) {
    %c0_i32 = arith.constant 0 : i32
    %c0_i32_0 = arith.constant 0 : i32
    %c0_i32_1 = arith.constant 0 : i32
    return %arg0, %c0_i32, %c0_i32_0 : i32, i32, i32
  }
  func.func @transform_15(%arg0: i32) -> (i32, i32, i32) {
    %c0_i32 = arith.constant 0 : i32
    %c0_i32_0 = arith.constant 0 : i32
    %c0_i32_1 = arith.constant 0 : i32
    return %arg0, %c0_i32, %c0_i32_0 : i32, i32, i32
  }
  func.func @transform_16(%arg0: i32) -> (i32, i32, i32) {
    %c0_i32 = arith.constant 0 : i32
    %c0_i32_0 = arith.constant 0 : i32
    %c0_i32_1 = arith.constant 0 : i32
    return %arg0, %c0_i32, %c0_i32_0 : i32, i32, i32
  }
  func.func @transform_17(%arg0: i32) -> (i32, i32) {
    %c0_i32 = arith.constant 0 : i32
    %c0_i32_0 = arith.constant 0 : i32
    %c0_i32_1 = arith.constant 0 : i32
    return %c0_i32, %c0_i32_0 : i32, i32
  }
  func.func @transform_18(%arg0: i32) -> (i32, i32) {
    %c0_i32 = arith.constant 0 : i32
    %c0_i32_0 = arith.constant 0 : i32
    %c0_i32_1 = arith.constant 0 : i32
    return %c0_i32, %c0_i32_0 : i32, i32
  }
  func.func @transform_19(%arg0: i32) -> (i32, i32) {
    %c0_i32 = arith.constant 0 : i32
    %c0_i32_0 = arith.constant 0 : i32
    %c0_i32_1 = arith.constant 0 : i32
    return %c0_i32, %c0_i32_0 : i32, i32
  }
}

</mosaic_0001>

<bundles_post_ra>
// kernel: transformer_forward.2
= control target key start
LH: loop header
LB: loop body
LE: loop exit
PB: predicated region body
PF: predicated region fallthrough
CT: control target
= control target key end

     0   :  { %s6336_s0 = inlined_call_operand.vmem [shape: f32[32,1], index: 0, kind: input, shape index: {}]   ;;  %s6337_s1 = inlined_call_operand.vmem [shape: f32[32,64], index: 1, kind: input, shape index: {}]   ;;  %s6338_s2 = inlined_call_operand.hbm [shape: f32[1,64], index: 2, kind: input, shape index: {}]   ;;  %s6339_s3 = inlined_call_operand.hbm [shape: f32[1,64], index: 3, kind: input, shape index: {}]   ;;  %s6340_s4 = inlined_call_operand.hbm [shape: bf16[3,64,64], index: 4, kind: input, shape index: {}]   ;;  %s6341_s5 = inlined_call_operand.hbm [shape: bf16[3,64,64], index: 5, kind: input, shape index: {}]   ;;  %s6342_s6 = inlined_call_operand.hbm [shape: bf16[3,64,64], index: 6, kind: input, shape index: {}]   ;;  %s6343_s7 = inlined_call_operand.hbm [shape: bf16[3,64,64], index: 7, kind: input, shape index: {}]   ;;  %s6344_s8 = inlined_call_operand.hbm [shape: bf16[3,64,2048], index: 8, kind: input, shape index: {}]   ;;  %s6345_s9 = inlined_call_operand.hbm [shape: f32[3,1,2048], index: 9, kind: input, shape index: {}]   ;;  %s6346_s10 = inlined_call_operand.hbm [shape: bf16[3,64,2048], index: 10, kind: input, shape index: {}]   ;;  %s6347_s11 = inlined_call_operand.vmem [shape: f32[3,9,64], index: 11, kind: input, shape index: {}]   ;;  %s6348_s12 = inlined_call_operand.vmem [shape: f32[32,64], index: 12, kind: output, shape index: {}]  }
   0x1   :  { %6370 = sst [smem:[#allocation22_spill]] %s6336_s0 }
   0x2   :  { %6371 = sst [smem:[#allocation23_spill]] %s6337_s1 }
   0x3   :  { %6372 = sst [smem:[#allocation24_spill]] %s6338_s2 }
   0x4   :  { %6373 = sst [smem:[#allocation25_spill]] %s6340_s4 }
   0x5   :  { %6374 = sst [smem:[#allocation26_spill]] %s6341_s5 }
   0x6   :  { %6375 = sst [smem:[#allocation27_spill]] %s6347_s11 }
   0x7   :  { %6376 = sst [smem:[#allocation28_spill]] %s6348_s12 }
   0x8   :  { %17 = vsyncpa [#allocation4], 0 }
   0x9   :  { %18 = vsyncpa [#allocation6], 0  ;;  %s5004_s21 = smov 0   ;;  %s5006_s22 = smov 0  }
   0xa   :  { %s5008_s23 = smov 0   ;;  %s5010_s24 = smov 0  }
   0xb LB: > { %6377 = sst [smem:[#allocation17_spill]] %s4913_s22  ;;  %s5023_s25 = sadd.s32 4294967295, %s4921_s24   ;;  %s4921_s24 = sphi %s5010_s24, %s6416_s24   ;;  %s4917_s23 = sphi %s5008_s23, %s6419_s23   ;;  %s4913_s22 = sphi %s5006_s22, %s6418_s22   ;;  %s4909_s21 = sphi %s5004_s21, %s6417_s21  }
   0xc   : > { %6378 = sst [smem:[#allocation18_spill]] %s4917_s23  ;;  %s5026_s26 = sadd.s32 1, %s4921_s24  }
   0xd   : > { %6379 = sst [smem:[#allocation19_spill]] %s5026_s26  ;;  %s112_s27 = ssub.s32 %s4921_s24, %s5026_s26 }
   0xe   : > { %s115_s28 = sadd.s32 1, %s4917_s23  ;;  %p113_p0 = scmp.eq.s32.totalorder %s112_s27, 0 }
   0xf   : > { %p122_p1 = scmp.ne.s32.totalorder %s4917_s23, %s4913_s22  ;;  %p123_p2 = scmp.eq.s32.totalorder %s4921_s24, 0 }
  0x10   : > { %p128_p3 = scmp.ne.s32.totalorder %s4913_s22, %s4909_s21  ;;  %p6353_p5 = scmp.eq.s32.totalorder %s5023_s25, 0 }
  0x11   : > { %s5036_s29 = scalar_select %p113_p0, %s4917_s23, %s115_s28  }
  0x12   : > { %p5038_p4 = por %p123_p2, %p122_p1  ;;  %p3989_p6 = scmp.ge.s32.totalorder %s4921_s24, 1 }
  0x13   : > { %6380 = sst [smem:[#allocation20_spill]] %s5036_s29  ;;  %p342_p7 = scmp.lt.s32.totalorder %s4921_s24, 4 }
  0x14   : > { %p5047_p8 = por %p6353_p5, %p128_p3  ;;  %s4923_s15 = smov [#allocation3]  }
  0x15   : > { %p5052_p10 = pnand %p3989_p6, %p342_p7  ;;  %s361_s16 = sshll.u32 %s4923_s15, 4  ;;  %s362_s16 = int_to_ptr.vmem [resolvable:$true] %s361_s16 }
  0x16   : > { %s6382_s13 = scalar_select %p5047_p8, 1, 0 }
  0x17   : > { %s6384_s14 = scalar_select %p5052_p10, 1, 0 }
  0x18   : > { %6383 = sst [smem:[#allocation21_spill]] %s6382_s13  ;;  %p4438_p11 = pneg %p5052_p10 }
  0x19   : > { %p4469_p12 = scmp.lt.s32.totalorder %s4921_s24, 3  ;;  %s383_s17 = sand.u32 1, %s4921_s24  }
  0x1a   : > { %p5062_p13 = pnand %p4438_p11, %p6353_p5  ;;  %s5073_s20 = sand.u32 1, %s4917_s23  }
  0x1b   : > { %p5068_p0 = pnand %p4469_p12, %p5038_p4  ;;  %s5076_s21 = sshll.u32 %s5073_s20, 5 }
  0x1c   : > { %s6385_s18 = scalar_select %p5062_p13, 1, 0 }
  0x1d   : > { %s6386_s19 = scalar_select %p5068_p0, 1, 0 }
  0x1e   : > { %s6387_s2 = sld [smem:[#allocation24_spill]]  ;;  %p6358_p2 = pneg %p5062_p13 }
  0x24   : > { %s4613_s15 = scalar_lea.hbm %s6387_s2, 16 }
  0x25   : > { %p4614_p1 = scmp.ne.s32.totalorder %s6387_s2, %s4613_s15  ;;  %p4620_p6 = scmp.lt.u32.totalorder %s4613_s15, %s6387_s2 }
  0x27   : > { %p4616_p3 = pnand %p6358_p2, %p4614_p1 }
  0x29   : > { %p4617_p4 = pneg %p4616_p3 }
  0x2b   : > { %p4622_p7 = pnand %p4620_p6, %p4617_p4 }
  0x2d   : > { %4625 = shalt.err (!%p4622_p7)
}
  0x2e   : > { %s4626_s12 = scalar_lea.vmem %s362_s16, 16  ;;  %s4633_s26 = scalar_lea.vmem %s362_s16, 32 }
  0x2f   : > { %p4627_p11 = scmp.ne.s32.totalorder %s362_s16, %s4626_s12  ;;  %p4634_p5 = scmp.lt.s32.totalorder %s362_s16, %s362_s16 }
  0x30   : > { %p4635_p8 = scmp.lt.s32.totalorder %s4633_s26, %s4626_s12 }
  0x31   : > { %p4629_p12 = pnand %p4627_p11, %p6358_p2 }
  0x32   : > { %p4636_p10 = por %p4635_p8, %p4634_p5 }
  0x33   : > { %p4630_p9 = pneg %p4629_p12 }
  0x35   : > { %p4637_p0 = pnand %p4636_p10, %p4630_p9 }
  0x37   : > { %4640 = shalt.err (!%p4637_p0)
}
  0x38   : > { %4441 = dma.hbm_to_vmem [thread:$0]  (!%p5062_p13), %s6387_s2, 16, %s362_s16, [#allocation4]  }
  0x39   : > { %s5101_s27 = sshll.u32 %s4921_s24, 9  ;;  %s387_s28 = scalar_lea.vmem [#allocation7], %s5076_s21 }
  0x3a   : > { %s394_s15 = sshll.u32 %s387_s28, 4  ;;  %s6388_s4 = sld [smem:[#allocation25_spill]]  ;;  %s5110_s15 = int_to_ptr.vmem [resolvable:$true] %s394_s15 }
  0x3b   : > { %s5112_s26 = scalar_lea.sflag [#allocation4], %s383_s17  ;;  %p6389_p8 = scmp.ne.s32.totalorder %s6386_s19, 0 }
  0x3d   : > { %p5118_p9 = pneg %p6389_p8 }
  0x3f   : > { %s6390_s16 = scalar_select %p5118_p9, 1, 0 }
  0x40   : > { %s5108_s12 = scalar_lea.hbm %s6388_s4, %s5101_s27  ;;  %s4646_s28 = scalar_lea.hbm %s6388_s4, 1536 }
  0x41   : > { %s4641_s29 = scalar_lea.hbm %s5108_s12, 512  ;;  %p4647_p1 = scmp.lt.u32.totalorder %s5108_s12, %s6388_s4 }
  0x42   : > { %p4642_p5 = scmp.ne.s32.totalorder %s5108_s12, %s4641_s29  ;;  %p4648_p3 = scmp.lt.u32.totalorder %s4646_s28, %s4641_s29 }
  0x43   : > { %p4650_p6 = scmp.lt.u32.totalorder %s4641_s29, %s5108_s12 }
  0x44   : > { %p4644_p10 = pnand %p5118_p9, %p4642_p5  ;;  %p4649_p4 = por %p4648_p3, %p4647_p1 }
  0x46   : > { %p4645_p0 = pneg %p4644_p10  ;;  %p4651_p7 = por %p4650_p6, %p4649_p4 }
  0x48   : > { %p4652_p11 = pnand %p4651_p7, %p4645_p0 }
  0x4a   : > { %4655 = shalt.err (!%p4652_p11)
}
  0x4b   : > { %s4656_s17 = scalar_lea.vmem %s5110_s15, 512  ;;  %s4924_s1 = smov [#allocation7]  }
  0x4c   : > { %p4657_p12 = scmp.ne.s32.totalorder %s5110_s15, %s4656_s17  ;;  %s4661_s23 = sshll.u32 %s4924_s1, 4  ;;  %s4662_s23 = int_to_ptr.vmem [resolvable:$false] %s4661_s23 }
  0x4d   : > { %s4663_s2 = scalar_lea.vmem %s4662_s23, 1024  ;;  %p4664_p2 = scmp.lt.s32.totalorder %s5110_s15, %s4662_s23 }
  0x4e   : > { %p4659_p5 = pnand %p4657_p12, %p5118_p9  ;;  %p4665_p13 = scmp.lt.s32.totalorder %s4663_s2, %s4656_s17 }
  0x50   : > { %p4660_p10 = pneg %p4659_p5  ;;  %p4666_p1 = por %p4665_p13, %p4664_p2 }
  0x52   : > { %p4667_p3 = pnand %p4666_p1, %p4660_p10 }
  0x54   : > { %4670 = shalt.err (!%p4667_p3)
}
  0x55   : > { %s6364_s29 = smov 64   ;;  %s4926_s28 = smov 4  }
  0x56   : > { %4448 = dma.hbm_to_vmem [thread:$0]  (!%p6389_p8), %s5108_s12, 512, %s5110_s15, %s5112_s26, %s6364_s29, %s6364_s29, %s4926_s28  }
  0x57   : > { %s6391_s5 = sld [smem:[#allocation26_spill]]  ;;  %s408_s23 = scalar_lea.vmem [#allocation8], %s5076_s21 }
  0x58   : > { %s415_s2 = sshll.u32 %s408_s23, 4  ;;  %s5158_s11 = scalar_lea.hbm %s6342_s6, %s5101_s27  ;;  %s5152_s2 = int_to_ptr.vmem [resolvable:$true] %s415_s2 }
  0x5d   : > { %s5149_s1 = scalar_lea.hbm %s6391_s5, %s5101_s27  ;;  %s4676_s30 = scalar_lea.hbm %s6391_s5, 1536 }
  0x5e   : > { %s4671_s13 = scalar_lea.hbm %s5149_s1, 512  ;;  %p4677_p4 = scmp.lt.u32.totalorder %s5149_s1, %s6391_s5 }
  0x5f   : > { %p4672_p13 = scmp.ne.s32.totalorder %s5149_s1, %s4671_s13  ;;  %p4678_p6 = scmp.lt.u32.totalorder %s4676_s30, %s4671_s13 }
  0x60   : > { %p4680_p11 = scmp.lt.u32.totalorder %s4671_s13, %s5149_s1 }
  0x61   : > { %p4674_p2 = pnand %p4672_p13, %p5118_p9  ;;  %p4679_p7 = por %p4678_p6, %p4677_p4 }
  0x63   : > { %p4675_p0 = pneg %p4674_p2  ;;  %p4681_p12 = por %p4680_p11, %p4679_p7 }
  0x65   : > { %p4682_p5 = pnand %p4681_p12, %p4675_p0 }
  0x67   : > { %4685 = shalt.err (!%p4682_p5)
}
  0x68   : > { %s4686_s0 = scalar_lea.vmem %s5152_s2, 512  ;;  %s4927_s4 = smov [#allocation8]  }
  0x69   : > { %p4687_p10 = scmp.ne.s32.totalorder %s5152_s2, %s4686_s0  ;;  %s4691_s23 = sshll.u32 %s4927_s4, 4  ;;  %s4692_s23 = int_to_ptr.vmem [resolvable:$false] %s4691_s23 }
  0x6a   : > { %s4693_s29 = scalar_lea.vmem %s4692_s23, 1024  ;;  %p4694_p13 = scmp.lt.s32.totalorder %s5152_s2, %s4692_s23 }
  0x6b   : > { %p4689_p1 = pnand %p4687_p10, %p5118_p9  ;;  %p4695_p2 = scmp.lt.s32.totalorder %s4693_s29, %s4686_s0 }
  0x6d   : > { %p4690_p3 = pneg %p4689_p1  ;;  %p4696_p4 = por %p4695_p2, %p4694_p13 }
  0x6f   : > { %p4697_p6 = pnand %p4696_p4, %p4690_p3 }
  0x71   : > { %4700 = shalt.err (!%p4697_p6)
}
  0x72   : > { %s6392_s13 = smov 64   ;;  %s429_s15 = scalar_lea.vmem [#allocation9], %s5076_s21 }
  0x73   : > { %4451 = dma.hbm_to_vmem [thread:$0]  (!%p6389_p8), %s5149_s1, 512, %s5152_s2, %s5112_s26, %s6392_s13, %s6392_s13, %s4926_s28  }
  0x74   : > { %s436_s12 = sshll.u32 %s429_s15, 4  ;;  %s5192_s0 = scalar_lea.hbm %s6343_s7, %s5101_s27  ;;  %s5186_s12 = int_to_ptr.vmem [resolvable:$true] %s436_s12 }
  0x75   : > { %s4701_s4 = scalar_lea.hbm %s5158_s11, 512  ;;  %s4706_s5 = scalar_lea.hbm %s6342_s6, 1536 }
  0x76   : > { %p4702_p0 = scmp.ne.s32.totalorder %s5158_s11, %s4701_s4  ;;  %p4707_p12 = scmp.lt.u32.totalorder %s5158_s11, %s6342_s6 }
  0x77   : > { %p4708_p5 = scmp.lt.u32.totalorder %s4706_s5, %s4701_s4  ;;  %p4710_p1 = scmp.lt.u32.totalorder %s4701_s4, %s5158_s11 }
  0x78   : > { %p4704_p7 = pnand %p4702_p0, %p5118_p9 }
  0x79   : > { %p4709_p10 = por %p4708_p5, %p4707_p12 }
  0x7a   : > { %p4705_p11 = pneg %p4704_p7 }
  0x7b   : > { %p4711_p3 = por %p4710_p1, %p4709_p10 }
  0x7d   : > { %p4712_p13 = pnand %p4711_p3, %p4705_p11 }
  0x7f   : > { %4715 = shalt.err (!%p4712_p13)
}
  0x80   : > { %s4716_s27 = scalar_lea.vmem %s5186_s12, 512  ;;  %s4928_s2 = smov [#allocation9]  }
  0x81   : > { %p4717_p2 = scmp.ne.s32.totalorder %s5186_s12, %s4716_s27  ;;  %s4721_s15 = sshll.u32 %s4928_s2, 4  ;;  %s4722_s15 = int_to_ptr.vmem [resolvable:$false] %s4721_s15 }
  0x82   : > { %s4723_s22 = scalar_lea.vmem %s4722_s15, 1024  ;;  %p4724_p0 = scmp.lt.s32.totalorder %s5186_s12, %s4722_s15 }
  0x83   : > { %p4719_p4 = pnand %p4717_p2, %p5118_p9  ;;  %p4725_p7 = scmp.lt.s32.totalorder %s4723_s22, %s4716_s27 }
  0x85   : > { %p4720_p6 = pneg %p4719_p4  ;;  %p4726_p12 = por %p4725_p7, %p4724_p0 }
  0x87   : > { %p4727_p5 = pnand %p4726_p12, %p4720_p6 }
  0x89   : > { %4730 = shalt.err (!%p4727_p5)
}
  0x8a   : > { %4454 = dma.hbm_to_vmem [thread:$0]  (!%p6389_p8), %s5158_s11, 512, %s5186_s12, %s5112_s26, %s6392_s13, %s6392_s13, %s4926_s28  }
  0x8b   : > { %s450_s5 = scalar_lea.vmem [#allocation10], %s5076_s21  ;;  %s4005_s17 = sshll.u32 %s5073_s20, 9 }
  0x8c   : > { %s457_s30 = sshll.u32 %s450_s5, 4  ;;  %s4731_s4 = scalar_lea.hbm %s5192_s0, 512  ;;  %s5221_s30 = int_to_ptr.vmem [resolvable:$true] %s457_s30 }
  0x8d   : > { %p4732_p11 = scmp.ne.s32.totalorder %s5192_s0, %s4731_s4  ;;  %s4736_s1 = scalar_lea.hbm %s6343_s7, 1536 }
  0x8e   : > { %p4737_p3 = scmp.lt.u32.totalorder %s5192_s0, %s6343_s7  ;;  %p4738_p13 = scmp.lt.u32.totalorder %s4736_s1, %s4731_s4 }
  0x8f   : > { %p4734_p10 = pnand %p4732_p11, %p5118_p9  ;;  %p4740_p4 = scmp.lt.u32.totalorder %s4731_s4, %s5192_s0 }
  0x90   : > { %p4739_p2 = por %p4738_p13, %p4737_p3 }
  0x91   : > { %p4735_p1 = pneg %p4734_p10 }
  0x92   : > { %p4741_p6 = por %p4740_p4, %p4739_p2 }
  0x94   : > { %p4742_p0 = pnand %p4741_p6, %p4735_p1 }
  0x96   : > { %4745 = shalt.err (!%p4742_p0)
}
  0x97   : > { %s4746_s11 = scalar_lea.vmem %s5221_s30, 512  ;;  %s4929_s21 = smov [#allocation10]  }
  0x98   : > { %p4747_p7 = scmp.ne.s32.totalorder %s5221_s30, %s4746_s11  ;;  %s4751_s12 = sshll.u32 %s4929_s21, 4  ;;  %s4752_s12 = int_to_ptr.vmem [resolvable:$false] %s4751_s12 }
  0x99   : > { %s4753_s15 = scalar_lea.vmem %s4752_s12, 1024  ;;  %p4754_p11 = scmp.lt.s32.totalorder %s5221_s30, %s4752_s12 }
  0x9a   : > { %p4749_p12 = pnand %p4747_p7, %p5118_p9  ;;  %p4755_p10 = scmp.lt.s32.totalorder %s4753_s15, %s4746_s11 }
  0x9c   : > { %p4750_p5 = pneg %p4749_p12  ;;  %p4756_p3 = por %p4755_p10, %p4754_p11 }
  0x9e   : > { %p4757_p13 = pnand %p4756_p3, %p4750_p5 }
  0xa0   : > { %4760 = shalt.err (!%p4757_p13)
}
  0xa1   : > { %4457 = dma.hbm_to_vmem [thread:$0]  (!%p6389_p8), %s5192_s0, 512, %s5221_s30, %s5112_s26, %s6392_s13, %s6392_s13, %s4926_s28  }
  0xa2   : > { %s4224_s22 = sshll.u32 %s4921_s24, 13  ;;  %s471_s5 = scalar_lea.vmem [#allocation11], %s4005_s17 }
  0xa3   : > { %s478_s4 = sshll.u32 %s471_s5, 4  ;;  %s5256_s1 = scalar_lea.hbm %s6344_s8, %s4224_s22  ;;  %s5258_s4 = int_to_ptr.vmem [resolvable:$true] %s478_s4 }
  0xa4   : > { %s4008_s27 = sshll.u32 %s5073_s20, 4  ;;  %s4761_s2 = scalar_lea.hbm %s5256_s1, 8192 }
  0xa5   : > { %p4762_p1 = scmp.ne.s32.totalorder %s5256_s1, %s4761_s2  ;;  %s4766_s30 = scalar_lea.hbm %s6344_s8, 24576 }
  0xa6   : > { %p4767_p6 = scmp.lt.u32.totalorder %s5256_s1, %s6344_s8  ;;  %p4768_p0 = scmp.lt.u32.totalorder %s4766_s30, %s4761_s2 }
  0xa7   : > { %p4764_p2 = pnand %p4762_p1, %p5118_p9  ;;  %p4770_p12 = scmp.lt.u32.totalorder %s4761_s2, %s5256_s1 }
  0xa8   : > { %p4769_p7 = por %p4768_p0, %p4767_p6 }
  0xa9   : > { %p4765_p4 = pneg %p4764_p2 }
  0xaa   : > { %p4771_p5 = por %p4770_p12, %p4769_p7 }
  0xac   : > { %p4772_p11 = pnand %p4771_p5, %p4765_p4 }
  0xae   : > { %4775 = shalt.err (!%p4772_p11)
}
  0xaf   : > { %s4776_s12 = scalar_lea.vmem %s5258_s4, 8192  ;;  %s4930_s15 = smov [#allocation11]  }
  0xb0   : > { %p4777_p10 = scmp.ne.s32.totalorder %s5258_s4, %s4776_s12  ;;  %s4781_s5 = sshll.u32 %s4930_s15, 4  ;;  %s4782_s5 = int_to_ptr.vmem [resolvable:$false] %s4781_s5 }
  0xb1   : > { %s4783_s23 = scalar_lea.vmem %s4782_s5, 16384  ;;  %p4784_p1 = scmp.lt.s32.totalorder %s5258_s4, %s4782_s5 }
  0xb2   : > { %p4779_p3 = pnand %p4777_p10, %p5118_p9  ;;  %p4785_p2 = scmp.lt.s32.totalorder %s4783_s23, %s4776_s12 }
  0xb4   : > { %p4780_p13 = pneg %p4779_p3  ;;  %p4786_p6 = por %p4785_p2, %p4784_p1 }
  0xb6   : > { %p4787_p0 = pnand %p4786_p6, %p4780_p13 }
  0xb8   : > { %4790 = shalt.err (!%p4787_p0)
}
  0xb9   : > { %s4931_s29 = smov 1024   ;;  %s4225_s2 = sshll.u32 %s4921_s24, 8 }
  0xba   : > { %4460 = dma.hbm_to_vmem [thread:$0]  (!%p6389_p8), %s5256_s1, 8192, %s5258_s4, %s5112_s26, %s4931_s29, %s4931_s29, %s6392_s13  }
  0xbb   : > { %s5290_s30 = scalar_lea.hbm %s6345_s9, %s4225_s2  ;;  %s492_s11 = scalar_lea.vmem [#allocation12], %s4008_s27 }
  0xbc   : > { %s500_s21 = sshll.u32 %s492_s11, 4  ;;  %s4791_s12 = scalar_lea.hbm %s5290_s30, 256  ;;  %s501_s21 = int_to_ptr.vmem [resolvable:$true] %s500_s21 }
  0xbd   : > { %p4792_p4 = scmp.ne.s32.totalorder %s5290_s30, %s4791_s12  ;;  %s4796_s15 = scalar_lea.hbm %s6345_s9, 768 }
  0xbe   : > { %p4797_p5 = scmp.lt.u32.totalorder %s5290_s30, %s6345_s9  ;;  %p4798_p11 = scmp.lt.u32.totalorder %s4796_s15, %s4791_s12 }
  0xbf   : > { %p4794_p7 = pnand %p4792_p4, %p5118_p9  ;;  %p4800_p3 = scmp.lt.u32.totalorder %s4791_s12, %s5290_s30 }
  0xc0   : > { %p4799_p10 = por %p4798_p11, %p4797_p5 }
  0xc1   : > { %p4795_p12 = pneg %p4794_p7 }
  0xc2   : > { %p4801_p13 = por %p4800_p3, %p4799_p10 }
  0xc4   : > { %p4802_p1 = pnand %p4801_p13, %p4795_p12 }
  0xc6   : > { %4805 = shalt.err (!%p4802_p1)
}
  0xc7   : > { %s4806_s27 = scalar_lea.vmem %s501_s21, 256  ;;  %s4932_s2 = smov [#allocation12]  }
  0xc8   : > { %p4807_p2 = scmp.ne.s32.totalorder %s501_s21, %s4806_s27  ;;  %s4811_s28 = sshll.u32 %s4932_s2, 4  ;;  %s4812_s28 = int_to_ptr.vmem [resolvable:$false] %s4811_s28 }
  0xc9   : > { %s4813_s0 = scalar_lea.vmem %s4812_s28, 512  ;;  %p4814_p4 = scmp.lt.s32.totalorder %s501_s21, %s4812_s28 }
  0xca   : > { %p4809_p6 = pnand %p4807_p2, %p5118_p9  ;;  %p4815_p7 = scmp.lt.s32.totalorder %s4813_s0, %s4806_s27 }
  0xcc   : > { %p4810_p0 = pneg %p4809_p6  ;;  %p4816_p8 = por %p4815_p7, %p4814_p4 }
  0xce   : > { %p4817_p5 = pnand %p4816_p8, %p4810_p0 }
  0xd0   : > { %4820 = shalt.err (!%p4817_p5)
}
  0xd1   : > { %p6393_p11 = scmp.ne.s32.totalorder %s6386_s19, 0  ;;  %s4933_s11 = smov [#allocation5]  }
  0xd2   : > { %s372_s12 = sshll.u32 %s4933_s11, 4  ;;  %s5317_s15 = scalar_lea.hbm %s6346_s10, %s4224_s22  ;;  %s373_s12 = int_to_ptr.vmem [resolvable:$true] %s372_s12 }
  0xd3   : > { %4463 = dma.hbm_to_vmem [thread:$0]  (!%p6393_p11), %s5290_s30, 256, %s501_s21, %s5112_s26  }
  0xd4   : > { %s4821_s27 = scalar_lea.hbm %s6339_s3, 16  ;;  %p6394_p12 = scmp.ne.s32.totalorder %s6385_s18, 0 }
  0xd5   : > { %p4822_p8 = scmp.ne.s32.totalorder %s6339_s3, %s4821_s27  ;;  %p4828_p1 = scmp.lt.u32.totalorder %s4821_s27, %s6339_s3 }
  0xd6   : > { %p6395_p10 = pneg %p6394_p12 }
  0xd8   : > { %p4824_p3 = pnand %p4822_p8, %p6395_p10 }
  0xda   : > { %p4825_p13 = pneg %p4824_p3 }
  0xdc   : > { %p4830_p2 = pnand %p4828_p1, %p4825_p13 }
  0xde   : > { %4833 = shalt.err (!%p4830_p2)
}
  0xdf   : > { %s4834_s24 = scalar_lea.vmem %s373_s12, 16  ;;  %p6396_p0 = pmov %p6395_p10 }
  0xe0   : > { %p4835_p6 = scmp.ne.s32.totalorder %s373_s12, %s4834_s24  ;;  %s4841_s22 = scalar_lea.vmem %s373_s12, 32 }
  0xe1   : > { %p4842_p5 = scmp.lt.s32.totalorder %s373_s12, %s373_s12  ;;  %p4843_p11 = scmp.lt.s32.totalorder %s4841_s22, %s4834_s24 }
  0xe2   : > { %p4837_p4 = pnand %p4835_p6, %p6396_p0 }
  0xe3   : > { %p4844_p9 = por %p4843_p11, %p4842_p5 }
  0xe4   : > { %p4838_p7 = pneg %p4837_p4 }
  0xe6   : > { %p4845_p8 = pnand %p4844_p9, %p4838_p7 }
  0xe8   : > { %4848 = shalt.err (!%p4845_p8)
}
  0xe9   : > { %4444 = dma.hbm_to_vmem [thread:$0]  (!%p6394_p12), %s6339_s3, 16, %s373_s12, [#allocation6]  }
  0xea   : > { %s511_s4 = scalar_lea.vmem [#allocation13], %s4005_s17  ;;  %s4849_s5 = scalar_lea.hbm %s5317_s15, 8192 }
  0xeb   : > { %s518_s1 = sshll.u32 %s511_s4, 4  ;;  %p4850_p9 = scmp.ne.s32.totalorder %s5317_s15, %s4849_s5  ;;  %s5341_s1 = int_to_ptr.vmem [resolvable:$true] %s518_s1 }
  0xec   : > { %p6397_p11 = scmp.ne.s32.totalorder %s6390_s16, 0  ;;  %s4854_s27 = scalar_lea.hbm %s6346_s10, 24576 }
  0xed   : > { %p4855_p13 = scmp.lt.u32.totalorder %s5317_s15, %s6346_s10  ;;  %p4856_p1 = scmp.lt.u32.totalorder %s4854_s27, %s4849_s5 }
  0xee   : > { %p4852_p10 = pnand %p4850_p9, %p6397_p11  ;;  %p4858_p2 = scmp.lt.u32.totalorder %s4849_s5, %s5317_s15 }
  0xef   : > { %p4857_p12 = por %p4856_p1, %p4855_p13 }
  0xf0   : > { %p4853_p3 = pneg %p4852_p10 }
  0xf1   : > { %p4859_p6 = por %p4858_p2, %p4857_p12 }
  0xf3   : > { %p4860_p0 = pnand %p4859_p6, %p4853_p3 }
  0xf5   : > { %4863 = shalt.err (!%p4860_p0)
}
  0xf6   : > { %s4864_s20 = scalar_lea.vmem %s5341_s1, 8192  ;;  %s4934_s17 = smov [#allocation13]  }
  0xf7   : > { %p4865_p4 = scmp.ne.s32.totalorder %s5341_s1, %s4864_s20  ;;  %s4869_s12 = sshll.u32 %s4934_s17, 4  ;;  %s4870_s12 = int_to_ptr.vmem [resolvable:$false] %s4869_s12 }
  0xf8   : > { %s4871_s30 = scalar_lea.vmem %s4870_s12, 16384  ;;  %p4872_p8 = scmp.lt.s32.totalorder %s5341_s1, %s4870_s12 }
  0xf9   : > { %p4867_p7 = pnand %p4865_p4, %p6397_p11  ;;  %p4873_p9 = scmp.lt.s32.totalorder %s4871_s30, %s4864_s20 }
  0xfb   : > { %p4868_p5 = pneg %p4867_p7  ;;  %p4874_p10 = por %p4873_p9, %p4872_p8 }
  0xfd   : > { %p4875_p13 = pnand %p4874_p10, %p4868_p5 }
  0xff   : > { %4878 = shalt.err (!%p4875_p13)
}
 0x100   : > { %p6398_p3 = scmp.ne.s32.totalorder %s6386_s19, 0  ;;  %p6399_p11 = scmp.ne.s32.totalorder %s6384_s14, 0 }
 0x101   : > { %p6400_p1 = scmp.eq.s32.totalorder (!%p6399_p11), %s5023_s25, 0 }
 0x102   : > { %4466 = dma.hbm_to_vmem [thread:$0]  (!%p6398_p3), %s5317_s15, 8192, %s5341_s1, %s5112_s26, %s4931_s29, %s4931_s29, %s6392_s13  }
 0x103   : > { %538 = sbr.rel (%p6399_p11) target bundleno = 3416 (0xd58), region = 68 }
 0x10a   : > { %4896 = dma.done.wait (%p6400_p1), [#allocation4], 16   ;;  %p6401_p12 = pmov %p6400_p1 }
 0x10b   : > { %p6402_p2 = pmov %p6400_p1 }
 0x10c   : > { %4898 = vsyncadd (%p6401_p12), [#allocation4], 4294967280 }
 0x10d   : > { %4900 = dma.done.wait (%p6402_p2), [#allocation6], 16   ;;  %p6403_p6 = pmov %p6400_p1 }
 0x10e   : > { %s6404_s19 = sld [smem:[#allocation17_spill]]  ;;  %s6405_s16 = sld [smem:[#allocation21_spill]] }
 0x10f   : > { %4902 = vsyncadd (%p6403_p6), [#allocation6], 4294967280  ;;  %s548_s21 = sand.u32 1, %s5023_s25  }
 0x110   : > { %s549_s14 = scalar_lea.sflag [#allocation4], %s548_s21 }
 0x114   : > { %s550_s26 = sand.u32 1, %s6404_s19   ;;  %p6406_p0 = scmp.ne.s32.totalorder %s6405_s16, 0 }
 0x115   : > { %s4017_s13 = sshll.u32 %s550_s26, 5 }
 0x116   : > { %s5380_s29 = scalar_lea.vmem [#allocation7], %s4017_s13 }
 0x117   : > { %4904 = dma.done.wait (%p6406_p0), %s549_s14, 18688  }
 0x118   : > { %4906 = vsyncadd (%p6406_p0), %s549_s14, 4294948608  ;;  %s4021_s15 = sshll.u32 %s550_s26, 9  ;;  %s4022_s24 = sshll.u32 %s550_s26, 4 }
 0x119   : > { %p677_p4 = scmp.lt.s32.totalorder %s5023_s25, 2  ;;  %s6407_s1 = sld [smem:[#allocation27_spill]] }
 0x11a   : > { %s5393_s18 = scalar_lea.vmem [#allocation8], %s4017_s13  ;;  %s5395_s23 = scalar_lea.vmem [#allocation9], %s4017_s13 }
 0x11b   : > { %s678_s22 = scalar_select %p677_p4, %s5023_s25, 2 }
 0x11c   : > { %s5397_s27 = scalar_lea.vmem [#allocation10], %s4017_s13  ;;  %s5399_s2 = scalar_lea.vmem [#allocation11], %s4021_s15 }
 0x11d   : > { %s4227_s0 = sshll.u32 %s678_s22, 4  ;;  %s5401_s28 = scalar_lea.vmem [#allocation12], %s4022_s24 }
 0x11e   : > { %s5403_s20 = scalar_lea.vmem [#allocation13], %s4021_s15  ;;  %p6408_p7 = scmp.ne.s32.totalorder %s5023_s25, 0 }
 0x11f   : > { %s5391_s5 = scalar_lea.vmem %s6407_s1, %s4227_s0  ;;  %s6409_s30 = sld [smem:[#allocation22_spill]] (!%p6408_p7)  ;;  %v4935_v2 = vmov (!%p6408_p7), 0   ;;  %v4027_v5 = vld [vmem:[#allocation3] ss:$0 sm:$0xff] (!%p6408_p7)  ;;  %v4028_v6 = vld [vmem:[#allocation5] ss:$0 sm:$0xff] (!%p6408_p7) }
 0x120   : > { %686 = sbr.rel (%p6408_p7) target bundleno = 433 (0x1b1), region = 108  ;;  %4514 = vset.pattern.permute.xlu1 (!%p6408_p7), %v4935_v2  ;;  %4513 = vset.pattern.permute.xlu0 (!%p6408_p7), %v4935_v2  ;;  %s6410_s24 = sld [smem:[#allocation23_spill]] (!%p6408_p7)  ;;  %vm741_vm0 = vcmask (!%p6408_p7), 523264  }
 0x125   : > { %v689_v0 = vld [vmem:[%s6409_s30 + $0x10] sm:$0xff] (!%p6408_p7)  ;;  %v687_v1 = vld [vmem:[%s6409_s30] sm:$0xff] (!%p6408_p7)  ;;  %v690_v3 = vld [vmem:[%s6409_s30 + $0x18] sm:$0xff] (!%p6408_p7) }
 0x126   : > { %704 = vperm.xlu1 (!%p6408_p7), %4514, %v689_v0   ;;  %694 = vperm.xlu0 (!%p6408_p7), %4513, %v687_v1   ;;  %v688_v4 = vld [vmem:[%s6409_s30 + $0x8] sm:$0xff] (!%p6408_p7)  ;;  %s6411_s0 = smov (!%p6408_p7), %s6410_s24  ;;  %v735_v11 = vld [vmem:[%s6410_s24 + $0x10] sm:$0xff] (!%p6408_p7) }
 0x127   : > { %v733_v12 = vld [vmem:[%s6411_s0] sm:$0xff]  ;;  %v736_v21 = vld [vmem:[%s6411_s0 + $0x18] sm:$0xff]  ;;  %v734_v22 = vld [vmem:[%s6411_s0 + $0x8] sm:$0xff] }
 0x12a   : > { %709 = vperm.xlu1 %4514, %v690_v3   ;;  %699 = vperm.xlu0 %4513, %v688_v4  }
 0x1a5   : > { %v705_v7 = vpop.permute.xlu1 %704  ;;  %v695_v8 = vpop.permute.xlu0 %694 }
 0x1a6   : > { %v720_v9 = vmul.f32 %v4027_v5, %v705_v7  ;;  %v718_v10 = vmul.f32 %v4027_v5, %v695_v8 }
 0x1a8   : > { %v731_v13 = vadd.f32 %v4028_v6, %v720_v9  ;;  %v729_v14 = vadd.f32 %v4028_v6, %v718_v10 }
 0x1a9   : > { %v710_v15 = vpop.permute.xlu1 %709  ;;  %v700_v16 = vpop.permute.xlu0 %699 }
 0x1aa   : > { %v739_v17 = vadd.f32 %v735_v11, %v731_v13  ;;  %v737_v18 = vadd.f32 %v733_v12, %v729_v14  ;;  %v721_v19 = vmul.f32 %v4027_v5, %v710_v15  ;;  %v719_v20 = vmul.f32 %v4027_v5, %v700_v16 }
 0x1ac   : > { %744 = vst.msk [vmem:[#allocation2 + $0x10] sm:$0xff] %vm741_vm0, %v739_v17  ;;  %742 = vst.msk [vmem:[#allocation2] sm:$0xff] %vm741_vm0, %v737_v18  ;;  %v732_v23 = vadd.f32 %v4028_v6, %v721_v19  ;;  %v730_v24 = vadd.f32 %v4028_v6, %v719_v20 }
 0x1ae   : > { %v740_v25 = vadd.f32 %v736_v21, %v732_v23  ;;  %v738_v26 = vadd.f32 %v734_v22, %v730_v24 }
 0x1b0   : > { %745 = vst.msk [vmem:[#allocation2 + $0x18] sm:$0xff] %vm741_vm0, %v740_v25  ;;  %743 = vst.msk [vmem:[#allocation2 + $0x8] sm:$0xff] %vm741_vm0, %v738_v26 }
 0x1b1 PF: > { %v4515_v27 = vld [vmem:[%s5393_s18] sm:$0xff]   ;;  %v4516_v28 = vld [vmem:[%s5393_s18 + $0x8] sm:$0xff]   ;;  %v4518_v30 = vld [vmem:[%s5393_s18 + $0x10] sm:$0xff]   ;;  %vm814_vm1 = vcmask 523264   ;;  %v786_v45 = vlaneseq  ;;  %v4936_v47 = vmov 0.0   ;;  %vm1158_vm12 = vcmask 261120  }
 0x1b2   : > { %4296 = vmatprep.subr.bf16.mxu1 %v4515_v27  ;;  %v4517_v29 = vld [vmem:[%s5380_s29] sm:$0xff]   ;;  %v4519_v31 = vld [vmem:[%s5380_s29 + $0x8] sm:$0xff]   ;;  %v4521_v35 = vld [vmem:[%s5380_s29 + $0x10] sm:$0xff]  }
 0x1b3   : > { %4297 = vmatpush3.bf16.msra.mxu1 %v4515_v27  ;;  %4284 = vmatprep.subr.bf16.mxu0 %v4517_v29  ;;  %v5440_v32 = vld [vmem:[#allocation2] sm:$0xff]  ;;  %v5449_v37 = vld [vmem:[#allocation2 + $0x10] sm:$0xff]  ;;  %v5465_v46 = vand.u32 127, %v786_v45  ;;  %v5471_v49 = vshrl.u32 %v786_v45, 7 }
 0x1b4   : > { %4298 = vmatprep.subr.bf16.mxu1 %v4516_v28  ;;  %4285 = vmatpush3.bf16.msra.mxu0 %v4517_v29  ;;  %v4520_v36 = vld [vmem:[%s5393_s18 + $0x18] sm:$0xff]   ;;  %v4523_v40 = vld [vmem:[%s5395_s23] sm:$0xff]   ;;  %v4524_v42 = vld [vmem:[%s5395_s23 + $0x8] sm:$0xff]  }
 0x1b5   : > { %4286 = vmatprep.subr.bf16.mxu0 %v4519_v31  ;;  %v4522_v38 = vld [vmem:[%s5380_s29 + $0x18] sm:$0xff]   ;;  %v4525_v43 = vld [vmem:[%s5395_s23 + $0x10] sm:$0xff]   ;;  %vm1607_vm2 = vcmp.ge.s32.totalorder %v5465_v46, 48  ;;  %vm1608_vm3 = vcmp.lt.s32.totalorder %v5465_v46, 64  ;;  %v5474_v50 = vsub.s32 1, %v5471_v49  ;;  %v5477_v51 = vsub.s32 0, %v5471_v49 }
 0x1b6   : > { %v4526_v44 = vld [vmem:[%s5395_s23 + $0x18] sm:$0xff]   ;;  %vm1609_vm4 = vmand %vm1607_vm2, %vm1608_vm3  ;;  %vm1066_vm5 = vcmp.ge.s32.totalorder %v5465_v46, 16  ;;  %vm1067_vm6 = vcmp.lt.s32.totalorder %v5465_v46, 32  ;;  %vm1430_vm7 = vcmp.ge.s32.totalorder %v5465_v46, 32  ;;  %vm1431_vm8 = vcmp.lt.s32.totalorder %v5465_v46, 48  ;;  %s6414_s23 = sld [smem:[#allocation28_spill]] }
 0x1b7   : > { %v5442_v33 = vld [vmem:[#allocation2 + $0x8] sm:$0xff]  ;;  %4299 = vmatpush3.bf16.msra.mxu1 %v4516_v28  ;;  %v5453_v39 = vld [vmem:[#allocation2 + $0x18] sm:$0xff]  ;;  %v5469_v48 = vsel %vm1609_vm4, 1.0, %v4936_v47  ;;  %v5480_v52 = vld [vmem:[%s5391_s5] sm:$0xff]  ;;  %vm1048_vm9 = vcmp.lt.s32.totalorder %v5465_v46, 16  ;;  %v5534_v26 = vsub.s32 2, %v5471_v49 }
 0x1b8   : > { %v784_v34 = vpack.c.bf16 %v5442_v33, %v5440_v32  ;;  %4300 = vmatprep.subr.bf16.mxu1 %v4518_v30  ;;  %4287 = vmatpush3.bf16.msra.mxu0 %v4519_v31  ;;  %v785_v41 = vpack.c.bf16 %v5453_v39, %v5449_v37  ;;  %v873_v53 = vrot.slane %v5480_v52, %v5474_v50  ;;  %vm5491_vm10 = vmand %vm1066_vm5, %vm1067_vm6  ;;  %v5497_v3 = vsel %vm1048_vm9, 1.0, %v4936_v47 }
 0x1b9   : > { %4288 = vmatprep.subr.bf16.mxu0 %v4521_v35  ;;  %v789_v54 = vrot.slane %v5480_v52, %v5477_v51  ;;  %vm1432_vm11 = vmand %vm1430_vm7, %vm1431_vm8  ;;  %v4050_v8 = vsel %vm5491_vm10, 1.0, %v4936_v47 }
 0x1ba   : > { %4304 = vmatprep.mubr.msk.bf16.mxu1 %vm814_vm1, %v784_v34  ;;  %4292 = vmatprep.mubr.msk.bf16.mxu0 %vm814_vm1, %v784_v34  ;;  %v5505_v12 = vsel %vm1432_vm11, 1.0, %v4936_v47 }
 0x1bb   : > { %4301 = vmatpush3.bf16.msra.mxu1 %v4518_v30 }
 0x1bc   : > { %4302 = vmatprep.subr.bf16.mxu1 %v4520_v36  ;;  %4289 = vmatpush3.bf16.msra.mxu0 %v4521_v35 }
 0x1bd   : > { %4290 = vmatprep.subr.bf16.mxu0 %v4522_v38 }
 0x1bf   : > { %4303 = vmatpush3.bf16.msra.mxu1 %v4520_v36 }
 0x1c0   : > { %4291 = vmatpush3.bf16.msra.mxu0 %v4522_v38 }
 0x1c1   : > { %4308 = vmatprep.subr.bf16.mxu0 %v4523_v40 }
 0x1c2   : > { %4305 = vmatmul.mubr.msk.bf16.vlgmr.msra.gmra.mrb[0].mxu1 %vm814_vm1, %v785_v41 }
 0x1c3   : > { %4293 = vmatmul.mubr.msk.bf16.vlgmr.msra.gmra.mrb[0].mxu0 %vm814_vm1, %v785_v41 }
 0x1c4   : > { %4309 = vmatpush3.bf16.msra.mxu0 %v4523_v40  ;;  %4316 = vmatprep.mubr.msk.bf16.mxu0 %vm814_vm1, %v784_v34 }
 0x1c5   : > { %4310 = vmatprep.subr.bf16.mxu0 %v4524_v42 }
 0x1c8   : > { %4311 = vmatpush3.bf16.msra.mxu0 %v4524_v42 }
 0x1c9   : > { %4312 = vmatprep.subr.bf16.mxu0 %v4525_v43 }
 0x1cc   : > { %4313 = vmatpush3.bf16.msra.mxu0 %v4525_v43 }
 0x1cd   : > { %4314 = vmatprep.subr.bf16.mxu0 %v4526_v44 }
 0x1d0   : > { %4315 = vmatpush3.bf16.msra.mxu0 %v4526_v44 }
 0x1d3   : > { %4317 = vmatmul.mubr.msk.bf16.vlgmr.msra.gmra.mrb[4].mxu0 %vm814_vm1, %v785_v41 }
 0x295   : > { %v4306_v55 = vpop.f32.mrb[0].mxu1 }
 0x296   : > { %v932_v56 = vpop.f32.mrb[1].mxu1  ;;  %v4294_v58 = vpop.f32.mrb[0].mxu0  ;;  %v941_v60 = vadd.f32 %v4306_v55, %v873_v53 }
 0x297   : > { %v4307_v57 = vpop.f32.mrb[2].mxu1  ;;  %v864_v63 = vadd.f32 %v4294_v58, %v789_v54  ;;  %v855_v0 = vpop.f32.mrb[1].mxu0  ;;  %v933_v1 = vadd.f32 %v932_v56, %v873_v53 }
 0x298   : > { %v944_v61 = vadd.f32 %v4307_v57, %v873_v53  ;;  %v935_v62 = vpop.f32.mrb[3].mxu1  ;;  %v856_v4 = vadd.f32 %v855_v0, %v789_v54  ;;  %v4295_v5 = vpop.f32.mrb[2].mxu0 }
 0x299   : > { %v936_v2 = vadd.f32 %v935_v62, %v873_v53  ;;  %v1026_v7 = vmul.f32 0.25, %v864_v63  ;;  %v867_v9 = vadd.f32 %v4295_v5, %v789_v54  ;;  %v858_v10 = vpop.f32.mrb[3].mxu0 }
 0x29a   : > { %v5499_v6 = vpack.c.bf16 %v944_v61, %v941_v60  ;;  %v1024_v13 = vmul.f32 0.25, %v856_v4  ;;  %v859_v14 = vadd.f32 %v858_v10, %v789_v54  ;;  %v950_v54 = vrot.slane %v5480_v52, %v5534_v26 }
 0x29b   : > { %v5503_v11 = vpack.c.bf16 %v936_v2, %v933_v1  ;;  %v5508_v15 = vmul.f32 %v5469_v48, %v1026_v7  ;;  %v1087_v16 = vmul.f32 %v5497_v3, %v1026_v7  ;;  %v1209_v17 = vmul.f32 %v4050_v8, %v1026_v7 }
 0x29c   : > { %v5520_v19 = vmul.f32 %v5505_v12, %v1026_v7  ;;  %v5523_v20 = vmul.f32 %v5469_v48, %v1024_v13  ;;  %v1027_v21 = vmul.f32 0.25, %v867_v9  ;;  %v1025_v22 = vmul.f32 0.25, %v859_v14 }
 0x29d   : > { %4408 = vmatprep.subr.msk.bf16.mxu1 %vm814_vm1, %v5503_v11  ;;  %4410 = vmatprep.subr.msk.bf16.mxu0 %vm814_vm1, %v5503_v11  ;;  %v5517_v18 = vsel %vm814_vm1, %v5503_v11, 0  ;;  %v1085_v23 = vmul.f32 %v5497_v3, %v1024_v13  ;;  %v1207_v24 = vmul.f32 %v4050_v8, %v1024_v13  ;;  %v1435_v25 = vmul.f32 %v5505_v12, %v1024_v13 }
 0x29e   : > { %4321 = vmatpush3.bf16.xpose.msra.mxu1 %v5517_v18  ;;  %4329 = vmatpush3.bf16.xpose.msra.mxu0 %v5517_v18  ;;  %v1088_v27 = vmul.f32 %v5497_v3, %v1027_v21  ;;  %v1210_v28 = vmul.f32 %v4050_v8, %v1027_v21  ;;  %v1438_v29 = vmul.f32 %v5505_v12, %v1027_v21  ;;  %v5553_v53 = vsel %vm814_vm1, %v5499_v6, 0 }
 0x29f   : > { %4409 = vmatprep.subr.msk.bf16.mxu1 %vm814_vm1, %v5499_v6  ;;  %4411 = vmatprep.subr.msk.bf16.mxu0 %vm814_vm1, %v5499_v6  ;;  %v5539_v30 = vmul.f32 %v5469_v48, %v1027_v21  ;;  %v1086_v31 = vmul.f32 %v5497_v3, %v1025_v22  ;;  %v1208_v34 = vmul.f32 %v4050_v8, %v1025_v22 }
 0x2a0   : > { %v1436_v35 = vmul.f32 %v5505_v12, %v1025_v22  ;;  %v5544_v36 = vmul.f32 %v5469_v48, %v1025_v22  ;;  %v1090_v38 = vpack.c.bf16 %v1088_v27, %v1087_v16  ;;  %v1212_v40 = vpack.c.bf16 %v1210_v28, %v1209_v17 }
 0x2a1   : > { %v1440_v41 = vpack.c.bf16 %v1438_v29, %v5520_v19  ;;  %v1617_v42 = vpack.c.bf16 %v5539_v30, %v5508_v15  ;;  %v1089_v43 = vpack.c.bf16 %v1086_v31, %v1085_v23  ;;  %v1211_v44 = vpack.c.bf16 %v1208_v34, %v1207_v24 }
 0x2a2   : > { %v1439_v45 = vpack.c.bf16 %v1436_v35, %v1435_v25  ;;  %v1616_v47 = vpack.c.bf16 %v5544_v36, %v5523_v20 }
 0x2a3   : > { %4324 = vmatprep.mubr.msk.bf16.mxu1 %vm814_vm1, %v1089_v43  ;;  %4332 = vmatprep.mubr.msk.bf16.mxu0 %vm814_vm1, %v1211_v44 }
 0x2a6   : > { %4323 = vmatpush3.bf16.xpose.msra.mxu1 %v5553_v53  ;;  %4331 = vmatpush3.bf16.xpose.msra.mxu0 %v5553_v53  ;;  %v4318_v55 = vpop.f32.mrb[4].mxu0 }
 0x2a7   : > { %4412 = vmatprep.subr.msk.bf16.mxu0 %vm814_vm1, %v5503_v11  ;;  %v5563_v56 = vadd.f32 %v4318_v55, %v950_v54  ;;  %v1009_v57 = vpop.f32.mrb[5].mxu0 }
 0x2a8   : > { %v5565_v58 = vadd.f32 %v1009_v57, %v950_v54  ;;  %v4319_v60 = vpop.f32.mrb[6].mxu0 }
 0x2a9   : > { %v5567_v61 = vadd.f32 %v4319_v60, %v950_v54  ;;  %v1012_v62 = vpop.f32.mrb[7].mxu0  ;;  %v1215_v1 = vmul.f32 %v4050_v8, %v5563_v56  ;;  %v1620_v20 = vmul.f32 %v5469_v48, %v5563_v56 }
 0x2aa   : > { %v5569_v63 = vadd.f32 %v1012_v62, %v950_v54  ;;  %v1213_v0 = vmul.f32 %v4050_v8, %v5565_v58  ;;  %v1091_v9 = vmul.f32 %v5497_v3, %v5565_v58 }
 0x2ab   : > { %v1216_v2 = vmul.f32 %v4050_v8, %v5567_v61  ;;  %v1621_v36 = vmul.f32 %v5469_v48, %v5567_v61 }
 0x2ac   : > { %v1214_v4 = vmul.f32 %v4050_v8, %v5569_v63  ;;  %v1092_v10 = vmul.f32 %v5497_v3, %v5569_v63  ;;  %v4937_v8 = vmov -1e+30  }
 0x2ad   : > { %4325 = vmatmul.mubr.msk.bf16.vlgmr.msra.gmra.mrb[4].mxu1 %vm814_vm1, %v1090_v38  ;;  %4333 = vmatmul.mubr.msk.bf16.vlgmr.msra.gmra.mrb[8].mxu0 %vm814_vm1, %v1212_v40  ;;  %v1218_v7 = vpack.c.bf16 %v1216_v2, %v1215_v1  ;;  %v5592_v14 = vsel %vm5491_vm10, 0.0, %v4937_v8  ;;  %v5596_v16 = vsel %vm1048_vm9, 0.0, %v4937_v8 }
 0x2ae   : > { %4353 = vmatpush3.bf16.xpose.msra.mxu0 %v5517_v18  ;;  %4356 = vmatprep.mubr.msk.bf16.mxu0 %vm814_vm1, %v1439_v45  ;;  %v1217_v5 = vpack.c.bf16 %v1214_v4, %v1213_v0  ;;  %v5585_v13 = vpack.c.bf16 %v1092_v10, %v1091_v9 }
 0x2af   : > { %4413 = vmatprep.subr.msk.bf16.mxu0 %vm814_vm1, %v5499_v6 }
 0x2b0   : > { %4336 = vmatprep.subr.bf16.mxu1 %v1217_v5 }
 0x2b1   : > { %4337 = vmatpush3.bf16.msra.mxu1 %v1217_v5 }
 0x2b2   : > { %4338 = vmatprep.subr.bf16.mxu1 %v1218_v7 }
 0x2b5   : > { %4339 = vmatpush3.bf16.msra.mxu1 %v1218_v7 }
 0x2b6   : > { %4355 = vmatpush3.bf16.xpose.msra.mxu0 %v5553_v53  ;;  %4344 = vmatprep.subr.bf16.mxu1 %v5585_v13 }
 0x2bd   : > { %4357 = vmatmul.mubr.msk.bf16.vlgmr.msra.gmra.mrb[12].mxu0 %vm814_vm1, %v1440_v41 }
 0x380   : > { %v4326_v17 = vpop.f32.mrb[4].mxu1  ;;  %v4334_v19 = vpop.f32.mrb[8].mxu0 }
 0x381   : > { %v1268_v21 = vadd.f32 %v4334_v19, %v5592_v14  ;;  %v1143_v22 = vpop.f32.mrb[5].mxu1  ;;  %v1259_v23 = vpop.f32.mrb[9].mxu0  ;;  %v1152_v45 = vadd.f32 %v4326_v17, %v5592_v14 }
 0x382   : > { %v1260_v24 = vadd.f32 %v1259_v23, %v5596_v16  ;;  %v4327_v25 = vpop.f32.mrb[6].mxu1  ;;  %v4335_v27 = vpop.f32.mrb[10].mxu0  ;;  %v1144_v40 = vadd.f32 %v1143_v22, %v5596_v16 }
 0x383   : > { %v1271_v28 = vadd.f32 %v4335_v27, %v5592_v14  ;;  %v1146_v59 = vpop.f32.mrb[7].mxu1  ;;  %v1262_v29 = vpop.f32.mrb[11].mxu0  ;;  %v1280_v31 = vsel %vm1158_vm12, %v1268_v21, -inf  ;;  %v1155_v43 = vadd.f32 %v4327_v25, %v5592_v14  ;;  %v1165_v60 = vsel %vm1158_vm12, %v1152_v45, -inf }
 0x384   : > { %v1263_v46 = vadd.f32 %v1262_v29, %v5596_v16  ;;  %1281 = vmax.xlane.f32.xlu1 %v1280_v31  ;;  %v1274_v34 = vsel %vm1158_vm12, %v1260_v24, -inf  ;;  %v1147_v35 = vadd.f32 %v1146_v59, %v5596_v16  ;;  %v1159_v54 = vsel %vm1158_vm12, %v1144_v40, -inf }
 0x385   : > { %1275 = vmax.xlane.f32.xlu0 %v1274_v34  ;;  %v1283_v38 = vsel %vm1158_vm12, %v1271_v28, -inf  ;;  %v1168_v55 = vsel %vm1158_vm12, %v1155_v43, -inf }
 0x386   : > { %v1277_v41 = vsel %vm1158_vm12, %v1263_v46, -inf  ;;  %v1162_v44 = vsel %vm1158_vm12, %v1147_v35, -inf }
 0x388   : > { %1284 = vmax.xlane.f32.xlu1 %v1283_v38 }
 0x389   : > { %1278 = vmax.xlane.f32.xlu0 %v1277_v41 }
 0x38c   : > { %1163 = vmax.xlane.f32.xlu1 %v1162_v44 }
 0x38d   : > { %1160 = vmax.xlane.f32.xlu0 %v1159_v54 }
 0x390   : > { %v4358_v57 = vpop.f32.mrb[12].mxu0  ;;  %1169 = vmax.xlane.f32.xlu1 %v1168_v55 }
 0x391   : > { %v1487_v62 = vpop.f32.mrb[13].mxu0  ;;  %1166 = vmax.xlane.f32.xlu0 %v1165_v60  ;;  %v5616_v4 = vadd.f32 %v4358_v57, %v5592_v14 }
 0x392   : > { %v1488_v0 = vadd.f32 %v1487_v62, %v5596_v16  ;;  %v4359_v1 = vpop.f32.mrb[14].mxu0 }
 0x393   : > { %v1490_v2 = vpop.f32.mrb[15].mxu0  ;;  %v5621_v9 = vadd.f32 %v4359_v1, %v5592_v14  ;;  %v1508_v8 = vsel %vm1158_vm12, %v5616_v4, -inf }
 0x394   : > { %v1491_v5 = vadd.f32 %v1490_v2, %v5596_v16  ;;  %v1502_v7 = vsel %vm1158_vm12, %v1488_v0, -inf }
 0x395   : > { %1503 = vmax.xlane.f32.xlu0 %v1502_v7  ;;  %v1511_v17 = vsel %vm1158_vm12, %v5621_v9, -inf }
 0x396   : > { %v1505_v10 = vsel %vm1158_vm12, %v1491_v5, -inf }
 0x397   : > { %1506 = vmax.xlane.f32.xlu1 %v1505_v10 }
 0x399   : > { %1509 = vmax.xlane.f32.xlu0 %v1508_v8 }
 0x39b   : > { %1512 = vmax.xlane.f32.xlu1 %v1511_v17 }
 0x411   : > { %v1282_v19 = vpop.xlane.xlu1 %1281 }
 0x412   : > { %v1288_v22 = vsub.f32 %v1268_v21, %v1282_v19  ;;  %v1276_v23 = vpop.xlane.xlu0 %1275 }
 0x413   : > { %v1286_v25 = vsub.f32 %v1260_v24, %v1276_v23 }
 0x414   : > { %v1294_v27 = vmul.f32 1.442695, %v1288_v22 }
 0x415   : > { %v1290_v59 = vmul.f32 1.442695, %v1286_v25  ;;  %v1285_v29 = vpop.xlane.xlu1 %1284 }
 0x416   : > { %v1289_v31 = vsub.f32 %v1271_v28, %v1285_v29  ;;  %v1279_v34 = vpop.xlane.xlu0 %1278 }
 0x417   : > { %4531 = vpow2.f32 %v1290_v59  ;;  %v1287_v38 = vsub.f32 %v1263_v46, %v1279_v34 }
 0x418   : > { %4533 = vpow2.f32 %v1294_v27  ;;  %v1296_v41 = vmul.f32 1.442695, %v1289_v31 }
 0x419   : > { %v1292_v44 = vmul.f32 1.442695, %v1287_v38  ;;  %v1164_v54 = vpop.xlane.xlu1 %1163 }
 0x41a   : > { %v1172_v55 = vsub.f32 %v1147_v35, %v1164_v54  ;;  %v1161_v57 = vpop.xlane.xlu0 %1160 }
 0x41b   : > { %4535 = vpow2.f32 %v1292_v44  ;;  %v1171_v60 = vsub.f32 %v1144_v40, %v1161_v57 }
 0x41c   : > { %4537 = vpow2.f32 %v1296_v41  ;;  %v1177_v62 = vmul.f32 1.442695, %v1172_v55 }
 0x41d   : > { %v1175_v21 = vmul.f32 1.442695, %v1171_v60  ;;  %v1170_v1 = vpop.xlane.xlu1 %1169 }
 0x41e   : > { %v1174_v24 = vsub.f32 %v1155_v43, %v1170_v1  ;;  %v1167_v2 = vpop.xlane.xlu0 %1166 }
 0x41f   : > { %4539 = vpow2.f32 %v1175_v21  ;;  %v1173_v7 = vsub.f32 %v1152_v45, %v1167_v2 }
 0x420   : > { %4541 = vpow2.f32 %v1177_v62  ;;  %v1181_v46 = vmul.f32 1.442695, %v1174_v24 }
 0x421   : > { %v5628_v28 = vpop.eup %4531  ;;  %v1179_v10 = vmul.f32 1.442695, %v1173_v7 }
 0x422   : > { %v1504_v8 = vpop.xlane.xlu0 %1503  ;;  %v1298_v35 = vsel %vm1158_vm12, %v5628_v28, 0.0  ;;  %v5632_v17 = vpop.eup %4533 }
 0x423   : > { %4543 = vpow2.f32 %v1179_v10  ;;  %v1514_v40 = vsub.f32 %v1488_v0, %v1504_v8  ;;  %1299 = vadd.xlane.f32.xlu0 %v1298_v35  ;;  %v1304_v27 = vsel %vm1158_vm12, %v5632_v17, 0.0 }
 0x424   : > { %v1507_v19 = vpop.xlane.xlu1 %1506  ;;  %4545 = vpow2.f32 %v1181_v46 }
 0x425   : > { %v5634_v22 = vpop.eup %4535  ;;  %v1518_v43 = vmul.f32 1.442695, %v1514_v40  ;;  %v1515_v45 = vsub.f32 %v1491_v5, %v1507_v19 }
 0x426   : > { %v1510_v23 = vpop.xlane.xlu0 %1509  ;;  %v1301_v25 = vsel %vm1158_vm12, %v5634_v22, 0.0  ;;  %v5640_v59 = vpop.eup %4537 }
 0x427   : > { %4547 = vpow2.f32 %v1518_v43  ;;  %v1520_v29 = vmul.f32 1.442695, %v1515_v45  ;;  %v1516_v0 = vsub.f32 %v5616_v4, %v1510_v23  ;;  %1302 = vadd.xlane.f32.xlu1 %v1301_v25  ;;  %1305 = vadd.xlane.f32.xlu0 %v1304_v27  ;;  %v1307_v41 = vsel %vm1158_vm12, %v5640_v59, 0.0 }
 0x428   : > { %v1513_v31 = vpop.xlane.xlu1 %1512 }
 0x429   : > { %v5643_v34 = vpop.eup %4539  ;;  %4549 = vpow2.f32 %v1520_v29  ;;  %v1522_v5 = vmul.f32 1.442695, %v1516_v0  ;;  %v1517_v38 = vsub.f32 %v5621_v9, %v1513_v31 }
 0x42a   : > { %v1183_v44 = vsel %vm1158_vm12, %v5643_v34, 0.0  ;;  %v5650_v54 = vpop.eup %4541 }
 0x42b   : > { %4551 = vpow2.f32 %v1522_v5  ;;  %v1524_v55 = vmul.f32 1.442695, %v1517_v38  ;;  %1308 = vadd.xlane.f32.xlu1 %v1307_v41  ;;  %1184 = vadd.xlane.f32.xlu0 %v1183_v44  ;;  %v1186_v57 = vsel %vm1158_vm12, %v5650_v54, 0.0 }
 0x42d   : > { %v5652_v4 = vpop.eup %4543  ;;  %4553 = vpow2.f32 %v1524_v55 }
 0x42e   : > { %v1189_v9 = vsel %vm1158_vm12, %v5652_v4, 0.0  ;;  %v5658_v60 = vpop.eup %4545 }
 0x42f   : > { %1187 = vadd.xlane.f32.xlu1 %v1186_v57  ;;  %1190 = vadd.xlane.f32.xlu0 %v1189_v9  ;;  %v1192_v21 = vsel %vm1158_vm12, %v5658_v60, 0.0 }
 0x431   : > { %v5660_v62 = vpop.eup %4547 }
 0x432   : > { %v1526_v1 = vsel %vm1158_vm12, %v5660_v62, 0.0 }
 0x433   : > { %v5666_v24 = vpop.eup %4549  ;;  %1193 = vadd.xlane.f32.xlu1 %v1192_v21  ;;  %1527 = vadd.xlane.f32.xlu0 %v1526_v1  ;;  %v1093_v1 = vmul.f32 %v5497_v3, %v5563_v56 }
 0x434   : > { %v1529_v7 = vsel %vm1158_vm12, %v5666_v24, 0.0 }
 0x435   : > { %v5668_v2 = vpop.eup %4551 }
 0x436   : > { %v1532_v46 = vsel %vm1158_vm12, %v5668_v2, 0.0 }
 0x437   : > { %v5674_v10 = vpop.eup %4553  ;;  %1530 = vadd.xlane.f32.xlu1 %v1529_v7  ;;  %1533 = vadd.xlane.f32.xlu0 %v1532_v46 }
 0x438   : > { %v1535_v8 = vsel %vm1158_vm12, %v5674_v10, 0.0 }
 0x43b   : > { %1536 = vadd.xlane.f32.xlu1 %v1535_v8  ;;  %v1441_v8 = vmul.f32 %v5505_v12, %v5565_v58 }
 0x4b0   : > { %v1300_v35 = vpop.xlane.xlu0 %1299 }
 0x4b1   : > { %4555 = vrcp.f32 %v1300_v35 }
 0x4b4   : > { %v1303_v40 = vpop.xlane.xlu1 %1302  ;;  %v1306_v19 = vpop.xlane.xlu0 %1305 }
 0x4b5   : > { %4557 = vrcp.f32 %v1303_v40  ;;  %v1442_v40 = vmul.f32 %v5505_v12, %v5569_v63 }
 0x4b6   : > { %4559 = vrcp.f32 %v1306_v19 }
 0x4b8   : > { %v1309_v43 = vpop.xlane.xlu1 %1308  ;;  %v1185_v45 = vpop.xlane.xlu0 %1184 }
 0x4b9   : > { %4561 = vrcp.f32 %v1309_v43 }
 0x4ba   : > { %4563 = vrcp.f32 %v1185_v45 }
 0x4bb   : > { %v4556_v27 = vpop.eup %4555 }
 0x4bc   : > { %v1188_v23 = vpop.xlane.xlu1 %1187  ;;  %v1191_v25 = vpop.xlane.xlu0 %1190  ;;  %v1311_v5 = vmul.f32 %v4556_v27, %v5628_v28  ;;  %v1094_v28 = vmul.f32 %v5497_v3, %v5567_v61 }
 0x4bd   : > { %4565 = vrcp.f32 %v1188_v23 }
 0x4bf   : > { %v4558_v29 = vpop.eup %4557 }
 0x4c0   : > { %v1194_v0 = vpop.xlane.xlu1 %1193  ;;  %v1528_v31 = vpop.xlane.xlu0 %1527  ;;  %v1313_v38 = vmul.f32 %v4558_v29, %v5634_v22 }
 0x4c1   : > { %v4560_v41 = vpop.eup %4559  ;;  %4567 = vrcp.f32 %v1194_v0  ;;  %v1444_v0 = vmul.f32 %v5505_v12, %v5567_v61 }
 0x4c2   : > { %4569 = vrcp.f32 %v1191_v25  ;;  %v1318_v44 = vpack.c.bf16 %v1313_v38, %v1311_v5  ;;  %v1315_v57 = vmul.f32 %v4560_v41, %v5632_v17  ;;  %v1096_v17 = vpack.c.bf16 %v1094_v28, %v1093_v1 }
 0x4c3   : > { %v4562_v55 = vpop.eup %4561  ;;  %4571 = vrcp.f32 %v1528_v31  ;;  %v1445_v25 = vpack.c.bf16 %v1442_v40, %v1441_v8 }
 0x4c4   : > { %v1317_v9 = vmul.f32 %v4562_v55, %v5640_v59  ;;  %v1531_v21 = vpop.xlane.xlu1 %1530  ;;  %4340 = vmatprep.mubr.msk.bf16.mxu1 %vm1158_vm12, %v1318_v44  ;;  %v4564_v22 = vpop.eup %4563 }
 0x4c5   : > { %4573 = vrcp.f32 %v1531_v21  ;;  %v1196_v59 = vmul.f32 %v4564_v22, %v5643_v34  ;;  %v1534_v23 = vpop.xlane.xlu0 %1533 }
 0x4c6   : > { %v1319_v7 = vpack.c.bf16 %v1317_v9, %v1315_v57 }
 0x4c7   : > { %v4566_v46 = vpop.eup %4565 }
 0x4c8   : > { %4341 = vmatmul.mubr.msk.bf16.vlgmr.msra.gmra.mrb[8].mxu1 %vm1158_vm12, %v1319_v7  ;;  %v1198_v35 = vmul.f32 %v4566_v46, %v5650_v54  ;;  %v1537_v3 = vpop.xlane.xlu1 %1536 }
 0x4c9   : > { %4345 = vmatpush3.bf16.msra.mxu1 %v5585_v13  ;;  %4575 = vrcp.f32 %v1537_v3  ;;  %v1443_v13 = vmul.f32 %v5505_v12, %v5563_v56 }
 0x4ca   : > { %4346 = vmatprep.subr.bf16.mxu1 %v1096_v17  ;;  %v1203_v19 = vpack.c.bf16 %v1198_v35, %v1196_v59  ;;  %4577 = vrcp.f32 %v1534_v23 }
 0x4cb   : > { %v4568_v43 = vpop.eup %4567 }
 0x4cc   : > { %v4570_v45 = vpop.eup %4569  ;;  %4348 = vmatprep.mubr.msk.bf16.mxu1 %vm1158_vm12, %v1203_v19  ;;  %v1202_v34 = vmul.f32 %v4568_v43, %v5658_v60  ;;  %v1446_v60 = vpack.c.bf16 %v1444_v0, %v1443_v13 }
 0x4cd   : > { %v4572_v27 = vpop.eup %4571  ;;  %4347 = vmatpush3.bf16.msra.mxu1 %v1096_v17  ;;  %v1200_v29 = vmul.f32 %v4570_v45, %v5652_v4 }
 0x4ce   : > { %4360 = vmatprep.subr.bf16.mxu1 %v1445_v25  ;;  %v1539_v31 = vmul.f32 %v4572_v27, %v5660_v62  ;;  %v4528_v27 = vld [vmem:[%s5397_s27 + $0x8] sm:$0xff]  }
 0x4cf   : > { %v4574_v54 = vpop.eup %4573  ;;  %v1204_v38 = vpack.c.bf16 %v1202_v34, %v1200_v29  ;;  %v4529_v34 = vld [vmem:[%s5397_s27 + $0x10] sm:$0xff]  }
 0x4d0   : > { %v1541_v5 = vmul.f32 %v4574_v54, %v5666_v24  ;;  %v1618_v24 = vmul.f32 %v5469_v48, %v5565_v58 }
 0x4d2   : > { %v1546_v41 = vpack.c.bf16 %v1541_v5, %v1539_v31 }
 0x4d3   : > { %v4576_v44 = vpop.eup %4575 }
 0x4d4   : > { %4349 = vmatmul.mubr.msk.bf16.vlgmr.msra.gmra.mrb[8].mxu1 %vm1158_vm12, %v1204_v38  ;;  %v4578_v55 = vpop.eup %4577  ;;  %v1545_v4 = vmul.f32 %v4576_v44, %v5674_v10 }
 0x4d5   : > { %4361 = vmatpush3.bf16.msra.mxu1 %v1445_v25  ;;  %4364 = vmatprep.mubr.msk.bf16.mxu1 %vm1158_vm12, %v1546_v41  ;;  %v1543_v12 = vmul.f32 %v4578_v55, %v5668_v2  ;;  %v4527_v25 = vld [vmem:[%s5397_s27] sm:$0xff]  }
 0x4d6   : > { %4362 = vmatprep.subr.bf16.mxu1 %v1446_v60  ;;  %4384 = vmatprep.subr.bf16.mxu0 %v4527_v25 }
 0x4d7   : > { %v1547_v62 = vpack.c.bf16 %v1545_v4, %v1543_v12  ;;  %4385 = vmatpush3.bf16.msra.mxu0 %v4527_v25 }
 0x4d8   : > { %4386 = vmatprep.subr.bf16.mxu0 %v4528_v27 }
 0x4d9   : > { %4363 = vmatpush3.bf16.msra.mxu1 %v1446_v60 }
 0x4da   : > { %4414 = vmatprep.subr.msk.bf16.mxu1 %vm814_vm1, %v5503_v11  ;;  %v1619_v11 = vmul.f32 %v5469_v48, %v5569_v63 }
 0x4db   : > { %4387 = vmatpush3.bf16.msra.mxu0 %v4528_v27 }
 0x4dc   : > { %v1622_v2 = vpack.c.bf16 %v1619_v11, %v1618_v24  ;;  %4388 = vmatprep.subr.bf16.mxu0 %v4529_v34  ;;  %v4530_v24 = vld [vmem:[%s5397_s27 + $0x18] sm:$0xff]   ;;  %s6415_s27 = smov %s6414_s23 }
 0x4df   : > { %4389 = vmatpush3.bf16.msra.mxu0 %v4529_v34  ;;  %v1942_v34 = vld [vmem:[%s5399_s2] sm:$0xff] }
 0x4e0   : > { %4365 = vmatmul.mubr.msk.bf16.vlgmr.msra.gmra.mrb[8].mxu1 %vm1158_vm12, %v1547_v62  ;;  %4390 = vmatprep.subr.bf16.mxu0 %v4530_v24 }
 0x4e1   : > { %4372 = vmatprep.mubr.msk.bf16.mxu1 %vm814_vm1, %v1616_v47 }
 0x4e2   : > { %4369 = vmatpush3.bf16.xpose.msra.mxu1 %v5517_v18 }
 0x4e3   : > { %4415 = vmatprep.subr.msk.bf16.mxu1 %vm814_vm1, %v5499_v6  ;;  %v1623_v6 = vpack.c.bf16 %v1621_v36, %v1620_v20  ;;  %4391 = vmatpush3.bf16.msra.mxu0 %v4530_v24 }
 0x4ea   : > { %4371 = vmatpush3.bf16.xpose.msra.mxu1 %v5553_v53 }
 0x4eb   : > { %4376 = vmatprep.subr.bf16.mxu1 %v1622_v2 }
 0x4f1   : > { %4373 = vmatmul.mubr.msk.bf16.vlgmr.msra.gmra.mrb[12].mxu1 %vm814_vm1, %v1617_v42 }
 0x4f2   : > { %4377 = vmatpush3.bf16.msra.mxu1 %v1622_v2 }
 0x4f3   : > { %4378 = vmatprep.subr.bf16.mxu1 %v1623_v6 }
 0x4f6   : > { %4379 = vmatpush3.bf16.msra.mxu1 %v1623_v6 }
 0x5c4   : > { %v4374_v18 = vpop.f32.mrb[12].mxu1 }
 0x5c5   : > { %v1664_v47 = vpop.f32.mrb[13].mxu1  ;;  %v1673_v56 = vadd.f32 %v4374_v18, %v5592_v14 }
 0x5c6   : > { %v1665_v53 = vadd.f32 %v1664_v47, %v5596_v16  ;;  %v4375_v58 = vpop.f32.mrb[14].mxu1  ;;  %v5752_v47 = vsub.s32 3, %v5471_v49 }
 0x5c7   : > { %v1667_v63 = vpop.f32.mrb[15].mxu1  ;;  %v1676_v15 = vadd.f32 %v4375_v58, %v5592_v14  ;;  %v1685_v42 = vsel %vm1158_vm12, %v1673_v56, -inf }
 0x5c8   : > { %v1668_v10 = vadd.f32 %v1667_v63, %v5596_v16  ;;  %v1679_v48 = vsel %vm1158_vm12, %v1665_v53, -inf }
 0x5c9   : > { %1680 = vmax.xlane.f32.xlu0 %v1679_v48  ;;  %v1688_v61 = vsel %vm1158_vm12, %v1676_v15, -inf }
 0x5ca   : > { %v1682_v30 = vsel %vm1158_vm12, %v1668_v10, -inf }
 0x5cb   : > { %1683 = vmax.xlane.f32.xlu1 %v1682_v30 }
 0x5cd   : > { %1686 = vmax.xlane.f32.xlu0 %v1685_v42 }
 0x5cf   : > { %1689 = vmax.xlane.f32.xlu1 %v1688_v61 }
 0x656   : > { %v1681_v57 = vpop.xlane.xlu0 %1680 }
 0x657   : > { %v1691_v9 = vsub.f32 %v1665_v53, %v1681_v57  ;;  %v1789_v53 = vrot.slane %v5480_v52, %v5752_v47 }
 0x658   : > { %v1684_v21 = vpop.xlane.xlu1 %1683 }
 0x659   : > { %v1695_v1 = vmul.f32 1.442695, %v1691_v9  ;;  %v1692_v28 = vsub.f32 %v1668_v10, %v1684_v21 }
 0x65a   : > { %v1687_v16 = vpop.xlane.xlu0 %1686 }
 0x65b   : > { %4579 = vpow2.f32 %v1695_v1  ;;  %v1697_v22 = vmul.f32 1.442695, %v1692_v28  ;;  %v1693_v7 = vsub.f32 %v1673_v56, %v1687_v16 }
 0x65c   : > { %v1690_v46 = vpop.xlane.xlu1 %1689 }
 0x65d   : > { %4581 = vpow2.f32 %v1697_v22  ;;  %v1699_v14 = vmul.f32 1.442695, %v1693_v7  ;;  %v1694_v8 = vsub.f32 %v1676_v15, %v1690_v46 }
 0x65f   : > { %4583 = vpow2.f32 %v1699_v14  ;;  %v1701_v17 = vmul.f32 1.442695, %v1694_v8 }
 0x661   : > { %4585 = vpow2.f32 %v1701_v17 }
 0x665   : > { %v4580_v59 = vpop.eup %4579 }
 0x666   : > { %v1703_v35 = vsel %vm1158_vm12, %v4580_v59, 0.0 }
 0x667   : > { %v4582_v40 = vpop.eup %4581  ;;  %1704 = vadd.xlane.f32.xlu0 %v1703_v35 }
 0x668   : > { %v1706_v3 = vsel %vm1158_vm12, %v4582_v40, 0.0 }
 0x669   : > { %v4584_v19 = vpop.eup %4583  ;;  %1707 = vadd.xlane.f32.xlu1 %v1706_v3 }
 0x66a   : > { %v1709_v43 = vsel %vm1158_vm12, %v4584_v19, 0.0 }
 0x66b   : > { %v4586_v45 = vpop.eup %4585  ;;  %1710 = vadd.xlane.f32.xlu0 %v1709_v43 }
 0x66c   : > { %v1712_v23 = vsel %vm1158_vm12, %v4586_v45, 0.0 }
 0x66d   : > { %1713 = vadd.xlane.f32.xlu1 %v1712_v23 }
 0x6f4   : > { %v1705_v54 = vpop.xlane.xlu0 %1704 }
 0x6f5   : > { %4587 = vrcp.f32 %v1705_v54  ;;  %v1950_v54 = vld [vmem:[%s5399_s2 + $0x40] sm:$0xff] }
 0x6f6   : > { %v1708_v13 = vpop.xlane.xlu1 %1707 }
 0x6f7   : > { %4589 = vrcp.f32 %v1708_v13  ;;  %v1943_v13 = vld [vmem:[%s5399_s2 + $0x8] sm:$0xff] }
 0x6f8   : > { %v1711_v29 = vpop.xlane.xlu0 %1710 }
 0x6f9   : > { %4591 = vrcp.f32 %v1711_v29  ;;  %v4074_v29 = vcombine.high %v1942_v34, %v1950_v54 }
 0x6fa   : > { %v1714_v0 = vpop.xlane.xlu1 %1713 }
 0x6fb   : > { %4593 = vrcp.f32 %v1714_v0  ;;  %v1951_v0 = vld [vmem:[%s5399_s2 + $0x48] sm:$0xff]  ;;  %2482 = vmatprep.subr.bf16.mxu0 %v4074_v29 }
 0x6ff   : > { %v4588_v31 = vpop.eup %4587 }
 0x700   : > { %v1716_v38 = vmul.f32 %v4588_v31, %v4580_v59  ;;  %v4073_v31 = vcombine.low %v1942_v34, %v1950_v54  ;;  %v5812_v54 = vsub.s32 5, %v5471_v49 }
 0x701   : > { %v4590_v5 = vpop.eup %4589 }
 0x702   : > { %v1718_v41 = vmul.f32 %v4590_v5, %v4582_v40  ;;  %v4075_v5 = vcombine.low %v1943_v13, %v1951_v0 }
 0x703   : > { %v4592_v60 = vpop.eup %4591 }
 0x704   : > { %v1723_v44 = vpack.c.bf16 %v1718_v41, %v1716_v38  ;;  %v1720_v4 = vmul.f32 %v4592_v60, %v4584_v19  ;;  %v4076_v38 = vcombine.high %v1943_v13, %v1951_v0  ;;  %v1958_v41 = vld [vmem:[%s5399_s2 + $0x80] sm:$0xff] }
 0x705   : > { %v4594_v55 = vpop.eup %4593  ;;  %v1966_v60 = vld [vmem:[%s5399_s2 + $0xc0] sm:$0xff] }
 0x706   : > { %v1722_v12 = vmul.f32 %v4594_v55, %v4586_v45  ;;  %4380 = vmatprep.mubr.msk.bf16.mxu1 %vm1158_vm12, %v1723_v44  ;;  %2535 = vmatprep.subr.bf16.mxu1 %v4076_v38  ;;  %v1959_v44 = vld [vmem:[%s5399_s2 + $0x88] sm:$0xff]  ;;  %v4090_v55 = vcombine.high %v1958_v41, %v1966_v60 }
 0x708   : > { %v1724_v62 = vpack.c.bf16 %v1722_v12, %v1720_v4  ;;  %v1967_v4 = vld [vmem:[%s5399_s2 + $0xc8] sm:$0xff]  ;;  %v4089_v12 = vcombine.low %v1958_v41, %v1966_v60 }
 0x709   : > { %v4092_v24 = vcombine.high %v1959_v44, %v1967_v4 }
 0x70a   : > { %4381 = vmatmul.mubr.msk.bf16.vlgmr.msra.gmra.mrb[8].mxu1 %vm1158_vm12, %v1724_v62  ;;  %v4091_v62 = vcombine.low %v1959_v44, %v1967_v4  ;;  %v1960_v44 = vld [vmem:[%s5399_s2 + $0x90] sm:$0xff] }
 0x70b   : > { %2536 = vmatpush1.bf16.msra.mxu1 %v4075_v5  ;;  %v1968_v4 = vld [vmem:[%s5399_s2 + $0xd0] sm:$0xff] }
 0x70c   : > { %2537 = vmatprep.subr.bf16.mxu1 %v4092_v24 }
 0x70f   : > { %2538 = vmatpush1.bf16.msra.mxu1 %v4091_v62  ;;  %v1969_v62 = vld [vmem:[%s5399_s2 + $0xd8] sm:$0xff] }
 0x7dd   : > { %v4382_v11 = vpop.f32.mrb[8].mxu1 }
 0x7de   : > { %v1765_v2 = vpop.f32.mrb[9].mxu1 }
 0x7df   : > { %v4383_v20 = vpop.f32.mrb[10].mxu1 }
 0x7e0   : > { %v1785_v36 = vpack.c.bf16 %v4383_v20, %v4382_v11  ;;  %v1768_v6 = vpop.f32.mrb[11].mxu1  ;;  %v1974_v11 = vld [vmem:[%s5399_s2 + $0x100] sm:$0xff]  ;;  %v1975_v20 = vld [vmem:[%s5399_s2 + $0x108] sm:$0xff] }
 0x7e1   : > { %v1784_v18 = vpack.c.bf16 %v1768_v6, %v1765_v2  ;;  %v1982_v2 = vld [vmem:[%s5399_s2 + $0x140] sm:$0xff]  ;;  %v1983_v6 = vld [vmem:[%s5399_s2 + $0x148] sm:$0xff] }
 0x7e3   : > { %4392 = vmatprep.mubr.msk.bf16.mxu0 %vm814_vm1, %v1784_v18  ;;  %v4105_v18 = vcombine.low %v1974_v11, %v1982_v2 }
 0x7e4   : > { %4393 = vmatmul.mubr.msk.bf16.vlgmr.msra.gmra.mrb[16].mxu0 %vm814_vm1, %v1785_v36  ;;  %v4106_v36 = vcombine.high %v1974_v11, %v1982_v2 }
 0x7e5   : > { %2483 = vmatpush1.bf16.msra.mxu0 %v4073_v31 }
 0x7e6   : > { %2484 = vmatprep.subr.bf16.mxu0 %v4090_v55 }
 0x7e9   : > { %2485 = vmatpush1.bf16.msra.mxu0 %v4089_v12  ;;  %v1961_v12 = vld [vmem:[%s5399_s2 + $0x98] sm:$0xff] }
 0x7ea   : > { %2486 = vmatprep.subr.bf16.mxu0 %v4106_v36  ;;  %v4094_v36 = vcombine.high %v1960_v44, %v1968_v4 }
 0x7ed   : > { %2487 = vmatpush1.bf16.msra.mxu0 %v4105_v18  ;;  %v1976_v18 = vld [vmem:[%s5399_s2 + $0x110] sm:$0xff] }
 0x8b7   : > { %v4394_v58 = vpop.f32.mrb[16].mxu0 }
 0x8b8   : > { %v1854_v63 = vpop.f32.mrb[17].mxu0  ;;  %v1863_v56 = vadd.f32 %v4394_v58, %v1789_v53  ;;  %v4108_v58 = vcombine.high %v1975_v20, %v1983_v6 }
 0x8b9   : > { %v1855_v10 = vadd.f32 %v1854_v63, %v1789_v53  ;;  %v4395_v48 = vpop.f32.mrb[18].mxu0  ;;  %v1990_v63 = vld [vmem:[%s5399_s2 + $0x180] sm:$0xff] }
 0x8ba   : > { %v1857_v15 = vpop.f32.mrb[19].mxu0  ;;  %v1866_v30 = vadd.f32 %v4395_v48, %v1789_v53  ;;  %v1871_v21 = vadd.f32 %v1863_v56, %v5449_v37  ;;  %2539 = vmatprep.subr.bf16.mxu1 %v4108_v58  ;;  %v1998_v56 = vld [vmem:[%s5399_s2 + $0x1c0] sm:$0xff]  ;;  %v1977_v58 = vld [vmem:[%s5399_s2 + $0x118] sm:$0xff] }
 0x8bb   : > { %v1858_v42 = vadd.f32 %v1857_v15, %v1789_v53  ;;  %v1869_v61 = vadd.f32 %v1855_v10, %v5440_v32  ;;  %v4107_v53 = vcombine.low %v1975_v20, %v1983_v6  ;;  %v1991_v10 = vld [vmem:[%s5399_s2 + $0x188] sm:$0xff]  ;;  %v4122_v48 = vcombine.high %v1990_v63, %v1998_v56 }
 0x8bc   : > { %v1872_v52 = vadd.f32 %v1866_v30, %v5453_v39  ;;  %v1879_v28 = vsel %vm814_vm1, %v1871_v21, 0.0  ;;  %v1999_v15 = vld [vmem:[%s5399_s2 + $0x1c8] sm:$0xff]  ;;  %v4121_v30 = vcombine.low %v1990_v63, %v1998_v56  ;;  %v4096_v6 = vcombine.high %v1961_v12, %v1969_v62  ;;  %v1985_v63 = vld [vmem:[%s5399_s2 + $0x158] sm:$0xff] }
 0x8bd   : > { %v1873_v57 = vsel %vm814_vm1, %v1869_v61, 0.0  ;;  %v1870_v9 = vadd.f32 %v1858_v42, %v5442_v33  ;;  %2540 = vmatpush1.bf16.msra.mxu1 %v4107_v53  ;;  %v4123_v42 = vcombine.low %v1991_v10, %v1999_v15  ;;  %2488 = vmatprep.subr.bf16.mxu0 %v4122_v48  ;;  %v1984_v53 = vld [vmem:[%s5399_s2 + $0x150] sm:$0xff] }
 0x8be   : > { %1874 = vadd.xlane.f32.xlu0 %v1873_v57  ;;  %v1882_v16 = vsel %vm814_vm1, %v1872_v52, 0.0  ;;  %2489 = vmatpush1.bf16.msra.mxu0 %v4121_v30  ;;  %v1944_v57 = vld [vmem:[%s5399_s2 + $0x10] sm:$0xff]  ;;  %v4110_v48 = vcombine.high %v1976_v18, %v1984_v53 }
 0x8bf   : > { %v1876_v1 = vsel %vm814_vm1, %v1870_v9, 0.0  ;;  %v1992_v30 = vld [vmem:[%s5399_s2 + $0x190] sm:$0xff] }
 0x8c0   : > { %1877 = vadd.xlane.f32.xlu1 %v1876_v1 }
 0x8c2   : > { %1880 = vadd.xlane.f32.xlu0 %v1879_v28  ;;  %v4938_v28 = vmov 0  }
 0x8c3   : > { %2514 = vmatprep.mubr.bf16.mxu0 %v4938_v28  ;;  %2567 = vmatprep.mubr.bf16.mxu1 %v4938_v28 }
 0x8c4   : > { %1883 = vadd.xlane.f32.xlu1 %v1882_v16 }
 0x94b   : > { %v1875_v22 = vpop.xlane.xlu0 %1874 }
 0x94c   : > { %v1886_v32 = vmul.f32 0.015625, %v1875_v22 }
 0x94d   : > { %v1878_v7 = vpop.xlane.xlu1 %1877 }
 0x94e   : > { %v5764_v46 = vsub.f32 %v1869_v61, %v1886_v32  ;;  %v1887_v33 = vmul.f32 0.015625, %v1878_v7  ;;  %v4124_v61 = vcombine.high %v1991_v10, %v1999_v15  ;;  %v4112_v15 = vcombine.high %v1977_v58, %v1985_v63 }
 0x94f   : > { %v1881_v14 = vpop.xlane.xlu0 %1880 }
 0x950   : > { %v5766_v37 = vsub.f32 %v1870_v9, %v1887_v33  ;;  %v1888_v8 = vmul.f32 0.015625, %v1881_v14  ;;  %v1894_v39 = vmul.f32 %v5764_v46, %v5764_v46  ;;  %2541 = vmatprep.subr.bf16.mxu1 %v4124_v61  ;;  %v1952_v9 = vld [vmem:[%s5399_s2 + $0x50] sm:$0xff]  ;;  %v1993_v61 = vld [vmem:[%s5399_s2 + $0x198] sm:$0xff] }
 0x951   : > { %v1884_v17 = vpop.xlane.xlu1 %1883  ;;  %2542 = vmatpush1.bf16.msra.mxu1 %v4123_v42  ;;  %v4078_v1 = vcombine.high %v1944_v57, %v1952_v9  ;;  %v4077_v16 = vcombine.low %v1944_v57, %v1952_v9  ;;  %v2000_v42 = vld [vmem:[%s5399_s2 + $0x1d0] sm:$0xff]  ;;  %v2001_v57 = vld [vmem:[%s5399_s2 + $0x1d8] sm:$0xff] }
 0x952   : > { %v5770_v59 = vsub.f32 %v1871_v21, %v1888_v8  ;;  %v1889_v35 = vmul.f32 0.015625, %v1884_v17  ;;  %v1898_v40 = vsel %vm814_vm1, %v1894_v39, 0.0  ;;  %v1895_v3 = vmul.f32 %v5766_v37, %v5766_v37  ;;  %v1945_v21 = vld [vmem:[%s5399_s2 + $0x18] sm:$0xff] }
 0x953   : > { %1899 = vadd.xlane.f32.xlu0 %v1898_v40  ;;  %2588 = vmatprep.subr.bf16.mxu0 %v4078_v1  ;;  %v4111_v1 = vcombine.low %v1977_v58, %v1985_v63  ;;  %v1957_v58 = vld [vmem:[%s5399_s2 + $0x78] sm:$0xff] }
 0x954   : > { %v5775_v19 = vsub.f32 %v1872_v52, %v1889_v35  ;;  %v1901_v43 = vsel %vm814_vm1, %v1895_v3, 0.0  ;;  %v1896_v45 = vmul.f32 %v5770_v59, %v5770_v59  ;;  %v1953_v52 = vld [vmem:[%s5399_s2 + $0x58] sm:$0xff] }
 0x955   : > { %1902 = vadd.xlane.f32.xlu1 %v1901_v43  ;;  %v4079_v22 = vcombine.low %v1945_v21, %v1953_v52  ;;  %v4080_v32 = vcombine.high %v1945_v21, %v1953_v52  ;;  %v4109_v21 = vcombine.low %v1976_v18, %v1984_v53  ;;  %v1956_v18 = vld [vmem:[%s5399_s2 + $0x70] sm:$0xff]  ;;  %v1949_v53 = vld [vmem:[%s5399_s2 + $0x38] sm:$0xff] }
 0x956   : > { %v1904_v23 = vsel %vm814_vm1, %v1896_v45, 0.0  ;;  %v1897_v25 = vmul.f32 %v5775_v19, %v5775_v19 }
 0x957   : > { %1905 = vadd.xlane.f32.xlu0 %v1904_v23  ;;  %2641 = vmatprep.subr.bf16.mxu1 %v4080_v32  ;;  %v1946_v32 = vld [vmem:[%s5399_s2 + $0x20] sm:$0xff] }
 0x958   : > { %v1907_v27 = vsel %vm814_vm1, %v1897_v25, 0.0  ;;  %v5807_v25 = vsub.s32 4, %v5471_v49 }
 0x959   : > { %1908 = vadd.xlane.f32.xlu1 %v1907_v27  ;;  %v4611_v27 = vld [vmem:[%s5391_s5] sm:$0xff] }
 0x95a   : > { %v1929_v34 = vrot.slane %v4611_v27, %v5807_v25  ;;  %v1937_v31 = vrot.slane %v4611_v27, %v5812_v54 }
 0x9e0   : > { %v1900_v7 = vpop.xlane.xlu0 %1899 }
 0x9e1   : > { %v1910_v33 = vmul.f32 0.015625, %v1900_v7  ;;  %v1954_v7 = vld [vmem:[%s5399_s2 + $0x60] sm:$0xff] }
 0x9e2   : > { %v1903_v14 = vpop.xlane.xlu1 %1902 }
 0x9e3   : > { %v1914_v8 = vadd.f32 1e-05, %v1910_v33  ;;  %v1911_v39 = vmul.f32 0.015625, %v1903_v14  ;;  %v1947_v33 = vld [vmem:[%s5399_s2 + $0x28] sm:$0xff] }
 0x9e4   : > { %v1906_v17 = vpop.xlane.xlu0 %1905  ;;  %v1955_v14 = vld [vmem:[%s5399_s2 + $0x68] sm:$0xff] }
 0x9e5   : > { %4595 = vrsqrt.f32 %v1914_v8  ;;  %v1915_v35 = vadd.f32 1e-05, %v1911_v39  ;;  %v1912_v40 = vmul.f32 0.015625, %v1906_v17  ;;  %v4125_v8 = vcombine.low %v1992_v30, %v2000_v42 }
 0x9e6   : > { %v1909_v3 = vpop.xlane.xlu1 %1908  ;;  %v4127_v39 = vcombine.low %v1993_v61, %v2001_v57  ;;  %v4082_v17 = vcombine.high %v1946_v32, %v1954_v7  ;;  %v4083_v27 = vcombine.low %v1947_v33, %v1955_v14 }
 0x9e7   : > { %4597 = vrsqrt.f32 %v1915_v35  ;;  %v1916_v43 = vadd.f32 1e-05, %v1912_v40  ;;  %v1913_v45 = vmul.f32 0.015625, %v1909_v3  ;;  %v4084_v35 = vcombine.high %v1947_v33, %v1955_v14  ;;  %v1962_v40 = vld [vmem:[%s5399_s2 + $0xa0] sm:$0xff] }
 0x9e8   : > { %v1970_v3 = vld [vmem:[%s5399_s2 + $0xe0] sm:$0xff] }
 0x9e9   : > { %4599 = vrsqrt.f32 %v1916_v43  ;;  %v1917_v23 = vadd.f32 1e-05, %v1913_v45  ;;  %v1963_v43 = vld [vmem:[%s5399_s2 + $0xa8] sm:$0xff] }
 0x9ea   : > { %v1971_v45 = vld [vmem:[%s5399_s2 + $0xe8] sm:$0xff] }
 0x9eb   : > { %4601 = vrsqrt.f32 %v1917_v23  ;;  %v4081_v23 = vcombine.low %v1946_v32, %v1954_v7  ;;  %v1981_v32 = vld [vmem:[%s5399_s2 + $0x138] sm:$0xff] }
 0x9ec   : > { %v1989_v7 = vld [vmem:[%s5399_s2 + $0x178] sm:$0xff] }
 0x9ef   : > { %v4596_v13 = vpop.eup %4595 }
 0x9f0   : > { %v1922_v29 = vmul.f32 %v4596_v13, %v5764_v46  ;;  %v4100_v13 = vcombine.high %v1963_v43, %v1971_v45 }
 0x9f1   : > { %v4598_v0 = vpop.eup %4597 }
 0x9f2   : > { %v1930_v5 = vmul.f32 %v1929_v34, %v1922_v29  ;;  %v1923_v38 = vmul.f32 %v4598_v0, %v5766_v37  ;;  %v1978_v29 = vld [vmem:[%s5399_s2 + $0x120] sm:$0xff] }
 0x9f3   : > { %v4600_v41 = vpop.eup %4599  ;;  %v1986_v0 = vld [vmem:[%s5399_s2 + $0x160] sm:$0xff] }
 0x9f4   : > { %v1931_v60 = vmul.f32 %v1929_v34, %v1923_v38  ;;  %v5821_v24 = vadd.f32 %v1937_v31, %v1930_v5  ;;  %v1924_v11 = vmul.f32 %v4600_v41, %v5770_v59  ;;  %v4093_v59 = vcombine.low %v1960_v44, %v1968_v4  ;;  %v1987_v5 = vld [vmem:[%s5399_s2 + $0x168] sm:$0xff]  ;;  %v2002_v4 = vld [vmem:[%s5399_s2 + $0x1e0] sm:$0xff] }
 0x9f5   : > { %v4602_v55 = vpop.eup %4601  ;;  %v4097_v38 = vcombine.low %v1962_v40, %v1970_v3  ;;  %v4099_v41 = vcombine.low %v1963_v43, %v1971_v45  ;;  %v4119_v45 = vcombine.low %v1981_v32, %v1989_v7 }
 0x9f6   : > { %v5823_v46 = vadd.f32 %v1937_v31, %v1931_v60  ;;  %v1925_v2 = vmul.f32 %v4602_v55, %v5775_v19  ;;  %v1932_v56 = vmul.f32 %v1929_v34, %v1924_v11  ;;  %v4095_v19 = vcombine.low %v1961_v12, %v1969_v62  ;;  %v1994_v55 = vld [vmem:[%s5399_s2 + $0x1a0] sm:$0xff]  ;;  %v1995_v12 = vld [vmem:[%s5399_s2 + $0x1a8] sm:$0xff] }
 0x9f7   : > { %v4114_v60 = vcombine.high %v1978_v29, %v1986_v0  ;;  %v2003_v62 = vld [vmem:[%s5399_s2 + $0x1e8] sm:$0xff]  ;;  %v4113_v11 = vcombine.low %v1978_v29, %v1986_v0  ;;  %v4129_v63 = vcombine.low %v1994_v55, %v2002_v4 }
 0x9f8   : > { %v5829_v37 = vpack.c.bf16 %v5823_v46, %v5821_v24  ;;  %v1933_v20 = vmul.f32 %v1929_v34, %v1925_v2  ;;  %v5847_v9 = vadd.f32 %v1937_v31, %v1932_v56  ;;  %v4098_v34 = vcombine.high %v1962_v40, %v1970_v3  ;;  %v1997_v40 = vld [vmem:[%s5399_s2 + $0x1b8] sm:$0xff]  ;;  %v2009_v29 = vld [vmem:[%s5403_s20 + $0x8] sm:$0xff] }
 0x9f9   : > { %v4131_v56 = vcombine.low %v1995_v12, %v2003_v62  ;;  %v2005_v3 = vld [vmem:[%s5399_s2 + $0x1f8] sm:$0xff]  ;;  %v2017_v0 = vld [vmem:[%s5403_s20 + $0x48] sm:$0xff] }
 0x9fa   : > { %4137 = vmatmul.mubr.msk.bf16.vlgmr.msra.gmra.mrb[20].mxu0 %vm814_vm1, %v5829_v37  ;;  %4139 = vmatmul.mubr.msk.bf16.vlgmr.msra.gmra.mrb[16].mxu1 %vm814_vm1, %v5829_v37  ;;  %v5839_v10 = vadd.f32 %v1937_v31, %v1933_v20  ;;  %v1979_v31 = vld [vmem:[%s5399_s2 + $0x128] sm:$0xff]  ;;  %v4130_v20 = vcombine.high %v1994_v55, %v2002_v4 }
 0x9fb   : > { %2589 = vmatpush1.bf16.msra.mxu0 %v4077_v16  ;;  %2642 = vmatpush1.bf16.msra.mxu1 %v4079_v22  ;;  %v4126_v16 = vcombine.high %v1992_v30, %v2000_v42  ;;  %v4128_v22 = vcombine.high %v1993_v61, %v2001_v57  ;;  %v4116_v44 = vcombine.high %v1979_v31, %v1987_v5  ;;  %v1965_v30 = vld [vmem:[%s5399_s2 + $0xb8] sm:$0xff]  ;;  %v2025_v55 = vld [vmem:[%s5403_s20 + $0x88] sm:$0xff] }
 0x9fc   : > { %2590 = vmatprep.subr.bf16.mxu0 %v4094_v36  ;;  %2643 = vmatprep.subr.bf16.mxu1 %v4096_v6  ;;  %v5851_v52 = vpack.c.bf16 %v5839_v10, %v5847_v9  ;;  %v4115_v2 = vcombine.low %v1979_v31, %v1987_v5  ;;  %v4132_v36 = vcombine.high %v1995_v12, %v2003_v62  ;;  %v1948_v6 = vld [vmem:[%s5399_s2 + $0x30] sm:$0xff]  ;;  %v1973_v42 = vld [vmem:[%s5399_s2 + $0xf8] sm:$0xff]  ;;  %v2033_v4 = vld [vmem:[%s5403_s20 + $0xc8] sm:$0xff] }
 0x9fd   : > { %2524 = vmatprep.mubr.bf16.mxu0 %v4938_v28  ;;  %2577 = vmatprep.mubr.bf16.mxu1 %v4938_v28  ;;  %v4085_v61 = vcombine.low %v1948_v6, %v1956_v18  ;;  %v4087_v57 = vcombine.low %v1949_v53, %v1957_v58  ;;  %v4103_v14 = vcombine.low %v1965_v30, %v1973_v42 }
 0x9fe   : > { %v4135_v5 = vcombine.low %v1997_v40, %v2005_v3  ;;  %v4155_v62 = vcombine.low %v2009_v29, %v2017_v0 }
 0x9ff   : > { %2591 = vmatpush1.bf16.msra.mxu0 %v4093_v59  ;;  %2644 = vmatpush1.bf16.msra.mxu1 %v4095_v19  ;;  %v4086_v59 = vcombine.high %v1948_v6, %v1956_v18  ;;  %v4088_v19 = vcombine.high %v1949_v53, %v1957_v58  ;;  %v4171_v18 = vcombine.low %v2025_v55, %v2033_v4 }
 0xa00   : > { %2592 = vmatprep.subr.bf16.mxu0 %v4110_v48  ;;  %2645 = vmatprep.subr.bf16.mxu1 %v4112_v15  ;;  %v1964_v48 = vld [vmem:[%s5399_s2 + $0xb0] sm:$0xff] }
 0xa01   : > { %v1972_v15 = vld [vmem:[%s5399_s2 + $0xf0] sm:$0xff] }
 0xa02   : > { %4138 = vmatmul.mubr.msk.bf16.gmra.mrb[24].mxu0 %vm814_vm1, %v5851_v52  ;;  %4140 = vmatmul.mubr.msk.bf16.gmra.mrb[20].mxu1 %vm814_vm1, %v5851_v52  ;;  %v4101_v33 = vcombine.low %v1964_v48, %v1972_v15 }
 0xa03   : > { %2593 = vmatpush1.bf16.msra.mxu0 %v4109_v21  ;;  %2646 = vmatpush1.bf16.msra.mxu1 %v4111_v1  ;;  %v4102_v21 = vcombine.high %v1964_v48, %v1972_v15  ;;  %v4104_v1 = vcombine.high %v1965_v30, %v1973_v42  ;;  %v2065_v15 = vld [vmem:[%s5403_s20 + $0x1c8] sm:$0xff] }
 0xa04   : > { %2594 = vmatprep.subr.bf16.mxu0 %v4126_v16  ;;  %2647 = vmatprep.subr.bf16.mxu1 %v4128_v22  ;;  %v1980_v16 = vld [vmem:[%s5399_s2 + $0x130] sm:$0xff] }
 0xa05   : > { %2620 = vmatprep.mubr.bf16.mxu0 %v4938_v28  ;;  %2673 = vmatprep.mubr.bf16.mxu1 %v4938_v28  ;;  %v1988_v22 = vld [vmem:[%s5399_s2 + $0x170] sm:$0xff] }
 0xa06   : > { %v4117_v43 = vcombine.low %v1980_v16, %v1988_v22 }
 0xa07   : > { %2595 = vmatpush1.bf16.msra.mxu0 %v4125_v8  ;;  %2648 = vmatpush1.bf16.msra.mxu1 %v4127_v39  ;;  %v4118_v8 = vcombine.high %v1980_v16, %v1988_v22  ;;  %v4120_v39 = vcombine.high %v1981_v32, %v1989_v7  ;;  %v5953_v22 = vld [vmem:[%s5403_s20 + $0x58] sm:$0xff] }
 0xa08   : > { %2694 = vmatprep.subr.bf16.mxu0 %v4082_v17  ;;  %2747 = vmatprep.subr.bf16.mxu1 %v4084_v35  ;;  %v1996_v17 = vld [vmem:[%s5399_s2 + $0x1b0] sm:$0xff] }
 0xa09   : > { %v2004_v35 = vld [vmem:[%s5399_s2 + $0x1f0] sm:$0xff] }
 0xa0a   : > { %4141 = vmatmul.mubr.msk.bf16.vlgmr.msra.gmra.mrb[28].mxu0 %vm814_vm1, %v5829_v37  ;;  %4143 = vmatmul.mubr.msk.bf16.vlgmr.msra.gmra.mrb[24].mxu1 %vm814_vm1, %v5829_v37  ;;  %v4133_v31 = vcombine.low %v1996_v17, %v2004_v35 }
 0xa0b   : > { %2695 = vmatpush1.bf16.msra.mxu0 %v4081_v23  ;;  %2748 = vmatpush1.bf16.msra.mxu1 %v4083_v27  ;;  %v4134_v23 = vcombine.high %v1996_v17, %v2004_v35  ;;  %v4136_v27 = vcombine.high %v1997_v40, %v2005_v3 }
 0xa0c   : > { %2696 = vmatprep.subr.bf16.mxu0 %v4098_v34  ;;  %2749 = vmatprep.subr.bf16.mxu1 %v4100_v13  ;;  %v2008_v34 = vld [vmem:[%s5403_s20] sm:$0xff] }
 0xa0d   : > { %2630 = vmatprep.mubr.bf16.mxu0 %v4938_v28  ;;  %2683 = vmatprep.mubr.bf16.mxu1 %v4938_v28  ;;  %v2016_v13 = vld [vmem:[%s5403_s20 + $0x40] sm:$0xff] }
 0xa0e   : > { %v4153_v12 = vcombine.low %v2008_v34, %v2016_v13 }
 0xa0f   : > { %2697 = vmatpush1.bf16.msra.mxu0 %v4097_v38  ;;  %2750 = vmatpush1.bf16.msra.mxu1 %v4099_v41  ;;  %v4154_v38 = vcombine.high %v2008_v34, %v2016_v13  ;;  %v4156_v41 = vcombine.high %v2009_v29, %v2017_v0 }
 0xa10   : > { %2698 = vmatprep.subr.bf16.mxu0 %v4114_v60  ;;  %2751 = vmatprep.subr.bf16.mxu1 %v4116_v44  ;;  %v2024_v60 = vld [vmem:[%s5403_s20 + $0x80] sm:$0xff] }
 0xa11   : > { %v2032_v44 = vld [vmem:[%s5403_s20 + $0xc0] sm:$0xff] }
 0xa12   : > { %4142 = vmatmul.mubr.msk.bf16.gmra.mrb[32].mxu0 %vm814_vm1, %v5851_v52  ;;  %4144 = vmatmul.mubr.msk.bf16.gmra.mrb[28].mxu1 %vm814_vm1, %v5851_v52  ;;  %v4169_v6 = vcombine.low %v2024_v60, %v2032_v44 }
 0xa13   : > { %2699 = vmatpush1.bf16.msra.mxu0 %v4113_v11  ;;  %2752 = vmatpush1.bf16.msra.mxu1 %v4115_v2  ;;  %v4170_v11 = vcombine.high %v2024_v60, %v2032_v44  ;;  %v4172_v2 = vcombine.high %v2025_v55, %v2033_v4  ;;  %v5973_v55 = vsub.s32 6, %v5471_v49 }
 0xa14   : > { %2700 = vmatprep.subr.bf16.mxu0 %v4130_v20  ;;  %2753 = vmatprep.subr.bf16.mxu1 %v4132_v36  ;;  %v2040_v20 = vld [vmem:[%s5403_s20 + $0x100] sm:$0xff]  ;;  %v2041_v36 = vld [vmem:[%s5403_s20 + $0x108] sm:$0xff] }
 0xa15   : > { %2726 = vmatprep.mubr.bf16.mxu0 %v4938_v28  ;;  %2779 = vmatprep.mubr.bf16.mxu1 %v4938_v28 }
 0xa17   : > { %2701 = vmatpush1.bf16.msra.mxu0 %v4129_v63  ;;  %2754 = vmatpush1.bf16.msra.mxu1 %v4131_v56 }
 0xa18   : > { %2800 = vmatprep.subr.bf16.mxu0 %v4086_v59  ;;  %2853 = vmatprep.subr.bf16.mxu1 %v4088_v19  ;;  %v2064_v59 = vld [vmem:[%s5403_s20 + $0x1c0] sm:$0xff]  ;;  %v2057_v19 = vld [vmem:[%s5403_s20 + $0x188] sm:$0xff] }
 0xa19   : > { %v4203_v42 = vcombine.low %v2057_v19, %v2065_v15 }
 0xa1a   : > { %4145 = vmatmul.mubr.msk.bf16.vlgmr.msra.gmra.mrb[36].mxu0 %vm814_vm1, %v5829_v37  ;;  %4147 = vmatmul.mubr.msk.bf16.vlgmr.msra.gmra.mrb[32].mxu1 %vm814_vm1, %v5829_v37 }
 0xa1b   : > { %2801 = vmatpush1.bf16.msra.mxu0 %v4085_v61  ;;  %2854 = vmatpush1.bf16.msra.mxu1 %v4087_v57  ;;  %v4204_v61 = vcombine.high %v2057_v19, %v2065_v15  ;;  %v5942_v57 = vld [vmem:[%s5403_s20 + $0x10] sm:$0xff]  ;;  %v5992_v15 = vsub.s32 7, %v5471_v49 }
 0xa1c   : > { %2802 = vmatprep.subr.bf16.mxu0 %v4102_v21  ;;  %2855 = vmatprep.subr.bf16.mxu1 %v4104_v1  ;;  %v5945_v21 = vld [vmem:[%s5403_s20 + $0x50] sm:$0xff]  ;;  %v5948_v1 = vld [vmem:[%s5403_s20 + $0x18] sm:$0xff] }
 0xa1d   : > { %2736 = vmatprep.mubr.bf16.mxu0 %v4938_v28  ;;  %2789 = vmatprep.mubr.bf16.mxu1 %v4938_v28  ;;  %v4158_v16 = vcombine.high %v5942_v57, %v5945_v21  ;;  %v4157_v32 = vcombine.low %v5942_v57, %v5945_v21  ;;  %v4159_v7 = vcombine.low %v5948_v1, %v5953_v22  ;;  %v6020_v57 = vld [vmem:[%s5403_s20 + $0x150] sm:$0xff] }
 0xa1f   : > { %2803 = vmatpush1.bf16.msra.mxu0 %v4101_v33  ;;  %2856 = vmatpush1.bf16.msra.mxu1 %v4103_v14  ;;  %v4160_v33 = vcombine.high %v5948_v1, %v5953_v22  ;;  %v5962_v14 = vld [vmem:[%s5401_s28] sm:$0xff]  ;;  %v6023_v22 = vld [vmem:[%s5403_s20 + $0x118] sm:$0xff] }
 0xa20   : > { %2804 = vmatprep.subr.bf16.mxu0 %v4118_v8  ;;  %2857 = vmatprep.subr.bf16.mxu1 %v4120_v39  ;;  %v2079_v8 = vrot.slane %v5962_v14, %v5477_v51  ;;  %v2087_v39 = vrot.slane %v5962_v14, %v5534_v26  ;;  %v2083_v17 = vrot.slane %v5962_v14, %v5474_v50 }
 0xa21   : > { %v2091_v35 = vrot.slane %v5962_v14, %v5752_v47  ;;  %v6000_v49 = vrot.slane %v5962_v14, %v5973_v55 }
 0xa22   : > { %4146 = vmatmul.mubr.msk.bf16.gmra.mrb[40].mxu0 %vm814_vm1, %v5851_v52  ;;  %4148 = vmatmul.mubr.msk.bf16.gmra.mrb[36].mxu1 %vm814_vm1, %v5851_v52 }
 0xa23   : > { %2805 = vmatpush1.bf16.msra.mxu0 %v4117_v43  ;;  %2858 = vmatpush1.bf16.msra.mxu1 %v4119_v45 }
 0xa24   : > { %2806 = vmatprep.subr.bf16.mxu0 %v4134_v23  ;;  %2859 = vmatprep.subr.bf16.mxu1 %v4136_v27 }
 0xa25   : > { %2832 = vmatprep.mubr.bf16.mxu0 %v4938_v28  ;;  %2885 = vmatprep.mubr.bf16.mxu1 %v4938_v28 }
 0xa27   : > { %2807 = vmatpush1.bf16.msra.mxu0 %v4133_v31  ;;  %2860 = vmatpush1.bf16.msra.mxu1 %v4135_v5 }
 0xa28   : > { %3326 = vmatprep.subr.bf16.mxu0 %v4154_v38  ;;  %3375 = vmatprep.subr.bf16.mxu1 %v4156_v41 }
 0xa2a   : > { %4149 = vmatmul.mubr.msk.bf16.vlgmr.msra.gmra.mrb[44].mxu0 %vm814_vm1, %v5829_v37  ;;  %4151 = vmatmul.mubr.msk.bf16.vlgmr.msra.gmra.mrb[40].mxu1 %vm814_vm1, %v5829_v37  ;;  %v2048_v37 = vld [vmem:[%s5403_s20 + $0x140] sm:$0xff] }
 0xa2b   : > { %2842 = vmatprep.mubr.bf16.mxu0 %v4938_v28  ;;  %2895 = vmatprep.mubr.bf16.mxu1 %v4938_v28  ;;  %v2049_v28 = vld [vmem:[%s5403_s20 + $0x148] sm:$0xff]  ;;  %v4186_v53 = vcombine.high %v2040_v20, %v2048_v37  ;;  %v4185_v63 = vcombine.low %v2040_v20, %v2048_v37  ;;  %v5979_v20 = vld [vmem:[%s5403_s20 + $0xd0] sm:$0xff] }
 0xa2c   : > { %v4188_v58 = vcombine.high %v2041_v36, %v2049_v28  ;;  %v4187_v56 = vcombine.low %v2041_v36, %v2049_v28 }
 0xa30   : > { %3327 = vmatpush1.bf16.xpose.msra.mxu0 %v4153_v12  ;;  %3376 = vmatpush1.bf16.xpose.msra.mxu1 %v4155_v62 }
 0xa31   : > { %3328 = vmatprep.subr.bf16.mxu0 %v4170_v11  ;;  %3377 = vmatprep.subr.bf16.mxu1 %v4172_v2  ;;  %v5976_v2 = vld [vmem:[%s5403_s20 + $0x90] sm:$0xff] }
 0xa32   : > { %4150 = vmatmul.mubr.msk.bf16.gmra.mrb[48].mxu0 %vm814_vm1, %v5851_v52  ;;  %4152 = vmatmul.mubr.msk.bf16.gmra.mrb[44].mxu1 %vm814_vm1, %v5851_v52  ;;  %v2056_v52 = vld [vmem:[%s5403_s20 + $0x180] sm:$0xff] }
 0xa33   : > { %v4202_v48 = vcombine.high %v2056_v52, %v2064_v59  ;;  %v4201_v30 = vcombine.low %v2056_v52, %v2064_v59 }
 0xa38   : > { %3329 = vmatpush1.bf16.xpose.msra.mxu0 %v4169_v6  ;;  %3378 = vmatpush1.bf16.xpose.msra.mxu1 %v4171_v18  ;;  %v5982_v18 = vld [vmem:[%s5403_s20 + $0x98] sm:$0xff] }
 0xa39   : > { %3330 = vmatprep.subr.bf16.mxu0 %v4186_v53  ;;  %3379 = vmatprep.subr.bf16.mxu1 %v4188_v58  ;;  %v5985_v53 = vld [vmem:[%s5403_s20 + $0xd8] sm:$0xff] }
 0xa40   : > { %3331 = vmatpush1.bf16.xpose.msra.mxu0 %v4185_v63  ;;  %3380 = vmatpush1.bf16.xpose.msra.mxu1 %v4187_v56 }
 0xa41   : > { %3332 = vmatprep.subr.bf16.mxu0 %v4202_v48  ;;  %3381 = vmatprep.subr.bf16.mxu1 %v4204_v61  ;;  %v5989_v48 = vrot.slane %v5962_v14, %v5807_v25 }
 0xa48   : > { %3333 = vmatpush1.bf16.xpose.msra.mxu0 %v4201_v30  ;;  %3382 = vmatpush1.bf16.xpose.msra.mxu1 %v4203_v42 }
 0xa49   : > { %3424 = vmatprep.subr.bf16.mxu0 %v4158_v16  ;;  %3473 = vmatprep.subr.bf16.mxu1 %v4160_v33  ;;  %v4174_v33 = vcombine.high %v5976_v2, %v5979_v20 }
 0xacd   : > { %v2516_v40 = vpop.f32.mrb[20].mxu0  ;;  %v2569_v3 = vpop.f32.mrb[16].mxu1 }
 0xace   : > { %v2517_v43 = vadd.f32 %v2516_v40, %v2079_v8  ;;  %v2570_v45 = vadd.f32 %v2569_v3, %v2087_v39  ;;  %v2518_v23 = vpop.f32.mrb[21].mxu0  ;;  %v2571_v27 = vpop.f32.mrb[17].mxu1  ;;  %v4176_v40 = vcombine.high %v5982_v18, %v5985_v53 }
 0xacf   : > { %v2519_v34 = vadd.f32 %v2518_v23, %v2083_v17  ;;  %v2572_v13 = vadd.f32 %v2571_v27, %v2091_v35  ;;  %v2520_v29 = vpop.f32.mrb[22].mxu0  ;;  %v2573_v0 = vpop.f32.mrb[18].mxu1 }
 0xad0   : > { %v2521_v31 = vadd.f32 %v2520_v29, %v2079_v8  ;;  %v2574_v5 = vadd.f32 %v2573_v0, %v2087_v39  ;;  %v2522_v38 = vpop.f32.mrb[23].mxu0  ;;  %v2575_v41 = vpop.f32.mrb[19].mxu1  ;;  %v2906_v4 = vmax.f32 %v2517_v43, 0.0  ;;  %v2908_v12 = vmax.f32 %v2570_v45, 0.0 }
 0xad1   : > { %v2523_v60 = vadd.f32 %v2522_v38, %v2083_v17  ;;  %v2576_v44 = vadd.f32 %v2575_v41, %v2091_v35  ;;  %v2907_v37 = vmax.f32 %v2519_v34, 0.0  ;;  %v2909_v36 = vmax.f32 %v2572_v13, 0.0 }
 0xad2   : > { %v2922_v62 = vmax.f32 %v2521_v31, 0.0  ;;  %v2924_v11 = vmax.f32 %v2574_v5, 0.0  ;;  %v6004_v0 = vrot.slane %v5962_v14, %v5812_v54 }
 0xad3   : > { %v2923_v28 = vmax.f32 %v2523_v60, 0.0  ;;  %v2925_v6 = vmax.f32 %v2576_v44, 0.0 }
 0xad4   : > { %v2970_v58 = vpack.c.bf16 %v2922_v62, %v2906_v4  ;;  %v2972_v63 = vpack.c.bf16 %v2924_v11, %v2908_v12 }
 0xad5   : > { %v2971_v56 = vpack.c.bf16 %v2923_v28, %v2907_v37  ;;  %v2973_v52 = vpack.c.bf16 %v2925_v6, %v2909_v36  ;;  %v2526_v59 = vpop.f32.mrb[24].mxu0  ;;  %v2579_v19 = vpop.f32.mrb[20].mxu1  ;;  %v4173_v37 = vcombine.low %v5976_v2, %v5979_v20  ;;  %v4175_v36 = vcombine.low %v5982_v18, %v5985_v53 }
 0xad6   : > { %v2527_v30 = vadd.f32 %v2526_v59, %v2079_v8  ;;  %v2580_v42 = vadd.f32 %v2579_v19, %v2087_v39  ;;  %v2528_v61 = vpop.f32.mrb[25].mxu0  ;;  %v2581_v16 = vpop.f32.mrb[21].mxu1 }
 0xad7   : > { %v2529_v3 = vadd.f32 %v2528_v61, %v2083_v17  ;;  %v2582_v43 = vadd.f32 %v2581_v16, %v2091_v35  ;;  %v2530_v45 = vpop.f32.mrb[26].mxu0  ;;  %v2583_v23 = vpop.f32.mrb[22].mxu1  ;;  %3358 = vmatprep.mubr.bf16.mxu0 %v2971_v56  ;;  %3407 = vmatprep.mubr.bf16.mxu1 %v2973_v52 }
 0xad8   : > { %v2531_v27 = vadd.f32 %v2530_v45, %v2079_v8  ;;  %v2584_v34 = vadd.f32 %v2583_v23, %v2087_v39  ;;  %v2532_v13 = vpop.f32.mrb[27].mxu0  ;;  %v2585_v29 = vpop.f32.mrb[23].mxu1  ;;  %3359 = vmatmul.mubr.bf16.vlgmr.msra.gmra.mrb[52].mxu0 %v2970_v58  ;;  %3408 = vmatmul.mubr.bf16.vlgmr.msra.gmra.mrb[48].mxu1 %v2972_v63  ;;  %v6014_v8 = vrot.slane %v5962_v14, %v5992_v15  ;;  %v2938_v39 = vmax.f32 %v2527_v30, 0.0  ;;  %v6045_v45 = vld [vmem:[%s5403_s20 + $0x190] sm:$0xff] }
 0xad9   : > { %v2533_v31 = vadd.f32 %v2532_v13, %v2083_v17  ;;  %v2586_v5 = vadd.f32 %v2585_v29, %v2091_v35  ;;  %3425 = vmatpush1.bf16.xpose.msra.mxu0 %v4157_v32  ;;  %3474 = vmatpush1.bf16.xpose.msra.mxu1 %v4159_v7  ;;  %v2940_v38 = vmax.f32 %v2580_v42, 0.0  ;;  %v6017_v17 = vld [vmem:[%s5403_s20 + $0x110] sm:$0xff]  ;;  %v2939_v21 = vmax.f32 %v2529_v3, 0.0  ;;  %v6026_v7 = vld [vmem:[%s5403_s20 + $0x158] sm:$0xff] }
 0xada   : > { %v2954_v41 = vmax.f32 %v2531_v27, 0.0  ;;  %v2956_v60 = vmax.f32 %v2584_v34, 0.0  ;;  %3426 = vmatprep.subr.bf16.mxu0 %v4174_v33  ;;  %3475 = vmatprep.subr.bf16.mxu1 %v4176_v40  ;;  %v2941_v32 = vmax.f32 %v2582_v43, 0.0  ;;  %v4190_v56 = vcombine.high %v6017_v17, %v6020_v57  ;;  %v6048_v23 = vld [vmem:[%s5403_s20 + $0x1d0] sm:$0xff] }
 0xadb   : > { %v2955_v35 = vmax.f32 %v2533_v31, 0.0  ;;  %v2957_v1 = vmax.f32 %v2586_v5, 0.0  ;;  %v4192_v52 = vcombine.high %v6023_v22, %v6026_v7  ;;  %v6051_v31 = vld [vmem:[%s5403_s20 + $0x198] sm:$0xff] }
 0xadc   : > { %v2986_v14 = vpack.c.bf16 %v2954_v41, %v2938_v39  ;;  %v2988_v44 = vpack.c.bf16 %v2956_v60, %v2940_v38  ;;  %v6054_v5 = vld [vmem:[%s5403_s20 + $0x1d8] sm:$0xff] }
 0xadd   : > { %v2987_v4 = vpack.c.bf16 %v2955_v35, %v2939_v21  ;;  %v2989_v12 = vpack.c.bf16 %v2957_v1, %v2941_v32  ;;  %v2622_v62 = vpop.f32.mrb[28].mxu0  ;;  %v2675_v11 = vpop.f32.mrb[24].mxu1  ;;  %v6061_v41 = vld [vmem:[%s5401_s28 + $0x8] sm:$0xff]  ;;  %v4189_v1 = vcombine.low %v6017_v17, %v6020_v57 }
 0xade   : > { %v2623_v28 = vadd.f32 %v2622_v62, %v5989_v48  ;;  %v2676_v6 = vadd.f32 %v2675_v11, %v6000_v49  ;;  %v2624_v58 = vpop.f32.mrb[29].mxu0  ;;  %v2677_v63 = vpop.f32.mrb[25].mxu1  ;;  %v4206_v11 = vcombine.high %v6045_v45, %v6048_v23 }
 0xadf   : > { %v2625_v59 = vadd.f32 %v2624_v58, %v6004_v0  ;;  %v2678_v19 = vadd.f32 %v2677_v63, %v6014_v8  ;;  %v2626_v2 = vpop.f32.mrb[30].mxu0  ;;  %v2679_v20 = vpop.f32.mrb[26].mxu1  ;;  %3366 = vmatprep.mubr.bf16.mxu0 %v2987_v4  ;;  %3415 = vmatprep.mubr.bf16.mxu1 %v2989_v12 }
 0xae0   : > { %v2627_v18 = vadd.f32 %v2626_v2, %v5989_v48  ;;  %v2680_v53 = vadd.f32 %v2679_v20, %v6000_v49  ;;  %v2628_v30 = vpop.f32.mrb[31].mxu0  ;;  %v2681_v42 = vpop.f32.mrb[27].mxu1  ;;  %3367 = vmatmul.mubr.bf16.gmra.mrb[56].mxu0 %v2986_v14  ;;  %3416 = vmatmul.mubr.bf16.gmra.mrb[52].mxu1 %v2988_v44  ;;  %v2910_v33 = vmax.f32 %v2623_v28, 0.0  ;;  %v2912_v40 = vmax.f32 %v2676_v6, 0.0  ;;  %v6099_v20 = vld [vmem:[%s5403_s20 + $0x60] sm:$0xff] }
 0xae1   : > { %v2629_v61 = vadd.f32 %v2628_v30, %v6004_v0  ;;  %v2682_v16 = vadd.f32 %v2681_v42, %v6014_v8  ;;  %3427 = vmatpush1.bf16.xpose.msra.mxu0 %v4173_v37  ;;  %3476 = vmatpush1.bf16.xpose.msra.mxu1 %v4175_v36  ;;  %v2911_v27 = vmax.f32 %v2625_v59, 0.0  ;;  %v2913_v34 = vmax.f32 %v2678_v19, 0.0  ;;  %v6102_v30 = vld [vmem:[%s5403_s20 + $0x28] sm:$0xff] }
 0xae2   : > { %v2926_v3 = vmax.f32 %v2627_v18, 0.0  ;;  %v2928_v43 = vmax.f32 %v2680_v53, 0.0  ;;  %3428 = vmatprep.subr.bf16.mxu0 %v4190_v56  ;;  %3477 = vmatprep.subr.bf16.mxu1 %v4192_v52  ;;  %v4191_v14 = vcombine.low %v6023_v22, %v6026_v7  ;;  %v4208_v37 = vcombine.high %v6051_v31, %v6054_v5  ;;  %v6105_v42 = vld [vmem:[%s5403_s20 + $0x68] sm:$0xff] }
 0xae3   : > { %v2927_v13 = vmax.f32 %v2629_v61, 0.0  ;;  %v2929_v29 = vmax.f32 %v2682_v16, 0.0  ;;  %v6077_v22 = vrot.slane %v6061_v41, %v5477_v51  ;;  %v6083_v56 = vrot.slane %v6061_v41, %v5534_v26 }
 0xae4   : > { %v6056_v39 = vpack.c.bf16 %v2926_v3, %v2910_v33  ;;  %v6058_v38 = vpack.c.bf16 %v2928_v43, %v2912_v40  ;;  %v6087_v52 = vrot.slane %v6061_v41, %v5474_v50  ;;  %v6096_v50 = vld [vmem:[%s5403_s20 + $0x20] sm:$0xff]  ;;  %v4205_v43 = vcombine.low %v6045_v45, %v6048_v23 }
 0xae5   : > { %v2975_v60 = vpack.c.bf16 %v2927_v13, %v2911_v27  ;;  %v2977_v21 = vpack.c.bf16 %v2929_v29, %v2913_v34  ;;  %v2632_v32 = vpop.f32.mrb[32].mxu0  ;;  %v2685_v35 = vpop.f32.mrb[28].mxu1  ;;  %v4207_v27 = vcombine.low %v6051_v31, %v6054_v5 }
 0xae6   : > { %v2633_v44 = vadd.f32 %v2632_v32, %v5989_v48  ;;  %v2686_v4 = vadd.f32 %v2685_v35, %v6000_v49  ;;  %v2634_v12 = vpop.f32.mrb[33].mxu0  ;;  %v2687_v62 = vpop.f32.mrb[29].mxu1  ;;  %v4164_v32 = vcombine.high %v6102_v30, %v6105_v42 }
 0xae7   : > { %v2635_v36 = vadd.f32 %v2634_v12, %v6004_v0  ;;  %v2688_v28 = vadd.f32 %v2687_v62, %v6014_v8  ;;  %v2636_v17 = vpop.f32.mrb[34].mxu0  ;;  %v2689_v57 = vpop.f32.mrb[30].mxu1  ;;  %3456 = vmatprep.mubr.bf16.mxu0 %v2975_v60  ;;  %3505 = vmatprep.mubr.bf16.mxu1 %v2977_v21  ;;  %v4162_v21 = vcombine.high %v6096_v50, %v6099_v20 }
 0xae8   : > { %v2637_v7 = vadd.f32 %v2636_v17, %v5989_v48  ;;  %v2690_v6 = vadd.f32 %v2689_v57, %v6000_v49  ;;  %v2638_v58 = vpop.f32.mrb[35].mxu0  ;;  %v2691_v63 = vpop.f32.mrb[31].mxu1  ;;  %v6093_v48 = vrot.slane %v6061_v41, %v5752_v47  ;;  %v2942_v49 = vmax.f32 %v2633_v44, 0.0 }
 0xae9   : > { %v2639_v59 = vadd.f32 %v2638_v58, %v6004_v0  ;;  %v2692_v51 = vadd.f32 %v2691_v63, %v6014_v8  ;;  %3429 = vmatpush1.bf16.xpose.msra.mxu0 %v4189_v1  ;;  %3478 = vmatpush1.bf16.xpose.msra.mxu1 %v4191_v14  ;;  %v2944_v19 = vmax.f32 %v2686_v4, 0.0  ;;  %v2943_v0 = vmax.f32 %v2635_v36, 0.0 }
 0xaea   : > { %v2958_v26 = vmax.f32 %v2637_v7, 0.0  ;;  %v2960_v2 = vmax.f32 %v2690_v6, 0.0  ;;  %3430 = vmatprep.subr.bf16.mxu0 %v4206_v11  ;;  %3479 = vmatprep.subr.bf16.mxu1 %v4208_v37  ;;  %v2945_v8 = vmax.f32 %v2688_v28, 0.0  ;;  %v6132_v6 = vld [vmem:[%s5403_s20 + $0xa0] sm:$0xff] }
 0xaeb   : > { %v2959_v18 = vmax.f32 %v2639_v59, 0.0  ;;  %v2961_v53 = vmax.f32 %v2692_v51, 0.0  ;;  %v6139_v59 = vld [vmem:[%s5403_s20 + $0xe0] sm:$0xff]  ;;  %v6142_v51 = vld [vmem:[%s5403_s20 + $0xa8] sm:$0xff] }
 0xaec   : > { %v6107_v47 = vpack.c.bf16 %v2958_v26, %v2942_v49  ;;  %v6109_v61 = vpack.c.bf16 %v2960_v2, %v2944_v19  ;;  %v6145_v49 = vld [vmem:[%s5403_s20 + $0xe8] sm:$0xff] }
 0xaed   : > { %v6111_v16 = vpack.c.bf16 %v2959_v18, %v2943_v0  ;;  %v6113_v33 = vpack.c.bf16 %v2961_v53, %v2945_v8  ;;  %v2728_v40 = vpop.f32.mrb[36].mxu0  ;;  %v2781_v3 = vpop.f32.mrb[32].mxu1  ;;  %v4161_v8 = vcombine.low %v6096_v50, %v6099_v20  ;;  %v4163_v18 = vcombine.low %v6102_v30, %v6105_v42 }
 0xaee   : > { %v2729_v34 = vadd.f32 %v2728_v40, %v6077_v22  ;;  %v2782_v13 = vadd.f32 %v2781_v3, %v6083_v56  ;;  %v2730_v29 = vpop.f32.mrb[37].mxu0  ;;  %v2783_v60 = vpop.f32.mrb[33].mxu1  ;;  %v4178_v42 = vcombine.high %v6132_v6, %v6139_v59 }
 0xaef   : > { %v2731_v35 = vadd.f32 %v2730_v29, %v6087_v52  ;;  %v2784_v1 = vadd.f32 %v2783_v60, %v6093_v48  ;;  %v2732_v45 = vpop.f32.mrb[38].mxu0  ;;  %v2785_v23 = vpop.f32.mrb[34].mxu1  ;;  %v4180_v29 = vcombine.high %v6142_v51, %v6145_v49 }
 0xaf0   : > { %v2733_v31 = vadd.f32 %v2732_v45, %v6077_v22  ;;  %v2786_v5 = vadd.f32 %v2785_v23, %v6083_v56  ;;  %v2734_v14 = vpop.f32.mrb[39].mxu0  ;;  %v2787_v44 = vpop.f32.mrb[35].mxu1  ;;  %v2914_v62 = vmax.f32 %v2729_v34, 0.0  ;;  %v2916_v11 = vmax.f32 %v2782_v13, 0.0 }
 0xaf1   : > { %v2735_v4 = vadd.f32 %v2734_v14, %v6087_v52  ;;  %v2788_v12 = vadd.f32 %v2787_v44, %v6093_v48  ;;  %3431 = vmatpush1.bf16.xpose.msra.mxu0 %v4205_v43  ;;  %3480 = vmatpush1.bf16.xpose.msra.mxu1 %v4207_v27  ;;  %v2915_v28 = vmax.f32 %v2731_v35, 0.0  ;;  %v2917_v17 = vmax.f32 %v2784_v1, 0.0  ;;  %v6198_v14 = vld [vmem:[%s5403_s20 + $0x128] sm:$0xff] }
 0xaf2   : > { %v2930_v37 = vmax.f32 %v2733_v31, 0.0  ;;  %v2932_v36 = vmax.f32 %v2786_v5, 0.0  ;;  %3522 = vmatprep.subr.bf16.mxu0 %v4162_v21  ;;  %3571 = vmatprep.subr.bf16.mxu1 %v4164_v32  ;;  %v6159_v27 = vrot.slane %v6061_v41, %v5807_v25  ;;  %v6163_v34 = vrot.slane %v6061_v41, %v5973_v55  ;;  %v6195_v5 = vld [vmem:[%s5403_s20 + $0x160] sm:$0xff]  ;;  %v6201_v44 = vld [vmem:[%s5403_s20 + $0x168] sm:$0xff] }
 0xaf3   : > { %v2931_v57 = vmax.f32 %v2735_v4, 0.0  ;;  %v2933_v7 = vmax.f32 %v2788_v12, 0.0  ;;  %v6177_v35 = vrot.slane %v6061_v41, %v5812_v54 }
 0xaf4   : > { %v6134_v58 = vpack.c.bf16 %v2930_v37, %v2914_v62  ;;  %v6136_v63 = vpack.c.bf16 %v2932_v36, %v2916_v11 }
 0xaf5   : > { %v6147_v19 = vpack.c.bf16 %v2931_v57, %v2915_v28  ;;  %v6149_v26 = vpack.c.bf16 %v2933_v7, %v2917_v17  ;;  %v2738_v2 = vpop.f32.mrb[40].mxu0  ;;  %v2791_v0 = vpop.f32.mrb[36].mxu1  ;;  %v4177_v57 = vcombine.low %v6132_v6, %v6139_v59  ;;  %v4179_v7 = vcombine.low %v6142_v51, %v6145_v49 }
 0xaf6   : > { %v2739_v53 = vadd.f32 %v2738_v2, %v6077_v22  ;;  %v2792_v40 = vadd.f32 %v2791_v0, %v6083_v56  ;;  %v2740_v3 = vpop.f32.mrb[41].mxu0  ;;  %v2793_v43 = vpop.f32.mrb[37].mxu1 }
 0xaf7   : > { %v2741_v13 = vadd.f32 %v2740_v3, %v6087_v52  ;;  %v2794_v50 = vadd.f32 %v2793_v43, %v6093_v48  ;;  %v2742_v20 = vpop.f32.mrb[42].mxu0  ;;  %v2795_v30 = vpop.f32.mrb[38].mxu1 }
 0xaf8   : > { %v2743_v60 = vadd.f32 %v2742_v20, %v6077_v22  ;;  %v2796_v25 = vadd.f32 %v2795_v30, %v6083_v56  ;;  %3457 = vmatmul.mubr.bf16.vlgmr.msra.gmra.mrb[60].mxu0 %v6056_v39  ;;  %3506 = vmatmul.mubr.bf16.vlgmr.msra.gmra.mrb[56].mxu1 %v6058_v38  ;;  %v2744_v21 = vpop.f32.mrb[43].mxu0  ;;  %v2797_v32 = vpop.f32.mrb[39].mxu1  ;;  %v6185_v39 = vrot.slane %v6061_v41, %v5992_v15  ;;  %v2946_v38 = vmax.f32 %v2739_v53, 0.0 }
 0xaf9   : > { %v2745_v1 = vadd.f32 %v2744_v21, %v6087_v52  ;;  %v2798_v45 = vadd.f32 %v2797_v32, %v6093_v48  ;;  %3464 = vmatprep.mubr.bf16.mxu0 %v6111_v16  ;;  %3513 = vmatprep.mubr.bf16.mxu1 %v6113_v33  ;;  %v2948_v22 = vmax.f32 %v2792_v40, 0.0  ;;  %v2947_v52 = vmax.f32 %v2741_v13, 0.0  ;;  %v6188_v16 = vld [vmem:[%s5403_s20 + $0x120] sm:$0xff]  ;;  %v2061_v21 = vld [vmem:[%s5403_s20 + $0x1a8] sm:$0xff] }
 0xafa   : > { %v2962_v54 = vmax.f32 %v2743_v60, 0.0  ;;  %v2964_v56 = vmax.f32 %v2796_v25, 0.0  ;;  %3523 = vmatpush1.bf16.xpose.msra.mxu0 %v4161_v8  ;;  %3572 = vmatpush1.bf16.xpose.msra.mxu1 %v4163_v18  ;;  %v2949_v48 = vmax.f32 %v2794_v50, 0.0  ;;  %v4194_v53 = vcombine.high %v6188_v16, %v6195_v5  ;;  %v2060_v60 = vld [vmem:[%s5403_s20 + $0x1a0] sm:$0xff]  ;;  %v2069_v32 = vld [vmem:[%s5403_s20 + $0x1e8] sm:$0xff] }
 0xafb   : > { %v2963_v23 = vmax.f32 %v2745_v1, 0.0  ;;  %v2965_v31 = vmax.f32 %v2798_v45, 0.0  ;;  %3524 = vmatprep.subr.bf16.mxu0 %v4178_v42  ;;  %3573 = vmatprep.subr.bf16.mxu1 %v4180_v29  ;;  %v4196_v40 = vcombine.high %v6198_v14, %v6201_v44 }
 0xafc   : > { %v6190_v33 = vpack.c.bf16 %v2962_v54, %v2946_v38  ;;  %v6192_v41 = vpack.c.bf16 %v2964_v56, %v2948_v22 }
 0xafd   : > { %v6203_v4 = vpack.c.bf16 %v2963_v23, %v2947_v52  ;;  %v6205_v12 = vpack.c.bf16 %v2965_v31, %v2949_v48  ;;  %v2834_v62 = vpop.f32.mrb[44].mxu0  ;;  %v2887_v11 = vpop.f32.mrb[40].mxu1  ;;  %v4193_v23 = vcombine.low %v6188_v16, %v6195_v5  ;;  %v4195_v31 = vcombine.low %v6198_v14, %v6201_v44 }
 0xafe   : > { %v2835_v37 = vadd.f32 %v2834_v62, %v6159_v27  ;;  %v2888_v36 = vadd.f32 %v2887_v11, %v6163_v34  ;;  %v2836_v28 = vpop.f32.mrb[45].mxu0  ;;  %v2889_v17 = vpop.f32.mrb[41].mxu1 }
 0xaff   : > { %v2837_v2 = vadd.f32 %v2836_v28, %v6177_v35  ;;  %v2890_v0 = vadd.f32 %v2889_v17, %v6185_v39  ;;  %v2838_v8 = vpop.f32.mrb[46].mxu0  ;;  %v2891_v18 = vpop.f32.mrb[42].mxu1  ;;  %v4212_v17 = vcombine.high %v2061_v21, %v2069_v32 }
 0xb00   : > { %v2839_v3 = vadd.f32 %v2838_v8, %v6159_v27  ;;  %v2892_v43 = vadd.f32 %v2891_v18, %v6163_v34  ;;  %3465 = vmatmul.mubr.bf16.gmra.mrb[64].mxu0 %v6107_v47  ;;  %3514 = vmatmul.mubr.bf16.gmra.mrb[60].mxu1 %v6109_v61  ;;  %v2840_v6 = vpop.f32.mrb[47].mxu0  ;;  %v2893_v59 = vpop.f32.mrb[43].mxu1  ;;  %v2918_v13 = vmax.f32 %v2835_v37, 0.0  ;;  %v2920_v50 = vmax.f32 %v2888_v36, 0.0 }
 0xb01   : > { %v2841_v51 = vadd.f32 %v2840_v6, %v6177_v35  ;;  %v2894_v49 = vadd.f32 %v2893_v59, %v6185_v39  ;;  %3554 = vmatprep.mubr.bf16.mxu0 %v6147_v19  ;;  %3603 = vmatprep.mubr.bf16.mxu1 %v6149_v26  ;;  %v2919_v61 = vmax.f32 %v2837_v2, 0.0  ;;  %v2921_v30 = vmax.f32 %v2890_v0, 0.0  ;;  %v2068_v26 = vld [vmem:[%s5403_s20 + $0x1e0] sm:$0xff]  ;;  %v2015_v6 = vld [vmem:[%s5403_s20 + $0x38] sm:$0xff] }
 0xb02   : > { %v2934_v20 = vmax.f32 %v2839_v3, 0.0  ;;  %v2936_v47 = vmax.f32 %v2892_v43, 0.0  ;;  %3525 = vmatpush1.bf16.xpose.msra.mxu0 %v4177_v57  ;;  %3574 = vmatpush1.bf16.xpose.msra.mxu1 %v4179_v7  ;;  %v4210_v28 = vcombine.high %v2060_v60, %v2068_v26  ;;  %v2014_v3 = vld [vmem:[%s5403_s20 + $0x30] sm:$0xff]  ;;  %v2023_v59 = vld [vmem:[%s5403_s20 + $0x78] sm:$0xff] }
 0xb03   : > { %v2935_v42 = vmax.f32 %v2841_v51, 0.0  ;;  %v2937_v29 = vmax.f32 %v2894_v49, 0.0  ;;  %3526 = vmatprep.subr.bf16.mxu0 %v4194_v53  ;;  %3575 = vmatprep.subr.bf16.mxu1 %v4196_v40  ;;  %v2022_v43 = vld [vmem:[%s5403_s20 + $0x70] sm:$0xff] }
 0xb04   : > { %v6228_v25 = vpack.c.bf16 %v2934_v20, %v2918_v13  ;;  %v6230_v19 = vpack.c.bf16 %v2936_v47, %v2920_v50  ;;  %v4209_v13 = vcombine.low %v2060_v60, %v2068_v26  ;;  %v4211_v50 = vcombine.low %v2061_v21, %v2069_v32  ;;  %v2046_v60 = vld [vmem:[%s5403_s20 + $0x130] sm:$0xff]  ;;  %v2047_v21 = vld [vmem:[%s5403_s20 + $0x138] sm:$0xff] }
 0xb05   : > { %v6235_v1 = vpack.c.bf16 %v2935_v42, %v2919_v61  ;;  %v6237_v45 = vpack.c.bf16 %v2937_v29, %v2921_v30  ;;  %v2844_v38 = vpop.f32.mrb[48].mxu0  ;;  %v2897_v22 = vpop.f32.mrb[44].mxu1  ;;  %v4166_v20 = vcombine.high %v2014_v3, %v2022_v43  ;;  %v4168_v47 = vcombine.high %v2015_v6, %v2023_v59  ;;  %v2030_v61 = vld [vmem:[%s5403_s20 + $0xb0] sm:$0xff]  ;;  %v2031_v42 = vld [vmem:[%s5403_s20 + $0xb8] sm:$0xff] }
 0xb06   : > { %v2845_v54 = vadd.f32 %v2844_v38, %v6159_v27  ;;  %v2898_v56 = vadd.f32 %v2897_v22, %v6163_v34  ;;  %v2846_v52 = vpop.f32.mrb[49].mxu0  ;;  %v2899_v48 = vpop.f32.mrb[45].mxu1  ;;  %v2038_v30 = vld [vmem:[%s5403_s20 + $0xf0] sm:$0xff]  ;;  %v2039_v29 = vld [vmem:[%s5403_s20 + $0xf8] sm:$0xff]  ;;  %v4165_v38 = vcombine.low %v2014_v3, %v2022_v43  ;;  %v4167_v22 = vcombine.low %v2015_v6, %v2023_v59 }
 0xb07   : > { %v2847_v62 = vadd.f32 %v2846_v52, %v6177_v35  ;;  %v2900_v11 = vadd.f32 %v2899_v48, %v6185_v39  ;;  %v2848_v37 = vpop.f32.mrb[50].mxu0  ;;  %v2901_v36 = vpop.f32.mrb[46].mxu1  ;;  %v2054_v26 = vld [vmem:[%s5403_s20 + $0x170] sm:$0xff]  ;;  %v2055_v32 = vld [vmem:[%s5403_s20 + $0x178] sm:$0xff]  ;;  %v4181_v52 = vcombine.low %v2030_v61, %v2038_v30 }
 0xb08   : > { %v2849_v57 = vadd.f32 %v2848_v37, %v6159_v27  ;;  %v2902_v7 = vadd.f32 %v2901_v36, %v6163_v34  ;;  %v2850_v2 = vpop.f32.mrb[51].mxu0  ;;  %v2903_v0 = vpop.f32.mrb[47].mxu1  ;;  %v2950_v14 = vmax.f32 %v2845_v54, 0.0  ;;  %v2952_v44 = vmax.f32 %v2898_v56, 0.0 }
 0xb09   : > { %v2851_v16 = vadd.f32 %v2850_v2, %v6177_v35  ;;  %v2904_v5 = vadd.f32 %v2903_v0, %v6185_v39  ;;  %v2951_v53 = vmax.f32 %v2847_v62, 0.0  ;;  %v2953_v27 = vmax.f32 %v2900_v11, 0.0 }
 0xb0a   : > { %v2966_v8 = vmax.f32 %v2849_v57, 0.0  ;;  %v2968_v18 = vmax.f32 %v2902_v7, 0.0  ;;  %3527 = vmatpush1.bf16.xpose.msra.mxu0 %v4193_v23  ;;  %3576 = vmatpush1.bf16.xpose.msra.mxu1 %v4195_v31  ;;  %v4182_v54 = vcombine.high %v2030_v61, %v2038_v30  ;;  %v4184_v56 = vcombine.high %v2031_v42, %v2039_v29  ;;  %v2063_v23 = vld [vmem:[%s5403_s20 + $0x1b8] sm:$0xff] }
 0xb0b   : > { %v2967_v40 = vmax.f32 %v2851_v16, 0.0  ;;  %v2969_v34 = vmax.f32 %v2904_v5, 0.0  ;;  %3528 = vmatprep.subr.bf16.mxu0 %v4210_v28  ;;  %3577 = vmatprep.subr.bf16.mxu1 %v4212_v17  ;;  %v4198_v48 = vcombine.high %v2046_v60, %v2054_v26  ;;  %v2071_v31 = vld [vmem:[%s5403_s20 + $0x1f8] sm:$0xff]  ;;  %v4197_v62 = vcombine.low %v2046_v60, %v2054_v26 }
 0xb0c   : > { %v6252_v35 = vpack.c.bf16 %v2966_v8, %v2950_v14  ;;  %v6254_v39 = vpack.c.bf16 %v2968_v18, %v2952_v44  ;;  %v4199_v11 = vcombine.low %v2047_v21, %v2055_v32  ;;  %v4216_v36 = vcombine.high %v2063_v23, %v2071_v31 }
 0xb0d   : > { %v2999_v51 = vpack.c.bf16 %v2967_v40, %v2951_v53  ;;  %v3001_v49 = vpack.c.bf16 %v2969_v34, %v2953_v27 }
 0xb12   : > { %3529 = vmatpush1.bf16.xpose.msra.mxu0 %v4209_v13  ;;  %3578 = vmatpush1.bf16.xpose.msra.mxu1 %v4211_v50 }
 0xb13   : > { %3620 = vmatprep.subr.bf16.mxu0 %v4166_v20  ;;  %3669 = vmatprep.subr.bf16.mxu1 %v4168_v47 }
 0xb19   : > { %3555 = vmatmul.mubr.bf16.vlgmr.msra.gmra.mrb[68].mxu0 %v6134_v58  ;;  %3604 = vmatmul.mubr.bf16.vlgmr.msra.gmra.mrb[64].mxu1 %v6136_v63  ;;  %v4183_v58 = vcombine.low %v2031_v42, %v2039_v29  ;;  %v4200_v63 = vcombine.high %v2047_v21, %v2055_v32 }
 0xb1a   : > { %3562 = vmatprep.mubr.bf16.mxu0 %v6203_v4  ;;  %3611 = vmatprep.mubr.bf16.mxu1 %v6205_v12  ;;  %v2062_v4 = vld [vmem:[%s5403_s20 + $0x1b0] sm:$0xff] }
 0xb1b   : > { %3621 = vmatpush1.bf16.xpose.msra.mxu0 %v4165_v38  ;;  %3670 = vmatpush1.bf16.xpose.msra.mxu1 %v4167_v22  ;;  %v2070_v12 = vld [vmem:[%s5403_s20 + $0x1f0] sm:$0xff] }
 0xb1c   : > { %3622 = vmatprep.subr.bf16.mxu0 %v4182_v54  ;;  %3671 = vmatprep.subr.bf16.mxu1 %v4184_v56  ;;  %v4214_v37 = vcombine.high %v2062_v4, %v2070_v12 }
 0xb21   : > { %3563 = vmatmul.mubr.bf16.gmra.mrb[72].mxu0 %v6190_v33  ;;  %3612 = vmatmul.mubr.bf16.gmra.mrb[68].mxu1 %v6192_v41  ;;  %v4213_v33 = vcombine.low %v2062_v4, %v2070_v12  ;;  %v4215_v41 = vcombine.low %v2063_v23, %v2071_v31 }
 0xb22   : > { %3652 = vmatprep.mubr.bf16.mxu0 %v6235_v1  ;;  %3701 = vmatprep.mubr.bf16.mxu1 %v6237_v45  ;;  %v6284_v1 = vld [vmem:[%s5391_s5] sm:$0xff] }
 0xb23   : > { %3623 = vmatpush1.bf16.xpose.msra.mxu0 %v4181_v52  ;;  %3672 = vmatpush1.bf16.xpose.msra.mxu1 %v4183_v58  ;;  %v3005_v45 = vrot.slane %v6284_v1, %v5973_v55 }
 0xb24   : > { %3624 = vmatprep.subr.bf16.mxu0 %v4198_v48  ;;  %3673 = vmatprep.subr.bf16.mxu1 %v4200_v63 }
 0xb2b   : > { %3625 = vmatpush1.bf16.xpose.msra.mxu0 %v4197_v62  ;;  %3674 = vmatpush1.bf16.xpose.msra.mxu1 %v4199_v11 }
 0xb2c   : > { %3626 = vmatprep.subr.bf16.mxu0 %v4214_v37  ;;  %3675 = vmatprep.subr.bf16.mxu1 %v4216_v36 }
 0xb33   : > { %3627 = vmatpush1.bf16.xpose.msra.mxu0 %v4213_v33  ;;  %3676 = vmatpush1.bf16.xpose.msra.mxu1 %v4215_v41 }
 0xb3a   : > { %3653 = vmatmul.mubr.bf16.vlgmr.msra.gmra.mrb[76].mxu0 %v6228_v25  ;;  %3702 = vmatmul.mubr.bf16.vlgmr.msra.gmra.mrb[72].mxu1 %v6230_v19 }
 0xb3b   : > { %3660 = vmatprep.mubr.bf16.mxu0 %v2999_v51  ;;  %3709 = vmatprep.mubr.bf16.mxu1 %v3001_v49 }
 0xb42   : > { %3661 = vmatmul.mubr.bf16.gmra.mrb[80].mxu0 %v6252_v35  ;;  %3710 = vmatmul.mubr.bf16.gmra.mrb[76].mxu1 %v6254_v39 }
 0xbab   : > { %v3360_v28 = vpop.f32.mrb[52].mxu0  ;;  %v3409_v17 = vpop.f32.mrb[48].mxu1 }
 0xbac   : > { %v3361_v57 = vadd.f32 %v3360_v28, %v3005_v45  ;;  %v3362_v7 = vpop.f32.mrb[53].mxu0  ;;  %v3411_v2 = vpop.f32.mrb[49].mxu1 }
 0xbad   : > { %v3363_v0 = vpop.f32.mrb[54].mxu0  ;;  %v3412_v25 = vpop.f32.mrb[50].mxu1 }
 0xbae   : > { %v3410_v16 = vadd.f32 %v3409_v17, %v3361_v57  ;;  %v3364_v19 = vadd.f32 %v3363_v0, %v3005_v45  ;;  %v3365_v5 = vpop.f32.mrb[55].mxu0  ;;  %v3414_v14 = vpop.f32.mrb[51].mxu1 }
 0xbb0   : > { %v3413_v44 = vadd.f32 %v3412_v25, %v3364_v19 }
 0xbb3   : > { %v3368_v8 = vpop.f32.mrb[56].mxu0  ;;  %v3417_v18 = vpop.f32.mrb[52].mxu1 }
 0xbb4   : > { %v3369_v53 = vadd.f32 %v3368_v8, %v3005_v45  ;;  %v3370_v27 = vpop.f32.mrb[57].mxu0  ;;  %v3419_v40 = vpop.f32.mrb[53].mxu1 }
 0xbb5   : > { %v3371_v34 = vpop.f32.mrb[58].mxu0  ;;  %v3420_v3 = vpop.f32.mrb[54].mxu1 }
 0xbb6   : > { %v3418_v55 = vadd.f32 %v3417_v18, %v3369_v53  ;;  %v3372_v35 = vadd.f32 %v3371_v34, %v3005_v45  ;;  %v3373_v39 = vpop.f32.mrb[59].mxu0  ;;  %v3422_v43 = vpop.f32.mrb[55].mxu1 }
 0xbb8   : > { %v3421_v6 = vadd.f32 %v3420_v3, %v3372_v35 }
 0xbcb   : > { %v3458_v59 = vpop.f32.mrb[60].mxu0  ;;  %v3507_v51 = vpop.f32.mrb[56].mxu1 }
 0xbcc   : > { %v3459_v49 = vadd.f32 %v3458_v59, %v3410_v16  ;;  %v3460_v13 = vpop.f32.mrb[61].mxu0  ;;  %v3509_v50 = vpop.f32.mrb[57].mxu1 }
 0xbcd   : > { %v3461_v20 = vpop.f32.mrb[62].mxu0  ;;  %v3510_v47 = vpop.f32.mrb[58].mxu1 }
 0xbce   : > { %v3508_v61 = vadd.f32 %v3507_v51, %v3459_v49  ;;  %v3462_v30 = vadd.f32 %v3461_v20, %v3413_v44  ;;  %v3463_v42 = vpop.f32.mrb[63].mxu0  ;;  %v3512_v29 = vpop.f32.mrb[59].mxu1 }
 0xbd0   : > { %v3511_v38 = vadd.f32 %v3510_v47, %v3462_v30 }
 0xbd3   : > { %v3466_v22 = vpop.f32.mrb[64].mxu0  ;;  %v3515_v54 = vpop.f32.mrb[60].mxu1 }
 0xbd4   : > { %v3467_v56 = vadd.f32 %v3466_v22, %v3418_v55  ;;  %v3468_v60 = vpop.f32.mrb[65].mxu0  ;;  %v3517_v26 = vpop.f32.mrb[61].mxu1 }
 0xbd5   : > { %v3469_v21 = vpop.f32.mrb[66].mxu0  ;;  %v3518_v32 = vpop.f32.mrb[62].mxu1 }
 0xbd6   : > { %v3516_v52 = vadd.f32 %v3515_v54, %v3467_v56  ;;  %v3470_v58 = vadd.f32 %v3469_v21, %v3421_v6  ;;  %v3471_v48 = vpop.f32.mrb[67].mxu0  ;;  %v3520_v63 = vpop.f32.mrb[63].mxu1 }
 0xbd8   : > { %v3519_v4 = vadd.f32 %v3518_v32, %v3470_v58 }
 0xbec   : > { %v3556_v12 = vpop.f32.mrb[68].mxu0  ;;  %v3605_v23 = vpop.f32.mrb[64].mxu1 }
 0xbed   : > { %v3557_v31 = vadd.f32 %v3556_v12, %v3508_v61  ;;  %v3558_v62 = vpop.f32.mrb[69].mxu0  ;;  %v3607_v11 = vpop.f32.mrb[65].mxu1 }
 0xbee   : > { %v3559_v37 = vpop.f32.mrb[70].mxu0  ;;  %v3608_v36 = vpop.f32.mrb[66].mxu1 }
 0xbef   : > { %v3606_v33 = vadd.f32 %v3605_v23, %v3557_v31  ;;  %v3560_v41 = vadd.f32 %v3559_v37, %v3511_v38  ;;  %v3561_v45 = vpop.f32.mrb[71].mxu0  ;;  %v3610_v28 = vpop.f32.mrb[67].mxu1 }
 0xbf1   : > { %v3609_v17 = vadd.f32 %v3608_v36, %v3560_v41 }
 0xbf4   : > { %v3564_v57 = vpop.f32.mrb[72].mxu0  ;;  %v3613_v7 = vpop.f32.mrb[68].mxu1 }
 0xbf5   : > { %v3565_v2 = vadd.f32 %v3564_v57, %v3516_v52  ;;  %v3566_v0 = vpop.f32.mrb[73].mxu0  ;;  %v3615_v25 = vpop.f32.mrb[69].mxu1 }
 0xbf6   : > { %v3567_v16 = vpop.f32.mrb[74].mxu0  ;;  %v3616_v19 = vpop.f32.mrb[70].mxu1 }
 0xbf7   : > { %v3614_v5 = vadd.f32 %v3613_v7, %v3565_v2  ;;  %v3568_v14 = vadd.f32 %v3567_v16, %v3519_v4  ;;  %v3569_v44 = vpop.f32.mrb[75].mxu0  ;;  %v3618_v8 = vpop.f32.mrb[71].mxu1 }
 0xbf9   : > { %v3617_v18 = vadd.f32 %v3616_v19, %v3568_v14 }
 0xc0d   : > { %v3654_v53 = vpop.f32.mrb[76].mxu0  ;;  %v3703_v27 = vpop.f32.mrb[72].mxu1 }
 0xc0e   : > { %v3655_v40 = vadd.f32 %v3654_v53, %v3606_v33  ;;  %v3656_v34 = vpop.f32.mrb[77].mxu0  ;;  %v3705_v3 = vpop.f32.mrb[73].mxu1 }
 0xc0f   : > { %v3657_v55 = vpop.f32.mrb[78].mxu0  ;;  %v3706_v35 = vpop.f32.mrb[74].mxu1 }
 0xc10   : > { %v3704_v39 = vadd.f32 %v3703_v27, %v3655_v40  ;;  %v3658_v43 = vadd.f32 %v3657_v55, %v3609_v17  ;;  %v3659_v6 = vpop.f32.mrb[79].mxu0  ;;  %v3708_v59 = vpop.f32.mrb[75].mxu1  ;;  %v3777_v40 = vrot.slane %v6284_v1, %v5992_v15 }
 0xc12   : > { %v3707_v51 = vadd.f32 %v3706_v35, %v3658_v43  ;;  %v3718_v49 = vadd.f32 %v3704_v39, %v5821_v24  ;;  %v4217_v35 = vld [vmem:[%s5391_s5 + $0x8] ss:$0 sm:$0xff] }
 0xc14   : > { %v3722_v13 = vsel %vm814_vm1, %v3718_v49, 0.0  ;;  %v3719_v50 = vadd.f32 %v3707_v51, %v5823_v46 }
 0xc15   : > { %v3662_v20 = vpop.f32.mrb[80].mxu0  ;;  %v3711_v47 = vpop.f32.mrb[76].mxu1  ;;  %3723 = vadd.xlane.f32.xlu0 %v3722_v13 }
 0xc16   : > { %v3663_v61 = vadd.f32 %v3662_v20, %v3614_v5  ;;  %v3664_v30 = vpop.f32.mrb[81].mxu0  ;;  %v3713_v42 = vpop.f32.mrb[77].mxu1  ;;  %v3725_v29 = vsel %vm814_vm1, %v3719_v50, 0.0 }
 0xc17   : > { %v3665_v38 = vpop.f32.mrb[82].mxu0  ;;  %v3714_v22 = vpop.f32.mrb[78].mxu1  ;;  %3726 = vadd.xlane.f32.xlu1 %v3725_v29 }
 0xc18   : > { %v3712_v54 = vadd.f32 %v3711_v47, %v3663_v61  ;;  %v3666_v56 = vadd.f32 %v3665_v38, %v3617_v18  ;;  %v3667_v60 = vpop.f32.mrb[83].mxu0  ;;  %v3716_v26 = vpop.f32.mrb[79].mxu1 }
 0xc1a   : > { %v3715_v24 = vadd.f32 %v3714_v22, %v3666_v56  ;;  %v3720_v21 = vadd.f32 %v3712_v54, %v5847_v9 }
 0xc1c   : > { %v3728_v46 = vsel %vm814_vm1, %v3720_v21, 0.0  ;;  %v3721_v32 = vadd.f32 %v3715_v24, %v5839_v10 }
 0xc1d   : > { %3729 = vadd.xlane.f32.xlu0 %v3728_v46 }
 0xc1e   : > { %v3731_v52 = vsel %vm814_vm1, %v3721_v32, 0.0 }
 0xc1f   : > { %3732 = vadd.xlane.f32.xlu1 %v3731_v52 }
 0xca2   : > { %v3724_v58 = vpop.xlane.xlu0 %3723 }
 0xca3   : > { %v3734_v48 = vmul.f32 0.015625, %v3724_v58 }
 0xca4   : > { %v3727_v63 = vpop.xlane.xlu1 %3726 }
 0xca5   : > { %v3738_v4 = vsub.f32 %v3718_v49, %v3734_v48  ;;  %v3735_v12 = vmul.f32 0.015625, %v3727_v63 }
 0xca7   : > { %v3739_v23 = vsub.f32 %v3719_v50, %v3735_v12  ;;  %v3742_v31 = vmul.f32 %v3738_v4, %v3738_v4 }
 0xca9   : > { %v3746_v62 = vsel %vm814_vm1, %v3742_v31, 0.0  ;;  %v3743_v11 = vmul.f32 %v3739_v23, %v3739_v23 }
 0xcaa   : > { %3747 = vadd.xlane.f32.xlu0 %v3746_v62  ;;  %v3730_v9 = vpop.xlane.xlu0 %3729 }
 0xcab   : > { %v3736_v37 = vmul.f32 0.015625, %v3730_v9  ;;  %v3749_v36 = vsel %vm814_vm1, %v3743_v11, 0.0 }
 0xcac   : > { %3750 = vadd.xlane.f32.xlu1 %v3749_v36  ;;  %v3733_v10 = vpop.xlane.xlu1 %3732 }
 0xcad   : > { %v3740_v33 = vsub.f32 %v3720_v21, %v3736_v37  ;;  %v3737_v41 = vmul.f32 0.015625, %v3733_v10 }
 0xcaf   : > { %v3741_v45 = vsub.f32 %v3721_v32, %v3737_v41  ;;  %v3744_v28 = vmul.f32 %v3740_v33, %v3740_v33 }
 0xcb1   : > { %v3752_v17 = vsel %vm814_vm1, %v3744_v28, 0.0  ;;  %v3745_v57 = vmul.f32 %v3741_v45, %v3741_v45 }
 0xcb2   : > { %3753 = vadd.xlane.f32.xlu0 %v3752_v17 }
 0xcb3   : > { %v3755_v7 = vsel %vm814_vm1, %v3745_v57, 0.0 }
 0xcb4   : > { %3756 = vadd.xlane.f32.xlu1 %v3755_v7 }
 0xd37   : > { %v3748_v2 = vpop.xlane.xlu0 %3747 }
 0xd38   : > { %v3758_v0 = vmul.f32 0.015625, %v3748_v2 }
 0xd39   : > { %v3751_v25 = vpop.xlane.xlu1 %3750 }
 0xd3a   : > { %v3762_v16 = vadd.f32 1e-05, %v3758_v0  ;;  %v3759_v19 = vmul.f32 0.015625, %v3751_v25 }
 0xd3c   : > { %4603 = vrsqrt.f32 %v3762_v16  ;;  %v3763_v5 = vadd.f32 1e-05, %v3759_v19 }
 0xd3e   : > { %4605 = vrsqrt.f32 %v3763_v5 }
 0xd3f   : > { %v3754_v14 = vpop.xlane.xlu0 %3753 }
 0xd40   : > { %v3760_v44 = vmul.f32 0.015625, %v3754_v14 }
 0xd41   : > { %v3757_v8 = vpop.xlane.xlu1 %3756 }
 0xd42   : > { %v3764_v18 = vadd.f32 1e-05, %v3760_v44  ;;  %v3761_v53 = vmul.f32 0.015625, %v3757_v8 }
 0xd44   : > { %4607 = vrsqrt.f32 %v3764_v18  ;;  %v3765_v27 = vadd.f32 1e-05, %v3761_v53 }
 0xd46   : > { %v4604_v34 = vpop.eup %4603  ;;  %4609 = vrsqrt.f32 %v3765_v27 }
 0xd47   : > { %v3770_v3 = vmul.f32 %v4604_v34, %v3738_v4 }
 0xd48   : > { %v4606_v55 = vpop.eup %4605 }
 0xd49   : > { %v3778_v39 = vmul.f32 %v3777_v40, %v3770_v3  ;;  %v3771_v43 = vmul.f32 %v4606_v55, %v3739_v23 }
 0xd4b   : > { %v3786_v6 = vadd.f32 %v4217_v35, %v3778_v39  ;;  %v3779_v59 = vmul.f32 %v3777_v40, %v3771_v43 }
 0xd4d   : > { %3790 = vst.msk [vmem:[#allocation2] sm:$0xff] %vm814_vm1, %v3786_v6  ;;  %3794 = vst.msk [vmem:[%s6414_s23] sm:$0xff] %vm814_vm1, %v3786_v6  ;;  %v3787_v51 = vadd.f32 %v4217_v35, %v3779_v59 }
 0xd4e   : > { %v4608_v49 = vpop.eup %4607 }
 0xd4f   : > { %3791 = vst.msk [vmem:[#allocation2 + $0x8] sm:$0xff] %vm814_vm1, %v3787_v51  ;;  %3795 = vst.msk [vmem:[%s6415_s27 + $0x8] sm:$0xff] %vm814_vm1, %v3787_v51  ;;  %v3772_v15 = vmul.f32 %v4608_v49, %v3740_v33 }
 0xd50   : > { %v4610_v1 = vpop.eup %4609 }
 0xd51   : > { %v3780_v13 = vmul.f32 %v3777_v40, %v3772_v15  ;;  %v3773_v50 = vmul.f32 %v4610_v1, %v3741_v45 }
 0xd53   : > { %v3788_v20 = vadd.f32 %v4217_v35, %v3780_v13  ;;  %v3781_v47 = vmul.f32 %v3777_v40, %v3773_v50 }
 0xd55   : > { %3792 = vst.msk [vmem:[#allocation2 + $0x10] sm:$0xff] %vm814_vm1, %v3788_v20  ;;  %3796 = vst.msk [vmem:[%s6415_s27 + $0x10] sm:$0xff] %vm814_vm1, %v3788_v20  ;;  %v3789_v61 = vadd.f32 %v4217_v35, %v3781_v47 }
 0xd57   : > { %3793 = vst.msk [vmem:[#allocation2 + $0x18] sm:$0xff] %vm814_vm1, %v3789_v61  ;;  %3797 = vst.msk [vmem:[%s6415_s27 + $0x18] sm:$0xff] %vm814_vm1, %v3789_v61 }
 0xd58 PF: > { %s6416_s24 = sld [smem:[#allocation19_spill]]  ;;  %s6417_s21 = sld [smem:[#allocation17_spill]] }
 0xd59   : > { %s6418_s22 = sld [smem:[#allocation18_spill]]  ;;  %s6419_s23 = sld [smem:[#allocation20_spill]] }
 0xd5e   : > { %p21_p5 = scmp.ge.s32.totalorder %s6416_s24, 5  }
 0xd60   :  { %23 = sbr.rel (!%p21_p5) target bundleno = 11 (0xb), region = 184 }
 0xd67   :  { %3809 = vsyncpa [#allocation4], 1 }
 0xd68   :  { %3811 = vsyncpa [#allocation4 + $0x1], 1 }
 0xd69   :  { %3812 = vsyncpa [#allocation6], 1 }

// kernel: transformer_forward.3
= control target key start
LH: loop header
LB: loop body
LE: loop exit
PB: predicated region body
PF: predicated region fallthrough
CT: control target
= control target key end

     0   :  { %s5231_s20 = smov 0   ;;  %s6046_s0 = inlined_call_operand.vmem [shape: f32[16,1], index: 0, kind: input, shape index: {}]   ;;  %s6047_s1 = inlined_call_operand.vmem [shape: f32[16,64], index: 1, kind: input, shape index: {}]   ;;  %s6048_s2 = inlined_call_operand.vmem [shape: f32[1,64], index: 2, kind: input, shape index: {}]   ;;  %s6049_s3 = inlined_call_operand.vmem [shape: f32[1,64], index: 3, kind: input, shape index: {}]   ;;  %s6050_s4 = inlined_call_operand.vmem [shape: f32[32,64], index: 4, kind: input, shape index: {}]   ;;  %s6051_s5 = inlined_call_operand.vmem [shape: bf16[3,64,64], index: 5, kind: input, shape index: {}]   ;;  %s6052_s6 = inlined_call_operand.vmem [shape: bf16[3,64,64], index: 6, kind: input, shape index: {}]   ;;  %s6053_s7 = inlined_call_operand.vmem [shape: bf16[3,64,64], index: 7, kind: input, shape index: {}]   ;;  %s6054_s8 = inlined_call_operand.vmem [shape: bf16[3,64,64], index: 8, kind: input, shape index: {}]   ;;  %s6055_s9 = inlined_call_operand.vmem [shape: bf16[3,64,64], index: 9, kind: input, shape index: {}]   ;;  %s6056_s10 = inlined_call_operand.vmem [shape: bf16[3,64,64], index: 10, kind: input, shape index: {}]   ;;  %s6057_s11 = inlined_call_operand.vmem [shape: bf16[3,64,64], index: 11, kind: input, shape index: {}]   ;;  %s6058_s12 = inlined_call_operand.vmem [shape: bf16[3,64,64], index: 12, kind: input, shape index: {}]   ;;  %s6059_s13 = inlined_call_operand.vmem [shape: bf16[3,64,2048], index: 13, kind: input, shape index: {}]   ;;  %s6060_s14 = inlined_call_operand.vmem [shape: f32[3,1,2048], index: 14, kind: input, shape index: {}]   ;;  %s6061_s15 = inlined_call_operand.vmem [shape: bf16[3,64,2048], index: 15, kind: input, shape index: {}]   ;;  %s6062_s16 = inlined_call_operand.vmem [shape: f32[3,15,64], index: 16, kind: input, shape index: {}]   ;;  %s6063_s17 = inlined_call_operand.vmem [shape: f32[1,64], index: 17, kind: input, shape index: {}]   ;;  %s6064_s18 = inlined_call_operand.<no memory space> [shape: f32[1,1], index: 18, kind: input, shape index: {}]   ;;  %s6065_s19 = inlined_call_operand.vmem [shape: f32[16,1], index: 19, kind: output, shape index: {}]  }
   0x1   :  { %6070 = sst [smem:[#allocation5_spill]] %s6046_s0  ;;  %v24_v0 = vstv %s6064_s18 }
   0x2   :  { %6071 = sst [smem:[#allocation6_spill]] %s6047_s1  ;;  %25 = vst [vmem:[#allocation3] sm:$0x1] %v24_v0 }
   0x3   :  { %6072 = sst [smem:[#allocation7_spill]] %s6048_s2 }
   0x4   :  { %6073 = sst [smem:[#allocation8_spill]] %s6049_s3 }
   0x5   :  { %6074 = sst [smem:[#allocation9_spill]] %s6051_s5 }
   0x6   :  { %6075 = sst [smem:[#allocation10_spill]] %s6052_s6 }
   0x7   :  { %6076 = sst [smem:[#allocation11_spill]] %s6053_s7 }
   0x8   :  { %6077 = sst [smem:[#allocation12_spill]] %s6054_s8 }
   0x9   :  { %6078 = sst [smem:[#allocation13_spill]] %s6055_s9 }
   0xa   :  { %6079 = sst [smem:[#allocation14_spill]] %s6056_s10 }
   0xb   :  { %6080 = sst [smem:[#allocation15_spill]] %s6057_s11 }
   0xc   :  { %6081 = sst [smem:[#allocation16_spill]] %s6063_s17 }
   0xd   :  { %6082 = sst [smem:[#allocation17_spill]] %s6065_s19 }
   0xe LB: > { %6083 = sst [smem:[#allocation4_spill]] %s5121_s20  ;;  %s4435_s21 = sadd.s32 4294967295, %s5121_s20   ;;  %s5121_s20 = sphi %s5231_s20, %s31_s20  }
   0xf   : > { %p4438_p0 = scmp.ge.s32.totalorder %s5121_s20, 1  ;;  %p643_p1 = scmp.lt.s32.totalorder %s5121_s20, 4 }
  0x11   : > { %p644_p2 = pnand %p4438_p0, %p643_p1 }
  0x12   : > { %p748_p3 = scmp.lt.s32.totalorder (!%p644_p2), %s4435_s21, 2  ;;  %s6084_s5 = sld [smem:[#allocation9_spill]] (!%p644_p2) }
  0x13   : > { %647 = sbr.rel (%p644_p2) target bundleno = 4827 (0x12db), region = 96  ;;  %s6085_s6 = sld [smem:[#allocation10_spill]] (!%p644_p2) }
  0x14   : > { %s6086_s7 = sld [smem:[#allocation11_spill]] (!%p644_p2)  ;;  %s6087_s8 = sld [smem:[#allocation12_spill]] (!%p644_p2) }
  0x15   : > { %s6088_s9 = sld [smem:[#allocation13_spill]] (!%p644_p2)  ;;  %s6089_s10 = sld [smem:[#allocation14_spill]] (!%p644_p2) }
  0x16   : > { %s6090_s11 = sld [smem:[#allocation15_spill]] (!%p644_p2)  ;;  %p4462_p4 = scmp.ne.s32.totalorder (!%p644_p2), %s4435_s21, 0 }
  0x1a   : > { %s749_s1 = scalar_select %p748_p3, %s4435_s21, 2 }
  0x1b   : > { %v5123_v2 = vmov (!%p4462_p4), 0   ;;  %s6093_s21 = sld [smem:[#allocation8_spill]] (!%p4462_p4)  ;;  %vm846_vm0 = vcmask (!%p4462_p4), 523264  }
  0x1c   : > { %s4667_s22 = sshll.u32 %s749_s1, 5  ;;  %s4675_s18 = sshll.u32 %s749_s1, 9  ;;  %5005 = vset.pattern.permute.xlu0 (!%p4462_p4), %v5123_v2 }
  0x1d   : > { %s5242_s24 = scalar_lea.vmem %s6084_s5, %s4667_s22  ;;  %s5247_s26 = scalar_lea.vmem %s6085_s6, %s4667_s22 }
  0x1e   : > { %s5252_s29 = scalar_lea.vmem %s6086_s7, %s4667_s22  ;;  %s5257_s20 = scalar_lea.vmem %s6087_s8, %s4667_s22 }
  0x1f   : > { %s5262_s2 = scalar_lea.vmem %s6088_s9, %s4667_s22  ;;  %s5267_s25 = scalar_lea.vmem %s6089_s10, %s4667_s22 }
  0x20   : > { %s5272_s27 = scalar_lea.vmem %s6090_s11, %s4667_s22  ;;  %s5277_s0 = scalar_lea.vmem %s6058_s12, %s4667_s22 }
  0x21   : > { %s5282_s17 = scalar_lea.vmem %s6059_s13, %s4675_s18  ;;  %s4457_s19 = sshll.u32 %s749_s1, 4  ;;  %v4464_v5 = vld [vmem:[%s6093_s21] ss:$0 sm:$0xff] (!%p4462_p4) }
  0x22   : > { %s5287_s23 = scalar_lea.vmem %s6060_s14, %s4457_s19  ;;  %s5292_s3 = scalar_lea.vmem %s6061_s15, %s4675_s18 }
  0x23   : > { %s5297_s22 = scalar_lea.vmem %s6062_s16, %s4457_s19  ;;  %811 = sbr.rel (%p4462_p4) target bundleno = 182 (0xb6), region = 100 }
  0x24   : > { %s6091_s1 = sld [smem:[#allocation5_spill]] (!%p4462_p4)  ;;  %s6092_s5 = sld [smem:[#allocation7_spill]] (!%p4462_p4) }
  0x25   : > { %s6094_s8 = sld [smem:[#allocation6_spill]] (!%p4462_p4) }
  0x2a   : > { %v812_v1 = vld [vmem:[%s6091_s1] sm:$0xff]  ;;  %v813_v3 = vld [vmem:[%s6091_s1 + $0x8] sm:$0xff] }
  0x2b   : > { %817 = vperm.xlu0 %5005, %v812_v1   ;;  %v4463_v4 = vld [vmem:[%s6092_s5] ss:$0 sm:$0xff]  ;;  %v843_v13 = vld [vmem:[%s6094_s8 + $0x8] sm:$0xff] }
  0x2c   : > { %v842_v8 = vld [vmem:[%s6094_s8] sm:$0xff] }
  0x2f   : > { %822 = vperm.xlu0 %5005, %v813_v3  }
  0xaa   : > { %v818_v6 = vpop.permute.xlu0 %817 }
  0xab   : > { %v831_v7 = vmul.f32 %v4463_v4, %v818_v6 }
  0xad   : > { %v840_v9 = vadd.f32 %v4464_v5, %v831_v7 }
  0xae   : > { %v823_v10 = vpop.permute.xlu0 %822 }
  0xaf   : > { %v844_v11 = vadd.f32 %v842_v8, %v840_v9  ;;  %v832_v12 = vmul.f32 %v4463_v4, %v823_v10 }
  0xb1   : > { %847 = vst.msk [vmem:[#allocation2] sm:$0xff] %vm846_vm0, %v844_v11  ;;  %v841_v14 = vadd.f32 %v4464_v5, %v832_v12 }
  0xb3   : > { %v845_v15 = vadd.f32 %v843_v13, %v841_v14 }
  0xb5   : > { %848 = vst.msk [vmem:[#allocation2 + $0x8] sm:$0xff] %vm846_vm0, %v845_v15 }
  0xb6 PF: > { %v5006_v16 = vld [vmem:[%s5247_s26] sm:$0xff]   ;;  %v5124_v17 = vmov 0.0   ;;  %v5008_v19 = vld [vmem:[%s5247_s26 + $0x8] sm:$0xff]   ;;  %vm5125_vm1 = vmmov 0   ;;  %v5010_v21 = vld [vmem:[%s5247_s26 + $0x10] sm:$0xff]   ;;  %vm918_vm2 = vcmask 523264   ;;  %v890_v28 = vlaneseq }
  0xb7   : > { %4772 = vmatprep.subr.bf16.mxu1 %v5124_v17  ;;  %4760 = vmatprep.subr.bf16.mxu0 %v5124_v17  ;;  %v5007_v18 = vld [vmem:[%s5242_s24] sm:$0xff]   ;;  %v5009_v20 = vld [vmem:[%s5242_s24 + $0x8] sm:$0xff]   ;;  %v5011_v22 = vld [vmem:[%s5242_s24 + $0x10] sm:$0xff]   ;;  %v5126_v9 = vmov -1e+30   ;;  %vm1191_vm0 = vcmask 130048  }
  0xb8   : > { %4773 = vmatpush3.bf16.msra.mxu1 %v5006_v16  ;;  %4780 = vmatprep.mubr.msk.bf16.mxu1 %vm5125_vm1, %v5124_v17  ;;  %v5012_v23 = vld [vmem:[%s5247_s26 + $0x18] sm:$0xff]   ;;  %v5334_v24 = vld [vmem:[#allocation2] sm:$0xff]  ;;  %v5355_v29 = vshrl.u32 %v890_v28, 7  ;;  %v5357_v30 = vand.u32 127, %v890_v28  ;;  %v5015_v6 = vld [vmem:[%s5252_s29 + $0x8] sm:$0xff]  }
  0xb9   : > { %4761 = vmatpush3.bf16.msra.mxu0 %v5007_v18  ;;  %4774 = vmatprep.subr.bf16.mxu1 %v5124_v17  ;;  %v5013_v26 = vld [vmem:[%s5242_s24 + $0x18] sm:$0xff]   ;;  %v5366_v33 = vld [vmem:[%s5297_s22] sm:$0xff]  ;;  %v5016_v7 = vld [vmem:[%s5252_s29 + $0x10] sm:$0xff]  }
  0xba   : > { %4762 = vmatprep.subr.bf16.mxu0 %v5124_v17  ;;  %4768 = vmatprep.mubr.msk.bf16.mxu0 %vm5125_vm1, %v5124_v17  ;;  %v5360_v31 = vsub.s32 0, %v5355_v29  ;;  %v5363_v32 = vsub.s32 1, %v5355_v29  ;;  %vm1215_vm3 = vcmp.ge.s32.totalorder %v5357_v30, 16  ;;  %vm1216_vm4 = vcmp.lt.s32.totalorder %v5357_v30, 32  ;;  %v5014_v5 = vld [vmem:[%s5252_s29] sm:$0xff]   ;;  %v5017_v8 = vld [vmem:[%s5252_s29 + $0x18] sm:$0xff]  }
  0xbb   : > { %vm1381_vm5 = vcmp.ge.s32.totalorder %v5357_v30, 32  ;;  %vm1382_vm6 = vcmp.lt.s32.totalorder %v5357_v30, 48  ;;  %vm1505_vm7 = vcmp.ge.s32.totalorder %v5357_v30, 48  ;;  %vm1506_vm8 = vcmp.lt.s32.totalorder %v5357_v30, 64  ;;  %vm5378_vm9 = vmand %vm1215_vm3, %vm1216_vm4 }
  0xbc   : > { %4775 = vmatpush3.bf16.msra.mxu1 %v5008_v19  ;;  %v5336_v25 = vld [vmem:[#allocation2 + $0x8] sm:$0xff]  ;;  %v893_v34 = vrot.slane %v5366_v33, %v5360_v31  ;;  %v966_v35 = vrot.slane %v5366_v33, %v5363_v32  ;;  %vm1126_vm10 = vcmp.lt.s32.totalorder %v5357_v30, 16  ;;  %vm1383_vm11 = vmand %vm1381_vm5, %vm1382_vm6  ;;  %v5391_v45 = vsel %vm5378_vm9, 1.0, %v5124_v17 }
  0xbd   : > { %4763 = vmatpush3.bf16.msra.mxu0 %v5009_v20  ;;  %4776 = vmatprep.subr.bf16.mxu1 %v5124_v17  ;;  %v5343_v27 = vpack.c.bf16 %v5336_v25, %v5334_v24  ;;  %vm1507_vm12 = vmand %vm1505_vm7, %vm1506_vm8  ;;  %v5386_v44 = vsel %vm1126_vm10, 1.0, %v5124_v17  ;;  %v5394_v50 = vsel %vm1383_vm11, 1.0, %v5124_v17  ;;  %vm1125_vm13 = vcmp.ge.s32.totalorder %v5357_v30, 8 }
  0xbe   : > { %4764 = vmatprep.subr.bf16.mxu0 %v5124_v17  ;;  %v5397_v51 = vsel %vm1507_vm12, 1.0, %v5124_v17  ;;  %vm1115_vm14 = vcmp.lt.s32.totalorder %v5357_v30, 8  ;;  %vm1127_vm15 = vmand %vm1125_vm13, %vm1126_vm10  ;;  %vm2081_vm3 = vcmask 261120  }
  0xbf   : > { %v1132_v10 = vsel %vm1115_vm14, 0.0, %v5126_v9  ;;  %v1133_v12 = vsel %vm1127_vm15, 0.0, %v5126_v9 }
  0xc0   : > { %4777 = vmatpush3.bf16.msra.mxu1 %v5010_v21 }
  0xc1   : > { %4765 = vmatpush3.bf16.msra.mxu0 %v5011_v22  ;;  %4778 = vmatprep.subr.bf16.mxu1 %v5124_v17 }
  0xc2   : > { %4766 = vmatprep.subr.bf16.mxu0 %v5124_v17 }
  0xc4   : > { %4779 = vmatpush3.bf16.msra.mxu1 %v5012_v23 }
  0xc5   : > { %4767 = vmatpush3.bf16.msra.mxu0 %v5013_v26  ;;  %4796 = vmatprep.subr.bf16.mxu1 %v5124_v17 }
  0xc6   : > { %4784 = vmatprep.subr.bf16.mxu0 %v5124_v17 }
  0xc7   : > { %4781 = vmatmul.mubr.msk.bf16.vlgmr.msra.gmra.mrb[0].mxu1 %vm918_vm2, %v5343_v27 }
  0xc8   : > { %4769 = vmatmul.mubr.msk.bf16.vlgmr.msra.gmra.mrb[0].mxu0 %vm918_vm2, %v5343_v27  ;;  %4798 = vmatprep.mubr.msk.bf16.mxu1 %vm5125_vm1, %v5124_v17 }
  0xc9   : > { %4792 = vmatprep.mubr.msk.bf16.mxu0 %vm5125_vm1, %v5124_v17  ;;  %4785 = vmatpush3.bf16.msra.mxu0 %v5014_v5 }
  0xca   : > { %4786 = vmatprep.subr.bf16.mxu0 %v5124_v17 }
  0xcd   : > { %4787 = vmatpush3.bf16.msra.mxu0 %v5015_v6 }
  0xce   : > { %4788 = vmatprep.subr.bf16.mxu0 %v5124_v17 }
  0xd1   : > { %4789 = vmatpush3.bf16.msra.mxu0 %v5016_v7 }
  0xd2   : > { %4790 = vmatprep.subr.bf16.mxu0 %v5124_v17 }
  0xd5   : > { %4791 = vmatpush3.bf16.msra.mxu0 %v5017_v8 }
  0xd6   : > { %4808 = vmatprep.subr.bf16.mxu0 %v5124_v17 }
  0xd8   : > { %4793 = vmatmul.mubr.msk.bf16.vlgmr.msra.gmra.mrb[4].mxu0 %vm918_vm2, %v5343_v27 }
  0xd9   : > { %4810 = vmatprep.mubr.msk.bf16.mxu0 %vm5125_vm1, %v5124_v17 }
 0x19a   : > { %v1025_v37 = vpop.f32.mrb[0].mxu1 }
 0x19b   : > { %v4782_v38 = vpop.f32.mrb[1].mxu1  ;;  %v956_v39 = vpop.f32.mrb[0].mxu0  ;;  %v1026_v43 = vadd.f32 %v1025_v37, %v966_v35 }
 0x19c   : > { %v957_v40 = vadd.f32 %v956_v39, %v893_v34  ;;  %v1028_v41 = vpop.f32.mrb[2].mxu1  ;;  %v4770_v42 = vpop.f32.mrb[1].mxu0 }
 0x19d   : > { %v1029_v46 = vadd.f32 %v1028_v41, %v966_v35  ;;  %v4783_v47 = vpop.f32.mrb[3].mxu1  ;;  %v959_v48 = vpop.f32.mrb[2].mxu0 }
 0x19e   : > { %v1101_v49 = vmul.f32 0.25, %v957_v40  ;;  %v960_v52 = vadd.f32 %v959_v48, %v893_v34  ;;  %v4771_v53 = vpop.f32.mrb[3].mxu0 }
 0x19f   : > { %v1134_v54 = vpack.c.bf16 %v1029_v46, %v1026_v43 }
 0x1a0   : > { %v1138_v55 = vmul.f32 %v5386_v44, %v1101_v49  ;;  %v1220_v56 = vmul.f32 %v5391_v45, %v1101_v49  ;;  %v1386_v57 = vmul.f32 %v5394_v50, %v1101_v49  ;;  %v1510_v58 = vmul.f32 %v5397_v51, %v1101_v49 }
 0x1a1   : > { %v1102_v59 = vmul.f32 0.25, %v960_v52  ;;  %v1148_v60 = vsel %vm918_vm2, %v1134_v54, 0 }
 0x1a2   : > { %4797 = vmatpush3.bf16.xpose.msra.mxu1 %v1148_v60 }
 0x1a3   : > { %v1139_v61 = vmul.f32 %v5386_v44, %v1102_v59  ;;  %v1221_v62 = vmul.f32 %v5391_v45, %v1102_v59  ;;  %v1387_v63 = vmul.f32 %v5394_v50, %v1102_v59  ;;  %v1511_v0 = vmul.f32 %v5397_v51, %v1102_v59  ;;  %4802 = vmatprep.subr.bf16.mxu1 %v5124_v17 }
 0x1a5   : > { %v1140_v1 = vpack.c.bf16 %v1139_v61, %v1138_v55  ;;  %v1222_v2 = vpack.c.bf16 %v1221_v62, %v1220_v56  ;;  %v1388_v3 = vpack.c.bf16 %v1387_v63, %v1386_v57  ;;  %v1512_v4 = vpack.c.bf16 %v1511_v0, %v1510_v58 }
 0x1a9   : > { %4799 = vmatmul.mubr.msk.bf16.vlgmr.msra.gmra.mrb[4].mxu1 %vm918_vm2, %v1140_v1 }
 0x1aa   : > { %4803 = vmatpush3.bf16.xpose.msra.mxu1 %v1148_v60  ;;  %4804 = vmatprep.mubr.msk.bf16.mxu1 %vm5125_vm1, %v5124_v17 }
 0x1ab   : > { %4820 = vmatprep.subr.bf16.mxu1 %v5124_v17 }
 0x1b1   : > { %4805 = vmatmul.mubr.msk.bf16.vlgmr.msra.gmra.mrb[8].mxu1 %vm918_vm2, %v1222_v2 }
 0x1b2   : > { %4821 = vmatpush3.bf16.xpose.msra.mxu1 %v1148_v60  ;;  %4822 = vmatprep.mubr.msk.bf16.mxu1 %vm5125_vm1, %v5124_v17 }
 0x1b3   : > { %4832 = vmatprep.subr.bf16.mxu1 %v5124_v17 }
 0x1b9   : > { %4823 = vmatmul.mubr.msk.bf16.vlgmr.msra.gmra.mrb[12].mxu1 %vm918_vm2, %v1388_v3 }
 0x1ba   : > { %4833 = vmatpush3.bf16.xpose.msra.mxu1 %v1148_v60  ;;  %4834 = vmatprep.mubr.msk.bf16.mxu1 %vm5125_vm1, %v5124_v17 }
 0x1bb   : > { %4844 = vmatprep.subr.bf16.mxu1 %v5124_v17 }
 0x1c1   : > { %4835 = vmatmul.mubr.msk.bf16.vlgmr.msra.gmra.mrb[16].mxu1 %vm918_vm2, %v1512_v4 }
 0x1c2   : > { %4852 = vmatprep.mubr.msk.bf16.mxu1 %vm5125_vm1, %v5124_v17 }
 0x27c   : > { %v1184_v11 = vpop.f32.mrb[4].mxu1 }
 0x27d   : > { %v1185_v13 = vadd.f32 %v1184_v11, %v1132_v10  ;;  %v4800_v14 = vpop.f32.mrb[5].mxu1 }
 0x27e   : > { %v1187_v15 = vpop.f32.mrb[6].mxu1 }
 0x27f   : > { %v1188_v16 = vadd.f32 %v1187_v15, %v1133_v12  ;;  %v4801_v18 = vpop.f32.mrb[7].mxu1  ;;  %v1192_v19 = vsel %vm1191_vm0, %v1185_v13, -inf }
 0x280   : > { %1193 = vmax.xlane.f32.xlu1 %v1192_v19 }
 0x281   : > { %v1195_v20 = vsel %vm1191_vm0, %v1188_v16, -inf }
 0x284   : > { %1196 = vmax.xlane.f32.xlu1 %v1195_v20  ;;  %v1263_v21 = vpop.f32.mrb[8].mxu1 }
 0x285   : > { %v1264_v22 = vadd.f32 %v1263_v21, %v1132_v10  ;;  %v4806_v23 = vpop.f32.mrb[9].mxu1 }
 0x286   : > { %v1266_v26 = vpop.f32.mrb[10].mxu1 }
 0x287   : > { %v1267_v27 = vadd.f32 %v1266_v26, %v1133_v12  ;;  %v4807_v28 = vpop.f32.mrb[11].mxu1  ;;  %v1270_v34 = vsel %vm1191_vm0, %v1264_v22, -inf }
 0x288   : > { %1271 = vmax.xlane.f32.xlu0 %v1270_v34 }
 0x289   : > { %v1273_v35 = vsel %vm1191_vm0, %v1267_v27, -inf }
 0x28c   : > { %1274 = vmax.xlane.f32.xlu0 %v1273_v35  ;;  %v1429_v37 = vpop.f32.mrb[12].mxu1 }
 0x28d   : > { %v1430_v38 = vadd.f32 %v1429_v37, %v1132_v10  ;;  %v4824_v39 = vpop.f32.mrb[13].mxu1 }
 0x28e   : > { %v1432_v40 = vpop.f32.mrb[14].mxu1 }
 0x28f   : > { %v1433_v41 = vadd.f32 %v1432_v40, %v1133_v12  ;;  %v4825_v42 = vpop.f32.mrb[15].mxu1  ;;  %v1436_v43 = vsel %vm1191_vm0, %v1430_v38, -inf }
 0x290   : > { %1437 = vmax.xlane.f32.xlu0 %v1436_v43  ;;  %v5483_v43 = vsub.s32 2, %v5355_v29 }
 0x291   : > { %v1439_v46 = vsel %vm1191_vm0, %v1433_v41, -inf }
 0x292   : > { %1440 = vmax.xlane.f32.xlu1 %v1439_v46  ;;  %v1094_v46 = vpop.f32.mrb[4].mxu0 }
 0x294   : > { %v1553_v47 = vpop.f32.mrb[16].mxu1 }
 0x295   : > { %v1554_v48 = vadd.f32 %v1553_v47, %v1132_v10  ;;  %v4836_v49 = vpop.f32.mrb[17].mxu1  ;;  %v4794_v47 = vpop.f32.mrb[5].mxu0 }
 0x296   : > { %v1556_v52 = vpop.f32.mrb[18].mxu1  ;;  %v1097_v49 = vpop.f32.mrb[6].mxu0 }
 0x297   : > { %v1557_v53 = vadd.f32 %v1556_v52, %v1133_v12  ;;  %v4837_v54 = vpop.f32.mrb[19].mxu1  ;;  %v1560_v55 = vsel %vm1191_vm0, %v1554_v48, -inf  ;;  %v4795_v52 = vpop.f32.mrb[7].mxu0 }
 0x298   : > { %1561 = vmax.xlane.f32.xlu0 %v1560_v55 }
 0x299   : > { %v1563_v56 = vsel %vm1191_vm0, %v1557_v53, -inf }
 0x29a   : > { %1564 = vmax.xlane.f32.xlu1 %v1563_v56 }
 0x30d   : > { %v1194_v57 = vpop.xlane.xlu1 %1193 }
 0x30e   : > { %v1198_v58 = vsub.f32 %v1185_v13, %v1194_v57 }
 0x310   : > { %v1200_v62 = vmul.f32 1.442695, %v1198_v58 }
 0x311   : > { %v1197_v59 = vpop.xlane.xlu1 %1196 }
 0x312   : > { %v1199_v63 = vsub.f32 %v1188_v16, %v1197_v59 }
 0x314   : > { %v1202_v3 = vmul.f32 1.442695, %v1199_v63 }
 0x315   : > { %v1272_v60 = vpop.xlane.xlu0 %1271 }
 0x316   : > { %v1276_v61 = vsub.f32 %v1264_v22, %v1272_v60 }
 0x318   : > { %v1278_v0 = vmul.f32 1.442695, %v1276_v61 }
 0x319   : > { %v1275_v1 = vpop.xlane.xlu0 %1274 }
 0x31a   : > { %5038 = vpow2.f32 %v1278_v0  ;;  %v1277_v2 = vsub.f32 %v1267_v27, %v1275_v1 }
 0x31b   : > { %5040 = vpow2.f32 %v1200_v62 }
 0x31c   : > { %v1280_v4 = vmul.f32 1.442695, %v1277_v2 }
 0x31d   : > { %v1438_v5 = vpop.xlane.xlu0 %1437 }
 0x31e   : > { %5042 = vpow2.f32 %v1280_v4  ;;  %v1442_v6 = vsub.f32 %v1430_v38, %v1438_v5  ;;  %v5019_v4 = vld [vmem:[%s5257_s20 + $0x8] sm:$0xff]   ;;  %v5020_v5 = vld [vmem:[%s5257_s20 + $0x10] sm:$0xff]  }
 0x31f   : > { %v1441_v7 = vpop.xlane.xlu1 %1440  ;;  %5044 = vpow2.f32 %v1202_v3  ;;  %v5018_v3 = vld [vmem:[%s5257_s20] sm:$0xff]  }
 0x320   : > { %v1444_v8 = vmul.f32 1.442695, %v1442_v6  ;;  %v1443_v10 = vsub.f32 %v1433_v41, %v1441_v7  ;;  %4845 = vmatpush3.bf16.msra.mxu1 %v5018_v3  ;;  %v5022_v3 = vld [vmem:[%s5267_s25] sm:$0xff]  }
 0x321   : > { %4846 = vmatprep.subr.bf16.mxu1 %v5124_v17 }
 0x322   : > { %5046 = vpow2.f32 %v1444_v8  ;;  %v1446_v11 = vmul.f32 1.442695, %v1443_v10 }
 0x324   : > { %v5450_v12 = vpop.eup %5038  ;;  %5048 = vpow2.f32 %v1446_v11  ;;  %4847 = vmatpush3.bf16.msra.mxu1 %v5019_v4  ;;  %v5023_v4 = vld [vmem:[%s5267_s25 + $0x8] sm:$0xff]  }
 0x325   : > { %v1562_v13 = vpop.xlane.xlu0 %1561  ;;  %v1282_v14 = vsel %vm1191_vm0, %v5450_v12, 0.0  ;;  %v5454_v15 = vpop.eup %5040  ;;  %4848 = vmatprep.subr.bf16.mxu1 %v5124_v17 }
 0x326   : > { %v1566_v16 = vsub.f32 %v1554_v48, %v1562_v13  ;;  %1283 = vadd.xlane.f32.xlu0 %v1282_v14  ;;  %v1204_v22 = vsel %vm1191_vm0, %v5454_v15, 0.0  ;;  %v1035_v48 = vrot.slane %v5366_v33, %v5483_v43 }
 0x327   : > { %v1565_v18 = vpop.xlane.xlu1 %1564 }
 0x328   : > { %v5456_v19 = vpop.eup %5042  ;;  %v1568_v20 = vmul.f32 1.442695, %v1566_v16  ;;  %v1567_v21 = vsub.f32 %v1557_v53, %v1565_v18  ;;  %v1095_v53 = vadd.f32 %v1094_v46, %v1035_v48  ;;  %v1098_v54 = vadd.f32 %v1097_v49, %v1035_v48  ;;  %4849 = vmatpush3.bf16.msra.mxu1 %v5020_v5  ;;  %v5024_v5 = vld [vmem:[%s5267_s25 + $0x10] sm:$0xff]  }
 0x329   : > { %v1285_v23 = vsel %vm1191_vm0, %v5456_v19, 0.0  ;;  %v5462_v26 = vpop.eup %5044  ;;  %4850 = vmatprep.subr.bf16.mxu1 %v5124_v17 }
 0x32a   : > { %5050 = vpow2.f32 %v1568_v20  ;;  %v1570_v27 = vmul.f32 1.442695, %v1567_v21  ;;  %1205 = vadd.xlane.f32.xlu0 %v1204_v22  ;;  %1286 = vadd.xlane.f32.xlu1 %v1285_v23  ;;  %v1207_v35 = vsel %vm1191_vm0, %v5462_v26, 0.0  ;;  %v1141_v55 = vmul.f32 %v5386_v44, %v1095_v53 }
 0x32b   : > { %v1223_v56 = vmul.f32 %v5391_v45, %v1095_v53  ;;  %v1389_v57 = vmul.f32 %v5394_v50, %v1095_v53  ;;  %v1513_v58 = vmul.f32 %v5397_v51, %v1095_v53  ;;  %v1142_v59 = vmul.f32 %v5386_v44, %v1098_v54 }
 0x32c   : > { %v5464_v28 = vpop.eup %5046  ;;  %5052 = vpow2.f32 %v1570_v27  ;;  %v1224_v60 = vmul.f32 %v5391_v45, %v1098_v54  ;;  %v1390_v61 = vmul.f32 %v5394_v50, %v1098_v54  ;;  %v1514_v62 = vmul.f32 %v5397_v51, %v1098_v54 }
 0x32d   : > { %v1448_v34 = vsel %vm1191_vm0, %v5464_v28, 0.0  ;;  %v1143_v0 = vpack.c.bf16 %v1142_v59, %v1141_v55 }
 0x32e   : > { %v5470_v37 = vpop.eup %5048  ;;  %1449 = vadd.xlane.f32.xlu0 %v1448_v34  ;;  %1208 = vadd.xlane.f32.xlu1 %v1207_v35  ;;  %v1225_v63 = vpack.c.bf16 %v1224_v60, %v1223_v56  ;;  %v1391_v1 = vpack.c.bf16 %v1390_v61, %v1389_v57  ;;  %v1515_v2 = vpack.c.bf16 %v1514_v62, %v1513_v58 }
 0x32f   : > { %v1451_v38 = vsel %vm1191_vm0, %v5470_v37, 0.0 }
 0x330   : > { %4809 = vmatpush3.bf16.msra.mxu0 %v1225_v63 }
 0x331   : > { %4814 = vmatprep.subr.bf16.mxu0 %v5124_v17 }
 0x332   : > { %1452 = vadd.xlane.f32.xlu1 %v1451_v38 }
 0x334   : > { %v5474_v39 = vpop.eup %5050 }
 0x335   : > { %v1572_v40 = vsel %vm1191_vm0, %v5474_v39, 0.0 }
 0x336   : > { %v5478_v41 = vpop.eup %5052  ;;  %1573 = vadd.xlane.f32.xlu0 %v1572_v40 }
 0x337   : > { %v1575_v42 = vsel %vm1191_vm0, %v5478_v41, 0.0 }
 0x338   : > { %1576 = vadd.xlane.f32.xlu1 %v1575_v42 }
 0x3b3   : > { %v1284_v6 = vpop.xlane.xlu0 %1283 }
 0x3b4   : > { %5054 = vrcp.f32 %v1284_v6  ;;  %v5025_v6 = vld [vmem:[%s5267_s25 + $0x18] sm:$0xff]  }
 0x3b7   : > { %v1287_v7 = vpop.xlane.xlu1 %1286  ;;  %v1206_v10 = vpop.xlane.xlu0 %1205 }
 0x3b8   : > { %5056 = vrcp.f32 %v1287_v7 }
 0x3bb   : > { %v1209_v8 = vpop.xlane.xlu1 %1208  ;;  %v1450_v22 = vpop.xlane.xlu0 %1449 }
 0x3bc   : > { %5058 = vrcp.f32 %v1209_v8 }
 0x3bd   : > { %5060 = vrcp.f32 %v1206_v10 }
 0x3be   : > { %v5055_v11 = vpop.eup %5054 }
 0x3bf   : > { %v1289_v14 = vmul.f32 %v5055_v11, %v5450_v12  ;;  %v1453_v20 = vpop.xlane.xlu1 %1452 }
 0x3c0   : > { %5062 = vrcp.f32 %v1453_v20  ;;  %v851_v20 = vld [vmem:[%s6050_s4] sm:$0xff] }
 0x3c1   : > { %5064 = vrcp.f32 %v1450_v22 }
 0x3c2   : > { %v5057_v13 = vpop.eup %5056 }
 0x3c3   : > { %v1291_v16 = vmul.f32 %v5057_v13, %v5456_v19  ;;  %v1574_v38 = vpop.xlane.xlu0 %1573 }
 0x3c5   : > { %v1292_v18 = vpack.c.bf16 %v1291_v16, %v1289_v14  ;;  %v1577_v34 = vpop.xlane.xlu1 %1576 }
 0x3c6   : > { %v5059_v21 = vpop.eup %5058  ;;  %5066 = vrcp.f32 %v1577_v34  ;;  %v5027_v34 = vld [vmem:[%s5262_s2 + $0x8] sm:$0xff]  }
 0x3c7   : > { %4811 = vmatmul.mubr.msk.bf16.vlgmr.msra.gmra.mrb[8].mxu0 %vm1191_vm0, %v1292_v18  ;;  %v5061_v23 = vpop.eup %5060  ;;  %v1213_v27 = vmul.f32 %v5059_v21, %v5462_v26  ;;  %5068 = vrcp.f32 %v1574_v38  ;;  %v852_v21 = vld [vmem:[%s6050_s4 + $0x8] sm:$0xff]  ;;  %v5029_v38 = vld [vmem:[%s5262_s2 + $0x18] sm:$0xff]  }
 0x3c8   : > { %4815 = vmatpush3.bf16.msra.mxu0 %v1143_v0  ;;  %4816 = vmatprep.mubr.msk.bf16.mxu0 %vm5125_vm1, %v5124_v17  ;;  %v1211_v12 = vmul.f32 %v5061_v23, %v5454_v15  ;;  %v1848_v22 = vpack.c.bf16 %v852_v21, %v851_v20  ;;  %v853_v23 = vld [vmem:[%s6050_s4 + $0x10] sm:$0xff] }
 0x3c9   : > { %4826 = vmatprep.subr.bf16.mxu0 %v5124_v17 }
 0x3ca   : > { %v1214_v19 = vpack.c.bf16 %v1213_v27, %v1211_v12  ;;  %v5063_v35 = vpop.eup %5062  ;;  %v854_v27 = vld [vmem:[%s6050_s4 + $0x18] sm:$0xff] }
 0x3cb   : > { %v5065_v40 = vpop.eup %5064  ;;  %v1457_v26 = vmul.f32 %v5063_v35, %v5470_v37  ;;  %v1849_v12 = vpack.c.bf16 %v854_v27, %v853_v23  ;;  %v5028_v35 = vld [vmem:[%s5262_s2 + $0x10] sm:$0xff]  }
 0x3cc   : > { %v1455_v15 = vmul.f32 %v5065_v40, %v5464_v28  ;;  %v5021_v28 = vld [vmem:[%s5257_s20 + $0x18] sm:$0xff]   ;;  %v5030_v40 = vld [vmem:[%s5272_s27] sm:$0xff]  }
 0x3cd   : > { %4851 = vmatpush3.bf16.msra.mxu1 %v5021_v28  ;;  %v5573_v28 = vsub.s32 5, %v5355_v29 }
 0x3ce   : > { %v1458_v42 = vpack.c.bf16 %v1457_v26, %v1455_v15  ;;  %4868 = vmatprep.subr.bf16.mxu1 %v5022_v3 }
 0x3d0   : > { %v5067_v46 = vpop.eup %5066 }
 0x3d1   : > { %v5069_v47 = vpop.eup %5068  ;;  %v1581_v48 = vmul.f32 %v5067_v46, %v5478_v41  ;;  %v5528_v41 = vsub.s32 3, %v5355_v29 }
 0x3d2   : > { %v1579_v49 = vmul.f32 %v5069_v47, %v5474_v39 }
 0x3d3   : > { %4817 = vmatmul.mubr.msk.bf16.vlgmr.msra.gmra.mrb[8].mxu0 %vm1191_vm0, %v1214_v19  ;;  %v1633_v39 = vrot.slane %v5366_v33, %v5528_v41  ;;  %v5026_v19 = vld [vmem:[%s5262_s2] sm:$0xff]  }
 0x3d4   : > { %4827 = vmatpush3.bf16.msra.mxu0 %v1391_v1  ;;  %4828 = vmatprep.mubr.msk.bf16.mxu0 %vm5125_vm1, %v5124_v17  ;;  %v1582_v52 = vpack.c.bf16 %v1581_v48, %v1579_v49  ;;  %v5568_v49 = vsub.s32 4, %v5355_v29 }
 0x3d5   : > { %4838 = vmatprep.subr.bf16.mxu0 %v5124_v17 }
 0x3df   : > { %4829 = vmatmul.mubr.msk.bf16.vlgmr.msra.gmra.mrb[8].mxu0 %vm1191_vm0, %v1458_v42 }
 0x3e0   : > { %4839 = vmatpush3.bf16.msra.mxu0 %v1515_v2  ;;  %4840 = vmatprep.mubr.msk.bf16.mxu0 %vm5125_vm1, %v5124_v17 }
 0x3e1   : > { %4856 = vmatprep.subr.bf16.mxu0 %v5124_v17 }
 0x3eb   : > { %4841 = vmatmul.mubr.msk.bf16.vlgmr.msra.gmra.mrb[8].mxu0 %vm1191_vm0, %v1582_v52  ;;  %v1734_v52 = vrot.slane %v5366_v33, %v5568_v49 }
 0x3ec   : > { %4864 = vmatprep.mubr.msk.bf16.mxu0 %vm5125_vm1, %v5124_v17  ;;  %4857 = vmatpush3.bf16.msra.mxu0 %v5026_v19 }
 0x3ed   : > { %4858 = vmatprep.subr.bf16.mxu0 %v5124_v17 }
 0x3f0   : > { %4859 = vmatpush3.bf16.msra.mxu0 %v5027_v34 }
 0x3f1   : > { %4860 = vmatprep.subr.bf16.mxu0 %v5124_v17 }
 0x3f4   : > { %4861 = vmatpush3.bf16.msra.mxu0 %v5028_v35 }
 0x3f5   : > { %4862 = vmatprep.subr.bf16.mxu0 %v5124_v17 }
 0x3f8   : > { %4863 = vmatpush3.bf16.msra.mxu0 %v5029_v38 }
 0x3f9   : > { %4880 = vmatprep.subr.bf16.mxu0 %v5030_v40 }
 0x4be   : > { %v1620_v37 = vpop.f32.mrb[8].mxu0 }
 0x4bf   : > { %v4842_v53 = vpop.f32.mrb[9].mxu0 }
 0x4c0   : > { %v1623_v54 = vpop.f32.mrb[10].mxu0 }
 0x4c1   : > { %v1629_v55 = vpack.c.bf16 %v1623_v54, %v1620_v37  ;;  %v4843_v56 = vpop.f32.mrb[11].mxu0 }
 0x4c3   : > { %4853 = vmatmul.mubr.msk.bf16.vlgmr.msra.gmra.mrb[20].mxu1 %vm918_vm2, %v1629_v55 }
 0x4c4   : > { %4869 = vmatpush3.bf16.msra.mxu1 %v5022_v3  ;;  %4876 = vmatprep.mubr.msk.bf16.mxu1 %vm918_vm2, %v1848_v22 }
 0x4c5   : > { %4870 = vmatprep.subr.bf16.mxu1 %v5023_v4 }
 0x4c8   : > { %4871 = vmatpush3.bf16.msra.mxu1 %v5023_v4 }
 0x4c9   : > { %4872 = vmatprep.subr.bf16.mxu1 %v5024_v5 }
 0x4cc   : > { %4873 = vmatpush3.bf16.msra.mxu1 %v5024_v5 }
 0x4cd   : > { %4874 = vmatprep.subr.bf16.mxu1 %v5025_v6 }
 0x4d0   : > { %4875 = vmatpush3.bf16.msra.mxu1 %v5025_v6 }
 0x4d1   : > { %4892 = vmatprep.subr.bf16.mxu1 %v5124_v17 }
 0x4d3   : > { %4877 = vmatmul.mubr.msk.bf16.vlgmr.msra.gmra.mrb[24].mxu1 %vm918_vm2, %v1849_v12 }
 0x4d4   : > { %4896 = vmatprep.mubr.msk.bf16.mxu1 %vm5125_vm1, %v5124_v17 }
 0x596   : > { %v1695_v57 = vpop.f32.mrb[20].mxu1 }
 0x597   : > { %v1696_v58 = vadd.f32 %v1695_v57, %v1633_v39  ;;  %v4854_v59 = vpop.f32.mrb[21].mxu1 }
 0x598   : > { %v1698_v60 = vpop.f32.mrb[22].mxu1 }
 0x599   : > { %v1699_v61 = vadd.f32 %v1698_v60, %v1633_v39  ;;  %v4855_v62 = vpop.f32.mrb[23].mxu1  ;;  %v1702_v63 = vadd.f32 %v1696_v58, %v5334_v24  ;;  %v1740_v39 = vrot.slane %v5366_v33, %v5573_v28 }
 0x59a   : > { %v5032_v62 = vld [vmem:[%s5272_s27 + $0x10] sm:$0xff]  }
 0x59b   : > { %v1704_v0 = vsel %vm918_vm2, %v1702_v63, 0.0  ;;  %v1703_v1 = vadd.f32 %v1699_v61, %v5336_v25  ;;  %v5031_v61 = vld [vmem:[%s5272_s27 + $0x8] sm:$0xff]  }
 0x59c   : > { %1705 = vadd.xlane.f32.xlu0 %v1704_v0  ;;  %v5593_v0 = vsub.s32 7, %v5355_v29 }
 0x59d   : > { %v1707_v2 = vsel %vm918_vm2, %v1703_v1, 0.0 }
 0x59e   : > { %1708 = vadd.xlane.f32.xlu1 %v1707_v2 }
 0x5a6   : > { %v4878_v2 = vpop.f32.mrb[24].mxu1 }
 0x5a7   : > { %v1918_v4 = vpop.f32.mrb[25].mxu1 }
 0x5a8   : > { %v4879_v6 = vpop.f32.mrb[26].mxu1 }
 0x629   : > { %v1706_v24 = vpop.xlane.xlu0 %1705 }
 0x62a   : > { %v1711_v25 = vmul.f32 0.015625, %v1706_v24 }
 0x62b   : > { %v1709_v7 = vpop.xlane.xlu1 %1708 }
 0x62c   : > { %v1713_v8 = vsub.f32 %v1702_v63, %v1711_v25  ;;  %v1712_v10 = vmul.f32 0.015625, %v1709_v7  ;;  %v5033_v63 = vld [vmem:[%s5272_s27 + $0x18] sm:$0xff]   ;;  %v1921_v25 = vpop.f32.mrb[27].mxu1 }
 0x62e   : > { %v1714_v11 = vsub.f32 %v1703_v1, %v1712_v10  ;;  %v1715_v13 = vmul.f32 %v1713_v8, %v1713_v8  ;;  %v1853_v1 = vrot.slane %v5366_v33, %v5593_v0 }
 0x630   : > { %v1717_v14 = vsel %vm918_vm2, %v1715_v13, 0.0  ;;  %v1716_v16 = vmul.f32 %v1714_v11, %v1714_v11  ;;  %v1927_v3 = vadd.f32 %v4878_v2, %v1853_v1  ;;  %v1919_v5 = vadd.f32 %v1918_v4, %v1853_v1 }
 0x631   : > { %1718 = vadd.xlane.f32.xlu0 %v1717_v14  ;;  %v1930_v24 = vadd.f32 %v4879_v6, %v1853_v1  ;;  %v1922_v7 = vadd.f32 %v1921_v25, %v1853_v1  ;;  %v5612_v14 = vsub.s32 6, %v5355_v29 }
 0x632   : > { %v1720_v18 = vsel %vm918_vm2, %v1716_v16, 0.0 }
 0x633   : > { %1721 = vadd.xlane.f32.xlu1 %v1720_v18  ;;  %v2020_v10 = vpack.c.bf16 %v1922_v7, %v1919_v5  ;;  %v1779_v16 = vrot.slane %v5366_v33, %v5612_v14 }
 0x6be   : > { %v1719_v26 = vpop.xlane.xlu0 %1718 }
 0x6bf   : > { %v1723_v15 = vmul.f32 0.015625, %v1719_v26 }
 0x6c0   : > { %v1722_v42 = vpop.xlane.xlu1 %1721 }
 0x6c1   : > { %v1725_v46 = vadd.f32 1e-05, %v1723_v15  ;;  %v1724_v47 = vmul.f32 0.015625, %v1722_v42 }
 0x6c3   : > { %5070 = vrsqrt.f32 %v1725_v46  ;;  %v1726_v48 = vadd.f32 1e-05, %v1724_v47 }
 0x6c5   : > { %5072 = vrsqrt.f32 %v1726_v48 }
 0x6cd   : > { %v5071_v37 = vpop.eup %5070 }
 0x6ce   : > { %v1729_v53 = vmul.f32 %v5071_v37, %v1713_v8  ;;  %v2021_v8 = vpack.c.bf16 %v1930_v24, %v1927_v3 }
 0x6cf   : > { %v5073_v54 = vpop.eup %5072 }
 0x6d0   : > { %v1735_v55 = vmul.f32 %v1734_v52, %v1729_v53  ;;  %v1730_v56 = vmul.f32 %v5073_v54, %v1714_v11  ;;  %v5598_v11 = vsel %vm918_vm2, %v2020_v10, 0  ;;  %v5605_v13 = vsel %vm918_vm2, %v2021_v8, 0 }
 0x6d1   : > { %4893 = vmatpush3.bf16.xpose.msra.mxu1 %v5598_v11 }
 0x6d2   : > { %v1736_v57 = vmul.f32 %v1734_v52, %v1730_v56  ;;  %v5577_v58 = vadd.f32 %v1740_v39, %v1735_v55  ;;  %4894 = vmatprep.subr.bf16.mxu1 %v5124_v17  ;;  %v5631_v52 = vld [vmem:[%s5297_s22 + $0x8] sm:$0x7f] }
 0x6d3   : > { %v1936_v37 = vrot.slane %v5631_v52, %v5360_v31 }
 0x6d4   : > { %v5579_v59 = vadd.f32 %v1740_v39, %v1736_v57 }
 0x6d6   : > { %v1775_v60 = vpack.c.bf16 %v5579_v59, %v5577_v58 }
 0x6d8   : > { %4865 = vmatmul.mubr.msk.bf16.vlgmr.msra.gmra.mrb[12].mxu0 %vm918_vm2, %v1775_v60 }
 0x6d9   : > { %4881 = vmatpush3.bf16.msra.mxu0 %v5030_v40  ;;  %4888 = vmatprep.mubr.msk.bf16.mxu0 %vm918_vm2, %v1848_v22 }
 0x6da   : > { %4882 = vmatprep.subr.bf16.mxu0 %v5031_v61  ;;  %4895 = vmatpush3.bf16.xpose.msra.mxu1 %v5605_v13 }
 0x6db   : > { %4908 = vmatprep.subr.bf16.mxu1 %v5124_v17 }
 0x6dd   : > { %4883 = vmatpush3.bf16.msra.mxu0 %v5031_v61 }
 0x6de   : > { %4884 = vmatprep.subr.bf16.mxu0 %v5032_v62 }
 0x6e1   : > { %4885 = vmatpush3.bf16.msra.mxu0 %v5032_v62 }
 0x6e2   : > { %4886 = vmatprep.subr.bf16.mxu0 %v5033_v63 }
 0x6e5   : > { %4887 = vmatpush3.bf16.msra.mxu0 %v5033_v63 }
 0x6e6   : > { %4900 = vmatprep.subr.bf16.mxu0 %v5124_v17 }
 0x6e8   : > { %4889 = vmatmul.mubr.msk.bf16.vlgmr.msra.gmra.mrb[16].mxu0 %vm918_vm2, %v1849_v12 }
 0x6e9   : > { %4904 = vmatprep.mubr.msk.bf16.mxu0 %vm5125_vm1, %v5124_v17 }
 0x6ee   : > { %4901 = vmatpush3.bf16.xpose.msra.mxu0 %v5598_v11 }
 0x6ef   : > { %4902 = vmatprep.subr.bf16.mxu0 %v5124_v17 }
 0x6f6   : > { %4903 = vmatpush3.bf16.xpose.msra.mxu0 %v5605_v13 }
 0x6f7   : > { %4924 = vmatprep.subr.bf16.mxu0 %v5124_v17 }
 0x7ab   : > { %v1841_v18 = vpop.f32.mrb[12].mxu0 }
 0x7ac   : > { %v1842_v20 = vadd.f32 %v1841_v18, %v1779_v16  ;;  %v4866_v21 = vpop.f32.mrb[13].mxu0 }
 0x7ad   : > { %v1844_v22 = vpop.f32.mrb[14].mxu0 }
 0x7ae   : > { %v2010_v23 = vmul.f32 0.25, %v1842_v20  ;;  %v1845_v27 = vadd.f32 %v1844_v22, %v1779_v16  ;;  %v4867_v12 = vpop.f32.mrb[15].mxu0 }
 0x7b0   : > { %v2011_v19 = vmul.f32 0.25, %v1845_v27  ;;  %v2022_v34 = vmul.f32 %v5386_v44, %v2010_v23  ;;  %v2105_v35 = vmul.f32 %v5391_v45, %v2010_v23  ;;  %v2269_v38 = vmul.f32 %v5394_v50, %v2010_v23 }
 0x7b1   : > { %v5620_v29 = vmul.f32 %v5397_v51, %v2010_v23 }
 0x7b2   : > { %v2023_v33 = vmul.f32 %v5386_v44, %v2011_v19  ;;  %v2106_v40 = vmul.f32 %v5391_v45, %v2011_v19  ;;  %v2270_v26 = vmul.f32 %v5394_v50, %v2011_v19  ;;  %v5626_v15 = vmul.f32 %v5397_v51, %v2011_v19 }
 0x7b4   : > { %v2024_v42 = vpack.c.bf16 %v2023_v33, %v2022_v34  ;;  %v2107_v46 = vpack.c.bf16 %v2106_v40, %v2105_v35  ;;  %v2271_v47 = vpack.c.bf16 %v2270_v26, %v2269_v38  ;;  %v2393_v48 = vpack.c.bf16 %v5626_v15, %v5620_v29 }
 0x7b5   : > { %v5710_v35 = vsel %vm5378_vm9, 0.0, %v5126_v9 }
 0x7b6   : > { %4897 = vmatmul.mubr.msk.bf16.vlgmr.msra.gmra.mrb[28].mxu1 %vm918_vm2, %v2024_v42  ;;  %4905 = vmatmul.mubr.msk.bf16.vlgmr.msra.gmra.mrb[20].mxu0 %vm918_vm2, %v2107_v46 }
 0x7b7   : > { %4925 = vmatpush3.bf16.xpose.msra.mxu0 %v5598_v11  ;;  %4928 = vmatprep.mubr.msk.bf16.mxu0 %vm5125_vm1, %v5124_v17 }
 0x7b8   : > { %4926 = vmatprep.subr.bf16.mxu0 %v5124_v17  ;;  %4912 = vmatprep.mubr.msk.bf16.mxu1 %vm5125_vm1, %v5124_v17 }
 0x7bb   : > { %v4890_v53 = vpop.f32.mrb[16].mxu0 }
 0x7bc   : > { %v2004_v54 = vadd.f32 %v4890_v53, %v1936_v37  ;;  %v1995_v55 = vpop.f32.mrb[17].mxu0 }
 0x7bd   : > { %v1996_v56 = vadd.f32 %v1995_v55, %v1936_v37  ;;  %v4891_v39 = vpop.f32.mrb[18].mxu0 }
 0x7be   : > { %v1998_v57 = vpop.f32.mrb[19].mxu0  ;;  %v2110_v60 = vmul.f32 %v5391_v45, %v2004_v54  ;;  %v2007_v61 = vadd.f32 %v4891_v39, %v1936_v37  ;;  %v5655_v5 = vmul.f32 %v5386_v44, %v2004_v54  ;;  %v5658_v6 = vmul.f32 %v5394_v50, %v2004_v54 }
 0x7bf   : > { %4927 = vmatpush3.bf16.xpose.msra.mxu0 %v5605_v13  ;;  %v1999_v62 = vadd.f32 %v1998_v57, %v1936_v37  ;;  %v2108_v63 = vmul.f32 %v5391_v45, %v1996_v56  ;;  %v5664_v24 = vmul.f32 %v5394_v50, %v1996_v56  ;;  %v5679_v16 = vmul.f32 %v5397_v51, %v2004_v54 }
 0x7c0   : > { %4956 = vmatprep.subr.bf16.mxu0 %v5124_v17  ;;  %v2111_v1 = vmul.f32 %v5391_v45, %v2007_v61  ;;  %v5667_v25 = vmul.f32 %v5386_v44, %v2007_v61  ;;  %v5670_v7 = vmul.f32 %v5394_v50, %v2007_v61  ;;  %v5682_v18 = vmul.f32 %v5397_v51, %v1996_v56 }
 0x7c1   : > { %v2109_v2 = vmul.f32 %v5391_v45, %v1999_v62  ;;  %v5661_v45 = vmul.f32 %v5386_v44, %v1996_v56  ;;  %v5673_v8 = vmul.f32 %v5386_v44, %v1999_v62  ;;  %v5676_v10 = vmul.f32 %v5394_v50, %v1999_v62 }
 0x7c2   : > { %v2113_v3 = vpack.c.bf16 %v2111_v1, %v2110_v60  ;;  %v5685_v20 = vmul.f32 %v5397_v51, %v2007_v61  ;;  %v5688_v21 = vmul.f32 %v5397_v51, %v1999_v62  ;;  %v2030_v44 = vpack.c.bf16 %v5667_v25, %v5655_v5 }
 0x7c3   : > { %v2112_v4 = vpack.c.bf16 %v2109_v2, %v2108_v63  ;;  %v2029_v22 = vpack.c.bf16 %v5673_v8, %v5661_v45  ;;  %v2276_v50 = vpack.c.bf16 %v5676_v10, %v5664_v24  ;;  %v2277_v23 = vpack.c.bf16 %v5670_v7, %v5658_v6 }
 0x7c4   : > { %v2398_v27 = vpack.c.bf16 %v5688_v21, %v5682_v18  ;;  %v2399_v12 = vpack.c.bf16 %v5685_v20, %v5679_v16  ;;  %v5705_v51 = vsel %vm1126_vm10, 0.0, %v5126_v9 }
 0x7c5   : > { %4909 = vmatpush3.bf16.msra.mxu1 %v2112_v4 }
 0x7c6   : > { %4929 = vmatmul.mubr.msk.bf16.vlgmr.msra.gmra.mrb[24].mxu0 %vm918_vm2, %v2271_v47  ;;  %4910 = vmatprep.subr.bf16.mxu1 %v5124_v17 }
 0x7c7   : > { %4964 = vmatprep.mubr.msk.bf16.mxu0 %vm5125_vm1, %v5124_v17 }
 0x7c9   : > { %4911 = vmatpush3.bf16.msra.mxu1 %v2113_v3 }
 0x7ca   : > { %4916 = vmatprep.subr.bf16.mxu1 %v5124_v17 }
 0x889   : > { %v2074_v19 = vpop.f32.mrb[28].mxu1  ;;  %v2151_v34 = vpop.f32.mrb[20].mxu0 }
 0x88a   : > { %v2152_v38 = vadd.f32 %v2151_v34, %v5705_v51  ;;  %v4898_v33 = vpop.f32.mrb[29].mxu1  ;;  %v4906_v40 = vpop.f32.mrb[21].mxu0  ;;  %v2075_v46 = vadd.f32 %v2074_v19, %v5705_v51 }
 0x88b   : > { %v2077_v26 = vpop.f32.mrb[30].mxu1  ;;  %v2154_v42 = vpop.f32.mrb[22].mxu0 }
 0x88c   : > { %v2155_v30 = vadd.f32 %v2154_v42, %v5710_v35  ;;  %v4899_v47 = vpop.f32.mrb[31].mxu1  ;;  %v4907_v37 = vpop.f32.mrb[23].mxu0  ;;  %v2158_v53 = vsel %vm2081_vm3, %v2152_v38, -inf  ;;  %v2078_v36 = vadd.f32 %v2077_v26, %v5710_v35  ;;  %v2082_v54 = vsel %vm2081_vm3, %v2075_v46, -inf }
 0x88d   : > { %2159 = vmax.xlane.f32.xlu0 %v2158_v53 }
 0x88e   : > { %v2161_v9 = vsel %vm2081_vm3, %v2155_v30, -inf  ;;  %v2085_v55 = vsel %vm2081_vm3, %v2078_v36, -inf }
 0x88f   : > { %2162 = vmax.xlane.f32.xlu1 %v2161_v9 }
 0x891   : > { %2083 = vmax.xlane.f32.xlu0 %v2082_v54 }
 0x893   : > { %2086 = vmax.xlane.f32.xlu1 %v2085_v55 }
 0x899   : > { %v2315_v56 = vpop.f32.mrb[24].mxu0 }
 0x89a   : > { %v2316_v39 = vadd.f32 %v2315_v56, %v5705_v51  ;;  %v4930_v57 = vpop.f32.mrb[25].mxu0 }
 0x89b   : > { %v2318_v60 = vpop.f32.mrb[26].mxu0 }
 0x89c   : > { %v2319_v61 = vadd.f32 %v2318_v60, %v5710_v35  ;;  %v4931_v62 = vpop.f32.mrb[27].mxu0  ;;  %v2322_v63 = vsel %vm2081_vm3, %v2316_v39, -inf }
 0x89d   : > { %2323 = vmax.xlane.f32.xlu0 %v2322_v63 }
 0x89e   : > { %v2325_v1 = vsel %vm2081_vm3, %v2319_v61, -inf }
 0x89f   : > { %2326 = vmax.xlane.f32.xlu1 %v2325_v1 }
 0x91a   : > { %v2160_v2 = vpop.xlane.xlu0 %2159 }
 0x91b   : > { %v2164_v3 = vsub.f32 %v2152_v38, %v2160_v2 }
 0x91c   : > { %v2163_v4 = vpop.xlane.xlu1 %2162 }
 0x91d   : > { %v2166_v19 = vmul.f32 1.442695, %v2164_v3  ;;  %v2165_v34 = vsub.f32 %v2155_v30, %v2163_v4 }
 0x91e   : > { %v2084_v33 = vpop.xlane.xlu0 %2083 }
 0x91f   : > { %5074 = vpow2.f32 %v2166_v19  ;;  %v2168_v40 = vmul.f32 1.442695, %v2165_v34  ;;  %v2088_v26 = vsub.f32 %v2075_v46, %v2084_v33 }
 0x920   : > { %v2087_v42 = vpop.xlane.xlu1 %2086 }
 0x921   : > { %5076 = vpow2.f32 %v2168_v40  ;;  %v2090_v47 = vmul.f32 1.442695, %v2088_v26  ;;  %v2089_v37 = vsub.f32 %v2078_v36, %v2087_v42 }
 0x923   : > { %5078 = vpow2.f32 %v2090_v47  ;;  %v2092_v53 = vmul.f32 1.442695, %v2089_v37 }
 0x925   : > { %5080 = vpow2.f32 %v2092_v53 }
 0x929   : > { %v5075_v9 = vpop.eup %5074 }
 0x92a   : > { %v2324_v54 = vpop.xlane.xlu0 %2323  ;;  %v2170_v55 = vsel %vm2081_vm3, %v5075_v9, 0.0 }
 0x92b   : > { %v5077_v56 = vpop.eup %5076  ;;  %v2328_v38 = vsub.f32 %v2316_v39, %v2324_v54  ;;  %2171 = vadd.xlane.f32.xlu0 %v2170_v55 }
 0x92c   : > { %v2327_v57 = vpop.xlane.xlu1 %2326  ;;  %v2173_v30 = vsel %vm2081_vm3, %v5077_v56, 0.0 }
 0x92d   : > { %v5079_v60 = vpop.eup %5078  ;;  %v2330_v62 = vmul.f32 1.442695, %v2328_v38  ;;  %v2329_v46 = vsub.f32 %v2319_v61, %v2327_v57  ;;  %2174 = vadd.xlane.f32.xlu1 %v2173_v30  ;;  %v5035_v30 = vld [vmem:[%s5277_s0 + $0x8] sm:$0xff]  }
 0x92e   : > { %v2094_v63 = vsel %vm2081_vm3, %v5079_v60, 0.0 }
 0x92f   : > { %v5081_v36 = vpop.eup %5080  ;;  %5082 = vpow2.f32 %v2330_v62  ;;  %v2332_v1 = vmul.f32 1.442695, %v2329_v46  ;;  %2095 = vadd.xlane.f32.xlu0 %v2094_v63 }
 0x930   : > { %v2097_v2 = vsel %vm2081_vm3, %v5081_v36, 0.0 }
 0x931   : > { %5084 = vpow2.f32 %v2332_v1  ;;  %2098 = vadd.xlane.f32.xlu1 %v2097_v2 }
 0x939   : > { %v5083_v3 = vpop.eup %5082 }
 0x93a   : > { %v2334_v39 = vsel %vm2081_vm3, %v5083_v3, 0.0 }
 0x93b   : > { %v5085_v4 = vpop.eup %5084  ;;  %2335 = vadd.xlane.f32.xlu0 %v2334_v39  ;;  %v5037_v39 = vld [vmem:[%s5277_s0 + $0x18] sm:$0xff]  }
 0x93c   : > { %v2337_v19 = vsel %vm2081_vm3, %v5085_v4, 0.0 }
 0x93d   : > { %2338 = vadd.xlane.f32.xlu1 %v2337_v19 }
 0x9b8   : > { %v2172_v61 = vpop.xlane.xlu0 %2171 }
 0x9b9   : > { %5086 = vrcp.f32 %v2172_v61 }
 0x9ba   : > { %v2175_v34 = vpop.xlane.xlu1 %2174 }
 0x9bb   : > { %5088 = vrcp.f32 %v2175_v34 }
 0x9bc   : > { %v2096_v40 = vpop.xlane.xlu0 %2095 }
 0x9be   : > { %v2099_v33 = vpop.xlane.xlu1 %2098 }
 0x9bf   : > { %5090 = vrcp.f32 %v2099_v33 }
 0x9c0   : > { %5092 = vrcp.f32 %v2096_v40 }
 0x9c3   : > { %v5087_v26 = vpop.eup %5086 }
 0x9c4   : > { %v2177_v47 = vmul.f32 %v5087_v26, %v5075_v9 }
 0x9c5   : > { %v5089_v42 = vpop.eup %5088 }
 0x9c6   : > { %v2179_v37 = vmul.f32 %v5089_v42, %v5077_v56 }
 0x9c8   : > { %v2180_v53 = vpack.c.bf16 %v2179_v37, %v2177_v47  ;;  %v2336_v38 = vpop.xlane.xlu0 %2335 }
 0x9c9   : > { %v5091_v55 = vpop.eup %5090 }
 0x9ca   : > { %4913 = vmatmul.mubr.msk.bf16.vlgmr.msra.gmra.mrb[32].mxu1 %vm2081_vm3, %v2180_v53  ;;  %v2339_v54 = vpop.xlane.xlu1 %2338  ;;  %v5093_v57 = vpop.eup %5092  ;;  %v2103_v9 = vmul.f32 %v5091_v55, %v5081_v36 }
 0x9cb   : > { %4917 = vmatpush3.bf16.msra.mxu1 %v2029_v22  ;;  %4920 = vmatprep.mubr.msk.bf16.mxu1 %vm5125_vm1, %v5124_v17  ;;  %5094 = vrcp.f32 %v2339_v54  ;;  %v2101_v45 = vmul.f32 %v5093_v57, %v5079_v60  ;;  %v5036_v60 = vld [vmem:[%s5277_s0 + $0x10] sm:$0xff]  }
 0x9cc   : > { %4918 = vmatprep.subr.bf16.mxu1 %v5124_v17  ;;  %5096 = vrcp.f32 %v2336_v38 }
 0x9cd   : > { %v2104_v8 = vpack.c.bf16 %v2103_v9, %v2101_v45 }
 0x9cf   : > { %4919 = vmatpush3.bf16.msra.mxu1 %v2030_v44 }
 0x9d0   : > { %4932 = vmatprep.subr.bf16.mxu1 %v5124_v17 }
 0x9d5   : > { %v5095_v22 = vpop.eup %5094 }
 0x9d6   : > { %4921 = vmatmul.mubr.msk.bf16.vlgmr.msra.gmra.mrb[32].mxu1 %vm2081_vm3, %v2104_v8  ;;  %v5097_v5 = vpop.eup %5096  ;;  %v2343_v25 = vmul.f32 %v5095_v22, %v5085_v4 }
 0x9d7   : > { %4933 = vmatpush3.bf16.msra.mxu1 %v2276_v50  ;;  %4936 = vmatprep.mubr.msk.bf16.mxu1 %vm5125_vm1, %v5124_v17  ;;  %v2341_v44 = vmul.f32 %v5097_v5, %v5083_v3 }
 0x9d8   : > { %4934 = vmatprep.subr.bf16.mxu1 %v5124_v17 }
 0x9d9   : > { %v2344_v56 = vpack.c.bf16 %v2343_v25, %v2341_v44 }
 0x9db   : > { %4935 = vmatpush3.bf16.msra.mxu1 %v2277_v23 }
 0x9dc   : > { %4940 = vmatprep.subr.bf16.mxu1 %v5124_v17 }
 0x9e2   : > { %4937 = vmatmul.mubr.msk.bf16.vlgmr.msra.gmra.mrb[32].mxu1 %vm2081_vm3, %v2344_v56 }
 0x9e3   : > { %4944 = vmatprep.mubr.msk.bf16.mxu1 %vm5125_vm1, %v5124_v17 }
 0x9e4   : > { %4941 = vmatpush3.bf16.xpose.msra.mxu1 %v5598_v11 }
 0x9e5   : > { %4942 = vmatprep.subr.bf16.mxu1 %v5124_v17 }
 0x9ec   : > { %4943 = vmatpush3.bf16.xpose.msra.mxu1 %v5605_v13 }
 0x9ed   : > { %4948 = vmatprep.subr.bf16.mxu1 %v5124_v17 }
 0x9f3   : > { %4945 = vmatmul.mubr.msk.bf16.vlgmr.msra.gmra.mrb[36].mxu1 %vm918_vm2, %v2393_v48 }
 0x9f4   : > { %4949 = vmatpush3.bf16.msra.mxu1 %v2398_v27  ;;  %4952 = vmatprep.mubr.msk.bf16.mxu1 %vm5125_vm1, %v5124_v17  ;;  %vm4272_vm1 = vcmask 7168  }
 0x9f5   : > { %4950 = vmatprep.subr.bf16.mxu1 %v5124_v17 }
 0x9f8   : > { %4951 = vmatpush3.bf16.msra.mxu1 %v2399_v12 }
 0xac6   : > { %v2437_v11 = vpop.f32.mrb[36].mxu1 }
 0xac7   : > { %v2438_v13 = vadd.f32 %v2437_v11, %v5705_v51  ;;  %v4946_v6 = vpop.f32.mrb[37].mxu1  ;;  %v2626_v11 = vld [vmem:[%s5282_s17] sm:$0xff] }
 0xac8   : > { %v2440_v29 = vpop.f32.mrb[38].mxu1  ;;  %v2627_v6 = vld [vmem:[%s5282_s17 + $0x8] sm:$0xff] }
 0xac9   : > { %v2441_v15 = vadd.f32 %v2440_v29, %v5710_v35  ;;  %v4947_v48 = vpop.f32.mrb[39].mxu1  ;;  %v2444_v24 = vsel %vm2081_vm3, %v2438_v13, -inf  ;;  %v5034_v35 = vld [vmem:[%s5277_s0] sm:$0xff]   ;;  %s6097_s0 = sld [smem:[#allocation16_spill]] }
 0xaca   : > { %2445 = vmax.xlane.f32.xlu0 %v2444_v24  ;;  %4957 = vmatpush3.bf16.msra.mxu0 %v5034_v35  ;;  %v2659_v35 = vld [vmem:[%s5282_s17 + $0x108] sm:$0xff] }
 0xacb   : > { %v2447_v7 = vsel %vm2081_vm3, %v2441_v15, -inf  ;;  %4958 = vmatprep.subr.bf16.mxu0 %v5124_v17 }
 0xacc   : > { %2448 = vmax.xlane.f32.xlu1 %v2447_v7 }
 0xace   : > { %4959 = vmatpush3.bf16.msra.mxu0 %v5035_v30 }
 0xacf   : > { %4960 = vmatprep.subr.bf16.mxu0 %v5124_v17 }
 0xad2   : > { %4961 = vmatpush3.bf16.msra.mxu0 %v5036_v60  ;;  %v2667_v60 = vld [vmem:[%s5282_s17 + $0x148] sm:$0xff] }
 0xad3   : > { %4962 = vmatprep.subr.bf16.mxu0 %v5124_v17  ;;  %v2517_v17 = vrot.slane %v5631_v52, %v5363_v32 }
 0xad6   : > { %4963 = vmatpush3.bf16.msra.mxu0 %v5037_v39  ;;  %v2683_v39 = vld [vmem:[%s5282_s17 + $0x1c8] sm:$0xff] }
 0xb57   : > { %v2446_v10 = vpop.xlane.xlu0 %2445 }
 0xb58   : > { %v2450_v18 = vsub.f32 %v2438_v13, %v2446_v10  ;;  %v2634_v13 = vld [vmem:[%s5282_s17 + $0x40] sm:$0xff] }
 0xb59   : > { %v2449_v16 = vpop.xlane.xlu1 %2448  ;;  %v4528_v29 = vcombine.high %v2626_v11, %v2634_v13  ;;  %v4527_v48 = vcombine.low %v2626_v11, %v2634_v13  ;;  %v2642_v10 = vld [vmem:[%s5282_s17 + $0x80] sm:$0xff] }
 0xb5a   : > { %v2452_v20 = vmul.f32 1.442695, %v2450_v18  ;;  %v2451_v21 = vsub.f32 %v2441_v15, %v2449_v16  ;;  %v2635_v15 = vld [vmem:[%s5282_s17 + $0x48] sm:$0xff]  ;;  %v2650_v18 = vld [vmem:[%s5282_s17 + $0xc0] sm:$0xff] }
 0xb5b   : > { %v4529_v24 = vcombine.low %v2627_v6, %v2635_v15  ;;  %v4530_v7 = vcombine.high %v2627_v6, %v2635_v15  ;;  %3162 = vmatprep.subr.bf16.mxu0 %v4528_v29  ;;  %v2643_v16 = vld [vmem:[%s5282_s17 + $0x88] sm:$0xff]  ;;  %v2644_v6 = vld [vmem:[%s5282_s17 + $0x90] sm:$0xff]  ;;  %v2645_v15 = vld [vmem:[%s5282_s17 + $0x98] sm:$0xff] }
 0xb5c   : > { %5098 = vpow2.f32 %v2452_v20  ;;  %v2454_v50 = vmul.f32 1.442695, %v2451_v21  ;;  %v4544_v20 = vcombine.high %v2642_v10, %v2650_v18  ;;  %v2651_v21 = vld [vmem:[%s5282_s17 + $0xc8] sm:$0xff]  ;;  %v2652_v29 = vld [vmem:[%s5282_s17 + $0xd0] sm:$0xff] }
 0xb5d   : > { %3205 = vmatprep.subr.bf16.mxu1 %v4530_v7 }
 0xb5e   : > { %5100 = vpow2.f32 %v2454_v50  ;;  %v4543_v50 = vcombine.low %v2642_v10, %v2650_v18  ;;  %v4548_v10 = vcombine.high %v2644_v6, %v2652_v29  ;;  %v2660_v18 = vld [vmem:[%s5282_s17 + $0x110] sm:$0xff] }
 0xb66   : > { %v5099_v23 = vpop.eup %5098 }
 0xb67   : > { %v2456_v27 = vsel %vm2081_vm3, %v5099_v23, 0.0 }
 0xb68   : > { %v5101_v12 = vpop.eup %5100  ;;  %2457 = vadd.xlane.f32.xlu0 %v2456_v27  ;;  %v4546_v27 = vcombine.high %v2643_v16, %v2651_v21 }
 0xb69   : > { %v2459_v51 = vsel %vm2081_vm3, %v5101_v12, 0.0 }
 0xb6a   : > { %2460 = vadd.xlane.f32.xlu1 %v2459_v51  ;;  %v2666_v51 = vld [vmem:[%s5282_s17 + $0x140] sm:$0xff] }
 0xbf5   : > { %v2458_v62 = vpop.xlane.xlu0 %2457 }
 0xbf6   : > { %5102 = vrcp.f32 %v2458_v62 }
 0xbf7   : > { %v2461_v46 = vpop.xlane.xlu1 %2460 }
 0xbf8   : > { %5104 = vrcp.f32 %v2461_v46  ;;  %v4561_v46 = vcombine.low %v2659_v35, %v2667_v60 }
 0xc00   : > { %v5103_v63 = vpop.eup %5102 }
 0xc01   : > { %v2463_v1 = vmul.f32 %v5103_v63, %v5099_v23  ;;  %v4545_v23 = vcombine.low %v2643_v16, %v2651_v21  ;;  %v4562_v63 = vcombine.high %v2659_v35, %v2667_v60  ;;  %v2661_v16 = vld [vmem:[%s5282_s17 + $0x118] sm:$0xff]  ;;  %v4547_v21 = vcombine.low %v2644_v6, %v2652_v29 }
 0xc02   : > { %v5105_v36 = vpop.eup %5104  ;;  %v2677_v35 = vld [vmem:[%s5282_s17 + $0x198] sm:$0xff] }
 0xc03   : > { %v2465_v2 = vmul.f32 %v5105_v36, %v5101_v12  ;;  %v2658_v12 = vld [vmem:[%s5282_s17 + $0x100] sm:$0xff] }
 0xc04   : > { %v4560_v30 = vcombine.high %v2658_v12, %v2666_v51  ;;  %v4559_v62 = vcombine.low %v2658_v12, %v2666_v51  ;;  %v2674_v36 = vld [vmem:[%s5282_s17 + $0x180] sm:$0xff]  ;;  %v2676_v12 = vld [vmem:[%s5282_s17 + $0x190] sm:$0xff] }
 0xc05   : > { %v2466_v3 = vpack.c.bf16 %v2465_v2, %v2463_v1  ;;  %v2682_v1 = vld [vmem:[%s5282_s17 + $0x1c0] sm:$0xff]  ;;  %v2675_v2 = vld [vmem:[%s5282_s17 + $0x188] sm:$0xff]  ;;  %v2684_v51 = vld [vmem:[%s5282_s17 + $0x1d0] sm:$0xff] }
 0xc07   : > { %4953 = vmatmul.mubr.msk.bf16.vlgmr.msra.gmra.mrb[32].mxu1 %vm2081_vm3, %v2466_v3  ;;  %v4576_v3 = vcombine.high %v2674_v36, %v2682_v1 }
 0xc08   : > { %3206 = vmatpush1.bf16.msra.mxu1 %v4529_v24 }
 0xc09   : > { %3207 = vmatprep.subr.bf16.mxu1 %v4546_v27 }
 0xc0c   : > { %3208 = vmatpush1.bf16.msra.mxu1 %v4545_v23 }
 0xc0d   : > { %3209 = vmatprep.subr.bf16.mxu1 %v4562_v63 }
 0xc10   : > { %3210 = vmatpush1.bf16.msra.mxu1 %v4561_v46  ;;  %v4580_v46 = vcombine.high %v2676_v12, %v2684_v51 }
 0xcda   : > { %v2504_v4 = vpop.f32.mrb[32].mxu1 }
 0xcdb   : > { %v4954_v19 = vpop.f32.mrb[33].mxu1 }
 0xcdc   : > { %v2507_v61 = vpop.f32.mrb[34].mxu1  ;;  %v4577_v19 = vcombine.low %v2675_v2, %v2683_v39 }
 0xcdd   : > { %v2513_v34 = vpack.c.bf16 %v2507_v61, %v2504_v4  ;;  %v4955_v33 = vpop.f32.mrb[35].mxu1  ;;  %v4575_v4 = vcombine.low %v2674_v36, %v2682_v1  ;;  %v4578_v61 = vcombine.high %v2675_v2, %v2683_v39  ;;  %v2630_v36 = vld [vmem:[%s5282_s17 + $0x20] sm:$0xff]  ;;  %v2631_v2 = vld [vmem:[%s5282_s17 + $0x28] sm:$0xff]  ;;  %v4579_v39 = vcombine.low %v2676_v12, %v2684_v51 }
 0xcde   : > { %v2636_v33 = vld [vmem:[%s5282_s17 + $0x50] sm:$0xff]  ;;  %v2638_v1 = vld [vmem:[%s5282_s17 + $0x60] sm:$0xff] }
 0xcdf   : > { %4965 = vmatmul.mubr.msk.bf16.vlgmr.msra.gmra.mrb[28].mxu0 %vm918_vm2, %v2513_v34  ;;  %3211 = vmatprep.subr.bf16.mxu1 %v4578_v61  ;;  %v2628_v34 = vld [vmem:[%s5282_s17 + $0x10] sm:$0xff] }
 0xce0   : > { %3163 = vmatpush1.bf16.msra.mxu0 %v4527_v48  ;;  %3212 = vmatpush1.bf16.msra.mxu1 %v4577_v19  ;;  %v2653_v48 = vld [vmem:[%s5282_s17 + $0xd8] sm:$0xff]  ;;  %v4536_v19 = vcombine.high %v2630_v36, %v2638_v1 }
 0xce1   : > { %3164 = vmatprep.subr.bf16.mxu0 %v4544_v20  ;;  %v2669_v20 = vld [vmem:[%s5282_s17 + $0x158] sm:$0xff] }
 0xce2   : > { %v4566_v27 = vcombine.high %v2661_v16, %v2669_v20 }
 0xce4   : > { %3165 = vmatpush1.bf16.msra.mxu0 %v4543_v50  ;;  %v4549_v50 = vcombine.low %v2645_v15, %v2653_v48 }
 0xce5   : > { %3166 = vmatprep.subr.bf16.mxu0 %v4560_v30  ;;  %v2685_v30 = vld [vmem:[%s5282_s17 + $0x1d8] sm:$0xff] }
 0xce6   : > { %v4582_v63 = vcombine.high %v2677_v35, %v2685_v30 }
 0xce8   : > { %3167 = vmatpush1.bf16.msra.mxu0 %v4559_v62  ;;  %v4565_v62 = vcombine.low %v2661_v16, %v2669_v20 }
 0xce9   : > { %3168 = vmatprep.subr.bf16.mxu0 %v4576_v3  ;;  %v2639_v3 = vld [vmem:[%s5282_s17 + $0x68] sm:$0xff] }
 0xcea   : > { %v4538_v61 = vcombine.high %v2631_v2, %v2639_v3 }
 0xcec   : > { %3169 = vmatpush1.bf16.msra.mxu0 %v4575_v4  ;;  %v4581_v4 = vcombine.low %v2677_v35, %v2685_v30 }
 0xdb2   : > { %v2579_v40 = vpop.f32.mrb[28].mxu0 }
 0xdb3   : > { %v2580_v26 = vadd.f32 %v2579_v40, %v2517_v17  ;;  %v4966_v42 = vpop.f32.mrb[29].mxu0  ;;  %v4532_v40 = vcombine.high %v2628_v34, %v2636_v33 }
 0xdb4   : > { %v2582_v47 = vpop.f32.mrb[30].mxu0  ;;  %v4531_v42 = vcombine.low %v2628_v34, %v2636_v33  ;;  %v2646_v34 = vld [vmem:[%s5282_s17 + $0xa0] sm:$0xff] }
 0xdb5   : > { %v2583_v37 = vadd.f32 %v2582_v47, %v2517_v17  ;;  %v4967_v53 = vpop.f32.mrb[31].mxu0  ;;  %v2586_v54 = vadd.f32 %v2580_v26, %v5577_v58  ;;  %v2629_v17 = vld [vmem:[%s5282_s17 + $0x18] sm:$0xff]  ;;  %3248 = vmatprep.subr.bf16.mxu0 %v4532_v40  ;;  %v2654_v33 = vld [vmem:[%s5282_s17 + $0xe0] sm:$0xff]  ;;  %v2655_v40 = vld [vmem:[%s5282_s17 + $0xe8] sm:$0xff] }
 0xdb6   : > { %v2637_v26 = vld [vmem:[%s5282_s17 + $0x58] sm:$0xff]  ;;  %v5127_v53 = vmov 0  }
 0xdb7   : > { %v2588_v55 = vsel %vm918_vm2, %v2586_v54, 0.0  ;;  %v2587_v38 = vadd.f32 %v2583_v37, %v5579_v59  ;;  %v4533_v47 = vcombine.low %v2629_v17, %v2637_v26  ;;  %v4534_v37 = vcombine.high %v2629_v17, %v2637_v26  ;;  %3194 = vmatprep.mubr.bf16.mxu0 %v5127_v53  ;;  %3237 = vmatprep.mubr.bf16.mxu1 %v5127_v53  ;;  %v2647_v17 = vld [vmem:[%s5282_s17 + $0xa8] sm:$0xff] }
 0xdb8   : > { %2589 = vadd.xlane.f32.xlu0 %v2588_v55  ;;  %v4535_v26 = vcombine.low %v2630_v36, %v2638_v1 }
 0xdb9   : > { %v2591_v57 = vsel %vm918_vm2, %v2587_v38, 0.0  ;;  %3291 = vmatprep.subr.bf16.mxu1 %v4534_v37  ;;  %v4554_v37 = vcombine.high %v2647_v17, %v2655_v40 }
 0xdba   : > { %2592 = vadd.xlane.f32.xlu1 %v2591_v57 }
 0xe45   : > { %v2590_v9 = vpop.xlane.xlu0 %2589 }
 0xe46   : > { %v2594_v45 = vmul.f32 0.015625, %v2590_v9 }
 0xe47   : > { %v2593_v8 = vpop.xlane.xlu1 %2592 }
 0xe48   : > { %v5793_v22 = vsub.f32 %v2586_v54, %v2594_v45  ;;  %v2595_v5 = vmul.f32 0.015625, %v2593_v8  ;;  %v2617_v8 = vrot.slane %v5631_v52, %v5483_v43 }
 0xe4a   : > { %v5795_v25 = vsub.f32 %v2587_v38, %v2595_v5  ;;  %v2598_v58 = vmul.f32 %v5793_v22, %v5793_v22 }
 0xe4c   : > { %v2600_v59 = vsel %vm918_vm2, %v2598_v58, 0.0  ;;  %v2599_v44 = vmul.f32 %v5795_v25, %v5795_v25 }
 0xe4d   : > { %2601 = vadd.xlane.f32.xlu0 %v2600_v59 }
 0xe4e   : > { %v2603_v56 = vsel %vm918_vm2, %v2599_v44, 0.0  ;;  %v2623_v44 = vrot.slane %v5631_v52, %v5528_v41  ;;  %v4550_v52 = vcombine.high %v2645_v15, %v2653_v48  ;;  %v2632_v15 = vld [vmem:[%s5282_s17 + $0x30] sm:$0xff] }
 0xe4f   : > { %2604 = vadd.xlane.f32.xlu1 %v2603_v56  ;;  %v2640_v48 = vld [vmem:[%s5282_s17 + $0x70] sm:$0xff] }
 0xe50   : > { %v4540_v16 = vcombine.high %v2632_v15, %v2640_v48  ;;  %v4539_v12 = vcombine.low %v2632_v15, %v2640_v48 }
 0xeda   : > { %v2602_v54 = vpop.xlane.xlu0 %2601 }
 0xedb   : > { %v2606_v55 = vmul.f32 0.015625, %v2602_v54  ;;  %v2662_v54 = vld [vmem:[%s5282_s17 + $0x120] sm:$0xff] }
 0xedc   : > { %v2605_v38 = vpop.xlane.xlu1 %2604 }
 0xedd   : > { %v2608_v57 = vadd.f32 1e-05, %v2606_v55  ;;  %v2607_v9 = vmul.f32 0.015625, %v2605_v38  ;;  %v2670_v55 = vld [vmem:[%s5282_s17 + $0x160] sm:$0xff]  ;;  %v2663_v38 = vld [vmem:[%s5282_s17 + $0x128] sm:$0xff] }
 0xedf   : > { %5106 = vrsqrt.f32 %v2608_v57  ;;  %v2609_v45 = vadd.f32 1e-05, %v2607_v9  ;;  %v2671_v57 = vld [vmem:[%s5282_s17 + $0x168] sm:$0xff]  ;;  %v4551_v9 = vcombine.low %v2646_v34, %v2654_v33 }
 0xee1   : > { %5108 = vrsqrt.f32 %v2609_v45  ;;  %v4553_v45 = vcombine.low %v2647_v17, %v2655_v40 }
 0xee9   : > { %v5107_v5 = vpop.eup %5106 }
 0xeea   : > { %v2612_v58 = vmul.f32 %v5107_v5, %v5793_v22  ;;  %v4570_v5 = vcombine.high %v2663_v38, %v2671_v57 }
 0xeeb   : > { %v5109_v59 = vpop.eup %5108 }
 0xeec   : > { %v2618_v56 = vmul.f32 %v2617_v8, %v2612_v58  ;;  %v2613_v11 = vmul.f32 %v5109_v59, %v5795_v25  ;;  %v2668_v25 = vld [vmem:[%s5282_s17 + $0x150] sm:$0xff]  ;;  %v2678_v58 = vld [vmem:[%s5282_s17 + $0x1a0] sm:$0xff] }
 0xeed   : > { %v4564_v23 = vcombine.high %v2660_v18, %v2668_v25  ;;  %v4563_v60 = vcombine.low %v2660_v18, %v2668_v25  ;;  %v2686_v59 = vld [vmem:[%s5282_s17 + $0x1e0] sm:$0xff] }
 0xeee   : > { %v2619_v13 = vmul.f32 %v2617_v8, %v2613_v11  ;;  %v5835_v24 = vadd.f32 %v2623_v44, %v2618_v56  ;;  %v4568_v8 = vcombine.high %v2662_v54, %v2670_v55  ;;  %v2687_v56 = vld [vmem:[%s5282_s17 + $0x1e8] sm:$0xff]  ;;  %v4567_v11 = vcombine.low %v2662_v54, %v2670_v55 }
 0xeef   : > { %v4584_v6 = vcombine.high %v2678_v58, %v2686_v59  ;;  %v4583_v18 = vcombine.low %v2678_v58, %v2686_v59 }
 0xef0   : > { %v5837_v7 = vadd.f32 %v2623_v44, %v2619_v13  ;;  %v2679_v44 = vld [vmem:[%s5282_s17 + $0x1a8] sm:$0xff]  ;;  %v4569_v13 = vcombine.low %v2663_v38, %v2671_v57  ;;  %v2708_v57 = vld [vmem:[%s5292_s3 + $0x80] sm:$0xff] }
 0xef1   : > { %v4586_v29 = vcombine.high %v2679_v44, %v2687_v56  ;;  %v4585_v25 = vcombine.low %v2679_v44, %v2687_v56  ;;  %v2724_v56 = vld [vmem:[%s5292_s3 + $0x100] sm:$0xff] }
 0xef2   : > { %v5841_v22 = vpack.c.bf16 %v5837_v7, %v5835_v24 }
 0xef4   : > { %4591 = vmatmul.mubr.msk.bf16.vlgmr.msra.gmra.mrb[32].mxu0 %vm918_vm2, %v5841_v22  ;;  %4592 = vmatmul.mubr.msk.bf16.vlgmr.msra.gmra.mrb[40].mxu1 %vm918_vm2, %v5841_v22 }
 0xef5   : > { %3249 = vmatpush1.bf16.msra.mxu0 %v4531_v42  ;;  %3292 = vmatpush1.bf16.msra.mxu1 %v4533_v47  ;;  %v4537_v42 = vcombine.low %v2631_v2, %v2639_v3  ;;  %v4552_v47 = vcombine.high %v2646_v34, %v2654_v33 }
 0xef6   : > { %3250 = vmatprep.subr.bf16.mxu0 %v4548_v10  ;;  %3293 = vmatprep.subr.bf16.mxu1 %v4550_v52  ;;  %v2633_v10 = vld [vmem:[%s5282_s17 + $0x38] sm:$0xff] }
 0xef7   : > { %3280 = vmatprep.mubr.bf16.mxu0 %v5127_v53  ;;  %3323 = vmatprep.mubr.bf16.mxu1 %v5127_v53  ;;  %v2641_v52 = vld [vmem:[%s5282_s17 + $0x78] sm:$0xff] }
 0xef8   : > { %v4542_v20 = vcombine.high %v2633_v10, %v2641_v52  ;;  %v4541_v51 = vcombine.low %v2633_v10, %v2641_v52 }
 0xef9   : > { %3251 = vmatpush1.bf16.msra.mxu0 %v4547_v21  ;;  %3294 = vmatpush1.bf16.msra.mxu1 %v4549_v50  ;;  %v2648_v21 = vld [vmem:[%s5282_s17 + $0xb0] sm:$0xff] }
 0xefa   : > { %3252 = vmatprep.subr.bf16.mxu0 %v4564_v23  ;;  %3295 = vmatprep.subr.bf16.mxu1 %v4566_v27  ;;  %v2656_v50 = vld [vmem:[%s5282_s17 + $0xf0] sm:$0xff]  ;;  %v2649_v23 = vld [vmem:[%s5282_s17 + $0xb8] sm:$0xff] }
 0xefb   : > { %v2657_v27 = vld [vmem:[%s5282_s17 + $0xf8] sm:$0xff]  ;;  %v4556_v35 = vcombine.high %v2648_v21, %v2656_v50  ;;  %v4555_v36 = vcombine.low %v2648_v21, %v2656_v50  ;;  %v2749_v21 = vld [vmem:[%s5292_s3 + $0x1c8] sm:$0xff] }
 0xefc   : > { %v4558_v30 = vcombine.high %v2649_v23, %v2657_v27  ;;  %v4557_v1 = vcombine.low %v2649_v23, %v2657_v27 }
 0xefd   : > { %3253 = vmatpush1.bf16.msra.mxu0 %v4563_v60  ;;  %3296 = vmatpush1.bf16.msra.mxu1 %v4565_v62  ;;  %v2664_v60 = vld [vmem:[%s5282_s17 + $0x130] sm:$0xff] }
 0xefe   : > { %3254 = vmatprep.subr.bf16.mxu0 %v4580_v46  ;;  %3297 = vmatprep.subr.bf16.mxu1 %v4582_v63  ;;  %v2672_v62 = vld [vmem:[%s5282_s17 + $0x170] sm:$0xff]  ;;  %v2665_v46 = vld [vmem:[%s5282_s17 + $0x138] sm:$0xff] }
 0xeff   : > { %v2673_v63 = vld [vmem:[%s5282_s17 + $0x178] sm:$0xff]  ;;  %v4572_v2 = vcombine.high %v2664_v60, %v2672_v62  ;;  %v4571_v34 = vcombine.low %v2664_v60, %v2672_v62 }
 0xf00   : > { %v4574_v3 = vcombine.high %v2665_v46, %v2673_v63  ;;  %v4573_v33 = vcombine.low %v2665_v46, %v2673_v63  ;;  %v2703_v60 = vld [vmem:[%s5292_s3 + $0x58] sm:$0xff] }
 0xf01   : > { %3255 = vmatpush1.bf16.msra.mxu0 %v4579_v39  ;;  %3298 = vmatpush1.bf16.msra.mxu1 %v4581_v4  ;;  %v2680_v39 = vld [vmem:[%s5282_s17 + $0x1b0] sm:$0xff] }
 0xf02   : > { %3334 = vmatprep.subr.bf16.mxu0 %v4536_v19  ;;  %3377 = vmatprep.subr.bf16.mxu1 %v4538_v61  ;;  %v2688_v4 = vld [vmem:[%s5282_s17 + $0x1f0] sm:$0xff]  ;;  %v2681_v19 = vld [vmem:[%s5282_s17 + $0x1b8] sm:$0xff] }
 0xf03   : > { %v2689_v61 = vld [vmem:[%s5282_s17 + $0x1f8] sm:$0xff]  ;;  %v4588_v17 = vcombine.high %v2680_v39, %v2688_v4  ;;  %v4587_v54 = vcombine.low %v2680_v39, %v2688_v4 }
 0xf04   : > { %4593 = vmatmul.mubr.msk.bf16.vlgmr.msra.gmra.mrb[36].mxu0 %vm918_vm2, %v5841_v22  ;;  %4594 = vmatmul.mubr.msk.bf16.vlgmr.msra.gmra.mrb[44].mxu1 %vm918_vm2, %v5841_v22  ;;  %v4590_v40 = vcombine.high %v2681_v19, %v2689_v61 }
 0xf05   : > { %3335 = vmatpush1.bf16.msra.mxu0 %v4535_v26  ;;  %3378 = vmatpush1.bf16.msra.mxu1 %v4537_v42  ;;  %v2692_v26 = vld [vmem:[%s5292_s3] sm:$0xff] }
 0xf06   : > { %3336 = vmatprep.subr.bf16.mxu0 %v4552_v47  ;;  %3379 = vmatprep.subr.bf16.mxu1 %v4554_v37  ;;  %v2700_v42 = vld [vmem:[%s5292_s3 + $0x40] sm:$0xff]  ;;  %v2693_v47 = vld [vmem:[%s5292_s3 + $0x8] sm:$0xff] }
 0xf07   : > { %3366 = vmatprep.mubr.bf16.mxu0 %v5127_v53  ;;  %3409 = vmatprep.mubr.bf16.mxu1 %v5127_v53  ;;  %v2701_v37 = vld [vmem:[%s5292_s3 + $0x48] sm:$0xff]  ;;  %v4600_v55 = vcombine.high %v2692_v26, %v2700_v42 }
 0xf08   : > { %v4602_v38 = vcombine.high %v2693_v47, %v2701_v37  ;;  %v4601_v58 = vcombine.low %v2693_v47, %v2701_v37 }
 0xf09   : > { %3337 = vmatpush1.bf16.msra.mxu0 %v4551_v9  ;;  %3380 = vmatpush1.bf16.msra.mxu1 %v4553_v45  ;;  %v2716_v9 = vld [vmem:[%s5292_s3 + $0xc0] sm:$0xff]  ;;  %v2709_v45 = vld [vmem:[%s5292_s3 + $0x88] sm:$0xff] }
 0xf0a   : > { %3338 = vmatprep.subr.bf16.mxu0 %v4568_v8  ;;  %3381 = vmatprep.subr.bf16.mxu1 %v4570_v5  ;;  %v2717_v8 = vld [vmem:[%s5292_s3 + $0xc8] sm:$0xff]  ;;  %v4599_v5 = vcombine.low %v2692_v26, %v2700_v42  ;;  %v4616_v59 = vcombine.high %v2708_v57, %v2716_v9 }
 0xf0b   : > { %v4618_v44 = vcombine.high %v2709_v45, %v2717_v8 }
 0xf0d   : > { %3339 = vmatpush1.bf16.msra.mxu0 %v4567_v11  ;;  %3382 = vmatpush1.bf16.msra.mxu1 %v4569_v13  ;;  %v2732_v11 = vld [vmem:[%s5292_s3 + $0x140] sm:$0xff]  ;;  %v2725_v13 = vld [vmem:[%s5292_s3 + $0x108] sm:$0xff] }
 0xf0e   : > { %3340 = vmatprep.subr.bf16.mxu0 %v4584_v6  ;;  %3383 = vmatprep.subr.bf16.mxu1 %v4586_v29  ;;  %v2733_v6 = vld [vmem:[%s5292_s3 + $0x148] sm:$0xff]  ;;  %v4615_v29 = vcombine.low %v2708_v57, %v2716_v9  ;;  %v4632_v15 = vcombine.high %v2724_v56, %v2732_v11  ;;  %v4631_v10 = vcombine.low %v2724_v56, %v2732_v11 }
 0xf0f   : > { %v4634_v48 = vcombine.high %v2725_v13, %v2733_v6  ;;  %v4633_v52 = vcombine.low %v2725_v13, %v2733_v6  ;;  %v2711_v6 = vld [vmem:[%s5292_s3 + $0x98] sm:$0xff] }
 0xf11   : > { %3341 = vmatpush1.bf16.msra.mxu0 %v4583_v18  ;;  %3384 = vmatpush1.bf16.msra.mxu1 %v4585_v25  ;;  %v2740_v18 = vld [vmem:[%s5292_s3 + $0x180] sm:$0xff] }
 0xf12   : > { %3420 = vmatprep.subr.bf16.mxu0 %v4540_v16  ;;  %3463 = vmatprep.subr.bf16.mxu1 %v4542_v20  ;;  %v2748_v25 = vld [vmem:[%s5292_s3 + $0x1c0] sm:$0xff]  ;;  %v2741_v16 = vld [vmem:[%s5292_s3 + $0x188] sm:$0xff] }
 0xf13   : > { %v4648_v20 = vcombine.high %v2740_v18, %v2748_v25  ;;  %v4647_v50 = vcombine.low %v2740_v18, %v2748_v25  ;;  %v4649_v23 = vcombine.low %v2741_v16, %v2749_v21  ;;  %v4650_v27 = vcombine.high %v2741_v16, %v2749_v21 }
 0xf14   : > { %4595 = vmatmul.mubr.msk.bf16.vlgmr.msra.gmra.mrb[40].mxu0 %vm918_vm2, %v5841_v22  ;;  %4596 = vmatmul.mubr.msk.bf16.vlgmr.msra.gmra.mrb[48].mxu1 %vm918_vm2, %v5841_v22 }
 0xf15   : > { %3421 = vmatpush1.bf16.msra.mxu0 %v4539_v12  ;;  %3464 = vmatpush1.bf16.msra.mxu1 %v4541_v51  ;;  %v2694_v12 = vld [vmem:[%s5292_s3 + $0x10] sm:$0xff] }
 0xf16   : > { %3422 = vmatprep.subr.bf16.mxu0 %v4556_v35  ;;  %3465 = vmatprep.subr.bf16.mxu1 %v4558_v30  ;;  %v2702_v51 = vld [vmem:[%s5292_s3 + $0x50] sm:$0xff]  ;;  %v2695_v35 = vld [vmem:[%s5292_s3 + $0x18] sm:$0xff] }
 0xf17   : > { %3452 = vmatprep.mubr.bf16.mxu0 %v5127_v53  ;;  %3495 = vmatprep.mubr.bf16.mxu1 %v5127_v53  ;;  %v4589_v53 = vcombine.low %v2681_v19, %v2689_v61  ;;  %v4604_v30 = vcombine.high %v2694_v12, %v2702_v51  ;;  %v4603_v62 = vcombine.low %v2694_v12, %v2702_v51  ;;  %v2735_v12 = vld [vmem:[%s5292_s3 + $0x158] sm:$0xff] }
 0xf18   : > { %v4605_v46 = vcombine.low %v2695_v35, %v2703_v60  ;;  %v4606_v63 = vcombine.high %v2695_v35, %v2703_v60 }
 0xf19   : > { %3423 = vmatpush1.bf16.msra.mxu0 %v4555_v36  ;;  %3466 = vmatpush1.bf16.msra.mxu1 %v4557_v1  ;;  %v2690_v36 = vld [vmem:[%s5287_s23] sm:$0xff] }
 0xf1a   : > { %3424 = vmatprep.subr.bf16.mxu0 %v4572_v2  ;;  %3467 = vmatprep.subr.bf16.mxu1 %v4574_v3  ;;  %v2762_v1 = vrot.slane %v2690_v36, %v5360_v31  ;;  %v2770_v2 = vrot.slane %v2690_v36, %v5483_v43  ;;  %v2766_v3 = vrot.slane %v2690_v36, %v5363_v32 }
 0xf1b   : > { %v2774_v39 = vrot.slane %v2690_v36, %v5528_v41  ;;  %v2778_v25 = vrot.slane %v2690_v36, %v5568_v49  ;;  %v2786_v16 = vrot.slane %v2690_v36, %v5612_v14  ;;  %v2782_v21 = vrot.slane %v2690_v36, %v5573_v28 }
 0xf1d   : > { %3425 = vmatpush1.bf16.msra.mxu0 %v4571_v34  ;;  %3468 = vmatpush1.bf16.msra.mxu1 %v4573_v33 }
 0xf1e   : > { %3426 = vmatprep.subr.bf16.mxu0 %v4588_v17  ;;  %3469 = vmatprep.subr.bf16.mxu1 %v4590_v40 }
 0xf21   : > { %3427 = vmatpush1.bf16.msra.mxu0 %v4587_v54  ;;  %3470 = vmatpush1.bf16.msra.mxu1 %v4589_v53 }
 0xf22   : > { %3878 = vmatprep.subr.bf16.mxu0 %v4600_v55  ;;  %3919 = vmatprep.subr.bf16.mxu1 %v4602_v38 }
 0xf24   : > { %4597 = vmatmul.mubr.msk.bf16.vlgmr.msra.gmra.mrb[44].mxu0 %vm918_vm2, %v5841_v22  ;;  %4598 = vmatmul.mubr.msk.bf16.vlgmr.msra.gmra.mrb[52].mxu1 %vm918_vm2, %v5841_v22  ;;  %v4617_v22 = vcombine.low %v2709_v45, %v2717_v8 }
 0xf2a   : > { %3879 = vmatpush1.bf16.xpose.msra.mxu0 %v4599_v5  ;;  %3920 = vmatpush1.bf16.xpose.msra.mxu1 %v4601_v58  ;;  %v2710_v58 = vld [vmem:[%s5292_s3 + $0x90] sm:$0xff] }
 0xf2b   : > { %3880 = vmatprep.subr.bf16.mxu0 %v4616_v59  ;;  %3921 = vmatprep.subr.bf16.mxu1 %v4618_v44  ;;  %v2718_v59 = vld [vmem:[%s5292_s3 + $0xd0] sm:$0xff] }
 0xf32   : > { %3881 = vmatpush1.bf16.xpose.msra.mxu0 %v4615_v29  ;;  %3922 = vmatpush1.bf16.xpose.msra.mxu1 %v4617_v22  ;;  %v2719_v29 = vld [vmem:[%s5292_s3 + $0xd8] sm:$0xff] }
 0xf33   : > { %3882 = vmatprep.subr.bf16.mxu0 %v4632_v15  ;;  %3923 = vmatprep.subr.bf16.mxu1 %v4634_v48  ;;  %v4622_v18 = vcombine.high %v2711_v6, %v2719_v29  ;;  %v4621_v60 = vcombine.low %v2711_v6, %v2719_v29 }
 0xf3a   : > { %3883 = vmatpush1.bf16.xpose.msra.mxu0 %v4631_v10  ;;  %3924 = vmatpush1.bf16.xpose.msra.mxu1 %v4633_v52  ;;  %v4620_v52 = vcombine.high %v2710_v58, %v2718_v59 }
 0xf3b   : > { %3884 = vmatprep.subr.bf16.mxu0 %v4648_v20  ;;  %3925 = vmatprep.subr.bf16.mxu1 %v4650_v27  ;;  %v2726_v20 = vld [vmem:[%s5292_s3 + $0x110] sm:$0xff]  ;;  %v2727_v27 = vld [vmem:[%s5292_s3 + $0x118] sm:$0xff] }
 0xf42   : > { %3885 = vmatpush1.bf16.xpose.msra.mxu0 %v4647_v50  ;;  %3926 = vmatpush1.bf16.xpose.msra.mxu1 %v4649_v23  ;;  %v2790_v50 = vrot.slane %v2690_v36, %v5593_v0  ;;  %v2734_v23 = vld [vmem:[%s5292_s3 + $0x150] sm:$0xff] }
 0xf43   : > { %3960 = vmatprep.subr.bf16.mxu0 %v4604_v30  ;;  %4001 = vmatprep.subr.bf16.mxu1 %v4606_v63  ;;  %v4619_v30 = vcombine.low %v2710_v58, %v2718_v59 }
 0xfc7   : > { %v3196_v4 = vpop.f32.mrb[32].mxu0  ;;  %v3239_v19 = vpop.f32.mrb[40].mxu1 }
 0xfc8   : > { %v3197_v61 = vadd.f32 %v3196_v4, %v2762_v1  ;;  %v3240_v34 = vadd.f32 %v3239_v19, %v2770_v2  ;;  %v3198_v33 = vpop.f32.mrb[33].mxu0  ;;  %v3241_v17 = vpop.f32.mrb[41].mxu1 }
 0xfc9   : > { %v3199_v40 = vadd.f32 %v3198_v33, %v2766_v3  ;;  %v3242_v26 = vadd.f32 %v3241_v17, %v2774_v39  ;;  %v3200_v42 = vpop.f32.mrb[34].mxu0  ;;  %v3243_v47 = vpop.f32.mrb[42].mxu1 }
 0xfca   : > { %v3201_v37 = vadd.f32 %v3200_v42, %v2762_v1  ;;  %v3244_v54 = vadd.f32 %v3243_v47, %v2770_v2  ;;  %v3202_v53 = vpop.f32.mrb[35].mxu0  ;;  %v3245_v55 = vpop.f32.mrb[43].mxu1  ;;  %v3506_v9 = vmax.f32 %v3197_v61, 0.0  ;;  %v3508_v45 = vmax.f32 %v3240_v34, 0.0 }
 0xfcb   : > { %v3203_v38 = vadd.f32 %v3202_v53, %v2766_v3  ;;  %v3246_v57 = vadd.f32 %v3245_v55, %v2774_v39  ;;  %v3507_v44 = vmax.f32 %v3199_v40, 0.0  ;;  %v3509_v56 = vmax.f32 %v3242_v26, 0.0  ;;  %v2742_v53 = vld [vmem:[%s5292_s3 + $0x190] sm:$0xff] }
 0xfcc   : > { %v3522_v8 = vmax.f32 %v3201_v37, 0.0  ;;  %v3524_v5 = vmax.f32 %v3244_v54, 0.0  ;;  %v4636_v2 = vcombine.high %v2726_v20, %v2734_v23  ;;  %v4638_v3 = vcombine.high %v2727_v27, %v2735_v12  ;;  %v2750_v55 = vld [vmem:[%s5292_s3 + $0x1d0] sm:$0xff] }
 0xfcd   : > { %v3523_v11 = vmax.f32 %v3203_v38, 0.0  ;;  %v3525_v13 = vmax.f32 %v3246_v57, 0.0  ;;  %v4652_v6 = vcombine.high %v2742_v53, %v2750_v55 }
 0xfce   : > { %v3538_v22 = vpack.c.bf16 %v3522_v8, %v3506_v9  ;;  %v3540_v15 = vpack.c.bf16 %v3524_v5, %v3508_v45  ;;  %v2743_v8 = vld [vmem:[%s5292_s3 + $0x198] sm:$0xff] }
 0xfcf   : > { %v3539_v48 = vpack.c.bf16 %v3523_v11, %v3507_v44  ;;  %v3541_v10 = vpack.c.bf16 %v3525_v13, %v3509_v56  ;;  %v2751_v5 = vld [vmem:[%s5292_s3 + $0x1d8] sm:$0xff]  ;;  %v4635_v11 = vcombine.low %v2726_v20, %v2734_v23  ;;  %v4637_v13 = vcombine.low %v2727_v27, %v2735_v12  ;;  %v2705_v20 = vld [vmem:[%s5292_s3 + $0x68] sm:$0xff] }
 0xfd0   : > { %v4654_v29 = vcombine.high %v2743_v8, %v2751_v5  ;;  %v4651_v23 = vcombine.low %v2742_v53, %v2750_v55  ;;  %v4653_v27 = vcombine.low %v2743_v8, %v2751_v5  ;;  %v2721_v53 = vld [vmem:[%s5292_s3 + $0xe8] sm:$0xff] }
 0xfd1   : > { %3910 = vmatprep.mubr.bf16.mxu0 %v3539_v48  ;;  %3951 = vmatprep.mubr.bf16.mxu1 %v3541_v10  ;;  %v2696_v10 = vld [vmem:[%s5292_s3 + $0x20] sm:$0xff] }
 0xfd2   : > { %3911 = vmatmul.mubr.bf16.vlgmr.msra.gmra.mrb[48].mxu0 %v3538_v22  ;;  %3952 = vmatmul.mubr.bf16.vlgmr.msra.gmra.mrb[56].mxu1 %v3540_v15  ;;  %v5951_v22 = vld [vmem:[%s5287_s23 + $0x8] sm:$0xff] }
 0xfd3   : > { %3961 = vmatpush1.bf16.xpose.msra.mxu0 %v4603_v62  ;;  %4002 = vmatpush1.bf16.xpose.msra.mxu1 %v4605_v46  ;;  %v2794_v15 = vrot.slane %v5951_v22, %v5360_v31  ;;  %v2802_v48 = vrot.slane %v5951_v22, %v5483_v43  ;;  %v2810_v5 = vrot.slane %v5951_v22, %v5568_v49 }
 0xfd4   : > { %3962 = vmatprep.subr.bf16.mxu0 %v4620_v52  ;;  %4003 = vmatprep.subr.bf16.mxu1 %v4622_v18  ;;  %v2798_v52 = vrot.slane %v5951_v22, %v5363_v32  ;;  %v2806_v18 = vrot.slane %v5951_v22, %v5528_v41 }
 0xfd7   : > { %v3282_v51 = vpop.f32.mrb[36].mxu0  ;;  %v3325_v35 = vpop.f32.mrb[44].mxu1 }
 0xfd8   : > { %v3283_v62 = vadd.f32 %v3282_v51, %v2778_v25  ;;  %v3326_v46 = vadd.f32 %v3325_v35, %v2786_v16  ;;  %v3284_v63 = vpop.f32.mrb[37].mxu0  ;;  %v3327_v1 = vpop.f32.mrb[45].mxu1 }
 0xfd9   : > { %v3285_v39 = vadd.f32 %v3284_v63, %v2782_v21  ;;  %v3328_v4 = vadd.f32 %v3327_v1, %v2790_v50  ;;  %v3286_v19 = vpop.f32.mrb[38].mxu0  ;;  %v3329_v61 = vpop.f32.mrb[46].mxu1 }
 0xfda   : > { %v3287_v36 = vadd.f32 %v3286_v19, %v2778_v25  ;;  %v3330_v34 = vadd.f32 %v3329_v61, %v2786_v16  ;;  %v3288_v33 = vpop.f32.mrb[39].mxu0  ;;  %v3331_v17 = vpop.f32.mrb[47].mxu1  ;;  %v3510_v42 = vmax.f32 %v3283_v62, 0.0  ;;  %v3512_v47 = vmax.f32 %v3326_v46, 0.0  ;;  %v2704_v25 = vld [vmem:[%s5292_s3 + $0x60] sm:$0xff]  ;;  %v2697_v16 = vld [vmem:[%s5292_s3 + $0x28] sm:$0xff] }
 0xfdb   : > { %v3289_v40 = vadd.f32 %v3288_v33, %v2782_v21  ;;  %v3332_v26 = vadd.f32 %v3331_v17, %v2790_v50  ;;  %3963 = vmatpush1.bf16.xpose.msra.mxu0 %v4619_v30  ;;  %4004 = vmatpush1.bf16.xpose.msra.mxu1 %v4621_v60  ;;  %v3511_v38 = vmax.f32 %v3285_v39, 0.0  ;;  %v3513_v57 = vmax.f32 %v3328_v4, 0.0 }
 0xfdc   : > { %v3526_v37 = vmax.f32 %v3287_v36, 0.0  ;;  %v3528_v54 = vmax.f32 %v3330_v34, 0.0  ;;  %3964 = vmatprep.subr.bf16.mxu0 %v4636_v2  ;;  %4005 = vmatprep.subr.bf16.mxu1 %v4638_v3  ;;  %v4608_v35 = vcombine.high %v2696_v10, %v2704_v25  ;;  %v4610_v30 = vcombine.high %v2697_v16, %v2705_v20 }
 0xfdd   : > { %v3527_v9 = vmax.f32 %v3289_v40, 0.0  ;;  %v3529_v45 = vmax.f32 %v3332_v26, 0.0  ;;  %v2712_v26 = vld [vmem:[%s5292_s3 + $0xa0] sm:$0xff] }
 0xfde   : > { %v5946_v58 = vpack.c.bf16 %v3526_v37, %v3510_v42  ;;  %v5948_v59 = vpack.c.bf16 %v3528_v54, %v3512_v47  ;;  %v2720_v37 = vld [vmem:[%s5292_s3 + $0xe0] sm:$0xff]  ;;  %v2713_v54 = vld [vmem:[%s5292_s3 + $0xa8] sm:$0xff] }
 0xfdf   : > { %v3543_v44 = vpack.c.bf16 %v3527_v9, %v3511_v38  ;;  %v3545_v56 = vpack.c.bf16 %v3529_v45, %v3513_v57  ;;  %v4607_v57 = vcombine.low %v2696_v10, %v2704_v25  ;;  %v4609_v9 = vcombine.low %v2697_v16, %v2705_v20 }
 0xfe0   : > { %v4624_v45 = vcombine.high %v2712_v26, %v2720_v37  ;;  %v4626_v8 = vcombine.high %v2713_v54, %v2721_v53  ;;  %v4625_v16 = vcombine.low %v2713_v54, %v2721_v53  ;;  %v2706_v54 = vld [vmem:[%s5292_s3 + $0x70] sm:$0xff]  ;;  %v2699_v53 = vld [vmem:[%s5292_s3 + $0x38] sm:$0xff] }
 0xfe1   : > { %3992 = vmatprep.mubr.bf16.mxu0 %v3543_v44  ;;  %4033 = vmatprep.mubr.bf16.mxu1 %v3545_v56  ;;  %v2818_v44 = vrot.slane %v5951_v22, %v5612_v14  ;;  %v2814_v56 = vrot.slane %v5951_v22, %v5573_v28 }
 0xfe3   : > { %3965 = vmatpush1.bf16.xpose.msra.mxu0 %v4635_v11  ;;  %4006 = vmatpush1.bf16.xpose.msra.mxu1 %v4637_v13  ;;  %v2822_v11 = vrot.slane %v5951_v22, %v5593_v0  ;;  %v2729_v13 = vld [vmem:[%s5292_s3 + $0x128] sm:$0xff] }
 0xfe4   : > { %3966 = vmatprep.subr.bf16.mxu0 %v4652_v6  ;;  %4007 = vmatprep.subr.bf16.mxu1 %v4654_v29  ;;  %v2737_v6 = vld [vmem:[%s5292_s3 + $0x168] sm:$0xff] }
 0xfe5   : > { %v4642_v0 = vcombine.high %v2729_v13, %v2737_v6 }
 0xfe7   : > { %v3368_v21 = vpop.f32.mrb[40].mxu0  ;;  %v3411_v50 = vpop.f32.mrb[48].mxu1 }
 0xfe8   : > { %v3369_v31 = vadd.f32 %v3368_v21, %v2794_v15  ;;  %v3412_v12 = vadd.f32 %v3411_v50, %v2802_v48  ;;  %v3370_v51 = vpop.f32.mrb[41].mxu0  ;;  %v3413_v43 = vpop.f32.mrb[49].mxu1 }
 0xfe9   : > { %v3371_v60 = vadd.f32 %v3370_v51, %v2798_v52  ;;  %v3414_v62 = vadd.f32 %v3413_v43, %v2806_v18  ;;  %v3372_v46 = vpop.f32.mrb[42].mxu0  ;;  %v3415_v32 = vpop.f32.mrb[50].mxu1 }
 0xfea   : > { %v3373_v63 = vadd.f32 %v3372_v46, %v2794_v15  ;;  %v3416_v1 = vadd.f32 %v3415_v32, %v2802_v48  ;;  %v3374_v41 = vpop.f32.mrb[43].mxu0  ;;  %v3417_v2 = vpop.f32.mrb[51].mxu1  ;;  %v3514_v4 = vmax.f32 %v3369_v31, 0.0  ;;  %v3516_v19 = vmax.f32 %v3412_v12, 0.0 }
 0xfeb   : > { %v3375_v3 = vadd.f32 %v3374_v41, %v2798_v52  ;;  %v3418_v39 = vadd.f32 %v3417_v2, %v2806_v18  ;;  %3967 = vmatpush1.bf16.xpose.msra.mxu0 %v4651_v23  ;;  %4008 = vmatpush1.bf16.xpose.msra.mxu1 %v4653_v27  ;;  %v3515_v34 = vmax.f32 %v3371_v60, 0.0  ;;  %v3517_v33 = vmax.f32 %v3414_v62, 0.0  ;;  %v2744_v2 = vld [vmem:[%s5292_s3 + $0x1a0] sm:$0xff] }
 0xfec   : > { %v3530_v61 = vmax.f32 %v3373_v63, 0.0  ;;  %v3532_v36 = vmax.f32 %v3416_v1, 0.0  ;;  %4042 = vmatprep.subr.bf16.mxu0 %v4608_v35  ;;  %4083 = vmatprep.subr.bf16.mxu1 %v4610_v30  ;;  %v4623_v48 = vcombine.low %v2712_v26, %v2720_v37  ;;  %v2698_v37 = vld [vmem:[%s5292_s3 + $0x30] sm:$0xff] }
 0xfed   : > { %v3531_v17 = vmax.f32 %v3375_v3, 0.0  ;;  %v3533_v40 = vmax.f32 %v3418_v39, 0.0  ;;  %v2752_v3 = vld [vmem:[%s5292_s3 + $0x1e0] sm:$0xff] }
 0xfee   : > { %v5966_v42 = vpack.c.bf16 %v3530_v61, %v3514_v4  ;;  %v5968_v47 = vpack.c.bf16 %v3532_v36, %v3516_v19  ;;  %v2745_v19 = vld [vmem:[%s5292_s3 + $0x1a8] sm:$0xff] }
 0xfef   : > { %v3547_v55 = vpack.c.bf16 %v3531_v17, %v3515_v34  ;;  %v3549_v38 = vpack.c.bf16 %v3533_v40, %v3517_v33  ;;  %v2753_v61 = vld [vmem:[%s5292_s3 + $0x1e8] sm:$0xff]  ;;  %v4641_v17 = vcombine.low %v2729_v13, %v2737_v6  ;;  %v4656_v40 = vcombine.high %v2744_v2, %v2752_v3  ;;  %v2730_v6 = vld [vmem:[%s5292_s3 + $0x130] sm:$0xff] }
 0xff0   : > { %v4658_v26 = vcombine.high %v2745_v19, %v2753_v61 }
 0xff2   : > { %3993 = vmatmul.mubr.bf16.vlgmr.msra.gmra.mrb[52].mxu0 %v5946_v58  ;;  %4034 = vmatmul.mubr.bf16.vlgmr.msra.gmra.mrb[60].mxu1 %v5948_v59  ;;  %v2728_v58 = vld [vmem:[%s5292_s3 + $0x120] sm:$0xff] }
 0xff3   : > { %4043 = vmatpush1.bf16.xpose.msra.mxu0 %v4607_v57  ;;  %4074 = vmatprep.mubr.bf16.mxu0 %v3547_v55  ;;  %v2736_v59 = vld [vmem:[%s5292_s3 + $0x160] sm:$0xff]  ;;  %v2707_v55 = vld [vmem:[%s5292_s3 + $0x78] sm:$0xff]  ;;  %v4657_v57 = vcombine.low %v2745_v19, %v2753_v61 }
 0xff4   : > { %4084 = vmatpush1.bf16.xpose.msra.mxu1 %v4609_v9  ;;  %4115 = vmatprep.mubr.bf16.mxu1 %v3549_v38  ;;  %v4640_v20 = vcombine.high %v2728_v58, %v2736_v59  ;;  %v4639_v33 = vcombine.low %v2728_v58, %v2736_v59  ;;  %v4655_v38 = vcombine.low %v2744_v2, %v2752_v3 }
 0xff5   : > { %4044 = vmatprep.subr.bf16.mxu0 %v4624_v45  ;;  %4085 = vmatprep.subr.bf16.mxu1 %v4626_v8  ;;  %v4612_v9 = vcombine.high %v2698_v37, %v2706_v54  ;;  %v4614_v45 = vcombine.high %v2699_v53, %v2707_v55  ;;  %v2714_v8 = vld [vmem:[%s5292_s3 + $0xb0] sm:$0xff]  ;;  %v4613_v58 = vcombine.low %v2699_v53, %v2707_v55 }
 0xff7   : > { %v3454_v29 = vpop.f32.mrb[44].mxu0  ;;  %v3497_v15 = vpop.f32.mrb[52].mxu1 }
 0xff8   : > { %v3455_v10 = vadd.f32 %v3454_v29, %v2810_v5  ;;  %v3498_v52 = vadd.f32 %v3497_v15, %v2818_v44  ;;  %v3456_v18 = vpop.f32.mrb[45].mxu0  ;;  %v3499_v25 = vpop.f32.mrb[53].mxu1  ;;  %v2738_v29 = vld [vmem:[%s5292_s3 + $0x170] sm:$0xff]  ;;  %v2731_v15 = vld [vmem:[%s5292_s3 + $0x138] sm:$0xff] }
 0xff9   : > { %v3457_v21 = vadd.f32 %v3456_v18, %v2814_v56  ;;  %v3500_v50 = vadd.f32 %v3499_v25, %v2822_v11  ;;  %v3458_v23 = vpop.f32.mrb[46].mxu0  ;;  %v3501_v27 = vpop.f32.mrb[54].mxu1  ;;  %v2754_v25 = vld [vmem:[%s5292_s3 + $0x1f0] sm:$0xff] }
 0xffa   : > { %v3459_v22 = vadd.f32 %v3458_v23, %v2810_v5  ;;  %v3502_v31 = vadd.f32 %v3501_v27, %v2818_v44  ;;  %v3460_v12 = vpop.f32.mrb[47].mxu0  ;;  %v3503_v51 = vpop.f32.mrb[55].mxu1  ;;  %v3518_v30 = vmax.f32 %v3455_v10, 0.0  ;;  %v3520_v60 = vmax.f32 %v3498_v52, 0.0  ;;  %v2722_v5 = vld [vmem:[%s5292_s3 + $0xf0] sm:$0xff] }
 0xffb   : > { %v3461_v43 = vadd.f32 %v3460_v12, %v2814_v56  ;;  %v3504_v35 = vadd.f32 %v3503_v51, %v2822_v11  ;;  %4045 = vmatpush1.bf16.xpose.msra.mxu0 %v4623_v48  ;;  %v3519_v32 = vmax.f32 %v3457_v21, 0.0  ;;  %v3521_v63 = vmax.f32 %v3500_v50, 0.0  ;;  %v2715_v56 = vld [vmem:[%s5292_s3 + $0xb8] sm:$0xff] }
 0xffc   : > { %v3534_v62 = vmax.f32 %v3459_v22, 0.0  ;;  %v3536_v46 = vmax.f32 %v3502_v31, 0.0  ;;  %4086 = vmatpush1.bf16.xpose.msra.mxu1 %v4625_v16  ;;  %4046 = vmatprep.subr.bf16.mxu0 %v4640_v20  ;;  %v4611_v44 = vcombine.low %v2698_v37, %v2706_v54  ;;  %v2723_v11 = vld [vmem:[%s5292_s3 + $0xf8] sm:$0xff]  ;;  %v4628_v59 = vcombine.high %v2714_v8, %v2722_v5  ;;  %v6016_v31 = vld [vmem:[%s5297_s22 + $0x8] sm:$0x7f] }
 0xffd   : > { %v3535_v1 = vmax.f32 %v3461_v43, 0.0  ;;  %v3537_v41 = vmax.f32 %v3504_v35, 0.0  ;;  %4087 = vmatprep.subr.bf16.mxu1 %v4642_v0  ;;  %v4630_v13 = vcombine.high %v2715_v56, %v2723_v11  ;;  %v2739_v48 = vld [vmem:[%s5292_s3 + $0x178] sm:$0xff]  ;;  %v4627_v10 = vcombine.low %v2714_v8, %v2722_v5 }
 0xffe   : > { %v5989_v39 = vpack.c.bf16 %v3534_v62, %v3518_v30  ;;  %v5991_v4 = vpack.c.bf16 %v3536_v46, %v3520_v60  ;;  %v4629_v52 = vcombine.low %v2715_v56, %v2723_v11  ;;  %v4646_v18 = vcombine.high %v2731_v15, %v2739_v48  ;;  %v2747_v16 = vld [vmem:[%s5292_s3 + $0x1b8] sm:$0xff] }
 0xfff   : > { %v3551_v36 = vpack.c.bf16 %v3535_v1, %v3519_v32  ;;  %v3553_v34 = vpack.c.bf16 %v3537_v41, %v3521_v63  ;;  %v2755_v20 = vld [vmem:[%s5292_s3 + $0x1f8] sm:$0xff]  ;;  %v4643_v21 = vcombine.low %v2730_v6, %v2738_v29  ;;  %v4645_v50 = vcombine.low %v2731_v15, %v2739_v48 }
0x1000   : > { %v4662_v27 = vcombine.high %v2747_v16, %v2755_v20  ;;  %v4661_v22 = vcombine.low %v2747_v16, %v2755_v20  ;;  %v3557_v12 = vrot.slane %v6016_v31, %v5568_v49 }
0x1003   : > { %4047 = vmatpush1.bf16.xpose.msra.mxu0 %v4639_v33 }
0x1004   : > { %4088 = vmatpush1.bf16.xpose.msra.mxu1 %v4641_v17  ;;  %4048 = vmatprep.subr.bf16.mxu0 %v4656_v40 }
0x1005   : > { %4089 = vmatprep.subr.bf16.mxu1 %v4658_v26 }
0x100b   : > { %4049 = vmatpush1.bf16.xpose.msra.mxu0 %v4655_v38 }
0x100c   : > { %4090 = vmatpush1.bf16.xpose.msra.mxu1 %v4657_v57  ;;  %4124 = vmatprep.subr.bf16.mxu0 %v4612_v9 }
0x100d   : > { %4165 = vmatprep.subr.bf16.mxu1 %v4614_v45 }
0x1012   : > { %4075 = vmatmul.mubr.bf16.vlgmr.msra.gmra.mrb[56].mxu0 %v5966_v42  ;;  %v4644_v42 = vcombine.high %v2730_v6, %v2738_v29 }
0x1013   : > { %4116 = vmatmul.mubr.bf16.vlgmr.msra.gmra.mrb[64].mxu1 %v5968_v47  ;;  %4125 = vmatpush1.bf16.xpose.msra.mxu0 %v4611_v44  ;;  %v2746_v47 = vld [vmem:[%s5292_s3 + $0x1b0] sm:$0xff]  ;;  %s6098_s3 = sld [smem:[#allocation17_spill]] }
0x1014   : > { %4156 = vmatprep.mubr.bf16.mxu0 %v3551_v36  ;;  %4166 = vmatpush1.bf16.xpose.msra.mxu1 %v4613_v58  ;;  %v4660_v23 = vcombine.high %v2746_v47, %v2754_v25  ;;  %v4659_v0 = vcombine.low %v2746_v47, %v2754_v25 }
0x1015   : > { %4197 = vmatprep.mubr.bf16.mxu1 %v3553_v34  ;;  %4126 = vmatprep.subr.bf16.mxu0 %v4628_v59 }
0x1016   : > { %4167 = vmatprep.subr.bf16.mxu1 %v4630_v13 }
0x101b   : > { %4127 = vmatpush1.bf16.xpose.msra.mxu0 %v4627_v10 }
0x101c   : > { %4168 = vmatpush1.bf16.xpose.msra.mxu1 %v4629_v52  ;;  %4128 = vmatprep.subr.bf16.mxu0 %v4644_v42 }
0x101d   : > { %4169 = vmatprep.subr.bf16.mxu1 %v4646_v18 }
0x1023   : > { %4129 = vmatpush1.bf16.xpose.msra.mxu0 %v4643_v21 }
0x1024   : > { %4170 = vmatpush1.bf16.xpose.msra.mxu1 %v4645_v50  ;;  %4130 = vmatprep.subr.bf16.mxu0 %v4660_v23 }
0x1025   : > { %4171 = vmatprep.subr.bf16.mxu1 %v4662_v27 }
0x102b   : > { %4131 = vmatpush1.bf16.xpose.msra.mxu0 %v4659_v0 }
0x102c   : > { %4172 = vmatpush1.bf16.xpose.msra.mxu1 %v4661_v22 }
0x1032   : > { %4157 = vmatmul.mubr.bf16.vlgmr.msra.gmra.mrb[60].mxu0 %v5989_v39 }
0x1033   : > { %4198 = vmatmul.mubr.bf16.vlgmr.msra.gmra.mrb[68].mxu1 %v5991_v4 }
0x10a5   : > { %v3912_v51 = vpop.f32.mrb[48].mxu0  ;;  %v3953_v43 = vpop.f32.mrb[56].mxu1 }
0x10a6   : > { %v3913_v35 = vadd.f32 %v3912_v51, %v3557_v12  ;;  %v3914_v30 = vpop.f32.mrb[49].mxu0  ;;  %v3955_v60 = vpop.f32.mrb[57].mxu1 }
0x10a7   : > { %v3915_v62 = vpop.f32.mrb[50].mxu0  ;;  %v3956_v46 = vpop.f32.mrb[58].mxu1 }
0x10a8   : > { %v3954_v32 = vadd.f32 %v3953_v43, %v3913_v35  ;;  %v3916_v63 = vadd.f32 %v3915_v62, %v3557_v12  ;;  %v3917_v1 = vpop.f32.mrb[51].mxu0  ;;  %v3958_v41 = vpop.f32.mrb[59].mxu1 }
0x10a9   : > { %v4243_v41 = vrot.slane %v6016_v31, %v5612_v14 }
0x10aa   : > { %v3957_v2 = vadd.f32 %v3956_v46, %v3916_v63 }
0x10c5   : > { %v3994_v3 = vpop.f32.mrb[52].mxu0  ;;  %v4035_v39 = vpop.f32.mrb[60].mxu1 }
0x10c6   : > { %v3995_v4 = vadd.f32 %v3994_v3, %v3954_v32  ;;  %v3996_v19 = vpop.f32.mrb[53].mxu0  ;;  %v4037_v61 = vpop.f32.mrb[61].mxu1  ;;  %v4237_v32 = vrot.slane %v6016_v31, %v5573_v28  ;;  %v4664_v31 = vld [vmem:[#allocation3] ss:$0 sm:$0xff] }
0x10c7   : > { %v3997_v36 = vpop.f32.mrb[54].mxu0  ;;  %v4038_v34 = vpop.f32.mrb[62].mxu1 }
0x10c8   : > { %v4036_v49 = vadd.f32 %v4035_v39, %v3995_v4  ;;  %v3998_v33 = vadd.f32 %v3997_v36, %v3957_v2  ;;  %v3999_v17 = vpop.f32.mrb[55].mxu0  ;;  %v4040_v40 = vpop.f32.mrb[63].mxu1  ;;  %v4663_v4 = vld [vmem:[%s6097_s0] ss:$0 sm:$0xff] }
0x10ca   : > { %v4039_v26 = vadd.f32 %v4038_v34, %v3998_v33 }
0x10e5   : > { %v4076_v37 = vpop.f32.mrb[56].mxu0 }
0x10e6   : > { %v4077_v54 = vadd.f32 %v4076_v37, %v4036_v49  ;;  %v4117_v53 = vpop.f32.mrb[64].mxu1  ;;  %v4078_v55 = vpop.f32.mrb[57].mxu0 }
0x10e7   : > { %v4119_v38 = vpop.f32.mrb[65].mxu1  ;;  %v4079_v57 = vpop.f32.mrb[58].mxu0 }
0x10e8   : > { %v4118_v9 = vadd.f32 %v4117_v53, %v4077_v54  ;;  %v4080_v45 = vadd.f32 %v4079_v57, %v4039_v26  ;;  %v4120_v8 = vpop.f32.mrb[66].mxu1  ;;  %v4081_v5 = vpop.f32.mrb[59].mxu0 }
0x10e9   : > { %v4122_v44 = vpop.f32.mrb[67].mxu1 }
0x10ea   : > { %v4121_v56 = vadd.f32 %v4120_v8, %v4080_v45 }
0x1105   : > { %v4158_v11 = vpop.f32.mrb[60].mxu0 }
0x1106   : > { %v4159_v58 = vadd.f32 %v4158_v11, %v4118_v9  ;;  %v4199_v59 = vpop.f32.mrb[68].mxu1  ;;  %v4160_v13 = vpop.f32.mrb[61].mxu0 }
0x1107   : > { %v4201_v6 = vpop.f32.mrb[69].mxu1  ;;  %v4161_v29 = vpop.f32.mrb[62].mxu0 }
0x1108   : > { %v4200_v15 = vadd.f32 %v4199_v59, %v4159_v58  ;;  %v4162_v48 = vadd.f32 %v4161_v29, %v4121_v56  ;;  %v4202_v10 = vpop.f32.mrb[70].mxu1  ;;  %v4163_v52 = vpop.f32.mrb[63].mxu0 }
0x1109   : > { %v4204_v42 = vpop.f32.mrb[71].mxu1 }
0x110a   : > { %v4203_v18 = vadd.f32 %v4202_v10, %v4162_v48  ;;  %v4206_v47 = vadd.f32 %v4200_v15, %v5835_v24 }
0x110c   : > { %v4208_v25 = vsel %vm918_vm2, %v4206_v47, 0.0  ;;  %v4207_v16 = vadd.f32 %v4203_v18, %v5837_v7 }
0x110d   : > { %4209 = vadd.xlane.f32.xlu0 %v4208_v25 }
0x110e   : > { %v4211_v20 = vsel %vm918_vm2, %v4207_v16, 0.0 }
0x110f   : > { %4212 = vadd.xlane.f32.xlu1 %v4211_v20 }
0x119a   : > { %v4210_v21 = vpop.xlane.xlu0 %4209 }
0x119b   : > { %v4214_v50 = vmul.f32 0.015625, %v4210_v21 }
0x119c   : > { %v4213_v23 = vpop.xlane.xlu1 %4212 }
0x119d   : > { %v4216_v27 = vsub.f32 %v4206_v47, %v4214_v50  ;;  %v4215_v0 = vmul.f32 0.015625, %v4213_v23 }
0x119f   : > { %v4217_v22 = vsub.f32 %v4207_v16, %v4215_v0  ;;  %v4218_v12 = vmul.f32 %v4216_v27, %v4216_v27 }
0x11a1   : > { %v4220_v51 = vsel %vm918_vm2, %v4218_v12, 0.0  ;;  %v4219_v43 = vmul.f32 %v4217_v22, %v4217_v22 }
0x11a2   : > { %4221 = vadd.xlane.f32.xlu0 %v4220_v51 }
0x11a3   : > { %v4223_v24 = vsel %vm918_vm2, %v4219_v43, 0.0 }
0x11a4   : > { %4224 = vadd.xlane.f32.xlu1 %v4223_v24 }
0x122f   : > { %v4222_v35 = vpop.xlane.xlu0 %4221 }
0x1230   : > { %v4226_v7 = vmul.f32 0.015625, %v4222_v35 }
0x1231   : > { %v4225_v30 = vpop.xlane.xlu1 %4224 }
0x1232   : > { %v4228_v60 = vadd.f32 1e-05, %v4226_v7  ;;  %v4227_v62 = vmul.f32 0.015625, %v4225_v30 }
0x1234   : > { %5110 = vrsqrt.f32 %v4228_v60  ;;  %v4229_v46 = vadd.f32 1e-05, %v4227_v62 }
0x1236   : > { %5112 = vrsqrt.f32 %v4229_v46 }
0x123e   : > { %v5111_v63 = vpop.eup %5110 }
0x123f   : > { %v4232_v1 = vmul.f32 %v5111_v63, %v4216_v27 }
0x1240   : > { %v5113_v2 = vpop.eup %5112 }
0x1241   : > { %v4238_v3 = vmul.f32 %v4237_v32, %v4232_v1  ;;  %v4233_v39 = vmul.f32 %v5113_v2, %v4217_v22 }
0x1243   : > { %v4244_v19 = vadd.f32 %v4243_v41, %v4238_v3  ;;  %v4239_v61 = vmul.f32 %v4237_v32, %v4233_v39 }
0x1245   : > { %v4255_v36 = vmul.f32 %v4663_v4, %v4244_v19  ;;  %4246 = vst.msk [vmem:[#allocation2] sm:$0xff] %vm918_vm2, %v4244_v19  ;;  %v4245_v34 = vadd.f32 %v4243_v41, %v4239_v61 }
0x1247   : > { %v4257_v28 = vsel %vm918_vm2, %v4255_v36, 0.0  ;;  %v4256_v49 = vmul.f32 %v4663_v4, %v4245_v34  ;;  %4247 = vst.msk [vmem:[#allocation2 + $0x8] sm:$0xff] %vm918_vm2, %v4245_v34 }
0x1248   : > { %4258 = vadd.xlane.f32.xlu0 %v4257_v28 }
0x1249   : > { %v4260_v14 = vsel %vm918_vm2, %v4256_v49, 0.0 }
0x124a   : > { %4261 = vadd.xlane.f32.xlu1 %v4260_v14 }
0x12d5   : > { %v4259_v33 = vpop.xlane.xlu0 %4258 }
0x12d6   : > { %v4270_v17 = vadd.f32 %v4664_v31, %v4259_v33 }
0x12d7   : > { %v4262_v40 = vpop.xlane.xlu1 %4261 }
0x12d8   : > { %4273 = vst.msk [vmem:[%s6098_s3] sm:$0xff] %vm4272_vm1, %v4270_v17  ;;  %v4271_v26 = vadd.f32 %v4664_v31, %v4262_v40 }
0x12da   : > { %4274 = vst.msk [vmem:[%s6098_s3 + $0x8] sm:$0xff] %vm4272_vm1, %v4271_v26 }
0x12db PF: > { %s6099_s11 = sld [smem:[#allocation4_spill]] }
0x12e1   : > { %s31_s20 = sadd.s32 1, %s6099_s11  }
0x12e2   : > { %p28_p5 = scmp.ge.s32.totalorder %s31_s20, 5  }
0x12e4   :  { %30 = sbr.rel (!%p28_p5) target bundleno = 14 (0xe), region = 159 }

</bundles_post_ra>
